<compile_context>
chip_gen: v5e
topology: v5e:2x2
jax: 0.10.0
libtpu: 0.0.40
codegen_flags: <defaults>
</compile_context>

<pallas_src>
import functools

import jax
import jax.numpy as jnp
import numpy as np
from jax import lax
from jax.experimental import pallas as pl
from jax.experimental.pallas import tpu as pltpu


def _round_up(x, m):
    return (x + m - 1) // m * m


def _pick_batch_tile(B, batch_tile):
    """Largest batch tile <= batch_tile that keeps blocks (8,128)-legal."""
    if B <= batch_tile:
        return B                      # fold whole batch into one grid step
    for d in range(min(batch_tile, B), 7, -1):
        if B % d == 0 and d % 8 == 0:
            return d                  # sublane-aligned divisor
    return B                          # no aligned divisor: single tile


# ----------------------------------------------------------------------------
# Pallas kernel: BiLSTM + masked mean pooling + final Linear (fused)
# ----------------------------------------------------------------------------
def bilstm_head_kernel(x_ref, mask_ref, wih_ref, b_ref, whh_f_ref, whh_b_ref,
                       fc_w_ref, fc_b_ref, out_ref, gxf_ref, gxb_ref,
                       *, t_chunk, rec_unroll):
    T, Bt, H = x_ref.shape
    G4 = 4 * H                                  # gates of one direction

    # ---- Phase 1: input projection for BOTH directions, chunked over T ----
    # Each chunk is one (Tc*Bt, H) @ (H, 8H) MXU pass whose result goes
    # straight to the f32 gate-pre-activation scratch: bounds live vregs /
    # store-slot pressure and keeps the matmul M near MXU height.
    n_chunks = T // t_chunk

    @pl.loop(0, n_chunks)
    def _(c):
        t0 = pl.multiple_of(c * t_chunk, t_chunk)
        xc = x_ref[pl.ds(t0, t_chunk)]                       # (Tc, Bt, H)
        g = jnp.dot(xc.reshape(t_chunk * Bt, H), wih_ref[...],
                    preferred_element_type=jnp.float32) + b_ref[...]
        g = g.reshape(t_chunk, Bt, 2 * G4)
        gxf_ref[pl.ds(t0, t_chunk)] = g[:, :, :G4]           # fwd gates
        gxb_ref[pl.ds(t0, t_chunk)] = g[:, :, G4:]           # bwd gates

    whh_f = whh_f_ref[...]                      # (H, 4H)
    whh_b = whh_b_ref[...]                      # (H, 4H)
    mm_dtype = whh_f.dtype

    def cell(gates, c):                         # gates: (Bt, 4H), [i|f|g|o]
        i = jax.nn.sigmoid(gates[:, 0 * H:1 * H])
        f = jax.nn.sigmoid(gates[:, 1 * H:2 * H])
        g = jnp.tanh(gates[:, 2 * H:3 * H])
        o = jax.nn.sigmoid(gates[:, 3 * H:4 * H])
        c_new = f * c + i * g
        return o * jnp.tanh(c_new), c_new

    # ---- Phase 2: fwd+bwd recurrences fused in one bounded-unroll loop ----
    # Two independent (Bt,H)@(H,4H) matmuls (no block-diag zero FLOPs); the
    # chains have no cross-dependencies, so within the unrolled body one
    # direction's gate math overlaps the other direction's MXU work.
    def step(t, carry):
        h_f, h_b, c_f, c_b, acc_f, acc_b = carry
        tb = T - 1 - t
        rec_f = jnp.dot(h_f.astype(mm_dtype), whh_f,
                        preferred_element_type=jnp.float32)
        rec_b = jnp.dot(h_b.astype(mm_dtype), whh_b,
                        preferred_element_type=jnp.float32)
        h_f, c_f = cell(gxf_ref[t] + rec_f, c_f)
        h_b, c_b = cell(gxb_ref[tb] + rec_b, c_b)
        acc_f = acc_f + h_f * mask_ref[t]       # mask-weighted sum (fwd @ t)
        acc_b = acc_b + h_b * mask_ref[tb]      # mask-weighted sum (bwd @ tb)
        return h_f, h_b, c_f, c_b, acc_f, acc_b

    z = jnp.zeros((Bt, H), jnp.float32)
    carry = (z, z, z, z, z, z)
    _, _, _, _, acc_f, acc_b = lax.fori_loop(0, T, step, carry,
                                             unroll=rec_unroll)

    # ---- Phase 3: MeanPooling + last_fc (lane-dense (Bt, Lp) store) ----
    sum_mask = jnp.maximum(jnp.sum(mask_ref[...], axis=0), 1e-9)      # (Bt, 1)
    pooled = jnp.concatenate([acc_f, acc_b], axis=-1) / sum_mask      # (Bt, 2H)
    logits = jnp.dot(pooled.astype(fc_w_ref.dtype), fc_w_ref[...],
                     preferred_element_type=jnp.float32) + fc_b_ref[...]
    out_ref[...] = logits.astype(out_ref.dtype)


# ----------------------------------------------------------------------------
# Wrapper (layout plumbing in plain JAX, kernel launch with a batch grid)
# ----------------------------------------------------------------------------
def llm_aes_head(x, attention_mask, params, *, compute_dtype=None,
                 batch_tile=128):
    """x: (B, T, H) hidden states; attention_mask: (B, T). Returns (B, L) f32.

    compute_dtype applies to matmul operands only (default bf16 — the native
    MXU dtype on v6e/v7x); gate math, h/c state and accumulation stay f32.
    """
    B, T, H = x.shape
    L = params["fc_w"].shape[0]
    Lp = _round_up(L, 128)
    dtype = jnp.bfloat16 if compute_dtype is None else compute_dtype

    Bt = _pick_batch_tile(B, batch_tile)
    nb = B // Bt

    # Phase-1 T chunk: largest divisor of T keeping chunk rows ~<= 256
    # (matmul M near MXU height; bounded live vregs for the gx store).
    row_cap = max(Bt, 256)
    t_chunk = 1
    for d in range(T, 0, -1):
        if T % d == 0 and d * Bt <= row_cap:
            t_chunk = d
            break
    rec_unroll = int(min(T, 8))          # bounded unroll of the recurrence

    # Time-major layouts: the serial loop indexes the cheap leading axis only.
    xt = jnp.swapaxes(x, 0, 1).astype(dtype)                        # (T, B, H)
    maskt = jnp.swapaxes(attention_mask.astype(jnp.float32), 0, 1)[:, :, None]

    # Gate packing: each direction's [i|f|g|o] gates are contiguous with
    # stride H (NO per-gate padding to 128) — for H=32 one direction's gates
    # fill exactly one 128-lane group.
    wih_both = jnp.concatenate(
        [params["wih_f"].T, params["wih_b"].T], axis=1).astype(dtype)  # (H,8H)
    b_both = jnp.concatenate(
        [params["bih_f"] + params["bhh_f"],
         params["bih_b"] + params["bhh_b"]]).astype(jnp.float32).reshape(1, 8 * H)
    whh_f_t = params["whh_f"].T.astype(dtype)                          # (H,4H)
    whh_b_t = params["whh_b"].T.astype(dtype)                          # (H,4H)
    fc_w_p = jnp.zeros((2 * H, Lp), dtype).at[:, :L].set(
        params["fc_w"].T.astype(dtype))
    fc_b_p = jnp.zeros((1, Lp), jnp.float32).at[0, :L].set(
        params["fc_b"].astype(jnp.float32))

    itemsize = jnp.dtype(dtype).itemsize
    weight_bytes = int((wih_both.size + whh_f_t.size + whh_b_t.size +
                        fc_w_p.size) * itemsize +
                       (b_both.size + fc_b_p.size) * 4)
    vmem_need = (2 * T * Bt * H * itemsize          # x block (double-buffered)
                 + 2 * T * Bt * 4                   # mask block
                 + weight_bytes                     # weights (single-buffered)
                 + 2 * T * Bt * 4 * H * 4           # gx scratch (fwd+bwd, f32)
                 + 2 * Bt * Lp * 4)                 # out block
    vmem_limit = int(min(max(2 * vmem_need + (4 << 20), 16 << 20), 64 << 20))

    flops = (2 * T * B * H * 8 * H                  # input projection
             + 2 * T * B * H * 4 * H * 2            # recurrent matmuls
             + 2 * B * 2 * H * Lp)                  # final fc
    transcendentals = T * B * 10 * H                # 2 dirs x (3 sigm + 2 tanh)
    bytes_accessed = int(xt.size * itemsize + maskt.size * 4 + weight_bytes +
                         B * Lp * 4)
    cost = pl.CostEstimate(flops=int(flops),
                           transcendentals=int(transcendentals),
                           bytes_accessed=bytes_accessed)

    kernel = functools.partial(bilstm_head_kernel,
                               t_chunk=t_chunk, rec_unroll=rec_unroll)

    def _launch(single_buffer_weights):
        # Grid-invariant weight blocks never change across batch tiles:
        # single-buffer them so default double-buffering doesn't double
        # their VMEM footprint (matters on v7x's smaller VMEM).
        wmode = ({"pipeline_mode": pl.Buffered(1)}
                 if single_buffer_weights else {})
        grid_spec = pltpu.PrefetchScalarGridSpec(
            num_scalar_prefetch=0,
            grid=(nb,),
            in_specs=[
                pl.BlockSpec((T, Bt, H), lambda i: (0, i, 0)),     # x (time-major)
                pl.BlockSpec((T, Bt, 1), lambda i: (0, i, 0)),     # mask
                pl.BlockSpec((H, 8 * H), lambda i: (0, 0), **wmode),   # W_ih both
                pl.BlockSpec((1, 8 * H), lambda i: (0, 0), **wmode),   # gate biases
                pl.BlockSpec((H, 4 * H), lambda i: (0, 0), **wmode),   # W_hh fwd
                pl.BlockSpec((H, 4 * H), lambda i: (0, 0), **wmode),   # W_hh bwd
                pl.BlockSpec((2 * H, Lp), lambda i: (0, 0), **wmode),  # fc weight
                pl.BlockSpec((1, Lp), lambda i: (0, 0), **wmode),      # fc bias
            ],
            out_specs=pl.BlockSpec((Bt, Lp), lambda i: (i, 0)),
            scratch_shapes=[
                pltpu.VMEM((T, Bt, 4 * H), jnp.float32),           # gx forward
                pltpu.VMEM((T, Bt, 4 * H), jnp.float32),           # gx backward
            ],
        )
        return pl.pallas_call(
            kernel,
            out_shape=jax.ShapeDtypeStruct((B, Lp), jnp.float32),
            grid_spec=grid_spec,
            compiler_params=pltpu.CompilerParams(
                dimension_semantics=("parallel",),    # batch tiles -> both TCs
                vmem_limit_bytes=vmem_limit),
            cost_estimate=cost,
        )(xt, maskt, wih_both, b_both, whh_f_t, whh_b_t, fc_w_p, fc_b_p)

    try:
        out = _launch(True)
    except Exception:
        # TODO(synk): fallback for jax builds that reject single-buffered
        # (pl.Buffered(1)) weight blocks — rerun with default double-buffering.
        out = _launch(False)
    return out[:, :L]


# ----------------------------------------------------------------------------
# Pure-JAX reference (PyTorch semantics) for correctness checking
# ----------------------------------------------------------------------------
def _lstm_dir_ref(x, wih, whh, bih, bhh, reverse=False):
    B, T, H = x.shape

    def step(carry, x_t):
        h, c = carry
        gates = x_t @ wih.T + bih + h @ whh.T + bhh
        i, f, g, o = jnp.split(gates, 4, axis=-1)
        i, f, o = jax.nn.sigmoid(i), jax.nn.sigmoid(f), jax.nn.sigmoid(o)
        g = jnp.tanh(g)
        c = f * c + i * g
        h = o * jnp.tanh(c)
        return (h, c), h

    xs = jnp.swapaxes(x, 0, 1)
    if reverse:
        xs = xs[::-1]
    init = (jnp.zeros((B, H), jnp.float32), jnp.zeros((B, H), jnp.float32))
    _, hs = lax.scan(step, init, xs)
    if reverse:
        hs = hs[::-1]
    return jnp.swapaxes(hs, 0, 1)


def reference_head(x, attention_mask, params):
    h_f = _lstm_dir_ref(x, params["wih_f"], params["whh_f"],
                        params["bih_f"], params["bhh_f"], reverse=False)
    h_b = _lstm_dir_ref(x, params["wih_b"], params["whh_b"],
                        params["bih_b"], params["bhh_b"], reverse=True)
    h = jnp.concatenate([h_f, h_b], axis=-1)                 # (B, T, 2H)
    m = attention_mask.astype(jnp.float32)[..., None]        # (B, T, 1)
    summed = jnp.sum(h * m, axis=1)
    sum_mask = jnp.clip(jnp.sum(m * jnp.ones_like(h), axis=1), 1e-9, None)
    pooled = summed / sum_mask
    return pooled @ params["fc_w"].T + params["fc_b"]


# ----------------------------------------------------------------------------
# Main
# ----------------------------------------------------------------------------
if __name__ == "__main__":
    B, T, H, L, VOCAB = 16, 8, 32, 6, 100

    key = jax.random.PRNGKey(0)
    keys = jax.random.split(key, 12)

    # TODO(synk): the pretrained LLM backbone (AutoModelForSequenceClassification
    # + LoRA + 4-bit quantization) is replaced by a deterministic embedding-table
    # stand-in that produces hidden_states[-1].
    emb_table = jax.random.normal(keys[0], (VOCAB, H), jnp.float32) * 0.5

    bound = 1.0 / np.sqrt(H)  # PyTorch LSTM default init range
    params = {
        "wih_f": jax.random.uniform(keys[1], (4 * H, H), jnp.float32, -bound, bound),
        "whh_f": jax.random.uniform(keys[2], (4 * H, H), jnp.float32, -bound, bound),
        "bih_f": jax.random.uniform(keys[3], (4 * H,), jnp.float32, -bound, bound),
        "bhh_f": jax.random.uniform(keys[4], (4 * H,), jnp.float32, -bound, bound),
        "wih_b": jax.random.uniform(keys[5], (4 * H, H), jnp.float32, -bound, bound),
        "whh_b": jax.random.uniform(keys[6], (4 * H, H), jnp.float32, -bound, bound),
        "bih_b": jax.random.uniform(keys[7], (4 * H,), jnp.float32, -bound, bound),
        "bhh_b": jax.random.uniform(keys[8], (4 * H,), jnp.float32, -bound, bound),
        "fc_w": jax.random.normal(keys[9], (L, 2 * H), jnp.float32) * 0.02,
        "fc_b": jnp.zeros((L,), jnp.float32),
    }

    input_ids = jax.random.randint(keys[10], (B, T), 0, VOCAB, jnp.int32)
    lengths = jax.random.randint(keys[11], (B,), 1, T + 1, jnp.int32)
    attention_mask = (jnp.arange(T)[None, :] < lengths[:, None]).astype(jnp.int32)

    # "bert_model" stand-in: embedding lookup -> last hidden state (B, T, H)
    x = emb_table[input_ids]

    ref = reference_head(x, attention_mask, params)

    # f32 matmul-operand path: numerically matches the reference tightly.
    logits_f32 = jax.block_until_ready(
        llm_aes_head(x, attention_mask, params, compute_dtype=jnp.float32))
    np.testing.assert_allclose(np.asarray(logits_f32), np.asarray(ref),
                               rtol=1e-4, atol=2e-4)

    # Default path: bf16 matmul operands (native MXU dtype), f32 gate math /
    # state / accumulation — tolerance-checked against the f32 reference.
    logits_bf16 = jax.block_until_ready(llm_aes_head(x, attention_mask, params))
    np.testing.assert_allclose(np.asarray(logits_bf16), np.asarray(ref),
                               rtol=5e-2, atol=3e-2)

    print("KERNEL_OK")
</pallas_src>

<mosaic_0001>
module attributes {stable_mosaic.version = 11 : i64} {
  func.func @bilstm_head_kernel(%arg0: i32, %arg1: memref<8x16x32xf32, #tpu.memory_space<vmem>>, %arg2: memref<8x16x1xf32, #tpu.memory_space<vmem>>, %arg3: memref<32x256xf32, #tpu.memory_space<vmem>>, %arg4: memref<1x256xf32, #tpu.memory_space<vmem>>, %arg5: memref<32x128xf32, #tpu.memory_space<vmem>>, %arg6: memref<32x128xf32, #tpu.memory_space<vmem>>, %arg7: memref<64x128xf32, #tpu.memory_space<vmem>>, %arg8: memref<1x128xf32, #tpu.memory_space<vmem>>, %arg9: memref<16x128xf32, #tpu.memory_space<vmem>>, %arg10: memref<8x16x128xf32, #tpu.memory_space<vmem>>, %arg11: memref<8x16x128xf32, #tpu.memory_space<vmem>>) attributes {dimension_semantics = [#tpu.dimension_semantics<parallel>], iteration_bounds = array<i64: 1>, scalar_prefetch = 0 : i64, scratch_operands = 2 : i64, tpu.core_type = #tpu.core_type<tc>, window_params = [{transform_indices = @transform_0, window_bounds = array<i64: 8, 16, 32>}, {transform_indices = @transform_1, window_bounds = array<i64: 8, 16, 1>}, {pipeline_mode = #tpu.pipeline_mode<synchronous>, transform_indices = @transform_2, window_bounds = array<i64: 32, 256>}, {pipeline_mode = #tpu.pipeline_mode<synchronous>, transform_indices = @transform_3, window_bounds = array<i64: 1, 256>}, {pipeline_mode = #tpu.pipeline_mode<synchronous>, transform_indices = @transform_4, window_bounds = array<i64: 32, 128>}, {pipeline_mode = #tpu.pipeline_mode<synchronous>, transform_indices = @transform_5, window_bounds = array<i64: 32, 128>}, {pipeline_mode = #tpu.pipeline_mode<synchronous>, transform_indices = @transform_6, window_bounds = array<i64: 64, 128>}, {pipeline_mode = #tpu.pipeline_mode<synchronous>, transform_indices = @transform_7, window_bounds = array<i64: 1, 128>}, {transform_indices = @transform_8, window_bounds = array<i64: 16, 128>}]} {
    %c0_i32 = arith.constant 0 : i32
    %c1_i32 = arith.constant 1 : i32
    %0 = arith.muli %c0_i32, %c1_i32 : i32
    %c0_i32_0 = arith.constant 0 : i32
    %1 = arith.addi %c0_i32_0, %0 : i32
    %c8_i32 = arith.constant 8 : i32
    %2 = arith.muli %1, %c8_i32 : i32
    %3 = tpu.assume_multiple %2, 8 : i32
    %4 = arith.index_cast %3 : i32 to index
    %c0 = arith.constant 0 : index
    %c0_1 = arith.constant 0 : index
    %5 = vector.load %arg1[%4, %c0, %c0_1] : memref<8x16x32xf32, #tpu.memory_space<vmem>>, vector<8x16x32xf32>
    %6 = vector.shape_cast %5 : vector<8x16x32xf32> to vector<128x32xf32>
    %c0_2 = arith.constant 0 : index
    %c0_3 = arith.constant 0 : index
    %7 = vector.load %arg3[%c0_2, %c0_3] : memref<32x256xf32, #tpu.memory_space<vmem>>, vector<32x256xf32>
    %cst = arith.constant dense<0.000000e+00> : vector<128x256xf32>
    %8 = tpu.matmul %6, %7, %cst {dimension_numbers = #tpu.dot_dimension_numbers<[1], [0], [0], [1], [0, 0, 1, 1], [], []>} : vector<128x32xf32>, vector<32x256xf32>, vector<128x256xf32> -> vector<128x256xf32>
    %c0_4 = arith.constant 0 : index
    %c0_5 = arith.constant 0 : index
    %9 = vector.load %arg4[%c0_4, %c0_5] : memref<1x256xf32, #tpu.memory_space<vmem>>, vector<1x256xf32>
    %10 = vector.broadcast %9 : vector<1x256xf32> to vector<128x256xf32>
    %11 = arith.addf %8, %10 : vector<128x256xf32>
    %12 = vector.shape_cast %11 : vector<128x256xf32> to vector<8x16x256xf32>
    %13 = vector.extract_strided_slice %12 {offsets = [0, 0, 0], sizes = [8, 16, 128], strides = [1, 1, 1]} : vector<8x16x256xf32> to vector<8x16x128xf32>
    %14 = arith.index_cast %3 : i32 to index
    %c0_6 = arith.constant 0 : index
    %c0_7 = arith.constant 0 : index
    %15 = vector.load %arg10[%14, %c0_6, %c0_7] : memref<8x16x128xf32, #tpu.memory_space<vmem>>, vector<8x16x128xf32>
    tpu.vector_store %arg10[%14, %c0_6, %c0_7], %13 {strides = array<i32>} : memref<8x16x128xf32, #tpu.memory_space<vmem>>, vector<8x16x128xf32>,
    %16 = vector.extract_strided_slice %12 {offsets = [0, 0, 128], sizes = [8, 16, 128], strides = [1, 1, 1]} : vector<8x16x256xf32> to vector<8x16x128xf32>
    %17 = arith.index_cast %3 : i32 to index
    %c0_8 = arith.constant 0 : index
    %c0_9 = arith.constant 0 : index
    %18 = vector.load %arg11[%17, %c0_8, %c0_9] : memref<8x16x128xf32, #tpu.memory_space<vmem>>, vector<8x16x128xf32>
    tpu.vector_store %arg11[%17, %c0_8, %c0_9], %16 {strides = array<i32>} : memref<8x16x128xf32, #tpu.memory_space<vmem>>, vector<8x16x128xf32>,
    %c1_i32_10 = arith.constant 1 : i32
    %c0_11 = arith.constant 0 : index
    %c0_12 = arith.constant 0 : index
    %19 = vector.load %arg5[%c0_11, %c0_12] : memref<32x128xf32, #tpu.memory_space<vmem>>, vector<32x128xf32>
    %c0_13 = arith.constant 0 : index
    %c0_14 = arith.constant 0 : index
    %20 = vector.load %arg6[%c0_13, %c0_14] : memref<32x128xf32, #tpu.memory_space<vmem>>, vector<32x128xf32>
    %cst_15 = arith.constant 0.000000e+00 : f32
    %21 = vector.broadcast %cst_15 : f32 to vector<16x32xf32>
    %c0_i32_16 = arith.constant 0 : i32
    %c7_i32 = arith.constant 7 : i32
    %22 = arith.subi %c7_i32, %c0_i32_16 : i32
    %cst_17 = arith.constant dense<0.000000e+00> : vector<16x128xf32>
    %23 = tpu.matmul %21, %19, %cst_17 {dimension_numbers = #tpu.dot_dimension_numbers<[1], [0], [0], [1], [0, 0, 1, 1], [], []>} : vector<16x32xf32>, vector<32x128xf32>, vector<16x128xf32> -> vector<16x128xf32>
    %cst_18 = arith.constant dense<0.000000e+00> : vector<16x128xf32>
    %24 = tpu.matmul %21, %20, %cst_18 {dimension_numbers = #tpu.dot_dimension_numbers<[1], [0], [0], [1], [0, 0, 1, 1], [], []>} : vector<16x32xf32>, vector<32x128xf32>, vector<16x128xf32> -> vector<16x128xf32>
    %25 = arith.index_cast %c0_i32_16 : i32 to index
    %c0_19 = arith.constant 0 : index
    %c0_20 = arith.constant 0 : index
    %26 = vector.load %arg10[%25, %c0_19, %c0_20] : memref<8x16x128xf32, #tpu.memory_space<vmem>>, vector<1x16x128xf32>
    %27 = vector.shape_cast %26 : vector<1x16x128xf32> to vector<16x128xf32>
    %28 = arith.addf %27, %23 : vector<16x128xf32>
    %29 = vector.extract_strided_slice %28 {offsets = [0, 0], sizes = [16, 32], strides = [1, 1]} : vector<16x128xf32> to vector<16x32xf32>
    %30 = arith.negf %29 : vector<16x32xf32>
    %31 = math.exp %30 : vector<16x32xf32>
    %cst_21 = arith.constant 1.000000e+00 : f32
    %32 = vector.broadcast %cst_21 : f32 to vector<16x32xf32>
    %33 = arith.addf %32, %31 : vector<16x32xf32>
    %34 = arith.divf %32, %33 : vector<16x32xf32>
    %35 = vector.extract_strided_slice %28 {offsets = [0, 32], sizes = [16, 32], strides = [1, 1]} : vector<16x128xf32> to vector<16x32xf32>
    %36 = arith.negf %35 : vector<16x32xf32>
    %37 = math.exp %36 : vector<16x32xf32>
    %cst_22 = arith.constant 1.000000e+00 : f32
    %38 = vector.broadcast %cst_22 : f32 to vector<16x32xf32>
    %39 = arith.addf %38, %37 : vector<16x32xf32>
    %40 = arith.divf %38, %39 : vector<16x32xf32>
    %41 = vector.extract_strided_slice %28 {offsets = [0, 64], sizes = [16, 32], strides = [1, 1]} : vector<16x128xf32> to vector<16x32xf32>
    %42 = math.tanh %41 : vector<16x32xf32>
    %43 = vector.extract_strided_slice %28 {offsets = [0, 96], sizes = [16, 32], strides = [1, 1]} : vector<16x128xf32> to vector<16x32xf32>
    %44 = arith.negf %43 : vector<16x32xf32>
    %45 = math.exp %44 : vector<16x32xf32>
    %cst_23 = arith.constant 1.000000e+00 : f32
    %46 = vector.broadcast %cst_23 : f32 to vector<16x32xf32>
    %47 = arith.addf %46, %45 : vector<16x32xf32>
    %48 = arith.divf %46, %47 : vector<16x32xf32>
    %49 = arith.mulf %40, %21 : vector<16x32xf32>
    %50 = arith.mulf %34, %42 : vector<16x32xf32>
    %51 = arith.addf %49, %50 : vector<16x32xf32>
    %52 = math.tanh %51 : vector<16x32xf32>
    %53 = arith.mulf %48, %52 : vector<16x32xf32>
    %54 = arith.index_cast %22 : i32 to index
    %c0_24 = arith.constant 0 : index
    %c0_25 = arith.constant 0 : index
    %55 = vector.load %arg11[%54, %c0_24, %c0_25] : memref<8x16x128xf32, #tpu.memory_space<vmem>>, vector<1x16x128xf32>
    %56 = vector.shape_cast %55 : vector<1x16x128xf32> to vector<16x128xf32>
    %57 = arith.addf %56, %24 : vector<16x128xf32>
    %58 = vector.extract_strided_slice %57 {offsets = [0, 0], sizes = [16, 32], strides = [1, 1]} : vector<16x128xf32> to vector<16x32xf32>
    %59 = arith.negf %58 : vector<16x32xf32>
    %60 = math.exp %59 : vector<16x32xf32>
    %cst_26 = arith.constant 1.000000e+00 : f32
    %61 = vector.broadcast %cst_26 : f32 to vector<16x32xf32>
    %62 = arith.addf %61, %60 : vector<16x32xf32>
    %63 = arith.divf %61, %62 : vector<16x32xf32>
    %64 = vector.extract_strided_slice %57 {offsets = [0, 32], sizes = [16, 32], strides = [1, 1]} : vector<16x128xf32> to vector<16x32xf32>
    %65 = arith.negf %64 : vector<16x32xf32>
    %66 = math.exp %65 : vector<16x32xf32>
    %cst_27 = arith.constant 1.000000e+00 : f32
    %67 = vector.broadcast %cst_27 : f32 to vector<16x32xf32>
    %68 = arith.addf %67, %66 : vector<16x32xf32>
    %69 = arith.divf %67, %68 : vector<16x32xf32>
    %70 = vector.extract_strided_slice %57 {offsets = [0, 64], sizes = [16, 32], strides = [1, 1]} : vector<16x128xf32> to vector<16x32xf32>
    %71 = math.tanh %70 : vector<16x32xf32>
    %72 = vector.extract_strided_slice %57 {offsets = [0, 96], sizes = [16, 32], strides = [1, 1]} : vector<16x128xf32> to vector<16x32xf32>
    %73 = arith.negf %72 : vector<16x32xf32>
    %74 = math.exp %73 : vector<16x32xf32>
    %cst_28 = arith.constant 1.000000e+00 : f32
    %75 = vector.broadcast %cst_28 : f32 to vector<16x32xf32>
    %76 = arith.addf %75, %74 : vector<16x32xf32>
    %77 = arith.divf %75, %76 : vector<16x32xf32>
    %78 = arith.mulf %69, %21 : vector<16x32xf32>
    %79 = arith.mulf %63, %71 : vector<16x32xf32>
    %80 = arith.addf %78, %79 : vector<16x32xf32>
    %81 = math.tanh %80 : vector<16x32xf32>
    %82 = arith.mulf %77, %81 : vector<16x32xf32>
    %83 = arith.index_cast %c0_i32_16 : i32 to index
    %c0_29 = arith.constant 0 : index
    %c0_30 = arith.constant 0 : index
    %84 = vector.load %arg2[%83, %c0_29, %c0_30] : memref<8x16x1xf32, #tpu.memory_space<vmem>>, vector<1x16x1xf32>
    %85 = vector.shape_cast %84 : vector<1x16x1xf32> to vector<16x1xf32>
    %86 = vector.broadcast %85 : vector<16x1xf32> to vector<16x32xf32>
    %87 = arith.mulf %53, %86 : vector<16x32xf32>
    %88 = arith.addf %21, %87 : vector<16x32xf32>
    %89 = arith.index_cast %22 : i32 to index
    %c0_31 = arith.constant 0 : index
    %c0_32 = arith.constant 0 : index
    %90 = vector.load %arg2[%89, %c0_31, %c0_32] : memref<8x16x1xf32, #tpu.memory_space<vmem>>, vector<1x16x1xf32>
    %91 = vector.shape_cast %90 : vector<1x16x1xf32> to vector<16x1xf32>
    %92 = vector.broadcast %91 : vector<16x1xf32> to vector<16x32xf32>
    %93 = arith.mulf %82, %92 : vector<16x32xf32>
    %94 = arith.addf %21, %93 : vector<16x32xf32>
    %c1_i32_33 = arith.constant 1 : i32
    %c7_i32_34 = arith.constant 7 : i32
    %95 = arith.subi %c7_i32_34, %c1_i32_33 : i32
    %cst_35 = arith.constant dense<0.000000e+00> : vector<16x128xf32>
    %96 = tpu.matmul %53, %19, %cst_35 {dimension_numbers = #tpu.dot_dimension_numbers<[1], [0], [0], [1], [0, 0, 1, 1], [], []>} : vector<16x32xf32>, vector<32x128xf32>, vector<16x128xf32> -> vector<16x128xf32>
    %cst_36 = arith.constant dense<0.000000e+00> : vector<16x128xf32>
    %97 = tpu.matmul %82, %20, %cst_36 {dimension_numbers = #tpu.dot_dimension_numbers<[1], [0], [0], [1], [0, 0, 1, 1], [], []>} : vector<16x32xf32>, vector<32x128xf32>, vector<16x128xf32> -> vector<16x128xf32>
    %98 = arith.index_cast %c1_i32_33 : i32 to index
    %c0_37 = arith.constant 0 : index
    %c0_38 = arith.constant 0 : index
    %99 = vector.load %arg10[%98, %c0_37, %c0_38] : memref<8x16x128xf32, #tpu.memory_space<vmem>>, vector<1x16x128xf32>
    %100 = vector.shape_cast %99 : vector<1x16x128xf32> to vector<16x128xf32>
    %101 = arith.addf %100, %96 : vector<16x128xf32>
    %102 = vector.extract_strided_slice %101 {offsets = [0, 0], sizes = [16, 32], strides = [1, 1]} : vector<16x128xf32> to vector<16x32xf32>
    %103 = arith.negf %102 : vector<16x32xf32>
    %104 = math.exp %103 : vector<16x32xf32>
    %cst_39 = arith.constant 1.000000e+00 : f32
    %105 = vector.broadcast %cst_39 : f32 to vector<16x32xf32>
    %106 = arith.addf %105, %104 : vector<16x32xf32>
    %107 = arith.divf %105, %106 : vector<16x32xf32>
    %108 = vector.extract_strided_slice %101 {offsets = [0, 32], sizes = [16, 32], strides = [1, 1]} : vector<16x128xf32> to vector<16x32xf32>
    %109 = arith.negf %108 : vector<16x32xf32>
    %110 = math.exp %109 : vector<16x32xf32>
    %cst_40 = arith.constant 1.000000e+00 : f32
    %111 = vector.broadcast %cst_40 : f32 to vector<16x32xf32>
    %112 = arith.addf %111, %110 : vector<16x32xf32>
    %113 = arith.divf %111, %112 : vector<16x32xf32>
    %114 = vector.extract_strided_slice %101 {offsets = [0, 64], sizes = [16, 32], strides = [1, 1]} : vector<16x128xf32> to vector<16x32xf32>
    %115 = math.tanh %114 : vector<16x32xf32>
    %116 = vector.extract_strided_slice %101 {offsets = [0, 96], sizes = [16, 32], strides = [1, 1]} : vector<16x128xf32> to vector<16x32xf32>
    %117 = arith.negf %116 : vector<16x32xf32>
    %118 = math.exp %117 : vector<16x32xf32>
    %cst_41 = arith.constant 1.000000e+00 : f32
    %119 = vector.broadcast %cst_41 : f32 to vector<16x32xf32>
    %120 = arith.addf %119, %118 : vector<16x32xf32>
    %121 = arith.divf %119, %120 : vector<16x32xf32>
    %122 = arith.mulf %113, %51 : vector<16x32xf32>
    %123 = arith.mulf %107, %115 : vector<16x32xf32>
    %124 = arith.addf %122, %123 : vector<16x32xf32>
    %125 = math.tanh %124 : vector<16x32xf32>
    %126 = arith.mulf %121, %125 : vector<16x32xf32>
    %127 = arith.index_cast %95 : i32 to index
    %c0_42 = arith.constant 0 : index
    %c0_43 = arith.constant 0 : index
    %128 = vector.load %arg11[%127, %c0_42, %c0_43] : memref<8x16x128xf32, #tpu.memory_space<vmem>>, vector<1x16x128xf32>
    %129 = vector.shape_cast %128 : vector<1x16x128xf32> to vector<16x128xf32>
    %130 = arith.addf %129, %97 : vector<16x128xf32>
    %131 = vector.extract_strided_slice %130 {offsets = [0, 0], sizes = [16, 32], strides = [1, 1]} : vector<16x128xf32> to vector<16x32xf32>
    %132 = arith.negf %131 : vector<16x32xf32>
    %133 = math.exp %132 : vector<16x32xf32>
    %cst_44 = arith.constant 1.000000e+00 : f32
    %134 = vector.broadcast %cst_44 : f32 to vector<16x32xf32>
    %135 = arith.addf %134, %133 : vector<16x32xf32>
    %136 = arith.divf %134, %135 : vector<16x32xf32>
    %137 = vector.extract_strided_slice %130 {offsets = [0, 32], sizes = [16, 32], strides = [1, 1]} : vector<16x128xf32> to vector<16x32xf32>
    %138 = arith.negf %137 : vector<16x32xf32>
    %139 = math.exp %138 : vector<16x32xf32>
    %cst_45 = arith.constant 1.000000e+00 : f32
    %140 = vector.broadcast %cst_45 : f32 to vector<16x32xf32>
    %141 = arith.addf %140, %139 : vector<16x32xf32>
    %142 = arith.divf %140, %141 : vector<16x32xf32>
    %143 = vector.extract_strided_slice %130 {offsets = [0, 64], sizes = [16, 32], strides = [1, 1]} : vector<16x128xf32> to vector<16x32xf32>
    %144 = math.tanh %143 : vector<16x32xf32>
    %145 = vector.extract_strided_slice %130 {offsets = [0, 96], sizes = [16, 32], strides = [1, 1]} : vector<16x128xf32> to vector<16x32xf32>
    %146 = arith.negf %145 : vector<16x32xf32>
    %147 = math.exp %146 : vector<16x32xf32>
    %cst_46 = arith.constant 1.000000e+00 : f32
    %148 = vector.broadcast %cst_46 : f32 to vector<16x32xf32>
    %149 = arith.addf %148, %147 : vector<16x32xf32>
    %150 = arith.divf %148, %149 : vector<16x32xf32>
    %151 = arith.mulf %142, %80 : vector<16x32xf32>
    %152 = arith.mulf %136, %144 : vector<16x32xf32>
    %153 = arith.addf %151, %152 : vector<16x32xf32>
    %154 = math.tanh %153 : vector<16x32xf32>
    %155 = arith.mulf %150, %154 : vector<16x32xf32>
    %156 = arith.index_cast %c1_i32_33 : i32 to index
    %c0_47 = arith.constant 0 : index
    %c0_48 = arith.constant 0 : index
    %157 = vector.load %arg2[%156, %c0_47, %c0_48] : memref<8x16x1xf32, #tpu.memory_space<vmem>>, vector<1x16x1xf32>
    %158 = vector.shape_cast %157 : vector<1x16x1xf32> to vector<16x1xf32>
    %159 = vector.broadcast %158 : vector<16x1xf32> to vector<16x32xf32>
    %160 = arith.mulf %126, %159 : vector<16x32xf32>
    %161 = arith.addf %88, %160 : vector<16x32xf32>
    %162 = arith.index_cast %95 : i32 to index
    %c0_49 = arith.constant 0 : index
    %c0_50 = arith.constant 0 : index
    %163 = vector.load %arg2[%162, %c0_49, %c0_50] : memref<8x16x1xf32, #tpu.memory_space<vmem>>, vector<1x16x1xf32>
    %164 = vector.shape_cast %163 : vector<1x16x1xf32> to vector<16x1xf32>
    %165 = vector.broadcast %164 : vector<16x1xf32> to vector<16x32xf32>
    %166 = arith.mulf %155, %165 : vector<16x32xf32>
    %167 = arith.addf %94, %166 : vector<16x32xf32>
    %c2_i32 = arith.constant 2 : i32
    %c7_i32_51 = arith.constant 7 : i32
    %168 = arith.subi %c7_i32_51, %c2_i32 : i32
    %cst_52 = arith.constant dense<0.000000e+00> : vector<16x128xf32>
    %169 = tpu.matmul %126, %19, %cst_52 {dimension_numbers = #tpu.dot_dimension_numbers<[1], [0], [0], [1], [0, 0, 1, 1], [], []>} : vector<16x32xf32>, vector<32x128xf32>, vector<16x128xf32> -> vector<16x128xf32>
    %cst_53 = arith.constant dense<0.000000e+00> : vector<16x128xf32>
    %170 = tpu.matmul %155, %20, %cst_53 {dimension_numbers = #tpu.dot_dimension_numbers<[1], [0], [0], [1], [0, 0, 1, 1], [], []>} : vector<16x32xf32>, vector<32x128xf32>, vector<16x128xf32> -> vector<16x128xf32>
    %171 = arith.index_cast %c2_i32 : i32 to index
    %c0_54 = arith.constant 0 : index
    %c0_55 = arith.constant 0 : index
    %172 = vector.load %arg10[%171, %c0_54, %c0_55] : memref<8x16x128xf32, #tpu.memory_space<vmem>>, vector<1x16x128xf32>
    %173 = vector.shape_cast %172 : vector<1x16x128xf32> to vector<16x128xf32>
    %174 = arith.addf %173, %169 : vector<16x128xf32>
    %175 = vector.extract_strided_slice %174 {offsets = [0, 0], sizes = [16, 32], strides = [1, 1]} : vector<16x128xf32> to vector<16x32xf32>
    %176 = arith.negf %175 : vector<16x32xf32>
    %177 = math.exp %176 : vector<16x32xf32>
    %cst_56 = arith.constant 1.000000e+00 : f32
    %178 = vector.broadcast %cst_56 : f32 to vector<16x32xf32>
    %179 = arith.addf %178, %177 : vector<16x32xf32>
    %180 = arith.divf %178, %179 : vector<16x32xf32>
    %181 = vector.extract_strided_slice %174 {offsets = [0, 32], sizes = [16, 32], strides = [1, 1]} : vector<16x128xf32> to vector<16x32xf32>
    %182 = arith.negf %181 : vector<16x32xf32>
    %183 = math.exp %182 : vector<16x32xf32>
    %cst_57 = arith.constant 1.000000e+00 : f32
    %184 = vector.broadcast %cst_57 : f32 to vector<16x32xf32>
    %185 = arith.addf %184, %183 : vector<16x32xf32>
    %186 = arith.divf %184, %185 : vector<16x32xf32>
    %187 = vector.extract_strided_slice %174 {offsets = [0, 64], sizes = [16, 32], strides = [1, 1]} : vector<16x128xf32> to vector<16x32xf32>
    %188 = math.tanh %187 : vector<16x32xf32>
    %189 = vector.extract_strided_slice %174 {offsets = [0, 96], sizes = [16, 32], strides = [1, 1]} : vector<16x128xf32> to vector<16x32xf32>
    %190 = arith.negf %189 : vector<16x32xf32>
    %191 = math.exp %190 : vector<16x32xf32>
    %cst_58 = arith.constant 1.000000e+00 : f32
    %192 = vector.broadcast %cst_58 : f32 to vector<16x32xf32>
    %193 = arith.addf %192, %191 : vector<16x32xf32>
    %194 = arith.divf %192, %193 : vector<16x32xf32>
    %195 = arith.mulf %186, %124 : vector<16x32xf32>
    %196 = arith.mulf %180, %188 : vector<16x32xf32>
    %197 = arith.addf %195, %196 : vector<16x32xf32>
    %198 = math.tanh %197 : vector<16x32xf32>
    %199 = arith.mulf %194, %198 : vector<16x32xf32>
    %200 = arith.index_cast %168 : i32 to index
    %c0_59 = arith.constant 0 : index
    %c0_60 = arith.constant 0 : index
    %201 = vector.load %arg11[%200, %c0_59, %c0_60] : memref<8x16x128xf32, #tpu.memory_space<vmem>>, vector<1x16x128xf32>
    %202 = vector.shape_cast %201 : vector<1x16x128xf32> to vector<16x128xf32>
    %203 = arith.addf %202, %170 : vector<16x128xf32>
    %204 = vector.extract_strided_slice %203 {offsets = [0, 0], sizes = [16, 32], strides = [1, 1]} : vector<16x128xf32> to vector<16x32xf32>
    %205 = arith.negf %204 : vector<16x32xf32>
    %206 = math.exp %205 : vector<16x32xf32>
    %cst_61 = arith.constant 1.000000e+00 : f32
    %207 = vector.broadcast %cst_61 : f32 to vector<16x32xf32>
    %208 = arith.addf %207, %206 : vector<16x32xf32>
    %209 = arith.divf %207, %208 : vector<16x32xf32>
    %210 = vector.extract_strided_slice %203 {offsets = [0, 32], sizes = [16, 32], strides = [1, 1]} : vector<16x128xf32> to vector<16x32xf32>
    %211 = arith.negf %210 : vector<16x32xf32>
    %212 = math.exp %211 : vector<16x32xf32>
    %cst_62 = arith.constant 1.000000e+00 : f32
    %213 = vector.broadcast %cst_62 : f32 to vector<16x32xf32>
    %214 = arith.addf %213, %212 : vector<16x32xf32>
    %215 = arith.divf %213, %214 : vector<16x32xf32>
    %216 = vector.extract_strided_slice %203 {offsets = [0, 64], sizes = [16, 32], strides = [1, 1]} : vector<16x128xf32> to vector<16x32xf32>
    %217 = math.tanh %216 : vector<16x32xf32>
    %218 = vector.extract_strided_slice %203 {offsets = [0, 96], sizes = [16, 32], strides = [1, 1]} : vector<16x128xf32> to vector<16x32xf32>
    %219 = arith.negf %218 : vector<16x32xf32>
    %220 = math.exp %219 : vector<16x32xf32>
    %cst_63 = arith.constant 1.000000e+00 : f32
    %221 = vector.broadcast %cst_63 : f32 to vector<16x32xf32>
    %222 = arith.addf %221, %220 : vector<16x32xf32>
    %223 = arith.divf %221, %222 : vector<16x32xf32>
    %224 = arith.mulf %215, %153 : vector<16x32xf32>
    %225 = arith.mulf %209, %217 : vector<16x32xf32>
    %226 = arith.addf %224, %225 : vector<16x32xf32>
    %227 = math.tanh %226 : vector<16x32xf32>
    %228 = arith.mulf %223, %227 : vector<16x32xf32>
    %229 = arith.index_cast %c2_i32 : i32 to index
    %c0_64 = arith.constant 0 : index
    %c0_65 = arith.constant 0 : index
    %230 = vector.load %arg2[%229, %c0_64, %c0_65] : memref<8x16x1xf32, #tpu.memory_space<vmem>>, vector<1x16x1xf32>
    %231 = vector.shape_cast %230 : vector<1x16x1xf32> to vector<16x1xf32>
    %232 = vector.broadcast %231 : vector<16x1xf32> to vector<16x32xf32>
    %233 = arith.mulf %199, %232 : vector<16x32xf32>
    %234 = arith.addf %161, %233 : vector<16x32xf32>
    %235 = arith.index_cast %168 : i32 to index
    %c0_66 = arith.constant 0 : index
    %c0_67 = arith.constant 0 : index
    %236 = vector.load %arg2[%235, %c0_66, %c0_67] : memref<8x16x1xf32, #tpu.memory_space<vmem>>, vector<1x16x1xf32>
    %237 = vector.shape_cast %236 : vector<1x16x1xf32> to vector<16x1xf32>
    %238 = vector.broadcast %237 : vector<16x1xf32> to vector<16x32xf32>
    %239 = arith.mulf %228, %238 : vector<16x32xf32>
    %240 = arith.addf %167, %239 : vector<16x32xf32>
    %c3_i32 = arith.constant 3 : i32
    %c7_i32_68 = arith.constant 7 : i32
    %241 = arith.subi %c7_i32_68, %c3_i32 : i32
    %cst_69 = arith.constant dense<0.000000e+00> : vector<16x128xf32>
    %242 = tpu.matmul %199, %19, %cst_69 {dimension_numbers = #tpu.dot_dimension_numbers<[1], [0], [0], [1], [0, 0, 1, 1], [], []>} : vector<16x32xf32>, vector<32x128xf32>, vector<16x128xf32> -> vector<16x128xf32>
    %cst_70 = arith.constant dense<0.000000e+00> : vector<16x128xf32>
    %243 = tpu.matmul %228, %20, %cst_70 {dimension_numbers = #tpu.dot_dimension_numbers<[1], [0], [0], [1], [0, 0, 1, 1], [], []>} : vector<16x32xf32>, vector<32x128xf32>, vector<16x128xf32> -> vector<16x128xf32>
    %244 = arith.index_cast %c3_i32 : i32 to index
    %c0_71 = arith.constant 0 : index
    %c0_72 = arith.constant 0 : index
    %245 = vector.load %arg10[%244, %c0_71, %c0_72] : memref<8x16x128xf32, #tpu.memory_space<vmem>>, vector<1x16x128xf32>
    %246 = vector.shape_cast %245 : vector<1x16x128xf32> to vector<16x128xf32>
    %247 = arith.addf %246, %242 : vector<16x128xf32>
    %248 = vector.extract_strided_slice %247 {offsets = [0, 0], sizes = [16, 32], strides = [1, 1]} : vector<16x128xf32> to vector<16x32xf32>
    %249 = arith.negf %248 : vector<16x32xf32>
    %250 = math.exp %249 : vector<16x32xf32>
    %cst_73 = arith.constant 1.000000e+00 : f32
    %251 = vector.broadcast %cst_73 : f32 to vector<16x32xf32>
    %252 = arith.addf %251, %250 : vector<16x32xf32>
    %253 = arith.divf %251, %252 : vector<16x32xf32>
    %254 = vector.extract_strided_slice %247 {offsets = [0, 32], sizes = [16, 32], strides = [1, 1]} : vector<16x128xf32> to vector<16x32xf32>
    %255 = arith.negf %254 : vector<16x32xf32>
    %256 = math.exp %255 : vector<16x32xf32>
    %cst_74 = arith.constant 1.000000e+00 : f32
    %257 = vector.broadcast %cst_74 : f32 to vector<16x32xf32>
    %258 = arith.addf %257, %256 : vector<16x32xf32>
    %259 = arith.divf %257, %258 : vector<16x32xf32>
    %260 = vector.extract_strided_slice %247 {offsets = [0, 64], sizes = [16, 32], strides = [1, 1]} : vector<16x128xf32> to vector<16x32xf32>
    %261 = math.tanh %260 : vector<16x32xf32>
    %262 = vector.extract_strided_slice %247 {offsets = [0, 96], sizes = [16, 32], strides = [1, 1]} : vector<16x128xf32> to vector<16x32xf32>
    %263 = arith.negf %262 : vector<16x32xf32>
    %264 = math.exp %263 : vector<16x32xf32>
    %cst_75 = arith.constant 1.000000e+00 : f32
    %265 = vector.broadcast %cst_75 : f32 to vector<16x32xf32>
    %266 = arith.addf %265, %264 : vector<16x32xf32>
    %267 = arith.divf %265, %266 : vector<16x32xf32>
    %268 = arith.mulf %259, %197 : vector<16x32xf32>
    %269 = arith.mulf %253, %261 : vector<16x32xf32>
    %270 = arith.addf %268, %269 : vector<16x32xf32>
    %271 = math.tanh %270 : vector<16x32xf32>
    %272 = arith.mulf %267, %271 : vector<16x32xf32>
    %273 = arith.index_cast %241 : i32 to index
    %c0_76 = arith.constant 0 : index
    %c0_77 = arith.constant 0 : index
    %274 = vector.load %arg11[%273, %c0_76, %c0_77] : memref<8x16x128xf32, #tpu.memory_space<vmem>>, vector<1x16x128xf32>
    %275 = vector.shape_cast %274 : vector<1x16x128xf32> to vector<16x128xf32>
    %276 = arith.addf %275, %243 : vector<16x128xf32>
    %277 = vector.extract_strided_slice %276 {offsets = [0, 0], sizes = [16, 32], strides = [1, 1]} : vector<16x128xf32> to vector<16x32xf32>
    %278 = arith.negf %277 : vector<16x32xf32>
    %279 = math.exp %278 : vector<16x32xf32>
    %cst_78 = arith.constant 1.000000e+00 : f32
    %280 = vector.broadcast %cst_78 : f32 to vector<16x32xf32>
    %281 = arith.addf %280, %279 : vector<16x32xf32>
    %282 = arith.divf %280, %281 : vector<16x32xf32>
    %283 = vector.extract_strided_slice %276 {offsets = [0, 32], sizes = [16, 32], strides = [1, 1]} : vector<16x128xf32> to vector<16x32xf32>
    %284 = arith.negf %283 : vector<16x32xf32>
    %285 = math.exp %284 : vector<16x32xf32>
    %cst_79 = arith.constant 1.000000e+00 : f32
    %286 = vector.broadcast %cst_79 : f32 to vector<16x32xf32>
    %287 = arith.addf %286, %285 : vector<16x32xf32>
    %288 = arith.divf %286, %287 : vector<16x32xf32>
    %289 = vector.extract_strided_slice %276 {offsets = [0, 64], sizes = [16, 32], strides = [1, 1]} : vector<16x128xf32> to vector<16x32xf32>
    %290 = math.tanh %289 : vector<16x32xf32>
    %291 = vector.extract_strided_slice %276 {offsets = [0, 96], sizes = [16, 32], strides = [1, 1]} : vector<16x128xf32> to vector<16x32xf32>
    %292 = arith.negf %291 : vector<16x32xf32>
    %293 = math.exp %292 : vector<16x32xf32>
    %cst_80 = arith.constant 1.000000e+00 : f32
    %294 = vector.broadcast %cst_80 : f32 to vector<16x32xf32>
    %295 = arith.addf %294, %293 : vector<16x32xf32>
    %296 = arith.divf %294, %295 : vector<16x32xf32>
    %297 = arith.mulf %288, %226 : vector<16x32xf32>
    %298 = arith.mulf %282, %290 : vector<16x32xf32>
    %299 = arith.addf %297, %298 : vector<16x32xf32>
    %300 = math.tanh %299 : vector<16x32xf32>
    %301 = arith.mulf %296, %300 : vector<16x32xf32>
    %302 = arith.index_cast %c3_i32 : i32 to index
    %c0_81 = arith.constant 0 : index
    %c0_82 = arith.constant 0 : index
    %303 = vector.load %arg2[%302, %c0_81, %c0_82] : memref<8x16x1xf32, #tpu.memory_space<vmem>>, vector<1x16x1xf32>
    %304 = vector.shape_cast %303 : vector<1x16x1xf32> to vector<16x1xf32>
    %305 = vector.broadcast %304 : vector<16x1xf32> to vector<16x32xf32>
    %306 = arith.mulf %272, %305 : vector<16x32xf32>
    %307 = arith.addf %234, %306 : vector<16x32xf32>
    %308 = arith.index_cast %241 : i32 to index
    %c0_83 = arith.constant 0 : index
    %c0_84 = arith.constant 0 : index
    %309 = vector.load %arg2[%308, %c0_83, %c0_84] : memref<8x16x1xf32, #tpu.memory_space<vmem>>, vector<1x16x1xf32>
    %310 = vector.shape_cast %309 : vector<1x16x1xf32> to vector<16x1xf32>
    %311 = vector.broadcast %310 : vector<16x1xf32> to vector<16x32xf32>
    %312 = arith.mulf %301, %311 : vector<16x32xf32>
    %313 = arith.addf %240, %312 : vector<16x32xf32>
    %c4_i32 = arith.constant 4 : i32
    %c7_i32_85 = arith.constant 7 : i32
    %314 = arith.subi %c7_i32_85, %c4_i32 : i32
    %cst_86 = arith.constant dense<0.000000e+00> : vector<16x128xf32>
    %315 = tpu.matmul %272, %19, %cst_86 {dimension_numbers = #tpu.dot_dimension_numbers<[1], [0], [0], [1], [0, 0, 1, 1], [], []>} : vector<16x32xf32>, vector<32x128xf32>, vector<16x128xf32> -> vector<16x128xf32>
    %cst_87 = arith.constant dense<0.000000e+00> : vector<16x128xf32>
    %316 = tpu.matmul %301, %20, %cst_87 {dimension_numbers = #tpu.dot_dimension_numbers<[1], [0], [0], [1], [0, 0, 1, 1], [], []>} : vector<16x32xf32>, vector<32x128xf32>, vector<16x128xf32> -> vector<16x128xf32>
    %317 = arith.index_cast %c4_i32 : i32 to index
    %c0_88 = arith.constant 0 : index
    %c0_89 = arith.constant 0 : index
    %318 = vector.load %arg10[%317, %c0_88, %c0_89] : memref<8x16x128xf32, #tpu.memory_space<vmem>>, vector<1x16x128xf32>
    %319 = vector.shape_cast %318 : vector<1x16x128xf32> to vector<16x128xf32>
    %320 = arith.addf %319, %315 : vector<16x128xf32>
    %321 = vector.extract_strided_slice %320 {offsets = [0, 0], sizes = [16, 32], strides = [1, 1]} : vector<16x128xf32> to vector<16x32xf32>
    %322 = arith.negf %321 : vector<16x32xf32>
    %323 = math.exp %322 : vector<16x32xf32>
    %cst_90 = arith.constant 1.000000e+00 : f32
    %324 = vector.broadcast %cst_90 : f32 to vector<16x32xf32>
    %325 = arith.addf %324, %323 : vector<16x32xf32>
    %326 = arith.divf %324, %325 : vector<16x32xf32>
    %327 = vector.extract_strided_slice %320 {offsets = [0, 32], sizes = [16, 32], strides = [1, 1]} : vector<16x128xf32> to vector<16x32xf32>
    %328 = arith.negf %327 : vector<16x32xf32>
    %329 = math.exp %328 : vector<16x32xf32>
    %cst_91 = arith.constant 1.000000e+00 : f32
    %330 = vector.broadcast %cst_91 : f32 to vector<16x32xf32>
    %331 = arith.addf %330, %329 : vector<16x32xf32>
    %332 = arith.divf %330, %331 : vector<16x32xf32>
    %333 = vector.extract_strided_slice %320 {offsets = [0, 64], sizes = [16, 32], strides = [1, 1]} : vector<16x128xf32> to vector<16x32xf32>
    %334 = math.tanh %333 : vector<16x32xf32>
    %335 = vector.extract_strided_slice %320 {offsets = [0, 96], sizes = [16, 32], strides = [1, 1]} : vector<16x128xf32> to vector<16x32xf32>
    %336 = arith.negf %335 : vector<16x32xf32>
    %337 = math.exp %336 : vector<16x32xf32>
    %cst_92 = arith.constant 1.000000e+00 : f32
    %338 = vector.broadcast %cst_92 : f32 to vector<16x32xf32>
    %339 = arith.addf %338, %337 : vector<16x32xf32>
    %340 = arith.divf %338, %339 : vector<16x32xf32>
    %341 = arith.mulf %332, %270 : vector<16x32xf32>
    %342 = arith.mulf %326, %334 : vector<16x32xf32>
    %343 = arith.addf %341, %342 : vector<16x32xf32>
    %344 = math.tanh %343 : vector<16x32xf32>
    %345 = arith.mulf %340, %344 : vector<16x32xf32>
    %346 = arith.index_cast %314 : i32 to index
    %c0_93 = arith.constant 0 : index
    %c0_94 = arith.constant 0 : index
    %347 = vector.load %arg11[%346, %c0_93, %c0_94] : memref<8x16x128xf32, #tpu.memory_space<vmem>>, vector<1x16x128xf32>
    %348 = vector.shape_cast %347 : vector<1x16x128xf32> to vector<16x128xf32>
    %349 = arith.addf %348, %316 : vector<16x128xf32>
    %350 = vector.extract_strided_slice %349 {offsets = [0, 0], sizes = [16, 32], strides = [1, 1]} : vector<16x128xf32> to vector<16x32xf32>
    %351 = arith.negf %350 : vector<16x32xf32>
    %352 = math.exp %351 : vector<16x32xf32>
    %cst_95 = arith.constant 1.000000e+00 : f32
    %353 = vector.broadcast %cst_95 : f32 to vector<16x32xf32>
    %354 = arith.addf %353, %352 : vector<16x32xf32>
    %355 = arith.divf %353, %354 : vector<16x32xf32>
    %356 = vector.extract_strided_slice %349 {offsets = [0, 32], sizes = [16, 32], strides = [1, 1]} : vector<16x128xf32> to vector<16x32xf32>
    %357 = arith.negf %356 : vector<16x32xf32>
    %358 = math.exp %357 : vector<16x32xf32>
    %cst_96 = arith.constant 1.000000e+00 : f32
    %359 = vector.broadcast %cst_96 : f32 to vector<16x32xf32>
    %360 = arith.addf %359, %358 : vector<16x32xf32>
    %361 = arith.divf %359, %360 : vector<16x32xf32>
    %362 = vector.extract_strided_slice %349 {offsets = [0, 64], sizes = [16, 32], strides = [1, 1]} : vector<16x128xf32> to vector<16x32xf32>
    %363 = math.tanh %362 : vector<16x32xf32>
    %364 = vector.extract_strided_slice %349 {offsets = [0, 96], sizes = [16, 32], strides = [1, 1]} : vector<16x128xf32> to vector<16x32xf32>
    %365 = arith.negf %364 : vector<16x32xf32>
    %366 = math.exp %365 : vector<16x32xf32>
    %cst_97 = arith.constant 1.000000e+00 : f32
    %367 = vector.broadcast %cst_97 : f32 to vector<16x32xf32>
    %368 = arith.addf %367, %366 : vector<16x32xf32>
    %369 = arith.divf %367, %368 : vector<16x32xf32>
    %370 = arith.mulf %361, %299 : vector<16x32xf32>
    %371 = arith.mulf %355, %363 : vector<16x32xf32>
    %372 = arith.addf %370, %371 : vector<16x32xf32>
    %373 = math.tanh %372 : vector<16x32xf32>
    %374 = arith.mulf %369, %373 : vector<16x32xf32>
    %375 = arith.index_cast %c4_i32 : i32 to index
    %c0_98 = arith.constant 0 : index
    %c0_99 = arith.constant 0 : index
    %376 = vector.load %arg2[%375, %c0_98, %c0_99] : memref<8x16x1xf32, #tpu.memory_space<vmem>>, vector<1x16x1xf32>
    %377 = vector.shape_cast %376 : vector<1x16x1xf32> to vector<16x1xf32>
    %378 = vector.broadcast %377 : vector<16x1xf32> to vector<16x32xf32>
    %379 = arith.mulf %345, %378 : vector<16x32xf32>
    %380 = arith.addf %307, %379 : vector<16x32xf32>
    %381 = arith.index_cast %314 : i32 to index
    %c0_100 = arith.constant 0 : index
    %c0_101 = arith.constant 0 : index
    %382 = vector.load %arg2[%381, %c0_100, %c0_101] : memref<8x16x1xf32, #tpu.memory_space<vmem>>, vector<1x16x1xf32>
    %383 = vector.shape_cast %382 : vector<1x16x1xf32> to vector<16x1xf32>
    %384 = vector.broadcast %383 : vector<16x1xf32> to vector<16x32xf32>
    %385 = arith.mulf %374, %384 : vector<16x32xf32>
    %386 = arith.addf %313, %385 : vector<16x32xf32>
    %c5_i32 = arith.constant 5 : i32
    %c7_i32_102 = arith.constant 7 : i32
    %387 = arith.subi %c7_i32_102, %c5_i32 : i32
    %cst_103 = arith.constant dense<0.000000e+00> : vector<16x128xf32>
    %388 = tpu.matmul %345, %19, %cst_103 {dimension_numbers = #tpu.dot_dimension_numbers<[1], [0], [0], [1], [0, 0, 1, 1], [], []>} : vector<16x32xf32>, vector<32x128xf32>, vector<16x128xf32> -> vector<16x128xf32>
    %cst_104 = arith.constant dense<0.000000e+00> : vector<16x128xf32>
    %389 = tpu.matmul %374, %20, %cst_104 {dimension_numbers = #tpu.dot_dimension_numbers<[1], [0], [0], [1], [0, 0, 1, 1], [], []>} : vector<16x32xf32>, vector<32x128xf32>, vector<16x128xf32> -> vector<16x128xf32>
    %390 = arith.index_cast %c5_i32 : i32 to index
    %c0_105 = arith.constant 0 : index
    %c0_106 = arith.constant 0 : index
    %391 = vector.load %arg10[%390, %c0_105, %c0_106] : memref<8x16x128xf32, #tpu.memory_space<vmem>>, vector<1x16x128xf32>
    %392 = vector.shape_cast %391 : vector<1x16x128xf32> to vector<16x128xf32>
    %393 = arith.addf %392, %388 : vector<16x128xf32>
    %394 = vector.extract_strided_slice %393 {offsets = [0, 0], sizes = [16, 32], strides = [1, 1]} : vector<16x128xf32> to vector<16x32xf32>
    %395 = arith.negf %394 : vector<16x32xf32>
    %396 = math.exp %395 : vector<16x32xf32>
    %cst_107 = arith.constant 1.000000e+00 : f32
    %397 = vector.broadcast %cst_107 : f32 to vector<16x32xf32>
    %398 = arith.addf %397, %396 : vector<16x32xf32>
    %399 = arith.divf %397, %398 : vector<16x32xf32>
    %400 = vector.extract_strided_slice %393 {offsets = [0, 32], sizes = [16, 32], strides = [1, 1]} : vector<16x128xf32> to vector<16x32xf32>
    %401 = arith.negf %400 : vector<16x32xf32>
    %402 = math.exp %401 : vector<16x32xf32>
    %cst_108 = arith.constant 1.000000e+00 : f32
    %403 = vector.broadcast %cst_108 : f32 to vector<16x32xf32>
    %404 = arith.addf %403, %402 : vector<16x32xf32>
    %405 = arith.divf %403, %404 : vector<16x32xf32>
    %406 = vector.extract_strided_slice %393 {offsets = [0, 64], sizes = [16, 32], strides = [1, 1]} : vector<16x128xf32> to vector<16x32xf32>
    %407 = math.tanh %406 : vector<16x32xf32>
    %408 = vector.extract_strided_slice %393 {offsets = [0, 96], sizes = [16, 32], strides = [1, 1]} : vector<16x128xf32> to vector<16x32xf32>
    %409 = arith.negf %408 : vector<16x32xf32>
    %410 = math.exp %409 : vector<16x32xf32>
    %cst_109 = arith.constant 1.000000e+00 : f32
    %411 = vector.broadcast %cst_109 : f32 to vector<16x32xf32>
    %412 = arith.addf %411, %410 : vector<16x32xf32>
    %413 = arith.divf %411, %412 : vector<16x32xf32>
    %414 = arith.mulf %405, %343 : vector<16x32xf32>
    %415 = arith.mulf %399, %407 : vector<16x32xf32>
    %416 = arith.addf %414, %415 : vector<16x32xf32>
    %417 = math.tanh %416 : vector<16x32xf32>
    %418 = arith.mulf %413, %417 : vector<16x32xf32>
    %419 = arith.index_cast %387 : i32 to index
    %c0_110 = arith.constant 0 : index
    %c0_111 = arith.constant 0 : index
    %420 = vector.load %arg11[%419, %c0_110, %c0_111] : memref<8x16x128xf32, #tpu.memory_space<vmem>>, vector<1x16x128xf32>
    %421 = vector.shape_cast %420 : vector<1x16x128xf32> to vector<16x128xf32>
    %422 = arith.addf %421, %389 : vector<16x128xf32>
    %423 = vector.extract_strided_slice %422 {offsets = [0, 0], sizes = [16, 32], strides = [1, 1]} : vector<16x128xf32> to vector<16x32xf32>
    %424 = arith.negf %423 : vector<16x32xf32>
    %425 = math.exp %424 : vector<16x32xf32>
    %cst_112 = arith.constant 1.000000e+00 : f32
    %426 = vector.broadcast %cst_112 : f32 to vector<16x32xf32>
    %427 = arith.addf %426, %425 : vector<16x32xf32>
    %428 = arith.divf %426, %427 : vector<16x32xf32>
    %429 = vector.extract_strided_slice %422 {offsets = [0, 32], sizes = [16, 32], strides = [1, 1]} : vector<16x128xf32> to vector<16x32xf32>
    %430 = arith.negf %429 : vector<16x32xf32>
    %431 = math.exp %430 : vector<16x32xf32>
    %cst_113 = arith.constant 1.000000e+00 : f32
    %432 = vector.broadcast %cst_113 : f32 to vector<16x32xf32>
    %433 = arith.addf %432, %431 : vector<16x32xf32>
    %434 = arith.divf %432, %433 : vector<16x32xf32>
    %435 = vector.extract_strided_slice %422 {offsets = [0, 64], sizes = [16, 32], strides = [1, 1]} : vector<16x128xf32> to vector<16x32xf32>
    %436 = math.tanh %435 : vector<16x32xf32>
    %437 = vector.extract_strided_slice %422 {offsets = [0, 96], sizes = [16, 32], strides = [1, 1]} : vector<16x128xf32> to vector<16x32xf32>
    %438 = arith.negf %437 : vector<16x32xf32>
    %439 = math.exp %438 : vector<16x32xf32>
    %cst_114 = arith.constant 1.000000e+00 : f32
    %440 = vector.broadcast %cst_114 : f32 to vector<16x32xf32>
    %441 = arith.addf %440, %439 : vector<16x32xf32>
    %442 = arith.divf %440, %441 : vector<16x32xf32>
    %443 = arith.mulf %434, %372 : vector<16x32xf32>
    %444 = arith.mulf %428, %436 : vector<16x32xf32>
    %445 = arith.addf %443, %444 : vector<16x32xf32>
    %446 = math.tanh %445 : vector<16x32xf32>
    %447 = arith.mulf %442, %446 : vector<16x32xf32>
    %448 = arith.index_cast %c5_i32 : i32 to index
    %c0_115 = arith.constant 0 : index
    %c0_116 = arith.constant 0 : index
    %449 = vector.load %arg2[%448, %c0_115, %c0_116] : memref<8x16x1xf32, #tpu.memory_space<vmem>>, vector<1x16x1xf32>
    %450 = vector.shape_cast %449 : vector<1x16x1xf32> to vector<16x1xf32>
    %451 = vector.broadcast %450 : vector<16x1xf32> to vector<16x32xf32>
    %452 = arith.mulf %418, %451 : vector<16x32xf32>
    %453 = arith.addf %380, %452 : vector<16x32xf32>
    %454 = arith.index_cast %387 : i32 to index
    %c0_117 = arith.constant 0 : index
    %c0_118 = arith.constant 0 : index
    %455 = vector.load %arg2[%454, %c0_117, %c0_118] : memref<8x16x1xf32, #tpu.memory_space<vmem>>, vector<1x16x1xf32>
    %456 = vector.shape_cast %455 : vector<1x16x1xf32> to vector<16x1xf32>
    %457 = vector.broadcast %456 : vector<16x1xf32> to vector<16x32xf32>
    %458 = arith.mulf %447, %457 : vector<16x32xf32>
    %459 = arith.addf %386, %458 : vector<16x32xf32>
    %c6_i32 = arith.constant 6 : i32
    %c7_i32_119 = arith.constant 7 : i32
    %460 = arith.subi %c7_i32_119, %c6_i32 : i32
    %cst_120 = arith.constant dense<0.000000e+00> : vector<16x128xf32>
    %461 = tpu.matmul %418, %19, %cst_120 {dimension_numbers = #tpu.dot_dimension_numbers<[1], [0], [0], [1], [0, 0, 1, 1], [], []>} : vector<16x32xf32>, vector<32x128xf32>, vector<16x128xf32> -> vector<16x128xf32>
    %cst_121 = arith.constant dense<0.000000e+00> : vector<16x128xf32>
    %462 = tpu.matmul %447, %20, %cst_121 {dimension_numbers = #tpu.dot_dimension_numbers<[1], [0], [0], [1], [0, 0, 1, 1], [], []>} : vector<16x32xf32>, vector<32x128xf32>, vector<16x128xf32> -> vector<16x128xf32>
    %463 = arith.index_cast %c6_i32 : i32 to index
    %c0_122 = arith.constant 0 : index
    %c0_123 = arith.constant 0 : index
    %464 = vector.load %arg10[%463, %c0_122, %c0_123] : memref<8x16x128xf32, #tpu.memory_space<vmem>>, vector<1x16x128xf32>
    %465 = vector.shape_cast %464 : vector<1x16x128xf32> to vector<16x128xf32>
    %466 = arith.addf %465, %461 : vector<16x128xf32>
    %467 = vector.extract_strided_slice %466 {offsets = [0, 0], sizes = [16, 32], strides = [1, 1]} : vector<16x128xf32> to vector<16x32xf32>
    %468 = arith.negf %467 : vector<16x32xf32>
    %469 = math.exp %468 : vector<16x32xf32>
    %cst_124 = arith.constant 1.000000e+00 : f32
    %470 = vector.broadcast %cst_124 : f32 to vector<16x32xf32>
    %471 = arith.addf %470, %469 : vector<16x32xf32>
    %472 = arith.divf %470, %471 : vector<16x32xf32>
    %473 = vector.extract_strided_slice %466 {offsets = [0, 32], sizes = [16, 32], strides = [1, 1]} : vector<16x128xf32> to vector<16x32xf32>
    %474 = arith.negf %473 : vector<16x32xf32>
    %475 = math.exp %474 : vector<16x32xf32>
    %cst_125 = arith.constant 1.000000e+00 : f32
    %476 = vector.broadcast %cst_125 : f32 to vector<16x32xf32>
    %477 = arith.addf %476, %475 : vector<16x32xf32>
    %478 = arith.divf %476, %477 : vector<16x32xf32>
    %479 = vector.extract_strided_slice %466 {offsets = [0, 64], sizes = [16, 32], strides = [1, 1]} : vector<16x128xf32> to vector<16x32xf32>
    %480 = math.tanh %479 : vector<16x32xf32>
    %481 = vector.extract_strided_slice %466 {offsets = [0, 96], sizes = [16, 32], strides = [1, 1]} : vector<16x128xf32> to vector<16x32xf32>
    %482 = arith.negf %481 : vector<16x32xf32>
    %483 = math.exp %482 : vector<16x32xf32>
    %cst_126 = arith.constant 1.000000e+00 : f32
    %484 = vector.broadcast %cst_126 : f32 to vector<16x32xf32>
    %485 = arith.addf %484, %483 : vector<16x32xf32>
    %486 = arith.divf %484, %485 : vector<16x32xf32>
    %487 = arith.mulf %478, %416 : vector<16x32xf32>
    %488 = arith.mulf %472, %480 : vector<16x32xf32>
    %489 = arith.addf %487, %488 : vector<16x32xf32>
    %490 = math.tanh %489 : vector<16x32xf32>
    %491 = arith.mulf %486, %490 : vector<16x32xf32>
    %492 = arith.index_cast %460 : i32 to index
    %c0_127 = arith.constant 0 : index
    %c0_128 = arith.constant 0 : index
    %493 = vector.load %arg11[%492, %c0_127, %c0_128] : memref<8x16x128xf32, #tpu.memory_space<vmem>>, vector<1x16x128xf32>
    %494 = vector.shape_cast %493 : vector<1x16x128xf32> to vector<16x128xf32>
    %495 = arith.addf %494, %462 : vector<16x128xf32>
    %496 = vector.extract_strided_slice %495 {offsets = [0, 0], sizes = [16, 32], strides = [1, 1]} : vector<16x128xf32> to vector<16x32xf32>
    %497 = arith.negf %496 : vector<16x32xf32>
    %498 = math.exp %497 : vector<16x32xf32>
    %cst_129 = arith.constant 1.000000e+00 : f32
    %499 = vector.broadcast %cst_129 : f32 to vector<16x32xf32>
    %500 = arith.addf %499, %498 : vector<16x32xf32>
    %501 = arith.divf %499, %500 : vector<16x32xf32>
    %502 = vector.extract_strided_slice %495 {offsets = [0, 32], sizes = [16, 32], strides = [1, 1]} : vector<16x128xf32> to vector<16x32xf32>
    %503 = arith.negf %502 : vector<16x32xf32>
    %504 = math.exp %503 : vector<16x32xf32>
    %cst_130 = arith.constant 1.000000e+00 : f32
    %505 = vector.broadcast %cst_130 : f32 to vector<16x32xf32>
    %506 = arith.addf %505, %504 : vector<16x32xf32>
    %507 = arith.divf %505, %506 : vector<16x32xf32>
    %508 = vector.extract_strided_slice %495 {offsets = [0, 64], sizes = [16, 32], strides = [1, 1]} : vector<16x128xf32> to vector<16x32xf32>
    %509 = math.tanh %508 : vector<16x32xf32>
    %510 = vector.extract_strided_slice %495 {offsets = [0, 96], sizes = [16, 32], strides = [1, 1]} : vector<16x128xf32> to vector<16x32xf32>
    %511 = arith.negf %510 : vector<16x32xf32>
    %512 = math.exp %511 : vector<16x32xf32>
    %cst_131 = arith.constant 1.000000e+00 : f32
    %513 = vector.broadcast %cst_131 : f32 to vector<16x32xf32>
    %514 = arith.addf %513, %512 : vector<16x32xf32>
    %515 = arith.divf %513, %514 : vector<16x32xf32>
    %516 = arith.mulf %507, %445 : vector<16x32xf32>
    %517 = arith.mulf %501, %509 : vector<16x32xf32>
    %518 = arith.addf %516, %517 : vector<16x32xf32>
    %519 = math.tanh %518 : vector<16x32xf32>
    %520 = arith.mulf %515, %519 : vector<16x32xf32>
    %521 = arith.index_cast %c6_i32 : i32 to index
    %c0_132 = arith.constant 0 : index
    %c0_133 = arith.constant 0 : index
    %522 = vector.load %arg2[%521, %c0_132, %c0_133] : memref<8x16x1xf32, #tpu.memory_space<vmem>>, vector<1x16x1xf32>
    %523 = vector.shape_cast %522 : vector<1x16x1xf32> to vector<16x1xf32>
    %524 = vector.broadcast %523 : vector<16x1xf32> to vector<16x32xf32>
    %525 = arith.mulf %491, %524 : vector<16x32xf32>
    %526 = arith.addf %453, %525 : vector<16x32xf32>
    %527 = arith.index_cast %460 : i32 to index
    %c0_134 = arith.constant 0 : index
    %c0_135 = arith.constant 0 : index
    %528 = vector.load %arg2[%527, %c0_134, %c0_135] : memref<8x16x1xf32, #tpu.memory_space<vmem>>, vector<1x16x1xf32>
    %529 = vector.shape_cast %528 : vector<1x16x1xf32> to vector<16x1xf32>
    %530 = vector.broadcast %529 : vector<16x1xf32> to vector<16x32xf32>
    %531 = arith.mulf %520, %530 : vector<16x32xf32>
    %532 = arith.addf %459, %531 : vector<16x32xf32>
    %c7_i32_136 = arith.constant 7 : i32
    %c7_i32_137 = arith.constant 7 : i32
    %533 = arith.subi %c7_i32_137, %c7_i32_136 : i32
    %cst_138 = arith.constant dense<0.000000e+00> : vector<16x128xf32>
    %534 = tpu.matmul %491, %19, %cst_138 {dimension_numbers = #tpu.dot_dimension_numbers<[1], [0], [0], [1], [0, 0, 1, 1], [], []>} : vector<16x32xf32>, vector<32x128xf32>, vector<16x128xf32> -> vector<16x128xf32>
    %cst_139 = arith.constant dense<0.000000e+00> : vector<16x128xf32>
    %535 = tpu.matmul %520, %20, %cst_139 {dimension_numbers = #tpu.dot_dimension_numbers<[1], [0], [0], [1], [0, 0, 1, 1], [], []>} : vector<16x32xf32>, vector<32x128xf32>, vector<16x128xf32> -> vector<16x128xf32>
    %536 = arith.index_cast %c7_i32_136 : i32 to index
    %c0_140 = arith.constant 0 : index
    %c0_141 = arith.constant 0 : index
    %537 = vector.load %arg10[%536, %c0_140, %c0_141] : memref<8x16x128xf32, #tpu.memory_space<vmem>>, vector<1x16x128xf32>
    %538 = vector.shape_cast %537 : vector<1x16x128xf32> to vector<16x128xf32>
    %539 = arith.addf %538, %534 : vector<16x128xf32>
    %540 = vector.extract_strided_slice %539 {offsets = [0, 0], sizes = [16, 32], strides = [1, 1]} : vector<16x128xf32> to vector<16x32xf32>
    %541 = arith.negf %540 : vector<16x32xf32>
    %542 = math.exp %541 : vector<16x32xf32>
    %cst_142 = arith.constant 1.000000e+00 : f32
    %543 = vector.broadcast %cst_142 : f32 to vector<16x32xf32>
    %544 = arith.addf %543, %542 : vector<16x32xf32>
    %545 = arith.divf %543, %544 : vector<16x32xf32>
    %546 = vector.extract_strided_slice %539 {offsets = [0, 32], sizes = [16, 32], strides = [1, 1]} : vector<16x128xf32> to vector<16x32xf32>
    %547 = arith.negf %546 : vector<16x32xf32>
    %548 = math.exp %547 : vector<16x32xf32>
    %cst_143 = arith.constant 1.000000e+00 : f32
    %549 = vector.broadcast %cst_143 : f32 to vector<16x32xf32>
    %550 = arith.addf %549, %548 : vector<16x32xf32>
    %551 = arith.divf %549, %550 : vector<16x32xf32>
    %552 = vector.extract_strided_slice %539 {offsets = [0, 64], sizes = [16, 32], strides = [1, 1]} : vector<16x128xf32> to vector<16x32xf32>
    %553 = math.tanh %552 : vector<16x32xf32>
    %554 = vector.extract_strided_slice %539 {offsets = [0, 96], sizes = [16, 32], strides = [1, 1]} : vector<16x128xf32> to vector<16x32xf32>
    %555 = arith.negf %554 : vector<16x32xf32>
    %556 = math.exp %555 : vector<16x32xf32>
    %cst_144 = arith.constant 1.000000e+00 : f32
    %557 = vector.broadcast %cst_144 : f32 to vector<16x32xf32>
    %558 = arith.addf %557, %556 : vector<16x32xf32>
    %559 = arith.divf %557, %558 : vector<16x32xf32>
    %560 = arith.mulf %551, %489 : vector<16x32xf32>
    %561 = arith.mulf %545, %553 : vector<16x32xf32>
    %562 = arith.addf %560, %561 : vector<16x32xf32>
    %563 = math.tanh %562 : vector<16x32xf32>
    %564 = arith.mulf %559, %563 : vector<16x32xf32>
    %565 = arith.index_cast %533 : i32 to index
    %c0_145 = arith.constant 0 : index
    %c0_146 = arith.constant 0 : index
    %566 = vector.load %arg11[%565, %c0_145, %c0_146] : memref<8x16x128xf32, #tpu.memory_space<vmem>>, vector<1x16x128xf32>
    %567 = vector.shape_cast %566 : vector<1x16x128xf32> to vector<16x128xf32>
    %568 = arith.addf %567, %535 : vector<16x128xf32>
    %569 = vector.extract_strided_slice %568 {offsets = [0, 0], sizes = [16, 32], strides = [1, 1]} : vector<16x128xf32> to vector<16x32xf32>
    %570 = arith.negf %569 : vector<16x32xf32>
    %571 = math.exp %570 : vector<16x32xf32>
    %cst_147 = arith.constant 1.000000e+00 : f32
    %572 = vector.broadcast %cst_147 : f32 to vector<16x32xf32>
    %573 = arith.addf %572, %571 : vector<16x32xf32>
    %574 = arith.divf %572, %573 : vector<16x32xf32>
    %575 = vector.extract_strided_slice %568 {offsets = [0, 32], sizes = [16, 32], strides = [1, 1]} : vector<16x128xf32> to vector<16x32xf32>
    %576 = arith.negf %575 : vector<16x32xf32>
    %577 = math.exp %576 : vector<16x32xf32>
    %cst_148 = arith.constant 1.000000e+00 : f32
    %578 = vector.broadcast %cst_148 : f32 to vector<16x32xf32>
    %579 = arith.addf %578, %577 : vector<16x32xf32>
    %580 = arith.divf %578, %579 : vector<16x32xf32>
    %581 = vector.extract_strided_slice %568 {offsets = [0, 64], sizes = [16, 32], strides = [1, 1]} : vector<16x128xf32> to vector<16x32xf32>
    %582 = math.tanh %581 : vector<16x32xf32>
    %583 = vector.extract_strided_slice %568 {offsets = [0, 96], sizes = [16, 32], strides = [1, 1]} : vector<16x128xf32> to vector<16x32xf32>
    %584 = arith.negf %583 : vector<16x32xf32>
    %585 = math.exp %584 : vector<16x32xf32>
    %cst_149 = arith.constant 1.000000e+00 : f32
    %586 = vector.broadcast %cst_149 : f32 to vector<16x32xf32>
    %587 = arith.addf %586, %585 : vector<16x32xf32>
    %588 = arith.divf %586, %587 : vector<16x32xf32>
    %589 = arith.mulf %580, %518 : vector<16x32xf32>
    %590 = arith.mulf %574, %582 : vector<16x32xf32>
    %591 = arith.addf %589, %590 : vector<16x32xf32>
    %592 = math.tanh %591 : vector<16x32xf32>
    %593 = arith.mulf %588, %592 : vector<16x32xf32>
    %594 = arith.index_cast %c7_i32_136 : i32 to index
    %c0_150 = arith.constant 0 : index
    %c0_151 = arith.constant 0 : index
    %595 = vector.load %arg2[%594, %c0_150, %c0_151] : memref<8x16x1xf32, #tpu.memory_space<vmem>>, vector<1x16x1xf32>
    %596 = vector.shape_cast %595 : vector<1x16x1xf32> to vector<16x1xf32>
    %597 = vector.broadcast %596 : vector<16x1xf32> to vector<16x32xf32>
    %598 = arith.mulf %564, %597 : vector<16x32xf32>
    %599 = arith.addf %526, %598 : vector<16x32xf32>
    %600 = arith.index_cast %533 : i32 to index
    %c0_152 = arith.constant 0 : index
    %c0_153 = arith.constant 0 : index
    %601 = vector.load %arg2[%600, %c0_152, %c0_153] : memref<8x16x1xf32, #tpu.memory_space<vmem>>, vector<1x16x1xf32>
    %602 = vector.shape_cast %601 : vector<1x16x1xf32> to vector<16x1xf32>
    %603 = vector.broadcast %602 : vector<16x1xf32> to vector<16x32xf32>
    %604 = arith.mulf %593, %603 : vector<16x32xf32>
    %605 = arith.addf %532, %604 : vector<16x32xf32>
    %c8_i32_154 = arith.constant 8 : i32
    %c0_155 = arith.constant 0 : index
    %c0_156 = arith.constant 0 : index
    %c0_157 = arith.constant 0 : index
    %606 = vector.load %arg2[%c0_155, %c0_156, %c0_157] : memref<8x16x1xf32, #tpu.memory_space<vmem>>, vector<8x16x1xf32>
    %cst_158 = arith.constant dense<0.000000e+00> : vector<16x1xf32>
    %607 = vector.multi_reduction <add>, %606, %cst_158 [0] : vector<8x16x1xf32> to vector<16x1xf32>
    %cst_159 = arith.constant 9.99999971E-10 : f32
    %608 = vector.broadcast %cst_159 : f32 to vector<16x1xf32>
    %609 = arith.maximumf %607, %608 : vector<16x1xf32>
    %610 = tpu.concatenate %599, %605 in 1 : vector<16x32xf32>, vector<16x32xf32> -> vector<16x64xf32>
    %611 = vector.broadcast %609 : vector<16x1xf32> to vector<16x64xf32>
    %612 = arith.divf %610, %611 : vector<16x64xf32>
    %c0_160 = arith.constant 0 : index
    %c0_161 = arith.constant 0 : index
    %613 = vector.load %arg7[%c0_160, %c0_161] : memref<64x128xf32, #tpu.memory_space<vmem>>, vector<64x128xf32>
    %cst_162 = arith.constant dense<0.000000e+00> : vector<16x128xf32>
    %614 = tpu.matmul %612, %613, %cst_162 {dimension_numbers = #tpu.dot_dimension_numbers<[1], [0], [0], [1], [0, 0, 1, 1], [], []>} : vector<16x64xf32>, vector<64x128xf32>, vector<16x128xf32> -> vector<16x128xf32>
    %c0_163 = arith.constant 0 : index
    %c0_164 = arith.constant 0 : index
    %615 = vector.load %arg8[%c0_163, %c0_164] : memref<1x128xf32, #tpu.memory_space<vmem>>, vector<1x128xf32>
    %616 = vector.broadcast %615 : vector<1x128xf32> to vector<16x128xf32>
    %617 = arith.addf %614, %616 : vector<16x128xf32>
    %c0_165 = arith.constant 0 : index
    %c0_166 = arith.constant 0 : index
    %618 = vector.load %arg9[%c0_165, %c0_166] : memref<16x128xf32, #tpu.memory_space<vmem>>, vector<16x128xf32>
    tpu.vector_store %arg9[%c0_165, %c0_166], %617 {strides = array<i32>} : memref<16x128xf32, #tpu.memory_space<vmem>>, vector<16x128xf32>,
    return
  }
  func.func @transform_0(%arg0: i32) -> (i32, i32, i32) {
    %c0_i32 = arith.constant 0 : i32
    %c0_i32_0 = arith.constant 0 : i32
    %c0_i32_1 = arith.constant 0 : i32
    return %c0_i32, %arg0, %c0_i32_0 : i32, i32, i32
  }
  func.func @transform_1(%arg0: i32) -> (i32, i32, i32) {
    %c0_i32 = arith.constant 0 : i32
    %c0_i32_0 = arith.constant 0 : i32
    %c0_i32_1 = arith.constant 0 : i32
    return %c0_i32, %arg0, %c0_i32_0 : i32, i32, i32
  }
  func.func @transform_2(%arg0: i32) -> (i32, i32) {
    %c0_i32 = arith.constant 0 : i32
    %c0_i32_0 = arith.constant 0 : i32
    %c0_i32_1 = arith.constant 0 : i32
    return %c0_i32, %c0_i32_0 : i32, i32
  }
  func.func @transform_3(%arg0: i32) -> (i32, i32) {
    %c0_i32 = arith.constant 0 : i32
    %c0_i32_0 = arith.constant 0 : i32
    %c0_i32_1 = arith.constant 0 : i32
    return %c0_i32, %c0_i32_0 : i32, i32
  }
  func.func @transform_4(%arg0: i32) -> (i32, i32) {
    %c0_i32 = arith.constant 0 : i32
    %c0_i32_0 = arith.constant 0 : i32
    %c0_i32_1 = arith.constant 0 : i32
    return %c0_i32, %c0_i32_0 : i32, i32
  }
  func.func @transform_5(%arg0: i32) -> (i32, i32) {
    %c0_i32 = arith.constant 0 : i32
    %c0_i32_0 = arith.constant 0 : i32
    %c0_i32_1 = arith.constant 0 : i32
    return %c0_i32, %c0_i32_0 : i32, i32
  }
  func.func @transform_6(%arg0: i32) -> (i32, i32) {
    %c0_i32 = arith.constant 0 : i32
    %c0_i32_0 = arith.constant 0 : i32
    %c0_i32_1 = arith.constant 0 : i32
    return %c0_i32, %c0_i32_0 : i32, i32
  }
  func.func @transform_7(%arg0: i32) -> (i32, i32) {
    %c0_i32 = arith.constant 0 : i32
    %c0_i32_0 = arith.constant 0 : i32
    %c0_i32_1 = arith.constant 0 : i32
    return %c0_i32, %c0_i32_0 : i32, i32
  }
  func.func @transform_8(%arg0: i32) -> (i32, i32) {
    %c0_i32 = arith.constant 0 : i32
    %c0_i32_0 = arith.constant 0 : i32
    return %arg0, %c0_i32 : i32, i32
  }
}

module attributes {stable_mosaic.version = 11 : i64} {
  func.func @bilstm_head_kernel(%arg0: i32, %arg1: memref<8x16x32xf32, #tpu.memory_space<vmem>>, %arg2: memref<8x16x1xf32, #tpu.memory_space<vmem>>, %arg3: memref<32x256xf32, #tpu.memory_space<vmem>>, %arg4: memref<1x256xf32, #tpu.memory_space<vmem>>, %arg5: memref<32x128xf32, #tpu.memory_space<vmem>>, %arg6: memref<32x128xf32, #tpu.memory_space<vmem>>, %arg7: memref<64x128xf32, #tpu.memory_space<vmem>>, %arg8: memref<1x128xf32, #tpu.memory_space<vmem>>, %arg9: memref<16x128xf32, #tpu.memory_space<vmem>>, %arg10: memref<8x16x128xf32, #tpu.memory_space<vmem>>, %arg11: memref<8x16x128xf32, #tpu.memory_space<vmem>>) attributes {dimension_semantics = [#tpu.dimension_semantics<parallel>], iteration_bounds = array<i64: 1>, scalar_prefetch = 0 : i64, scratch_operands = 2 : i64, tpu.core_type = #tpu.core_type<tc>, window_params = [{transform_indices = @transform_0, window_bounds = array<i64: 8, 16, 32>}, {transform_indices = @transform_1, window_bounds = array<i64: 8, 16, 1>}, {pipeline_mode = #tpu.pipeline_mode<synchronous>, transform_indices = @transform_2, window_bounds = array<i64: 32, 256>}, {pipeline_mode = #tpu.pipeline_mode<synchronous>, transform_indices = @transform_3, window_bounds = array<i64: 1, 256>}, {pipeline_mode = #tpu.pipeline_mode<synchronous>, transform_indices = @transform_4, window_bounds = array<i64: 32, 128>}, {pipeline_mode = #tpu.pipeline_mode<synchronous>, transform_indices = @transform_5, window_bounds = array<i64: 32, 128>}, {pipeline_mode = #tpu.pipeline_mode<synchronous>, transform_indices = @transform_6, window_bounds = array<i64: 64, 128>}, {pipeline_mode = #tpu.pipeline_mode<synchronous>, transform_indices = @transform_7, window_bounds = array<i64: 1, 128>}, {transform_indices = @transform_8, window_bounds = array<i64: 16, 128>}]} {
    %c0_i32 = arith.constant 0 : i32
    %c1_i32 = arith.constant 1 : i32
    %0 = arith.muli %c0_i32, %c1_i32 : i32
    %c0_i32_0 = arith.constant 0 : i32
    %1 = arith.addi %c0_i32_0, %0 : i32
    %c8_i32 = arith.constant 8 : i32
    %2 = arith.muli %1, %c8_i32 : i32
    %3 = tpu.assume_multiple %2, 8 : i32
    %4 = arith.index_cast %3 : i32 to index
    %c0 = arith.constant 0 : index
    %c0_1 = arith.constant 0 : index
    %5 = vector.load %arg1[%4, %c0, %c0_1] : memref<8x16x32xf32, #tpu.memory_space<vmem>>, vector<8x16x32xf32>
    %6 = vector.shape_cast %5 : vector<8x16x32xf32> to vector<128x32xf32>
    %c0_2 = arith.constant 0 : index
    %c0_3 = arith.constant 0 : index
    %7 = vector.load %arg3[%c0_2, %c0_3] : memref<32x256xf32, #tpu.memory_space<vmem>>, vector<32x256xf32>
    %cst = arith.constant dense<0.000000e+00> : vector<128x256xf32>
    %8 = tpu.matmul %6, %7, %cst {dimension_numbers = #tpu.dot_dimension_numbers<[1], [0], [0], [1], [0, 0, 1, 1], [], []>} : vector<128x32xf32>, vector<32x256xf32>, vector<128x256xf32> -> vector<128x256xf32>
    %c0_4 = arith.constant 0 : index
    %c0_5 = arith.constant 0 : index
    %9 = vector.load %arg4[%c0_4, %c0_5] : memref<1x256xf32, #tpu.memory_space<vmem>>, vector<1x256xf32>
    %10 = vector.broadcast %9 : vector<1x256xf32> to vector<128x256xf32>
    %11 = arith.addf %8, %10 : vector<128x256xf32>
    %12 = vector.shape_cast %11 : vector<128x256xf32> to vector<8x16x256xf32>
    %13 = vector.extract_strided_slice %12 {offsets = [0, 0, 0], sizes = [8, 16, 128], strides = [1, 1, 1]} : vector<8x16x256xf32> to vector<8x16x128xf32>
    %14 = arith.index_cast %3 : i32 to index
    %c0_6 = arith.constant 0 : index
    %c0_7 = arith.constant 0 : index
    %15 = vector.load %arg10[%14, %c0_6, %c0_7] : memref<8x16x128xf32, #tpu.memory_space<vmem>>, vector<8x16x128xf32>
    tpu.vector_store %arg10[%14, %c0_6, %c0_7], %13 {strides = array<i32>} : memref<8x16x128xf32, #tpu.memory_space<vmem>>, vector<8x16x128xf32>,
    %16 = vector.extract_strided_slice %12 {offsets = [0, 0, 128], sizes = [8, 16, 128], strides = [1, 1, 1]} : vector<8x16x256xf32> to vector<8x16x128xf32>
    %17 = arith.index_cast %3 : i32 to index
    %c0_8 = arith.constant 0 : index
    %c0_9 = arith.constant 0 : index
    %18 = vector.load %arg11[%17, %c0_8, %c0_9] : memref<8x16x128xf32, #tpu.memory_space<vmem>>, vector<8x16x128xf32>
    tpu.vector_store %arg11[%17, %c0_8, %c0_9], %16 {strides = array<i32>} : memref<8x16x128xf32, #tpu.memory_space<vmem>>, vector<8x16x128xf32>,
    %c1_i32_10 = arith.constant 1 : i32
    %c0_11 = arith.constant 0 : index
    %c0_12 = arith.constant 0 : index
    %19 = vector.load %arg5[%c0_11, %c0_12] : memref<32x128xf32, #tpu.memory_space<vmem>>, vector<32x128xf32>
    %c0_13 = arith.constant 0 : index
    %c0_14 = arith.constant 0 : index
    %20 = vector.load %arg6[%c0_13, %c0_14] : memref<32x128xf32, #tpu.memory_space<vmem>>, vector<32x128xf32>
    %cst_15 = arith.constant 0.000000e+00 : f32
    %21 = vector.broadcast %cst_15 : f32 to vector<16x32xf32>
    %c0_i32_16 = arith.constant 0 : i32
    %c7_i32 = arith.constant 7 : i32
    %22 = arith.subi %c7_i32, %c0_i32_16 : i32
    %cst_17 = arith.constant dense<0.000000e+00> : vector<16x128xf32>
    %23 = tpu.matmul %21, %19, %cst_17 {dimension_numbers = #tpu.dot_dimension_numbers<[1], [0], [0], [1], [0, 0, 1, 1], [], []>} : vector<16x32xf32>, vector<32x128xf32>, vector<16x128xf32> -> vector<16x128xf32>
    %cst_18 = arith.constant dense<0.000000e+00> : vector<16x128xf32>
    %24 = tpu.matmul %21, %20, %cst_18 {dimension_numbers = #tpu.dot_dimension_numbers<[1], [0], [0], [1], [0, 0, 1, 1], [], []>} : vector<16x32xf32>, vector<32x128xf32>, vector<16x128xf32> -> vector<16x128xf32>
    %25 = arith.index_cast %c0_i32_16 : i32 to index
    %c0_19 = arith.constant 0 : index
    %c0_20 = arith.constant 0 : index
    %26 = vector.load %arg10[%25, %c0_19, %c0_20] : memref<8x16x128xf32, #tpu.memory_space<vmem>>, vector<1x16x128xf32>
    %27 = vector.shape_cast %26 : vector<1x16x128xf32> to vector<16x128xf32>
    %28 = arith.addf %27, %23 : vector<16x128xf32>
    %29 = vector.extract_strided_slice %28 {offsets = [0, 0], sizes = [16, 32], strides = [1, 1]} : vector<16x128xf32> to vector<16x32xf32>
    %30 = arith.negf %29 : vector<16x32xf32>
    %31 = math.exp %30 : vector<16x32xf32>
    %cst_21 = arith.constant 1.000000e+00 : f32
    %32 = vector.broadcast %cst_21 : f32 to vector<16x32xf32>
    %33 = arith.addf %32, %31 : vector<16x32xf32>
    %34 = arith.divf %32, %33 : vector<16x32xf32>
    %35 = vector.extract_strided_slice %28 {offsets = [0, 32], sizes = [16, 32], strides = [1, 1]} : vector<16x128xf32> to vector<16x32xf32>
    %36 = arith.negf %35 : vector<16x32xf32>
    %37 = math.exp %36 : vector<16x32xf32>
    %cst_22 = arith.constant 1.000000e+00 : f32
    %38 = vector.broadcast %cst_22 : f32 to vector<16x32xf32>
    %39 = arith.addf %38, %37 : vector<16x32xf32>
    %40 = arith.divf %38, %39 : vector<16x32xf32>
    %41 = vector.extract_strided_slice %28 {offsets = [0, 64], sizes = [16, 32], strides = [1, 1]} : vector<16x128xf32> to vector<16x32xf32>
    %42 = math.tanh %41 : vector<16x32xf32>
    %43 = vector.extract_strided_slice %28 {offsets = [0, 96], sizes = [16, 32], strides = [1, 1]} : vector<16x128xf32> to vector<16x32xf32>
    %44 = arith.negf %43 : vector<16x32xf32>
    %45 = math.exp %44 : vector<16x32xf32>
    %cst_23 = arith.constant 1.000000e+00 : f32
    %46 = vector.broadcast %cst_23 : f32 to vector<16x32xf32>
    %47 = arith.addf %46, %45 : vector<16x32xf32>
    %48 = arith.divf %46, %47 : vector<16x32xf32>
    %49 = arith.mulf %40, %21 : vector<16x32xf32>
    %50 = arith.mulf %34, %42 : vector<16x32xf32>
    %51 = arith.addf %49, %50 : vector<16x32xf32>
    %52 = math.tanh %51 : vector<16x32xf32>
    %53 = arith.mulf %48, %52 : vector<16x32xf32>
    %54 = arith.index_cast %22 : i32 to index
    %c0_24 = arith.constant 0 : index
    %c0_25 = arith.constant 0 : index
    %55 = vector.load %arg11[%54, %c0_24, %c0_25] : memref<8x16x128xf32, #tpu.memory_space<vmem>>, vector<1x16x128xf32>
    %56 = vector.shape_cast %55 : vector<1x16x128xf32> to vector<16x128xf32>
    %57 = arith.addf %56, %24 : vector<16x128xf32>
    %58 = vector.extract_strided_slice %57 {offsets = [0, 0], sizes = [16, 32], strides = [1, 1]} : vector<16x128xf32> to vector<16x32xf32>
    %59 = arith.negf %58 : vector<16x32xf32>
    %60 = math.exp %59 : vector<16x32xf32>
    %cst_26 = arith.constant 1.000000e+00 : f32
    %61 = vector.broadcast %cst_26 : f32 to vector<16x32xf32>
    %62 = arith.addf %61, %60 : vector<16x32xf32>
    %63 = arith.divf %61, %62 : vector<16x32xf32>
    %64 = vector.extract_strided_slice %57 {offsets = [0, 32], sizes = [16, 32], strides = [1, 1]} : vector<16x128xf32> to vector<16x32xf32>
    %65 = arith.negf %64 : vector<16x32xf32>
    %66 = math.exp %65 : vector<16x32xf32>
    %cst_27 = arith.constant 1.000000e+00 : f32
    %67 = vector.broadcast %cst_27 : f32 to vector<16x32xf32>
    %68 = arith.addf %67, %66 : vector<16x32xf32>
    %69 = arith.divf %67, %68 : vector<16x32xf32>
    %70 = vector.extract_strided_slice %57 {offsets = [0, 64], sizes = [16, 32], strides = [1, 1]} : vector<16x128xf32> to vector<16x32xf32>
    %71 = math.tanh %70 : vector<16x32xf32>
    %72 = vector.extract_strided_slice %57 {offsets = [0, 96], sizes = [16, 32], strides = [1, 1]} : vector<16x128xf32> to vector<16x32xf32>
    %73 = arith.negf %72 : vector<16x32xf32>
    %74 = math.exp %73 : vector<16x32xf32>
    %cst_28 = arith.constant 1.000000e+00 : f32
    %75 = vector.broadcast %cst_28 : f32 to vector<16x32xf32>
    %76 = arith.addf %75, %74 : vector<16x32xf32>
    %77 = arith.divf %75, %76 : vector<16x32xf32>
    %78 = arith.mulf %69, %21 : vector<16x32xf32>
    %79 = arith.mulf %63, %71 : vector<16x32xf32>
    %80 = arith.addf %78, %79 : vector<16x32xf32>
    %81 = math.tanh %80 : vector<16x32xf32>
    %82 = arith.mulf %77, %81 : vector<16x32xf32>
    %83 = arith.index_cast %c0_i32_16 : i32 to index
    %c0_29 = arith.constant 0 : index
    %c0_30 = arith.constant 0 : index
    %84 = vector.load %arg2[%83, %c0_29, %c0_30] : memref<8x16x1xf32, #tpu.memory_space<vmem>>, vector<1x16x1xf32>
    %85 = vector.shape_cast %84 : vector<1x16x1xf32> to vector<16x1xf32>
    %86 = vector.broadcast %85 : vector<16x1xf32> to vector<16x32xf32>
    %87 = arith.mulf %53, %86 : vector<16x32xf32>
    %88 = arith.addf %21, %87 : vector<16x32xf32>
    %89 = arith.index_cast %22 : i32 to index
    %c0_31 = arith.constant 0 : index
    %c0_32 = arith.constant 0 : index
    %90 = vector.load %arg2[%89, %c0_31, %c0_32] : memref<8x16x1xf32, #tpu.memory_space<vmem>>, vector<1x16x1xf32>
    %91 = vector.shape_cast %90 : vector<1x16x1xf32> to vector<16x1xf32>
    %92 = vector.broadcast %91 : vector<16x1xf32> to vector<16x32xf32>
    %93 = arith.mulf %82, %92 : vector<16x32xf32>
    %94 = arith.addf %21, %93 : vector<16x32xf32>
    %c1_i32_33 = arith.constant 1 : i32
    %c7_i32_34 = arith.constant 7 : i32
    %95 = arith.subi %c7_i32_34, %c1_i32_33 : i32
    %cst_35 = arith.constant dense<0.000000e+00> : vector<16x128xf32>
    %96 = tpu.matmul %53, %19, %cst_35 {dimension_numbers = #tpu.dot_dimension_numbers<[1], [0], [0], [1], [0, 0, 1, 1], [], []>} : vector<16x32xf32>, vector<32x128xf32>, vector<16x128xf32> -> vector<16x128xf32>
    %cst_36 = arith.constant dense<0.000000e+00> : vector<16x128xf32>
    %97 = tpu.matmul %82, %20, %cst_36 {dimension_numbers = #tpu.dot_dimension_numbers<[1], [0], [0], [1], [0, 0, 1, 1], [], []>} : vector<16x32xf32>, vector<32x128xf32>, vector<16x128xf32> -> vector<16x128xf32>
    %98 = arith.index_cast %c1_i32_33 : i32 to index
    %c0_37 = arith.constant 0 : index
    %c0_38 = arith.constant 0 : index
    %99 = vector.load %arg10[%98, %c0_37, %c0_38] : memref<8x16x128xf32, #tpu.memory_space<vmem>>, vector<1x16x128xf32>
    %100 = vector.shape_cast %99 : vector<1x16x128xf32> to vector<16x128xf32>
    %101 = arith.addf %100, %96 : vector<16x128xf32>
    %102 = vector.extract_strided_slice %101 {offsets = [0, 0], sizes = [16, 32], strides = [1, 1]} : vector<16x128xf32> to vector<16x32xf32>
    %103 = arith.negf %102 : vector<16x32xf32>
    %104 = math.exp %103 : vector<16x32xf32>
    %cst_39 = arith.constant 1.000000e+00 : f32
    %105 = vector.broadcast %cst_39 : f32 to vector<16x32xf32>
    %106 = arith.addf %105, %104 : vector<16x32xf32>
    %107 = arith.divf %105, %106 : vector<16x32xf32>
    %108 = vector.extract_strided_slice %101 {offsets = [0, 32], sizes = [16, 32], strides = [1, 1]} : vector<16x128xf32> to vector<16x32xf32>
    %109 = arith.negf %108 : vector<16x32xf32>
    %110 = math.exp %109 : vector<16x32xf32>
    %cst_40 = arith.constant 1.000000e+00 : f32
    %111 = vector.broadcast %cst_40 : f32 to vector<16x32xf32>
    %112 = arith.addf %111, %110 : vector<16x32xf32>
    %113 = arith.divf %111, %112 : vector<16x32xf32>
    %114 = vector.extract_strided_slice %101 {offsets = [0, 64], sizes = [16, 32], strides = [1, 1]} : vector<16x128xf32> to vector<16x32xf32>
    %115 = math.tanh %114 : vector<16x32xf32>
    %116 = vector.extract_strided_slice %101 {offsets = [0, 96], sizes = [16, 32], strides = [1, 1]} : vector<16x128xf32> to vector<16x32xf32>
    %117 = arith.negf %116 : vector<16x32xf32>
    %118 = math.exp %117 : vector<16x32xf32>
    %cst_41 = arith.constant 1.000000e+00 : f32
    %119 = vector.broadcast %cst_41 : f32 to vector<16x32xf32>
    %120 = arith.addf %119, %118 : vector<16x32xf32>
    %121 = arith.divf %119, %120 : vector<16x32xf32>
    %122 = arith.mulf %113, %51 : vector<16x32xf32>
    %123 = arith.mulf %107, %115 : vector<16x32xf32>
    %124 = arith.addf %122, %123 : vector<16x32xf32>
    %125 = math.tanh %124 : vector<16x32xf32>
    %126 = arith.mulf %121, %125 : vector<16x32xf32>
    %127 = arith.index_cast %95 : i32 to index
    %c0_42 = arith.constant 0 : index
    %c0_43 = arith.constant 0 : index
    %128 = vector.load %arg11[%127, %c0_42, %c0_43] : memref<8x16x128xf32, #tpu.memory_space<vmem>>, vector<1x16x128xf32>
    %129 = vector.shape_cast %128 : vector<1x16x128xf32> to vector<16x128xf32>
    %130 = arith.addf %129, %97 : vector<16x128xf32>
    %131 = vector.extract_strided_slice %130 {offsets = [0, 0], sizes = [16, 32], strides = [1, 1]} : vector<16x128xf32> to vector<16x32xf32>
    %132 = arith.negf %131 : vector<16x32xf32>
    %133 = math.exp %132 : vector<16x32xf32>
    %cst_44 = arith.constant 1.000000e+00 : f32
    %134 = vector.broadcast %cst_44 : f32 to vector<16x32xf32>
    %135 = arith.addf %134, %133 : vector<16x32xf32>
    %136 = arith.divf %134, %135 : vector<16x32xf32>
    %137 = vector.extract_strided_slice %130 {offsets = [0, 32], sizes = [16, 32], strides = [1, 1]} : vector<16x128xf32> to vector<16x32xf32>
    %138 = arith.negf %137 : vector<16x32xf32>
    %139 = math.exp %138 : vector<16x32xf32>
    %cst_45 = arith.constant 1.000000e+00 : f32
    %140 = vector.broadcast %cst_45 : f32 to vector<16x32xf32>
    %141 = arith.addf %140, %139 : vector<16x32xf32>
    %142 = arith.divf %140, %141 : vector<16x32xf32>
    %143 = vector.extract_strided_slice %130 {offsets = [0, 64], sizes = [16, 32], strides = [1, 1]} : vector<16x128xf32> to vector<16x32xf32>
    %144 = math.tanh %143 : vector<16x32xf32>
    %145 = vector.extract_strided_slice %130 {offsets = [0, 96], sizes = [16, 32], strides = [1, 1]} : vector<16x128xf32> to vector<16x32xf32>
    %146 = arith.negf %145 : vector<16x32xf32>
    %147 = math.exp %146 : vector<16x32xf32>
    %cst_46 = arith.constant 1.000000e+00 : f32
    %148 = vector.broadcast %cst_46 : f32 to vector<16x32xf32>
    %149 = arith.addf %148, %147 : vector<16x32xf32>
    %150 = arith.divf %148, %149 : vector<16x32xf32>
    %151 = arith.mulf %142, %80 : vector<16x32xf32>
    %152 = arith.mulf %136, %144 : vector<16x32xf32>
    %153 = arith.addf %151, %152 : vector<16x32xf32>
    %154 = math.tanh %153 : vector<16x32xf32>
    %155 = arith.mulf %150, %154 : vector<16x32xf32>
    %156 = arith.index_cast %c1_i32_33 : i32 to index
    %c0_47 = arith.constant 0 : index
    %c0_48 = arith.constant 0 : index
    %157 = vector.load %arg2[%156, %c0_47, %c0_48] : memref<8x16x1xf32, #tpu.memory_space<vmem>>, vector<1x16x1xf32>
    %158 = vector.shape_cast %157 : vector<1x16x1xf32> to vector<16x1xf32>
    %159 = vector.broadcast %158 : vector<16x1xf32> to vector<16x32xf32>
    %160 = arith.mulf %126, %159 : vector<16x32xf32>
    %161 = arith.addf %88, %160 : vector<16x32xf32>
    %162 = arith.index_cast %95 : i32 to index
    %c0_49 = arith.constant 0 : index
    %c0_50 = arith.constant 0 : index
    %163 = vector.load %arg2[%162, %c0_49, %c0_50] : memref<8x16x1xf32, #tpu.memory_space<vmem>>, vector<1x16x1xf32>
    %164 = vector.shape_cast %163 : vector<1x16x1xf32> to vector<16x1xf32>
    %165 = vector.broadcast %164 : vector<16x1xf32> to vector<16x32xf32>
    %166 = arith.mulf %155, %165 : vector<16x32xf32>
    %167 = arith.addf %94, %166 : vector<16x32xf32>
    %c2_i32 = arith.constant 2 : i32
    %c7_i32_51 = arith.constant 7 : i32
    %168 = arith.subi %c7_i32_51, %c2_i32 : i32
    %cst_52 = arith.constant dense<0.000000e+00> : vector<16x128xf32>
    %169 = tpu.matmul %126, %19, %cst_52 {dimension_numbers = #tpu.dot_dimension_numbers<[1], [0], [0], [1], [0, 0, 1, 1], [], []>} : vector<16x32xf32>, vector<32x128xf32>, vector<16x128xf32> -> vector<16x128xf32>
    %cst_53 = arith.constant dense<0.000000e+00> : vector<16x128xf32>
    %170 = tpu.matmul %155, %20, %cst_53 {dimension_numbers = #tpu.dot_dimension_numbers<[1], [0], [0], [1], [0, 0, 1, 1], [], []>} : vector<16x32xf32>, vector<32x128xf32>, vector<16x128xf32> -> vector<16x128xf32>
    %171 = arith.index_cast %c2_i32 : i32 to index
    %c0_54 = arith.constant 0 : index
    %c0_55 = arith.constant 0 : index
    %172 = vector.load %arg10[%171, %c0_54, %c0_55] : memref<8x16x128xf32, #tpu.memory_space<vmem>>, vector<1x16x128xf32>
    %173 = vector.shape_cast %172 : vector<1x16x128xf32> to vector<16x128xf32>
    %174 = arith.addf %173, %169 : vector<16x128xf32>
    %175 = vector.extract_strided_slice %174 {offsets = [0, 0], sizes = [16, 32], strides = [1, 1]} : vector<16x128xf32> to vector<16x32xf32>
    %176 = arith.negf %175 : vector<16x32xf32>
    %177 = math.exp %176 : vector<16x32xf32>
    %cst_56 = arith.constant 1.000000e+00 : f32
    %178 = vector.broadcast %cst_56 : f32 to vector<16x32xf32>
    %179 = arith.addf %178, %177 : vector<16x32xf32>
    %180 = arith.divf %178, %179 : vector<16x32xf32>
    %181 = vector.extract_strided_slice %174 {offsets = [0, 32], sizes = [16, 32], strides = [1, 1]} : vector<16x128xf32> to vector<16x32xf32>
    %182 = arith.negf %181 : vector<16x32xf32>
    %183 = math.exp %182 : vector<16x32xf32>
    %cst_57 = arith.constant 1.000000e+00 : f32
    %184 = vector.broadcast %cst_57 : f32 to vector<16x32xf32>
    %185 = arith.addf %184, %183 : vector<16x32xf32>
    %186 = arith.divf %184, %185 : vector<16x32xf32>
    %187 = vector.extract_strided_slice %174 {offsets = [0, 64], sizes = [16, 32], strides = [1, 1]} : vector<16x128xf32> to vector<16x32xf32>
    %188 = math.tanh %187 : vector<16x32xf32>
    %189 = vector.extract_strided_slice %174 {offsets = [0, 96], sizes = [16, 32], strides = [1, 1]} : vector<16x128xf32> to vector<16x32xf32>
    %190 = arith.negf %189 : vector<16x32xf32>
    %191 = math.exp %190 : vector<16x32xf32>
    %cst_58 = arith.constant 1.000000e+00 : f32
    %192 = vector.broadcast %cst_58 : f32 to vector<16x32xf32>
    %193 = arith.addf %192, %191 : vector<16x32xf32>
    %194 = arith.divf %192, %193 : vector<16x32xf32>
    %195 = arith.mulf %186, %124 : vector<16x32xf32>
    %196 = arith.mulf %180, %188 : vector<16x32xf32>
    %197 = arith.addf %195, %196 : vector<16x32xf32>
    %198 = math.tanh %197 : vector<16x32xf32>
    %199 = arith.mulf %194, %198 : vector<16x32xf32>
    %200 = arith.index_cast %168 : i32 to index
    %c0_59 = arith.constant 0 : index
    %c0_60 = arith.constant 0 : index
    %201 = vector.load %arg11[%200, %c0_59, %c0_60] : memref<8x16x128xf32, #tpu.memory_space<vmem>>, vector<1x16x128xf32>
    %202 = vector.shape_cast %201 : vector<1x16x128xf32> to vector<16x128xf32>
    %203 = arith.addf %202, %170 : vector<16x128xf32>
    %204 = vector.extract_strided_slice %203 {offsets = [0, 0], sizes = [16, 32], strides = [1, 1]} : vector<16x128xf32> to vector<16x32xf32>
    %205 = arith.negf %204 : vector<16x32xf32>
    %206 = math.exp %205 : vector<16x32xf32>
    %cst_61 = arith.constant 1.000000e+00 : f32
    %207 = vector.broadcast %cst_61 : f32 to vector<16x32xf32>
    %208 = arith.addf %207, %206 : vector<16x32xf32>
    %209 = arith.divf %207, %208 : vector<16x32xf32>
    %210 = vector.extract_strided_slice %203 {offsets = [0, 32], sizes = [16, 32], strides = [1, 1]} : vector<16x128xf32> to vector<16x32xf32>
    %211 = arith.negf %210 : vector<16x32xf32>
    %212 = math.exp %211 : vector<16x32xf32>
    %cst_62 = arith.constant 1.000000e+00 : f32
    %213 = vector.broadcast %cst_62 : f32 to vector<16x32xf32>
    %214 = arith.addf %213, %212 : vector<16x32xf32>
    %215 = arith.divf %213, %214 : vector<16x32xf32>
    %216 = vector.extract_strided_slice %203 {offsets = [0, 64], sizes = [16, 32], strides = [1, 1]} : vector<16x128xf32> to vector<16x32xf32>
    %217 = math.tanh %216 : vector<16x32xf32>
    %218 = vector.extract_strided_slice %203 {offsets = [0, 96], sizes = [16, 32], strides = [1, 1]} : vector<16x128xf32> to vector<16x32xf32>
    %219 = arith.negf %218 : vector<16x32xf32>
    %220 = math.exp %219 : vector<16x32xf32>
    %cst_63 = arith.constant 1.000000e+00 : f32
    %221 = vector.broadcast %cst_63 : f32 to vector<16x32xf32>
    %222 = arith.addf %221, %220 : vector<16x32xf32>
    %223 = arith.divf %221, %222 : vector<16x32xf32>
    %224 = arith.mulf %215, %153 : vector<16x32xf32>
    %225 = arith.mulf %209, %217 : vector<16x32xf32>
    %226 = arith.addf %224, %225 : vector<16x32xf32>
    %227 = math.tanh %226 : vector<16x32xf32>
    %228 = arith.mulf %223, %227 : vector<16x32xf32>
    %229 = arith.index_cast %c2_i32 : i32 to index
    %c0_64 = arith.constant 0 : index
    %c0_65 = arith.constant 0 : index
    %230 = vector.load %arg2[%229, %c0_64, %c0_65] : memref<8x16x1xf32, #tpu.memory_space<vmem>>, vector<1x16x1xf32>
    %231 = vector.shape_cast %230 : vector<1x16x1xf32> to vector<16x1xf32>
    %232 = vector.broadcast %231 : vector<16x1xf32> to vector<16x32xf32>
    %233 = arith.mulf %199, %232 : vector<16x32xf32>
    %234 = arith.addf %161, %233 : vector<16x32xf32>
    %235 = arith.index_cast %168 : i32 to index
    %c0_66 = arith.constant 0 : index
    %c0_67 = arith.constant 0 : index
    %236 = vector.load %arg2[%235, %c0_66, %c0_67] : memref<8x16x1xf32, #tpu.memory_space<vmem>>, vector<1x16x1xf32>
    %237 = vector.shape_cast %236 : vector<1x16x1xf32> to vector<16x1xf32>
    %238 = vector.broadcast %237 : vector<16x1xf32> to vector<16x32xf32>
    %239 = arith.mulf %228, %238 : vector<16x32xf32>
    %240 = arith.addf %167, %239 : vector<16x32xf32>
    %c3_i32 = arith.constant 3 : i32
    %c7_i32_68 = arith.constant 7 : i32
    %241 = arith.subi %c7_i32_68, %c3_i32 : i32
    %cst_69 = arith.constant dense<0.000000e+00> : vector<16x128xf32>
    %242 = tpu.matmul %199, %19, %cst_69 {dimension_numbers = #tpu.dot_dimension_numbers<[1], [0], [0], [1], [0, 0, 1, 1], [], []>} : vector<16x32xf32>, vector<32x128xf32>, vector<16x128xf32> -> vector<16x128xf32>
    %cst_70 = arith.constant dense<0.000000e+00> : vector<16x128xf32>
    %243 = tpu.matmul %228, %20, %cst_70 {dimension_numbers = #tpu.dot_dimension_numbers<[1], [0], [0], [1], [0, 0, 1, 1], [], []>} : vector<16x32xf32>, vector<32x128xf32>, vector<16x128xf32> -> vector<16x128xf32>
    %244 = arith.index_cast %c3_i32 : i32 to index
    %c0_71 = arith.constant 0 : index
    %c0_72 = arith.constant 0 : index
    %245 = vector.load %arg10[%244, %c0_71, %c0_72] : memref<8x16x128xf32, #tpu.memory_space<vmem>>, vector<1x16x128xf32>
    %246 = vector.shape_cast %245 : vector<1x16x128xf32> to vector<16x128xf32>
    %247 = arith.addf %246, %242 : vector<16x128xf32>
    %248 = vector.extract_strided_slice %247 {offsets = [0, 0], sizes = [16, 32], strides = [1, 1]} : vector<16x128xf32> to vector<16x32xf32>
    %249 = arith.negf %248 : vector<16x32xf32>
    %250 = math.exp %249 : vector<16x32xf32>
    %cst_73 = arith.constant 1.000000e+00 : f32
    %251 = vector.broadcast %cst_73 : f32 to vector<16x32xf32>
    %252 = arith.addf %251, %250 : vector<16x32xf32>
    %253 = arith.divf %251, %252 : vector<16x32xf32>
    %254 = vector.extract_strided_slice %247 {offsets = [0, 32], sizes = [16, 32], strides = [1, 1]} : vector<16x128xf32> to vector<16x32xf32>
    %255 = arith.negf %254 : vector<16x32xf32>
    %256 = math.exp %255 : vector<16x32xf32>
    %cst_74 = arith.constant 1.000000e+00 : f32
    %257 = vector.broadcast %cst_74 : f32 to vector<16x32xf32>
    %258 = arith.addf %257, %256 : vector<16x32xf32>
    %259 = arith.divf %257, %258 : vector<16x32xf32>
    %260 = vector.extract_strided_slice %247 {offsets = [0, 64], sizes = [16, 32], strides = [1, 1]} : vector<16x128xf32> to vector<16x32xf32>
    %261 = math.tanh %260 : vector<16x32xf32>
    %262 = vector.extract_strided_slice %247 {offsets = [0, 96], sizes = [16, 32], strides = [1, 1]} : vector<16x128xf32> to vector<16x32xf32>
    %263 = arith.negf %262 : vector<16x32xf32>
    %264 = math.exp %263 : vector<16x32xf32>
    %cst_75 = arith.constant 1.000000e+00 : f32
    %265 = vector.broadcast %cst_75 : f32 to vector<16x32xf32>
    %266 = arith.addf %265, %264 : vector<16x32xf32>
    %267 = arith.divf %265, %266 : vector<16x32xf32>
    %268 = arith.mulf %259, %197 : vector<16x32xf32>
    %269 = arith.mulf %253, %261 : vector<16x32xf32>
    %270 = arith.addf %268, %269 : vector<16x32xf32>
    %271 = math.tanh %270 : vector<16x32xf32>
    %272 = arith.mulf %267, %271 : vector<16x32xf32>
    %273 = arith.index_cast %241 : i32 to index
    %c0_76 = arith.constant 0 : index
    %c0_77 = arith.constant 0 : index
    %274 = vector.load %arg11[%273, %c0_76, %c0_77] : memref<8x16x128xf32, #tpu.memory_space<vmem>>, vector<1x16x128xf32>
    %275 = vector.shape_cast %274 : vector<1x16x128xf32> to vector<16x128xf32>
    %276 = arith.addf %275, %243 : vector<16x128xf32>
    %277 = vector.extract_strided_slice %276 {offsets = [0, 0], sizes = [16, 32], strides = [1, 1]} : vector<16x128xf32> to vector<16x32xf32>
    %278 = arith.negf %277 : vector<16x32xf32>
    %279 = math.exp %278 : vector<16x32xf32>
    %cst_78 = arith.constant 1.000000e+00 : f32
    %280 = vector.broadcast %cst_78 : f32 to vector<16x32xf32>
    %281 = arith.addf %280, %279 : vector<16x32xf32>
    %282 = arith.divf %280, %281 : vector<16x32xf32>
    %283 = vector.extract_strided_slice %276 {offsets = [0, 32], sizes = [16, 32], strides = [1, 1]} : vector<16x128xf32> to vector<16x32xf32>
    %284 = arith.negf %283 : vector<16x32xf32>
    %285 = math.exp %284 : vector<16x32xf32>
    %cst_79 = arith.constant 1.000000e+00 : f32
    %286 = vector.broadcast %cst_79 : f32 to vector<16x32xf32>
    %287 = arith.addf %286, %285 : vector<16x32xf32>
    %288 = arith.divf %286, %287 : vector<16x32xf32>
    %289 = vector.extract_strided_slice %276 {offsets = [0, 64], sizes = [16, 32], strides = [1, 1]} : vector<16x128xf32> to vector<16x32xf32>
    %290 = math.tanh %289 : vector<16x32xf32>
    %291 = vector.extract_strided_slice %276 {offsets = [0, 96], sizes = [16, 32], strides = [1, 1]} : vector<16x128xf32> to vector<16x32xf32>
    %292 = arith.negf %291 : vector<16x32xf32>
    %293 = math.exp %292 : vector<16x32xf32>
    %cst_80 = arith.constant 1.000000e+00 : f32
    %294 = vector.broadcast %cst_80 : f32 to vector<16x32xf32>
    %295 = arith.addf %294, %293 : vector<16x32xf32>
    %296 = arith.divf %294, %295 : vector<16x32xf32>
    %297 = arith.mulf %288, %226 : vector<16x32xf32>
    %298 = arith.mulf %282, %290 : vector<16x32xf32>
    %299 = arith.addf %297, %298 : vector<16x32xf32>
    %300 = math.tanh %299 : vector<16x32xf32>
    %301 = arith.mulf %296, %300 : vector<16x32xf32>
    %302 = arith.index_cast %c3_i32 : i32 to index
    %c0_81 = arith.constant 0 : index
    %c0_82 = arith.constant 0 : index
    %303 = vector.load %arg2[%302, %c0_81, %c0_82] : memref<8x16x1xf32, #tpu.memory_space<vmem>>, vector<1x16x1xf32>
    %304 = vector.shape_cast %303 : vector<1x16x1xf32> to vector<16x1xf32>
    %305 = vector.broadcast %304 : vector<16x1xf32> to vector<16x32xf32>
    %306 = arith.mulf %272, %305 : vector<16x32xf32>
    %307 = arith.addf %234, %306 : vector<16x32xf32>
    %308 = arith.index_cast %241 : i32 to index
    %c0_83 = arith.constant 0 : index
    %c0_84 = arith.constant 0 : index
    %309 = vector.load %arg2[%308, %c0_83, %c0_84] : memref<8x16x1xf32, #tpu.memory_space<vmem>>, vector<1x16x1xf32>
    %310 = vector.shape_cast %309 : vector<1x16x1xf32> to vector<16x1xf32>
    %311 = vector.broadcast %310 : vector<16x1xf32> to vector<16x32xf32>
    %312 = arith.mulf %301, %311 : vector<16x32xf32>
    %313 = arith.addf %240, %312 : vector<16x32xf32>
    %c4_i32 = arith.constant 4 : i32
    %c7_i32_85 = arith.constant 7 : i32
    %314 = arith.subi %c7_i32_85, %c4_i32 : i32
    %cst_86 = arith.constant dense<0.000000e+00> : vector<16x128xf32>
    %315 = tpu.matmul %272, %19, %cst_86 {dimension_numbers = #tpu.dot_dimension_numbers<[1], [0], [0], [1], [0, 0, 1, 1], [], []>} : vector<16x32xf32>, vector<32x128xf32>, vector<16x128xf32> -> vector<16x128xf32>
    %cst_87 = arith.constant dense<0.000000e+00> : vector<16x128xf32>
    %316 = tpu.matmul %301, %20, %cst_87 {dimension_numbers = #tpu.dot_dimension_numbers<[1], [0], [0], [1], [0, 0, 1, 1], [], []>} : vector<16x32xf32>, vector<32x128xf32>, vector<16x128xf32> -> vector<16x128xf32>
    %317 = arith.index_cast %c4_i32 : i32 to index
    %c0_88 = arith.constant 0 : index
    %c0_89 = arith.constant 0 : index
    %318 = vector.load %arg10[%317, %c0_88, %c0_89] : memref<8x16x128xf32, #tpu.memory_space<vmem>>, vector<1x16x128xf32>
    %319 = vector.shape_cast %318 : vector<1x16x128xf32> to vector<16x128xf32>
    %320 = arith.addf %319, %315 : vector<16x128xf32>
    %321 = vector.extract_strided_slice %320 {offsets = [0, 0], sizes = [16, 32], strides = [1, 1]} : vector<16x128xf32> to vector<16x32xf32>
    %322 = arith.negf %321 : vector<16x32xf32>
    %323 = math.exp %322 : vector<16x32xf32>
    %cst_90 = arith.constant 1.000000e+00 : f32
    %324 = vector.broadcast %cst_90 : f32 to vector<16x32xf32>
    %325 = arith.addf %324, %323 : vector<16x32xf32>
    %326 = arith.divf %324, %325 : vector<16x32xf32>
    %327 = vector.extract_strided_slice %320 {offsets = [0, 32], sizes = [16, 32], strides = [1, 1]} : vector<16x128xf32> to vector<16x32xf32>
    %328 = arith.negf %327 : vector<16x32xf32>
    %329 = math.exp %328 : vector<16x32xf32>
    %cst_91 = arith.constant 1.000000e+00 : f32
    %330 = vector.broadcast %cst_91 : f32 to vector<16x32xf32>
    %331 = arith.addf %330, %329 : vector<16x32xf32>
    %332 = arith.divf %330, %331 : vector<16x32xf32>
    %333 = vector.extract_strided_slice %320 {offsets = [0, 64], sizes = [16, 32], strides = [1, 1]} : vector<16x128xf32> to vector<16x32xf32>
    %334 = math.tanh %333 : vector<16x32xf32>
    %335 = vector.extract_strided_slice %320 {offsets = [0, 96], sizes = [16, 32], strides = [1, 1]} : vector<16x128xf32> to vector<16x32xf32>
    %336 = arith.negf %335 : vector<16x32xf32>
    %337 = math.exp %336 : vector<16x32xf32>
    %cst_92 = arith.constant 1.000000e+00 : f32
    %338 = vector.broadcast %cst_92 : f32 to vector<16x32xf32>
    %339 = arith.addf %338, %337 : vector<16x32xf32>
    %340 = arith.divf %338, %339 : vector<16x32xf32>
    %341 = arith.mulf %332, %270 : vector<16x32xf32>
    %342 = arith.mulf %326, %334 : vector<16x32xf32>
    %343 = arith.addf %341, %342 : vector<16x32xf32>
    %344 = math.tanh %343 : vector<16x32xf32>
    %345 = arith.mulf %340, %344 : vector<16x32xf32>
    %346 = arith.index_cast %314 : i32 to index
    %c0_93 = arith.constant 0 : index
    %c0_94 = arith.constant 0 : index
    %347 = vector.load %arg11[%346, %c0_93, %c0_94] : memref<8x16x128xf32, #tpu.memory_space<vmem>>, vector<1x16x128xf32>
    %348 = vector.shape_cast %347 : vector<1x16x128xf32> to vector<16x128xf32>
    %349 = arith.addf %348, %316 : vector<16x128xf32>
    %350 = vector.extract_strided_slice %349 {offsets = [0, 0], sizes = [16, 32], strides = [1, 1]} : vector<16x128xf32> to vector<16x32xf32>
    %351 = arith.negf %350 : vector<16x32xf32>
    %352 = math.exp %351 : vector<16x32xf32>
    %cst_95 = arith.constant 1.000000e+00 : f32
    %353 = vector.broadcast %cst_95 : f32 to vector<16x32xf32>
    %354 = arith.addf %353, %352 : vector<16x32xf32>
    %355 = arith.divf %353, %354 : vector<16x32xf32>
    %356 = vector.extract_strided_slice %349 {offsets = [0, 32], sizes = [16, 32], strides = [1, 1]} : vector<16x128xf32> to vector<16x32xf32>
    %357 = arith.negf %356 : vector<16x32xf32>
    %358 = math.exp %357 : vector<16x32xf32>
    %cst_96 = arith.constant 1.000000e+00 : f32
    %359 = vector.broadcast %cst_96 : f32 to vector<16x32xf32>
    %360 = arith.addf %359, %358 : vector<16x32xf32>
    %361 = arith.divf %359, %360 : vector<16x32xf32>
    %362 = vector.extract_strided_slice %349 {offsets = [0, 64], sizes = [16, 32], strides = [1, 1]} : vector<16x128xf32> to vector<16x32xf32>
    %363 = math.tanh %362 : vector<16x32xf32>
    %364 = vector.extract_strided_slice %349 {offsets = [0, 96], sizes = [16, 32], strides = [1, 1]} : vector<16x128xf32> to vector<16x32xf32>
    %365 = arith.negf %364 : vector<16x32xf32>
    %366 = math.exp %365 : vector<16x32xf32>
    %cst_97 = arith.constant 1.000000e+00 : f32
    %367 = vector.broadcast %cst_97 : f32 to vector<16x32xf32>
    %368 = arith.addf %367, %366 : vector<16x32xf32>
    %369 = arith.divf %367, %368 : vector<16x32xf32>
    %370 = arith.mulf %361, %299 : vector<16x32xf32>
    %371 = arith.mulf %355, %363 : vector<16x32xf32>
    %372 = arith.addf %370, %371 : vector<16x32xf32>
    %373 = math.tanh %372 : vector<16x32xf32>
    %374 = arith.mulf %369, %373 : vector<16x32xf32>
    %375 = arith.index_cast %c4_i32 : i32 to index
    %c0_98 = arith.constant 0 : index
    %c0_99 = arith.constant 0 : index
    %376 = vector.load %arg2[%375, %c0_98, %c0_99] : memref<8x16x1xf32, #tpu.memory_space<vmem>>, vector<1x16x1xf32>
    %377 = vector.shape_cast %376 : vector<1x16x1xf32> to vector<16x1xf32>
    %378 = vector.broadcast %377 : vector<16x1xf32> to vector<16x32xf32>
    %379 = arith.mulf %345, %378 : vector<16x32xf32>
    %380 = arith.addf %307, %379 : vector<16x32xf32>
    %381 = arith.index_cast %314 : i32 to index
    %c0_100 = arith.constant 0 : index
    %c0_101 = arith.constant 0 : index
    %382 = vector.load %arg2[%381, %c0_100, %c0_101] : memref<8x16x1xf32, #tpu.memory_space<vmem>>, vector<1x16x1xf32>
    %383 = vector.shape_cast %382 : vector<1x16x1xf32> to vector<16x1xf32>
    %384 = vector.broadcast %383 : vector<16x1xf32> to vector<16x32xf32>
    %385 = arith.mulf %374, %384 : vector<16x32xf32>
    %386 = arith.addf %313, %385 : vector<16x32xf32>
    %c5_i32 = arith.constant 5 : i32
    %c7_i32_102 = arith.constant 7 : i32
    %387 = arith.subi %c7_i32_102, %c5_i32 : i32
    %cst_103 = arith.constant dense<0.000000e+00> : vector<16x128xf32>
    %388 = tpu.matmul %345, %19, %cst_103 {dimension_numbers = #tpu.dot_dimension_numbers<[1], [0], [0], [1], [0, 0, 1, 1], [], []>} : vector<16x32xf32>, vector<32x128xf32>, vector<16x128xf32> -> vector<16x128xf32>
    %cst_104 = arith.constant dense<0.000000e+00> : vector<16x128xf32>
    %389 = tpu.matmul %374, %20, %cst_104 {dimension_numbers = #tpu.dot_dimension_numbers<[1], [0], [0], [1], [0, 0, 1, 1], [], []>} : vector<16x32xf32>, vector<32x128xf32>, vector<16x128xf32> -> vector<16x128xf32>
    %390 = arith.index_cast %c5_i32 : i32 to index
    %c0_105 = arith.constant 0 : index
    %c0_106 = arith.constant 0 : index
    %391 = vector.load %arg10[%390, %c0_105, %c0_106] : memref<8x16x128xf32, #tpu.memory_space<vmem>>, vector<1x16x128xf32>
    %392 = vector.shape_cast %391 : vector<1x16x128xf32> to vector<16x128xf32>
    %393 = arith.addf %392, %388 : vector<16x128xf32>
    %394 = vector.extract_strided_slice %393 {offsets = [0, 0], sizes = [16, 32], strides = [1, 1]} : vector<16x128xf32> to vector<16x32xf32>
    %395 = arith.negf %394 : vector<16x32xf32>
    %396 = math.exp %395 : vector<16x32xf32>
    %cst_107 = arith.constant 1.000000e+00 : f32
    %397 = vector.broadcast %cst_107 : f32 to vector<16x32xf32>
    %398 = arith.addf %397, %396 : vector<16x32xf32>
    %399 = arith.divf %397, %398 : vector<16x32xf32>
    %400 = vector.extract_strided_slice %393 {offsets = [0, 32], sizes = [16, 32], strides = [1, 1]} : vector<16x128xf32> to vector<16x32xf32>
    %401 = arith.negf %400 : vector<16x32xf32>
    %402 = math.exp %401 : vector<16x32xf32>
    %cst_108 = arith.constant 1.000000e+00 : f32
    %403 = vector.broadcast %cst_108 : f32 to vector<16x32xf32>
    %404 = arith.addf %403, %402 : vector<16x32xf32>
    %405 = arith.divf %403, %404 : vector<16x32xf32>
    %406 = vector.extract_strided_slice %393 {offsets = [0, 64], sizes = [16, 32], strides = [1, 1]} : vector<16x128xf32> to vector<16x32xf32>
    %407 = math.tanh %406 : vector<16x32xf32>
    %408 = vector.extract_strided_slice %393 {offsets = [0, 96], sizes = [16, 32], strides = [1, 1]} : vector<16x128xf32> to vector<16x32xf32>
    %409 = arith.negf %408 : vector<16x32xf32>
    %410 = math.exp %409 : vector<16x32xf32>
    %cst_109 = arith.constant 1.000000e+00 : f32
    %411 = vector.broadcast %cst_109 : f32 to vector<16x32xf32>
    %412 = arith.addf %411, %410 : vector<16x32xf32>
    %413 = arith.divf %411, %412 : vector<16x32xf32>
    %414 = arith.mulf %405, %343 : vector<16x32xf32>
    %415 = arith.mulf %399, %407 : vector<16x32xf32>
    %416 = arith.addf %414, %415 : vector<16x32xf32>
    %417 = math.tanh %416 : vector<16x32xf32>
    %418 = arith.mulf %413, %417 : vector<16x32xf32>
    %419 = arith.index_cast %387 : i32 to index
    %c0_110 = arith.constant 0 : index
    %c0_111 = arith.constant 0 : index
    %420 = vector.load %arg11[%419, %c0_110, %c0_111] : memref<8x16x128xf32, #tpu.memory_space<vmem>>, vector<1x16x128xf32>
    %421 = vector.shape_cast %420 : vector<1x16x128xf32> to vector<16x128xf32>
    %422 = arith.addf %421, %389 : vector<16x128xf32>
    %423 = vector.extract_strided_slice %422 {offsets = [0, 0], sizes = [16, 32], strides = [1, 1]} : vector<16x128xf32> to vector<16x32xf32>
    %424 = arith.negf %423 : vector<16x32xf32>
    %425 = math.exp %424 : vector<16x32xf32>
    %cst_112 = arith.constant 1.000000e+00 : f32
    %426 = vector.broadcast %cst_112 : f32 to vector<16x32xf32>
    %427 = arith.addf %426, %425 : vector<16x32xf32>
    %428 = arith.divf %426, %427 : vector<16x32xf32>
    %429 = vector.extract_strided_slice %422 {offsets = [0, 32], sizes = [16, 32], strides = [1, 1]} : vector<16x128xf32> to vector<16x32xf32>
    %430 = arith.negf %429 : vector<16x32xf32>
    %431 = math.exp %430 : vector<16x32xf32>
    %cst_113 = arith.constant 1.000000e+00 : f32
    %432 = vector.broadcast %cst_113 : f32 to vector<16x32xf32>
    %433 = arith.addf %432, %431 : vector<16x32xf32>
    %434 = arith.divf %432, %433 : vector<16x32xf32>
    %435 = vector.extract_strided_slice %422 {offsets = [0, 64], sizes = [16, 32], strides = [1, 1]} : vector<16x128xf32> to vector<16x32xf32>
    %436 = math.tanh %435 : vector<16x32xf32>
    %437 = vector.extract_strided_slice %422 {offsets = [0, 96], sizes = [16, 32], strides = [1, 1]} : vector<16x128xf32> to vector<16x32xf32>
    %438 = arith.negf %437 : vector<16x32xf32>
    %439 = math.exp %438 : vector<16x32xf32>
    %cst_114 = arith.constant 1.000000e+00 : f32
    %440 = vector.broadcast %cst_114 : f32 to vector<16x32xf32>
    %441 = arith.addf %440, %439 : vector<16x32xf32>
    %442 = arith.divf %440, %441 : vector<16x32xf32>
    %443 = arith.mulf %434, %372 : vector<16x32xf32>
    %444 = arith.mulf %428, %436 : vector<16x32xf32>
    %445 = arith.addf %443, %444 : vector<16x32xf32>
    %446 = math.tanh %445 : vector<16x32xf32>
    %447 = arith.mulf %442, %446 : vector<16x32xf32>
    %448 = arith.index_cast %c5_i32 : i32 to index
    %c0_115 = arith.constant 0 : index
    %c0_116 = arith.constant 0 : index
    %449 = vector.load %arg2[%448, %c0_115, %c0_116] : memref<8x16x1xf32, #tpu.memory_space<vmem>>, vector<1x16x1xf32>
    %450 = vector.shape_cast %449 : vector<1x16x1xf32> to vector<16x1xf32>
    %451 = vector.broadcast %450 : vector<16x1xf32> to vector<16x32xf32>
    %452 = arith.mulf %418, %451 : vector<16x32xf32>
    %453 = arith.addf %380, %452 : vector<16x32xf32>
    %454 = arith.index_cast %387 : i32 to index
    %c0_117 = arith.constant 0 : index
    %c0_118 = arith.constant 0 : index
    %455 = vector.load %arg2[%454, %c0_117, %c0_118] : memref<8x16x1xf32, #tpu.memory_space<vmem>>, vector<1x16x1xf32>
    %456 = vector.shape_cast %455 : vector<1x16x1xf32> to vector<16x1xf32>
    %457 = vector.broadcast %456 : vector<16x1xf32> to vector<16x32xf32>
    %458 = arith.mulf %447, %457 : vector<16x32xf32>
    %459 = arith.addf %386, %458 : vector<16x32xf32>
    %c6_i32 = arith.constant 6 : i32
    %c7_i32_119 = arith.constant 7 : i32
    %460 = arith.subi %c7_i32_119, %c6_i32 : i32
    %cst_120 = arith.constant dense<0.000000e+00> : vector<16x128xf32>
    %461 = tpu.matmul %418, %19, %cst_120 {dimension_numbers = #tpu.dot_dimension_numbers<[1], [0], [0], [1], [0, 0, 1, 1], [], []>} : vector<16x32xf32>, vector<32x128xf32>, vector<16x128xf32> -> vector<16x128xf32>
    %cst_121 = arith.constant dense<0.000000e+00> : vector<16x128xf32>
    %462 = tpu.matmul %447, %20, %cst_121 {dimension_numbers = #tpu.dot_dimension_numbers<[1], [0], [0], [1], [0, 0, 1, 1], [], []>} : vector<16x32xf32>, vector<32x128xf32>, vector<16x128xf32> -> vector<16x128xf32>
    %463 = arith.index_cast %c6_i32 : i32 to index
    %c0_122 = arith.constant 0 : index
    %c0_123 = arith.constant 0 : index
    %464 = vector.load %arg10[%463, %c0_122, %c0_123] : memref<8x16x128xf32, #tpu.memory_space<vmem>>, vector<1x16x128xf32>
    %465 = vector.shape_cast %464 : vector<1x16x128xf32> to vector<16x128xf32>
    %466 = arith.addf %465, %461 : vector<16x128xf32>
    %467 = vector.extract_strided_slice %466 {offsets = [0, 0], sizes = [16, 32], strides = [1, 1]} : vector<16x128xf32> to vector<16x32xf32>
    %468 = arith.negf %467 : vector<16x32xf32>
    %469 = math.exp %468 : vector<16x32xf32>
    %cst_124 = arith.constant 1.000000e+00 : f32
    %470 = vector.broadcast %cst_124 : f32 to vector<16x32xf32>
    %471 = arith.addf %470, %469 : vector<16x32xf32>
    %472 = arith.divf %470, %471 : vector<16x32xf32>
    %473 = vector.extract_strided_slice %466 {offsets = [0, 32], sizes = [16, 32], strides = [1, 1]} : vector<16x128xf32> to vector<16x32xf32>
    %474 = arith.negf %473 : vector<16x32xf32>
    %475 = math.exp %474 : vector<16x32xf32>
    %cst_125 = arith.constant 1.000000e+00 : f32
    %476 = vector.broadcast %cst_125 : f32 to vector<16x32xf32>
    %477 = arith.addf %476, %475 : vector<16x32xf32>
    %478 = arith.divf %476, %477 : vector<16x32xf32>
    %479 = vector.extract_strided_slice %466 {offsets = [0, 64], sizes = [16, 32], strides = [1, 1]} : vector<16x128xf32> to vector<16x32xf32>
    %480 = math.tanh %479 : vector<16x32xf32>
    %481 = vector.extract_strided_slice %466 {offsets = [0, 96], sizes = [16, 32], strides = [1, 1]} : vector<16x128xf32> to vector<16x32xf32>
    %482 = arith.negf %481 : vector<16x32xf32>
    %483 = math.exp %482 : vector<16x32xf32>
    %cst_126 = arith.constant 1.000000e+00 : f32
    %484 = vector.broadcast %cst_126 : f32 to vector<16x32xf32>
    %485 = arith.addf %484, %483 : vector<16x32xf32>
    %486 = arith.divf %484, %485 : vector<16x32xf32>
    %487 = arith.mulf %478, %416 : vector<16x32xf32>
    %488 = arith.mulf %472, %480 : vector<16x32xf32>
    %489 = arith.addf %487, %488 : vector<16x32xf32>
    %490 = math.tanh %489 : vector<16x32xf32>
    %491 = arith.mulf %486, %490 : vector<16x32xf32>
    %492 = arith.index_cast %460 : i32 to index
    %c0_127 = arith.constant 0 : index
    %c0_128 = arith.constant 0 : index
    %493 = vector.load %arg11[%492, %c0_127, %c0_128] : memref<8x16x128xf32, #tpu.memory_space<vmem>>, vector<1x16x128xf32>
    %494 = vector.shape_cast %493 : vector<1x16x128xf32> to vector<16x128xf32>
    %495 = arith.addf %494, %462 : vector<16x128xf32>
    %496 = vector.extract_strided_slice %495 {offsets = [0, 0], sizes = [16, 32], strides = [1, 1]} : vector<16x128xf32> to vector<16x32xf32>
    %497 = arith.negf %496 : vector<16x32xf32>
    %498 = math.exp %497 : vector<16x32xf32>
    %cst_129 = arith.constant 1.000000e+00 : f32
    %499 = vector.broadcast %cst_129 : f32 to vector<16x32xf32>
    %500 = arith.addf %499, %498 : vector<16x32xf32>
    %501 = arith.divf %499, %500 : vector<16x32xf32>
    %502 = vector.extract_strided_slice %495 {offsets = [0, 32], sizes = [16, 32], strides = [1, 1]} : vector<16x128xf32> to vector<16x32xf32>
    %503 = arith.negf %502 : vector<16x32xf32>
    %504 = math.exp %503 : vector<16x32xf32>
    %cst_130 = arith.constant 1.000000e+00 : f32
    %505 = vector.broadcast %cst_130 : f32 to vector<16x32xf32>
    %506 = arith.addf %505, %504 : vector<16x32xf32>
    %507 = arith.divf %505, %506 : vector<16x32xf32>
    %508 = vector.extract_strided_slice %495 {offsets = [0, 64], sizes = [16, 32], strides = [1, 1]} : vector<16x128xf32> to vector<16x32xf32>
    %509 = math.tanh %508 : vector<16x32xf32>
    %510 = vector.extract_strided_slice %495 {offsets = [0, 96], sizes = [16, 32], strides = [1, 1]} : vector<16x128xf32> to vector<16x32xf32>
    %511 = arith.negf %510 : vector<16x32xf32>
    %512 = math.exp %511 : vector<16x32xf32>
    %cst_131 = arith.constant 1.000000e+00 : f32
    %513 = vector.broadcast %cst_131 : f32 to vector<16x32xf32>
    %514 = arith.addf %513, %512 : vector<16x32xf32>
    %515 = arith.divf %513, %514 : vector<16x32xf32>
    %516 = arith.mulf %507, %445 : vector<16x32xf32>
    %517 = arith.mulf %501, %509 : vector<16x32xf32>
    %518 = arith.addf %516, %517 : vector<16x32xf32>
    %519 = math.tanh %518 : vector<16x32xf32>
    %520 = arith.mulf %515, %519 : vector<16x32xf32>
    %521 = arith.index_cast %c6_i32 : i32 to index
    %c0_132 = arith.constant 0 : index
    %c0_133 = arith.constant 0 : index
    %522 = vector.load %arg2[%521, %c0_132, %c0_133] : memref<8x16x1xf32, #tpu.memory_space<vmem>>, vector<1x16x1xf32>
    %523 = vector.shape_cast %522 : vector<1x16x1xf32> to vector<16x1xf32>
    %524 = vector.broadcast %523 : vector<16x1xf32> to vector<16x32xf32>
    %525 = arith.mulf %491, %524 : vector<16x32xf32>
    %526 = arith.addf %453, %525 : vector<16x32xf32>
    %527 = arith.index_cast %460 : i32 to index
    %c0_134 = arith.constant 0 : index
    %c0_135 = arith.constant 0 : index
    %528 = vector.load %arg2[%527, %c0_134, %c0_135] : memref<8x16x1xf32, #tpu.memory_space<vmem>>, vector<1x16x1xf32>
    %529 = vector.shape_cast %528 : vector<1x16x1xf32> to vector<16x1xf32>
    %530 = vector.broadcast %529 : vector<16x1xf32> to vector<16x32xf32>
    %531 = arith.mulf %520, %530 : vector<16x32xf32>
    %532 = arith.addf %459, %531 : vector<16x32xf32>
    %c7_i32_136 = arith.constant 7 : i32
    %c7_i32_137 = arith.constant 7 : i32
    %533 = arith.subi %c7_i32_137, %c7_i32_136 : i32
    %cst_138 = arith.constant dense<0.000000e+00> : vector<16x128xf32>
    %534 = tpu.matmul %491, %19, %cst_138 {dimension_numbers = #tpu.dot_dimension_numbers<[1], [0], [0], [1], [0, 0, 1, 1], [], []>} : vector<16x32xf32>, vector<32x128xf32>, vector<16x128xf32> -> vector<16x128xf32>
    %cst_139 = arith.constant dense<0.000000e+00> : vector<16x128xf32>
    %535 = tpu.matmul %520, %20, %cst_139 {dimension_numbers = #tpu.dot_dimension_numbers<[1], [0], [0], [1], [0, 0, 1, 1], [], []>} : vector<16x32xf32>, vector<32x128xf32>, vector<16x128xf32> -> vector<16x128xf32>
    %536 = arith.index_cast %c7_i32_136 : i32 to index
    %c0_140 = arith.constant 0 : index
    %c0_141 = arith.constant 0 : index
    %537 = vector.load %arg10[%536, %c0_140, %c0_141] : memref<8x16x128xf32, #tpu.memory_space<vmem>>, vector<1x16x128xf32>
    %538 = vector.shape_cast %537 : vector<1x16x128xf32> to vector<16x128xf32>
    %539 = arith.addf %538, %534 : vector<16x128xf32>
    %540 = vector.extract_strided_slice %539 {offsets = [0, 0], sizes = [16, 32], strides = [1, 1]} : vector<16x128xf32> to vector<16x32xf32>
    %541 = arith.negf %540 : vector<16x32xf32>
    %542 = math.exp %541 : vector<16x32xf32>
    %cst_142 = arith.constant 1.000000e+00 : f32
    %543 = vector.broadcast %cst_142 : f32 to vector<16x32xf32>
    %544 = arith.addf %543, %542 : vector<16x32xf32>
    %545 = arith.divf %543, %544 : vector<16x32xf32>
    %546 = vector.extract_strided_slice %539 {offsets = [0, 32], sizes = [16, 32], strides = [1, 1]} : vector<16x128xf32> to vector<16x32xf32>
    %547 = arith.negf %546 : vector<16x32xf32>
    %548 = math.exp %547 : vector<16x32xf32>
    %cst_143 = arith.constant 1.000000e+00 : f32
    %549 = vector.broadcast %cst_143 : f32 to vector<16x32xf32>
    %550 = arith.addf %549, %548 : vector<16x32xf32>
    %551 = arith.divf %549, %550 : vector<16x32xf32>
    %552 = vector.extract_strided_slice %539 {offsets = [0, 64], sizes = [16, 32], strides = [1, 1]} : vector<16x128xf32> to vector<16x32xf32>
    %553 = math.tanh %552 : vector<16x32xf32>
    %554 = vector.extract_strided_slice %539 {offsets = [0, 96], sizes = [16, 32], strides = [1, 1]} : vector<16x128xf32> to vector<16x32xf32>
    %555 = arith.negf %554 : vector<16x32xf32>
    %556 = math.exp %555 : vector<16x32xf32>
    %cst_144 = arith.constant 1.000000e+00 : f32
    %557 = vector.broadcast %cst_144 : f32 to vector<16x32xf32>
    %558 = arith.addf %557, %556 : vector<16x32xf32>
    %559 = arith.divf %557, %558 : vector<16x32xf32>
    %560 = arith.mulf %551, %489 : vector<16x32xf32>
    %561 = arith.mulf %545, %553 : vector<16x32xf32>
    %562 = arith.addf %560, %561 : vector<16x32xf32>
    %563 = math.tanh %562 : vector<16x32xf32>
    %564 = arith.mulf %559, %563 : vector<16x32xf32>
    %565 = arith.index_cast %533 : i32 to index
    %c0_145 = arith.constant 0 : index
    %c0_146 = arith.constant 0 : index
    %566 = vector.load %arg11[%565, %c0_145, %c0_146] : memref<8x16x128xf32, #tpu.memory_space<vmem>>, vector<1x16x128xf32>
    %567 = vector.shape_cast %566 : vector<1x16x128xf32> to vector<16x128xf32>
    %568 = arith.addf %567, %535 : vector<16x128xf32>
    %569 = vector.extract_strided_slice %568 {offsets = [0, 0], sizes = [16, 32], strides = [1, 1]} : vector<16x128xf32> to vector<16x32xf32>
    %570 = arith.negf %569 : vector<16x32xf32>
    %571 = math.exp %570 : vector<16x32xf32>
    %cst_147 = arith.constant 1.000000e+00 : f32
    %572 = vector.broadcast %cst_147 : f32 to vector<16x32xf32>
    %573 = arith.addf %572, %571 : vector<16x32xf32>
    %574 = arith.divf %572, %573 : vector<16x32xf32>
    %575 = vector.extract_strided_slice %568 {offsets = [0, 32], sizes = [16, 32], strides = [1, 1]} : vector<16x128xf32> to vector<16x32xf32>
    %576 = arith.negf %575 : vector<16x32xf32>
    %577 = math.exp %576 : vector<16x32xf32>
    %cst_148 = arith.constant 1.000000e+00 : f32
    %578 = vector.broadcast %cst_148 : f32 to vector<16x32xf32>
    %579 = arith.addf %578, %577 : vector<16x32xf32>
    %580 = arith.divf %578, %579 : vector<16x32xf32>
    %581 = vector.extract_strided_slice %568 {offsets = [0, 64], sizes = [16, 32], strides = [1, 1]} : vector<16x128xf32> to vector<16x32xf32>
    %582 = math.tanh %581 : vector<16x32xf32>
    %583 = vector.extract_strided_slice %568 {offsets = [0, 96], sizes = [16, 32], strides = [1, 1]} : vector<16x128xf32> to vector<16x32xf32>
    %584 = arith.negf %583 : vector<16x32xf32>
    %585 = math.exp %584 : vector<16x32xf32>
    %cst_149 = arith.constant 1.000000e+00 : f32
    %586 = vector.broadcast %cst_149 : f32 to vector<16x32xf32>
    %587 = arith.addf %586, %585 : vector<16x32xf32>
    %588 = arith.divf %586, %587 : vector<16x32xf32>
    %589 = arith.mulf %580, %518 : vector<16x32xf32>
    %590 = arith.mulf %574, %582 : vector<16x32xf32>
    %591 = arith.addf %589, %590 : vector<16x32xf32>
    %592 = math.tanh %591 : vector<16x32xf32>
    %593 = arith.mulf %588, %592 : vector<16x32xf32>
    %594 = arith.index_cast %c7_i32_136 : i32 to index
    %c0_150 = arith.constant 0 : index
    %c0_151 = arith.constant 0 : index
    %595 = vector.load %arg2[%594, %c0_150, %c0_151] : memref<8x16x1xf32, #tpu.memory_space<vmem>>, vector<1x16x1xf32>
    %596 = vector.shape_cast %595 : vector<1x16x1xf32> to vector<16x1xf32>
    %597 = vector.broadcast %596 : vector<16x1xf32> to vector<16x32xf32>
    %598 = arith.mulf %564, %597 : vector<16x32xf32>
    %599 = arith.addf %526, %598 : vector<16x32xf32>
    %600 = arith.index_cast %533 : i32 to index
    %c0_152 = arith.constant 0 : index
    %c0_153 = arith.constant 0 : index
    %601 = vector.load %arg2[%600, %c0_152, %c0_153] : memref<8x16x1xf32, #tpu.memory_space<vmem>>, vector<1x16x1xf32>
    %602 = vector.shape_cast %601 : vector<1x16x1xf32> to vector<16x1xf32>
    %603 = vector.broadcast %602 : vector<16x1xf32> to vector<16x32xf32>
    %604 = arith.mulf %593, %603 : vector<16x32xf32>
    %605 = arith.addf %532, %604 : vector<16x32xf32>
    %c8_i32_154 = arith.constant 8 : i32
    %c0_155 = arith.constant 0 : index
    %c0_156 = arith.constant 0 : index
    %c0_157 = arith.constant 0 : index
    %606 = vector.load %arg2[%c0_155, %c0_156, %c0_157] : memref<8x16x1xf32, #tpu.memory_space<vmem>>, vector<8x16x1xf32>
    %cst_158 = arith.constant dense<0.000000e+00> : vector<16x1xf32>
    %607 = vector.multi_reduction <add>, %606, %cst_158 [0] : vector<8x16x1xf32> to vector<16x1xf32>
    %cst_159 = arith.constant 9.99999971E-10 : f32
    %608 = vector.broadcast %cst_159 : f32 to vector<16x1xf32>
    %609 = arith.maximumf %607, %608 : vector<16x1xf32>
    %610 = tpu.concatenate %599, %605 in 1 : vector<16x32xf32>, vector<16x32xf32> -> vector<16x64xf32>
    %611 = vector.broadcast %609 : vector<16x1xf32> to vector<16x64xf32>
    %612 = arith.divf %610, %611 : vector<16x64xf32>
    %c0_160 = arith.constant 0 : index
    %c0_161 = arith.constant 0 : index
    %613 = vector.load %arg7[%c0_160, %c0_161] : memref<64x128xf32, #tpu.memory_space<vmem>>, vector<64x128xf32>
    %cst_162 = arith.constant dense<0.000000e+00> : vector<16x128xf32>
    %614 = tpu.matmul %612, %613, %cst_162 {dimension_numbers = #tpu.dot_dimension_numbers<[1], [0], [0], [1], [0, 0, 1, 1], [], []>} : vector<16x64xf32>, vector<64x128xf32>, vector<16x128xf32> -> vector<16x128xf32>
    %c0_163 = arith.constant 0 : index
    %c0_164 = arith.constant 0 : index
    %615 = vector.load %arg8[%c0_163, %c0_164] : memref<1x128xf32, #tpu.memory_space<vmem>>, vector<1x128xf32>
    %616 = vector.broadcast %615 : vector<1x128xf32> to vector<16x128xf32>
    %617 = arith.addf %614, %616 : vector<16x128xf32>
    %c0_165 = arith.constant 0 : index
    %c0_166 = arith.constant 0 : index
    %618 = vector.load %arg9[%c0_165, %c0_166] : memref<16x128xf32, #tpu.memory_space<vmem>>, vector<16x128xf32>
    tpu.vector_store %arg9[%c0_165, %c0_166], %617 {strides = array<i32>} : memref<16x128xf32, #tpu.memory_space<vmem>>, vector<16x128xf32>,
    return
  }
  func.func @transform_0(%arg0: i32) -> (i32, i32, i32) {
    %c0_i32 = arith.constant 0 : i32
    %c0_i32_0 = arith.constant 0 : i32
    %c0_i32_1 = arith.constant 0 : i32
    return %c0_i32, %arg0, %c0_i32_0 : i32, i32, i32
  }
  func.func @transform_1(%arg0: i32) -> (i32, i32, i32) {
    %c0_i32 = arith.constant 0 : i32
    %c0_i32_0 = arith.constant 0 : i32
    %c0_i32_1 = arith.constant 0 : i32
    return %c0_i32, %arg0, %c0_i32_0 : i32, i32, i32
  }
  func.func @transform_2(%arg0: i32) -> (i32, i32) {
    %c0_i32 = arith.constant 0 : i32
    %c0_i32_0 = arith.constant 0 : i32
    %c0_i32_1 = arith.constant 0 : i32
    return %c0_i32, %c0_i32_0 : i32, i32
  }
  func.func @transform_3(%arg0: i32) -> (i32, i32) {
    %c0_i32 = arith.constant 0 : i32
    %c0_i32_0 = arith.constant 0 : i32
    %c0_i32_1 = arith.constant 0 : i32
    return %c0_i32, %c0_i32_0 : i32, i32
  }
  func.func @transform_4(%arg0: i32) -> (i32, i32) {
    %c0_i32 = arith.constant 0 : i32
    %c0_i32_0 = arith.constant 0 : i32
    %c0_i32_1 = arith.constant 0 : i32
    return %c0_i32, %c0_i32_0 : i32, i32
  }
  func.func @transform_5(%arg0: i32) -> (i32, i32) {
    %c0_i32 = arith.constant 0 : i32
    %c0_i32_0 = arith.constant 0 : i32
    %c0_i32_1 = arith.constant 0 : i32
    return %c0_i32, %c0_i32_0 : i32, i32
  }
  func.func @transform_6(%arg0: i32) -> (i32, i32) {
    %c0_i32 = arith.constant 0 : i32
    %c0_i32_0 = arith.constant 0 : i32
    %c0_i32_1 = arith.constant 0 : i32
    return %c0_i32, %c0_i32_0 : i32, i32
  }
  func.func @transform_7(%arg0: i32) -> (i32, i32) {
    %c0_i32 = arith.constant 0 : i32
    %c0_i32_0 = arith.constant 0 : i32
    %c0_i32_1 = arith.constant 0 : i32
    return %c0_i32, %c0_i32_0 : i32, i32
  }
  func.func @transform_8(%arg0: i32) -> (i32, i32) {
    %c0_i32 = arith.constant 0 : i32
    %c0_i32_0 = arith.constant 0 : i32
    return %arg0, %c0_i32 : i32, i32
  }
}

</mosaic_0001>

<bundles_post_ra>
// kernel: tpu_custom_call.1
= control target key start
LH: loop header
LB: loop body
LE: loop exit
PB: predicated region body
PF: predicated region fallthrough
CT: control target
= control target key end

     0   :  { %13 = vsyncpa [#allocation5], 0  ;;  %s3909_s0 = inlined_call_operand.vmem [shape: f32[8,16,32], index: 0, kind: input, shape index: {}]   ;;  %s3910_s1 = inlined_call_operand.vmem [shape: f32[8,16,1], index: 1, kind: input, shape index: {}]   ;;  %s3911_s2 = inlined_call_operand.hbm [shape: f32[32,256], index: 2, kind: input, shape index: {}]   ;;  %s3912_s3 = inlined_call_operand.vmem [shape: f32[1,256], index: 3, kind: input, shape index: {}]   ;;  %s3913_s4 = inlined_call_operand.hbm [shape: f32[32,128], index: 4, kind: input, shape index: {}]   ;;  %s3914_s5 = inlined_call_operand.hbm [shape: f32[32,128], index: 5, kind: input, shape index: {}]   ;;  %s3915_s6 = inlined_call_operand.hbm [shape: f32[64,128], index: 6, kind: input, shape index: {}]   ;;  %s3916_s7 = inlined_call_operand.vmem [shape: f32[1,128], index: 7, kind: input, shape index: {}]   ;;  %s3917_s8 = inlined_call_operand.hbm [shape: f32[16,128], index: 8, kind: output, shape index: {}]  }
   0x1   :  { %14 = vsyncpa [#allocation8], 0 }
   0x2   :  { %15 = vsyncpa [#allocation11], 0  ;;  %s40_s29 = sshll.u32 %s3913_s4, 4  ;;  %s41_s29 = int_to_ptr.hbm [resolvable:$true] %s40_s29 }
   0x3   :  { %16 = vsyncpa [#allocation6], 0  ;;  %s2983_s30 = smov [#allocation7]   ;;  %s25_s12 = sshll.u32 %s3911_s2, 4  ;;  %s26_s12 = int_to_ptr.hbm [resolvable:$true] %s25_s12 }
   0x4   :  { %s42_s9 = sshll.u32 %s2983_s30, 4  ;;  %s2984_s13 = smov 128   ;;  %s43_s9 = int_to_ptr.vmem [resolvable:$true] %s42_s9 }
   0x5   :  { %s2985_s14 = smov 8   ;;  %s2986_s15 = smov [#allocation4]  }
   0x6   :  { %48 = dma.hbm_to_vmem [thread:$0]  %s41_s29, 512, %s43_s9, [#allocation8], %s2984_s13, %s2984_s13, %s2985_s14  }
   0x7   :  { %s27_s16 = sshll.u32 %s2986_s15, 4  ;;  %s2987_s4 = smov 256   ;;  %s28_s16 = int_to_ptr.vmem [resolvable:$true] %s27_s16 }
   0x8   :  { %s2988_s17 = smov 16   ;;  %s53_s20 = sshll.u32 %s3914_s5, 4  ;;  %s54_s20 = int_to_ptr.hbm [resolvable:$true] %s53_s20 }
   0x9   :  { %33 = dma.hbm_to_vmem [thread:$0]  %s26_s12, 1024, %s28_s16, [#allocation5], %s2987_s4, %s2987_s4, %s2988_s17  }
   0xa   :  { %s2989_s21 = smov [#allocation9]   ;;  %s66_s24 = sshll.u32 %s3915_s6, 4  ;;  %s67_s24 = int_to_ptr.hbm [resolvable:$true] %s66_s24 }
   0xb   :  { %s55_s2 = sshll.u32 %s2989_s21, 4  ;;  %s2990_s25 = smov [#allocation10]   ;;  %s56_s2 = int_to_ptr.vmem [resolvable:$true] %s55_s2 }
   0xc   :  { %61 = dma.hbm_to_vmem [thread:$0]  %s54_s20, 512, %s56_s2, [#allocation8], %s2984_s13, %s2984_s13, %s2985_s14  }
   0xd   :  { %s68_s26 = sshll.u32 %s2990_s25, 4  ;;  %s69_s26 = int_to_ptr.vmem [resolvable:$true] %s68_s26 }
   0xe   :  { %74 = dma.hbm_to_vmem [thread:$0]  %s67_s24, 1024, %s69_s26, [#allocation11], %s2984_s13, %s2984_s13, %s2985_s14  }
   0xf   :  { %2975 = dma.done.wait [#allocation5], 1024  }
  0x10   :  { %2976 = vsyncadd [#allocation5], 4294966272 }
  0x11   :  { %2977 = dma.done.wait [#allocation8], 1024  }
  0x12   :  { %2978 = vsyncadd [#allocation8], 4294966272 }
  0x13   :  { %2979 = dma.done.wait [#allocation11], 1024  }
  0x14   :  { %2980 = vsyncadd [#allocation11], 4294966272  ;;  %v117_v0 = vld [vmem:[#allocation4 + $0x30] sm:$0xff]  ;;  %v3062_v1 = vld [vmem:[#allocation7 + $0x18] sm:$0xff]  ;;  %vm125_vm0 = vcmask 261120   ;;  %v2991_v11 = vmov 0.0  }
  0x15   :  { %v115_v2 = vld [vmem:[#allocation4 + $0x20] sm:$0xff]  ;;  %2566 = vmatpush.msra.mxu1 %v117_v0  ;;  %361 = vmatpush.msra.mxu2 %v3062_v1  ;;  %v3065_v3 = vld [vmem:[#allocation7 + $0x10] sm:$0xff]  ;;  %v3067_v5 = vld [vmem:[#allocation7 + $0x8] sm:$0xff]  ;;  %s2443_s24 = sshll.u32 %s3917_s8, 4  ;;  %s2444_s24 = int_to_ptr.hbm [resolvable:$true] %s2443_s24 }
  0x16   :  { %186 = vmatpush.msra.mxu0 %v117_v0  ;;  %v113_v4 = vld [vmem:[#allocation4 + $0x10] sm:$0xff]  ;;  %v111_v6 = vld [vmem:[#allocation4] sm:$0xff]  ;;  %v3076_v8 = vld [vmem:[%s3909_s0 + $0x78] sm:$0xff] }
  0x17   :  { %2567 = vmatpush.msra.mxu1 %v115_v2  ;;  %362 = vmatpush.msra.mxu2 %v3065_v3  ;;  %v3070_v7 = vld [vmem:[#allocation7] sm:$0xff]  ;;  %v118_v9 = vld [vmem:[#allocation4 + $0x38] sm:$0xff]  ;;  %v116_v12 = vld [vmem:[#allocation4 + $0x28] sm:$0xff] }
  0x18   :  { %187 = vmatpush.msra.mxu0 %v115_v2  ;;  %v95_v10 = vld [vmem:[%s3909_s0] sm:$0xff]  ;;  %v114_v13 = vld [vmem:[#allocation4 + $0x18] sm:$0xff]  ;;  %v112_v14 = vld [vmem:[#allocation4 + $0x8] sm:$0xff] }
  0x19   :  { %2568 = vmatpush.msra.mxu1 %v113_v4  ;;  %363 = vmatpush.msra.mxu2 %v3067_v5  ;;  %v96_v15 = vld [vmem:[%s3909_s0 + $0x8] sm:$0xff]  ;;  %v97_v16 = vld [vmem:[%s3909_s0 + $0x10] sm:$0xff]  ;;  %v98_v17 = vld [vmem:[%s3909_s0 + $0x18] sm:$0xff] }
  0x1a   :  { %188 = vmatpush.msra.mxu0 %v113_v4  ;;  %v99_v18 = vld [vmem:[%s3909_s0 + $0x20] sm:$0xff]  ;;  %v100_v19 = vld [vmem:[%s3909_s0 + $0x28] sm:$0xff]  ;;  %v101_v20 = vld [vmem:[%s3909_s0 + $0x30] sm:$0xff] }
  0x1b   :  { %2569 = vmatpush.msra.mxu1 %v111_v6  ;;  %364 = vmatpush.msra.mxu2 %v3070_v7  ;;  %v102_v21 = vld [vmem:[%s3909_s0 + $0x38] sm:$0xff]  ;;  %v103_v22 = vld [vmem:[%s3909_s0 + $0x40] sm:$0xff]  ;;  %v3138_v24 = vld [vmem:[#allocation9 + $0x10] sm:$0xff] }
  0x1c   :  { %2473 = vmatmul.msk.f32.vlgmr.msra.gmra.mxu1 %vm125_vm0, %v3076_v8  ;;  %365 = vmatmul.f32.vlgmr.msra.gmra.mxu2 %v2991_v11  ;;  %v3136_v23 = vld [vmem:[#allocation9 + $0x18] sm:$0xff]  ;;  %v104_v25 = vld [vmem:[%s3909_s0 + $0x48] sm:$0xff]  ;;  %v3149_v27 = vld [vmem:[#allocation9] sm:$0xff] }
  0x1d   :  { %251 = vmatpush.msrb.mxu1 %v118_v9  ;;  %189 = vmatpush.msra.mxu0 %v111_v6  ;;  %v3147_v26 = vld [vmem:[#allocation9 + $0x8] sm:$0xff]  ;;  %v105_v28 = vld [vmem:[%s3909_s0 + $0x50] sm:$0xff]  ;;  %v106_v29 = vld [vmem:[%s3909_s0 + $0x58] sm:$0xff] }
  0x1e   :  { %2458 = vmatmul.msk.f32.vlgmr.msra.gmra.mxu0 %vm125_vm0, %v95_v10  ;;  %607 = vmatpush.msrb.mxu2 %v3062_v1  ;;  %v107_v30 = vld [vmem:[%s3909_s0 + $0x60] sm:$0xff]  ;;  %v108_v31 = vld [vmem:[%s3909_s0 + $0x68] sm:$0xff]  ;;  %v109_v32 = vld [vmem:[%s3909_s0 + $0x70] sm:$0xff]  ;;  %s2992_s0 = smov 64  }
  0x1f   :  { %252 = vmatpush.msrb.mxu1 %v116_v12  ;;  %384 = vmatpush.msra.mxu3 %v3136_v23  ;;  %v119_v33 = vld [vmem:[%s3912_s3] sm:$0x3]  ;;  %s2993_s3 = smov 32  }
  0x20   :  { %608 = vmatpush.msrb.mxu2 %v3065_v3  ;;  %v3193_v35 = vperm.slane %v119_v33, 0 }
  0x21   :  { %253 = vmatpush.msrb.mxu1 %v114_v13  ;;  %385 = vmatpush.msra.mxu3 %v3138_v24 }
  0x22   :  { %609 = vmatpush.msrb.mxu2 %v3067_v5 }
  0x23   :  { %254 = vmatpush.msrb.mxu1 %v112_v14  ;;  %386 = vmatpush.msra.mxu3 %v3147_v26 }
  0x24   :  { %2474 = vmatmul.msk.f32.vlgmr.msrb.gmra.mxu1 %vm125_vm0, %v95_v10  ;;  %368 = vmatmul.f32.gmra.mxu2 %v2991_v11 }
  0x25   :  { %610 = vmatpush.msrb.mxu2 %v3070_v7  ;;  %387 = vmatpush.msra.mxu3 %v3149_v27 }
  0x26   :  { %2459 = vmatmul.msk.f32.gmra.mxu0 %vm125_vm0, %v96_v15  ;;  %388 = vmatmul.f32.vlgmr.msra.gmra.mxu3 %v2991_v11 }
  0x27   :  { %865 = vmatpush.msra.mxu2 %v3062_v1  ;;  %640 = vmatpush.msrb.mxu3 %v3136_v23 }
  0x29   :  { %866 = vmatpush.msra.mxu2 %v3065_v3  ;;  %641 = vmatpush.msrb.mxu3 %v3138_v24 }
  0x2b   :  { %867 = vmatpush.msra.mxu2 %v3067_v5  ;;  %642 = vmatpush.msrb.mxu3 %v3147_v26 }
  0x2c   :  { %2475 = vmatmul.msk.f32.gmra.mxu1 %vm125_vm0, %v96_v15 }
  0x2d   :  { %868 = vmatpush.msra.mxu2 %v3070_v7  ;;  %643 = vmatpush.msrb.mxu3 %v3149_v27 }
  0x2e   :  { %2460 = vmatmul.msk.f32.gmra.mxu0 %vm125_vm0, %v97_v16  ;;  %391 = vmatmul.f32.gmra.mxu3 %v2991_v11  ;;  %v3229_v11 = vperm.slane %v119_v33, 1 }
  0x2f   :  { %898 = vmatpush.msra.mxu3 %v3136_v23 }
  0x31   :  { %899 = vmatpush.msra.mxu3 %v3138_v24 }
  0x33   :  { %900 = vmatpush.msra.mxu3 %v3147_v26 }
  0x34   :  { %2476 = vmatmul.msk.f32.gmra.mxu1 %vm125_vm0, %v97_v16 }
  0x35   :  { %901 = vmatpush.msra.mxu3 %v3149_v27 }
  0x36   :  { %2461 = vmatmul.msk.f32.gmra.mxu0 %vm125_vm0, %v98_v17 }
  0x3c   :  { %2477 = vmatmul.msk.f32.gmra.mxu1 %vm125_vm0, %v98_v17 }
  0x3e   :  { %2462 = vmatmul.msk.f32.gmra.mxu0 %vm125_vm0, %v99_v18 }
  0x44   :  { %2478 = vmatmul.msk.f32.gmra.mxu1 %vm125_vm0, %v99_v18 }
  0x46   :  { %2463 = vmatmul.msk.f32.gmra.mxu0 %vm125_vm0, %v100_v19 }
  0x4c   :  { %2479 = vmatmul.msk.f32.gmra.mxu1 %vm125_vm0, %v100_v19 }
  0x4e   :  { %2464 = vmatmul.msk.f32.gmra.mxu0 %vm125_vm0, %v101_v20 }
  0x54   :  { %2480 = vmatmul.msk.f32.gmra.mxu1 %vm125_vm0, %v101_v20 }
  0x56   :  { %2465 = vmatmul.msk.f32.gmra.mxu0 %vm125_vm0, %v102_v21 }
  0x5c   :  { %2481 = vmatmul.msk.f32.gmra.mxu1 %vm125_vm0, %v102_v21 }
  0x5e   :  { %2466 = vmatmul.msk.f32.gmra.mxu0 %vm125_vm0, %v103_v22 }
  0x64   :  { %2482 = vmatmul.msk.f32.gmra.mxu1 %vm125_vm0, %v103_v22 }
  0x66   :  { %2467 = vmatmul.msk.f32.gmra.mxu0 %vm125_vm0, %v104_v25 }
  0x6c   :  { %2483 = vmatmul.msk.f32.gmra.mxu1 %vm125_vm0, %v104_v25 }
  0x6e   :  { %2468 = vmatmul.msk.f32.gmra.mxu0 %vm125_vm0, %v105_v28 }
  0x74   :  { %2484 = vmatmul.msk.f32.gmra.mxu1 %vm125_vm0, %v105_v28 }
  0x76   :  { %2469 = vmatmul.msk.f32.gmra.mxu0 %vm125_vm0, %v106_v29 }
  0x7c   :  { %2485 = vmatmul.msk.f32.gmra.mxu1 %vm125_vm0, %v106_v29 }
  0x7e   :  { %2470 = vmatmul.msk.f32.gmra.mxu0 %vm125_vm0, %v107_v30 }
  0x84   :  { %2486 = vmatmul.msk.f32.gmra.mxu1 %vm125_vm0, %v107_v30 }
  0x86   :  { %2471 = vmatmul.msk.f32.gmra.mxu0 %vm125_vm0, %v108_v31 }
  0x8c   :  { %2487 = vmatmul.msk.f32.gmra.mxu1 %vm125_vm0, %v108_v31 }
  0x8e   :  { %2472 = vmatmul.msk.f32.gmra.mxu0 %vm125_vm0, %v109_v32 }
  0x94   :  { %2488 = vmatmul.msk.f32.gmra.mxu1 %vm125_vm0, %v109_v32 }
  0x99   :  { %v3191_v34 = vpop.f32.mrf.mxu1 }
  0x9b   :  { %v191_v36 = vpop.f32.mrf.mxu0 }
  0x9c   :  { %2489 = vmatmul.msk.f32.gmra.mxu1 %vm125_vm0, %v3076_v8  ;;  %v192_v37 = vadd.f32 %v191_v36, %v3193_v35 }
  0x9f   :  { %v366_v38 = vpop.f32.mrf.mxu2 }
  0xa0   :  { %v397_v39 = vadd.f32 %v366_v38, %v192_v37 }
  0xa1   :  { %v3198_v40 = vpop.f32.mrf.mxu1 }
  0xa2   :  { %2587 = vtanh.f32 %v397_v39  ;;  %v2490_v56 = vmul.f32 -1.442695, %v397_v39 }
  0xa3   :  { %v194_v41 = vpop.f32.mrf.mxu0 }
  0xa4   :  { %v195_v42 = vadd.f32 %v194_v41, %v3193_v35 }
  0xa7   :  { %v369_v43 = vpop.f32.mrf.mxu2 }
  0xa8   :  { %v2588_v44 = vpop.eup %2587  ;;  %v398_v45 = vadd.f32 %v369_v43, %v195_v42 }
  0xa9   :  { %v3201_v46 = vpop.f32.mrf.mxu1  ;;  %443 = vrot.lane.b32.xlu0 %v2588_v44, %s2992_s0  ;;  %v389_v10 = vpop.f32.mrf.mxu3 }
  0xaa   :  { %2589 = vtanh.f32 %v398_v45  ;;  %v2491_v58 = vmul.f32 -1.442695, %v398_v45 }
  0xab   :  { %2591 = vpow2.f32 %v2490_v56 }
  0xac   :  { %2593 = vpow2.f32 %v2491_v58 }
  0xb0   :  { %v2590_v47 = vpop.eup %2589 }
  0xb1   :  { %v3204_v48 = vpop.f32.mrf.mxu1  ;;  %445 = vrot.lane.b32.xlu1 %v2590_v47, %s2992_s0  ;;  %v2592_v59 = vpop.eup %2591 }
  0xb2   :  { %v405_v61 = vadd.f32 1.0, %v2592_v59  ;;  %v2594_v62 = vpop.eup %2593  ;;  %v392_v29 = vpop.f32.mrf.mxu3 }
  0xb3   :  { %v406_v0 = vadd.f32 1.0, %v2594_v62 }
  0xb4   :  { %2595 = vrcp.f32 %v405_v61  ;;  %vm412_vm1 = vweird.f32 %v405_v61  ;;  %v418_v16 = vand.u32 2147483648, %v405_v61  ;;  %v416_v19 = vand.u32 2147483647, %v405_v61 }
  0xb5   :  { %2597 = vrcp.f32 %v406_v0  ;;  %vm427_vm5 = vweird.f32 %v406_v0  ;;  %v433_v33 = vand.u32 2147483648, %v406_v0  ;;  %v431_v41 = vand.u32 2147483647, %v406_v0 }
  0xb6   :  { %v419_v21 = vor.u32 1.1754944e-38, %v418_v16  ;;  %vm417_vm4 = vcmp.eq.f32.partialorder %v416_v19, 8.507059e+37 }
  0xb7   :  { %v434_v42 = vor.u32 1.1754944e-38, %v433_v33  ;;  %vm432_vm8 = vcmp.eq.f32.partialorder %v431_v41, 8.507059e+37 }
  0xb9   :  { %v3207_v49 = vpop.f32.mrf.mxu1 }
  0xba   :  { %v2596_v2 = vpop.eup %2595 }
  0xbb   :  { %v408_v4 = vmul.f32 %v2596_v2, %v405_v61  ;;  %v2598_v9 = vpop.eup %2597  ;;  %vm413_vm2 = vweird.f32 %v2596_v2 }
  0xbc   :  { %v423_v13 = vmul.f32 %v2598_v9, %v406_v0  ;;  %vm414_vm3 = vmor %vm412_vm1, %vm413_vm2  ;;  %vm428_vm6 = vweird.f32 %v2598_v9 }
  0xbd   :  { %v409_v8 = vsub.f32 1.0, %v408_v4  ;;  %vm429_vm7 = vmor %vm427_vm5, %vm428_vm6 }
  0xbe   :  { %v424_v20 = vsub.f32 1.0, %v423_v13 }
  0xbf   :  { %v410_v12 = vmul.f32 %v2596_v2, %v409_v8 }
  0xc0   :  { %v425_v25 = vmul.f32 %v2598_v9, %v424_v20 }
  0xc1   :  { %v3209_v50 = vpop.f32.mrf.mxu1  ;;  %v411_v18 = vadd.f32 %v2596_v2, %v410_v12 }
  0xc2   :  { %v426_v39 = vadd.f32 %v2598_v9, %v425_v25 }
  0xc3   :  { %v415_v22 = vsel %vm414_vm3, %v2596_v2, %v411_v18 }
  0xc4   :  { %v3233_v32 = vsel %vm417_vm4, %v419_v21, %v415_v22  ;;  %v430_v43 = vsel %vm429_vm7, %v2598_v9, %v426_v39 }
  0xc5   :  { %v3238_v45 = vsel %vm432_vm8, %v434_v42, %v430_v43  ;;  %v439_v21 = vmul.f32 0.0, %v3233_v32 }
  0xc6   :  { %v440_v42 = vmul.f32 0.0, %v3238_v45 }
  0xc9   :  { %v3211_v51 = vpop.f32.mrf.mxu1 }
  0xd1   :  { %v3213_v52 = vpop.f32.mrf.mxu1 }
  0xd9   :  { %v3215_v53 = vpop.f32.mrf.mxu1 }
  0xe1   :  { %v3217_v54 = vpop.f32.mrf.mxu1 }
  0xe9   :  { %v3219_v55 = vpop.f32.mrf.mxu1 }
  0xf1   :  { %v3221_v57 = vpop.f32.mrf.mxu1 }
  0xf9   :  { %v3223_v60 = vpop.f32.mrf.mxu1 }
 0x101   :  { %v3225_v63 = vpop.f32.mrf.mxu1 }
 0x109   :  { %v3227_v6 = vpop.f32.mrf.mxu1 }
 0x111   :  { %v298_v14 = vpop.f32.mrf.mxu1 }
 0x112   :  { %v299_v15 = vadd.f32 %v298_v14, %v3229_v11 }
 0x114   :  { %v476_v17 = vadd.f32 %v389_v10, %v299_v15 }
 0x116   :  { %2599 = vtanh.f32 %v476_v17  ;;  %v2492_v58 = vmul.f32 -1.442695, %v476_v17 }
 0x119   :  { %v301_v28 = vpop.f32.mrf.mxu1 }
 0x11a   :  { %v302_v30 = vadd.f32 %v301_v28, %v3229_v11 }
 0x11b   :  { %v444_v31 = vpop.permute.xlu0 %443 }
 0x11c   :  { %v2600_v36 = vpop.eup %2599  ;;  %v477_v37 = vadd.f32 %v392_v29, %v302_v30  ;;  %v449_v38 = vmul.f32 %v444_v31, %v3233_v32 }
 0x11d   :  { %522 = vrot.lane.b32.xlu0 %v2600_v36, %s2992_s0 }
 0x11e   :  { %2601 = vtanh.f32 %v477_v37  ;;  %453 = vrot.lane.b32.xlu2 %v449_v38, %s2993_s3  ;;  %v2493_v59 = vmul.f32 -1.442695, %v477_v37 }
 0x11f   :  { %2603 = vpow2.f32 %v2492_v58 }
 0x120   :  { %2605 = vpow2.f32 %v2493_v59 }
 0x123   :  { %v446_v44 = vpop.permute.xlu1 %445 }
 0x124   :  { %v2602_v47 = vpop.eup %2601  ;;  %v450_v56 = vmul.f32 %v446_v44, %v3238_v45 }
 0x125   :  { %524 = vrot.lane.b32.xlu1 %v2602_v47, %s2992_s0  ;;  %v2604_v61 = vpop.eup %2603 }
 0x126   :  { %455 = vrot.lane.b32.xlu0 %v450_v56, %s2993_s3  ;;  %v484_v62 = vadd.f32 1.0, %v2604_v61  ;;  %v2606_v0 = vpop.eup %2605 }
 0x127   :  { %v485_v2 = vadd.f32 1.0, %v2606_v0 }
 0x128   :  { %2607 = vrcp.f32 %v484_v62  ;;  %v497_v16 = vand.u32 2147483648, %v484_v62  ;;  %vm491_vm10 = vweird.f32 %v484_v62  ;;  %v495_v17 = vand.u32 2147483647, %v484_v62 }
 0x129   :  { %2609 = vrcp.f32 %v485_v2  ;;  %vm506_vm13 = vweird.f32 %v485_v2  ;;  %v512_v30 = vand.u32 2147483648, %v485_v2  ;;  %v510_v36 = vand.u32 2147483647, %v485_v2 }
 0x12a   :  { %v498_v22 = vor.u32 1.1754944e-38, %v497_v16  ;;  %vm496_vm12 = vcmp.eq.f32.partialorder %v495_v17, 8.507059e+37 }
 0x12b   :  { %v513_v37 = vor.u32 1.1754944e-38, %v512_v30  ;;  %vm511_vm1 = vcmp.eq.f32.partialorder %v510_v36, 8.507059e+37 }
 0x12e   :  { %v2608_v4 = vpop.eup %2607 }
 0x12f   :  { %v487_v8 = vmul.f32 %v2608_v4, %v484_v62  ;;  %v2610_v10 = vpop.eup %2609  ;;  %vm492_vm9 = vweird.f32 %v2608_v4 }
 0x130   :  { %v502_v13 = vmul.f32 %v2610_v10, %v485_v2  ;;  %vm493_vm11 = vmor %vm491_vm10, %vm492_vm9  ;;  %vm507_vm14 = vweird.f32 %v2610_v10 }
 0x131   :  { %v488_v9 = vsub.f32 1.0, %v487_v8  ;;  %vm508_vm15 = vmor %vm506_vm13, %vm507_vm14 }
 0x132   :  { %v503_v15 = vsub.f32 1.0, %v502_v13 }
 0x133   :  { %v489_v12 = vmul.f32 %v2608_v4, %v488_v9 }
 0x134   :  { %v504_v20 = vmul.f32 %v2610_v10, %v503_v15 }
 0x135   :  { %v490_v14 = vadd.f32 %v2608_v4, %v489_v12 }
 0x136   :  { %v505_v33 = vadd.f32 %v2610_v10, %v504_v20 }
 0x137   :  { %v494_v19 = vsel %vm493_vm11, %v2608_v4, %v490_v14 }
 0x138   :  { %v499_v28 = vsel %vm496_vm12, %v498_v22, %v494_v19  ;;  %v509_v38 = vsel %vm508_vm15, %v2610_v10, %v505_v33 }
 0x139   :  { %v514_v39 = vsel %vm511_vm1, %v513_v37, %v509_v38  ;;  %v518_v59 = vmul.f32 0.0, %v499_v28 }
 0x13a   :  { %v519_v8 = vmul.f32 0.0, %v514_v39 }
 0x178   :  { %v454_v18 = vpop.permute.xlu2 %453 }
 0x179   :  { %v3244_v25 = vadd.f32 %v454_v18, %v439_v21  ;;  %v197_v21 = vpop.f32.mrf.mxu0 }
 0x17a   :  { %v198_v22 = vadd.f32 %v197_v21, %v3193_v35 }
 0x17b   :  { %2611 = vtanh.f32 %v3244_v25 }
 0x181   :  { %v2612_v47 = vpop.eup %2611  ;;  %v200_v30 = vpop.f32.mrf.mxu0 }
 0x18f   :  { %v523_v29 = vpop.permute.xlu0 %522 }
 0x190   :  { %v528_v31 = vmul.f32 %v523_v29, %v499_v28 }
 0x192   :  { %532 = vrot.lane.b32.xlu2 %v528_v31, %s2993_s3  ;;  %v201_v31 = vadd.f32 %v200_v30, %v3193_v35 }
 0x197   :  { %v525_v41 = vpop.permute.xlu1 %524 }
 0x198   :  { %v529_v43 = vmul.f32 %v525_v41, %v514_v39  ;;  %v456_v44 = vpop.permute.xlu0 %455 }
 0x199   :  { %v3249_v56 = vadd.f32 %v456_v44, %v440_v42 }
 0x19a   :  { %534 = vrot.lane.b32.xlu1 %v529_v43, %s2993_s3  ;;  %465 = vrot.lane.b32.xlu2 %v2612_v47, %s2992_s0 }
 0x19b   :  { %2613 = vtanh.f32 %v3249_v56 }
 0x1a1   :  { %v2614_v58 = vpop.eup %2613 }
 0x1a2   :  { %467 = vrot.lane.b32.xlu1 %v2614_v58, %s2992_s0 }
 0x1ec   :  { %v533_v61 = vpop.permute.xlu2 %532 }
 0x1ed   :  { %v3255_v62 = vadd.f32 %v533_v61, %v518_v59  ;;  %v293_v61 = vadd.f32 %v3225_v63, %v3229_v11 }
 0x1ef   :  { %2615 = vtanh.f32 %v3255_v62 }
 0x1f4   :  { %v466_v2 = vpop.permute.xlu2 %465 }
 0x1f5   :  { %v2616_v0 = vpop.eup %2615  ;;  %v3260_v4 = vmul.f32 %v466_v2, %v3233_v32 }
 0x1f6   :  { %544 = vrot.lane.b32.xlu0 %v2616_v0, %s2992_s0 }
 0x1fe   :  { %587 = vrot.lane.b32.xlu0 %v3260_v4, %s2993_s3 }
 0x20c   :  { %v535_v9 = vpop.permute.xlu1 %534 }
 0x20d   :  { %v3264_v10 = vadd.f32 %v535_v9, %v519_v8 }
 0x20f   :  { %2617 = vtanh.f32 %v3264_v10 }
 0x214   :  { %v468_v13 = vpop.permute.xlu1 %467 }
 0x215   :  { %v2618_v12 = vpop.eup %2617  ;;  %v3269_v14 = vmul.f32 %v468_v13, %v3238_v45 }
 0x216   :  { %546 = vrot.lane.b32.xlu2 %v2618_v12, %s2992_s0 }
 0x21e   :  { %589 = vrot.lane.b32.xlu2 %v3269_v14, %s2993_s3 }
 0x268   :  { %v545_v32 = vpop.permute.xlu0 %544 }
 0x269   :  { %v3273_v15 = vmul.f32 %v545_v32, %v499_v28  ;;  %v296_v32 = vadd.f32 %v3227_v6, %v3229_v11 }
 0x26b   :  { %620 = vrot.lane.b32.xlu1 %v3273_v15, %s2993_s3 }
 0x270   :  { %v588_v16 = vpop.permute.xlu0 %587  ;;  %v547_v17 = vpop.permute.xlu2 %546 }
 0x271   :  { %v3277_v18 = vmul.f32 %v547_v17, %v514_v39  ;;  %2496 = vmatmul.msk.f32.vlgmr.msrb.gmra.mxu2 %vm125_vm0, %v588_v16 }
 0x272   :  { %1123 = vmatpush.msrb.mxu2 %v3062_v1 }
 0x273   :  { %622 = vrot.lane.b32.xlu0 %v3277_v18, %s2993_s3 }
 0x274   :  { %1124 = vmatpush.msrb.mxu2 %v3065_v3 }
 0x276   :  { %1125 = vmatpush.msrb.mxu2 %v3067_v5 }
 0x278   :  { %v590_v45 = vpop.permute.xlu2 %589  ;;  %1126 = vmatpush.msrb.mxu2 %v3070_v7 }
 0x279   :  { %2497 = vmatmul.msk.f32.gmra.mxu2 %vm125_vm0, %v590_v45 }
 0x2dd   :  { %v621_v19 = vpop.permute.xlu1 %620 }
 0x2de   :  { %2498 = vmatmul.msk.f32.vlgmr.msrb.gmra.mxu3 %vm125_vm0, %v621_v19 }
 0x2df   :  { %1156 = vmatpush.msrb.mxu3 %v3136_v23 }
 0x2e1   :  { %1157 = vmatpush.msrb.mxu3 %v3138_v24 }
 0x2e3   :  { %1158 = vmatpush.msrb.mxu3 %v3147_v26 }
 0x2e5   :  { %v623_v20 = vpop.permute.xlu0 %622  ;;  %1159 = vmatpush.msrb.mxu3 %v3149_v27 }
 0x2e6   :  { %2499 = vmatmul.msk.f32.gmra.mxu3 %vm125_vm0, %v623_v20 }
 0x2f4   :  { %v612_v28 = vpop.f32.mrf.mxu2 }
 0x2f5   :  { %v654_v29 = vadd.f32 %v612_v28, %v198_v22 }
 0x2f7   :  { %2619 = vtanh.f32 %v654_v29  ;;  %v2500_v39 = vmul.f32 -1.442695, %v654_v29 }
 0x2fc   :  { %v615_v33 = vpop.f32.mrf.mxu2 }
 0x2fd   :  { %v2620_v36 = vpop.eup %2619  ;;  %v655_v37 = vadd.f32 %v615_v33, %v201_v31 }
 0x2fe   :  { %700 = vrot.lane.b32.xlu1 %v2620_v36, %s2992_s0 }
 0x2ff   :  { %2621 = vtanh.f32 %v655_v37  ;;  %v2501_v41 = vmul.f32 -1.442695, %v655_v37 }
 0x300   :  { %2623 = vpow2.f32 %v2500_v39 }
 0x301   :  { %2625 = vpow2.f32 %v2501_v41 }
 0x305   :  { %v2622_v38 = vpop.eup %2621 }
 0x306   :  { %702 = vrot.lane.b32.xlu0 %v2622_v38, %s2992_s0  ;;  %v2624_v42 = vpop.eup %2623 }
 0x307   :  { %v662_v43 = vadd.f32 1.0, %v2624_v42  ;;  %v2626_v44 = vpop.eup %2625 }
 0x308   :  { %v663_v47 = vadd.f32 1.0, %v2626_v44 }
 0x309   :  { %2627 = vrcp.f32 %v662_v43  ;;  %v675_v21 = vand.u32 2147483648, %v662_v43  ;;  %vm669_vm3 = vweird.f32 %v662_v43  ;;  %v673_v63 = vand.u32 2147483647, %v662_v43 }
 0x30a   :  { %2629 = vrcp.f32 %v663_v47  ;;  %v690_v37 = vand.u32 2147483648, %v663_v47  ;;  %vm684_vm7 = vweird.f32 %v663_v47  ;;  %v688_v38 = vand.u32 2147483647, %v663_v47 }
 0x30b   :  { %v676_v29 = vor.u32 1.1754944e-38, %v675_v21  ;;  %vm674_vm5 = vcmp.eq.f32.partialorder %v673_v63, 8.507059e+37 }
 0x30c   :  { %v691_v41 = vor.u32 1.1754944e-38, %v690_v37  ;;  %vm689_vm9 = vcmp.eq.f32.partialorder %v688_v38, 8.507059e+37 }
 0x30f   :  { %v2628_v58 = vpop.eup %2627 }
 0x310   :  { %v665_v59 = vmul.f32 %v2628_v58, %v662_v43  ;;  %v2630_v8 = vpop.eup %2629  ;;  %vm670_vm2 = vweird.f32 %v2628_v58 }
 0x311   :  { %v680_v13 = vmul.f32 %v2630_v8, %v663_v47  ;;  %vm671_vm4 = vmor %vm669_vm3, %vm670_vm2  ;;  %vm685_vm6 = vweird.f32 %v2630_v8 }
 0x312   :  { %v666_v2 = vsub.f32 1.0, %v665_v59  ;;  %vm686_vm8 = vmor %vm684_vm7, %vm685_vm6 }
 0x313   :  { %v681_v45 = vsub.f32 1.0, %v680_v13 }
 0x314   :  { %v667_v12 = vmul.f32 %v2628_v58, %v666_v2 }
 0x315   :  { %v682_v28 = vmul.f32 %v2630_v8, %v681_v45 }
 0x316   :  { %v668_v17 = vadd.f32 %v2628_v58, %v667_v12 }
 0x317   :  { %v683_v33 = vadd.f32 %v2630_v8, %v682_v28 }
 0x318   :  { %v672_v22 = vsel %vm671_vm4, %v2628_v58, %v668_v17 }
 0x319   :  { %v3302_v31 = vsel %vm674_vm5, %v676_v29, %v672_v22  ;;  %v687_v39 = vsel %vm686_vm8, %v2630_v8, %v683_v33 }
 0x31a   :  { %v3307_v43 = vsel %vm689_vm9, %v691_v41, %v687_v39 }
 0x361   :  { %v645_v0 = vpop.f32.mrf.mxu3 }
 0x362   :  { %v733_v9 = vadd.f32 %v645_v0, %v293_v61 }
 0x364   :  { %2631 = vtanh.f32 %v733_v9  ;;  %v2502_v58 = vmul.f32 -1.442695, %v733_v9 }
 0x369   :  { %v648_v16 = vpop.f32.mrf.mxu3 }
 0x36a   :  { %v2632_v19 = vpop.eup %2631  ;;  %v734_v20 = vadd.f32 %v648_v16, %v296_v32 }
 0x36b   :  { %779 = vrot.lane.b32.xlu2 %v2632_v19, %s2992_s0 }
 0x36c   :  { %2633 = vtanh.f32 %v734_v20  ;;  %v2503_v47 = vmul.f32 -1.442695, %v734_v20  ;;  %v696_v20 = vmul.f32 %v3302_v31, %v3244_v25 }
 0x36d   :  { %2635 = vpow2.f32 %v2502_v58 }
 0x370   :  { %v701_v30 = vpop.permute.xlu1 %700 }
 0x371   :  { %v706_v6 = vmul.f32 %v701_v30, %v3302_v31 }
 0x372   :  { %v2634_v36 = vpop.eup %2633 }
 0x373   :  { %710 = vrot.lane.b32.xlu2 %v706_v6, %s2993_s3  ;;  %781 = vrot.lane.b32.xlu1 %v2634_v36, %s2992_s0  ;;  %v2636_v59 = vpop.eup %2635 }
 0x374   :  { %v741_v61 = vadd.f32 1.0, %v2636_v59 }
 0x376   :  { %2637 = vrcp.f32 %v741_v61  ;;  %v754_v32 = vand.u32 2147483648, %v741_v61  ;;  %vm748_vm11 = vweird.f32 %v741_v61  ;;  %v752_v16 = vand.u32 2147483647, %v741_v61 }
 0x377   :  { %2639 = vpow2.f32 %v2503_v47 }
 0x378   :  { %v703_v42 = vpop.permute.xlu0 %702  ;;  %v755_v19 = vor.u32 1.1754944e-38, %v754_v32  ;;  %vm753_vm13 = vcmp.eq.f32.partialorder %v752_v16, 8.507059e+37 }
 0x379   :  { %v707_v44 = vmul.f32 %v703_v42, %v3307_v43 }
 0x37b   :  { %712 = vrot.lane.b32.xlu1 %v707_v44, %s2993_s3 }
 0x37c   :  { %v2638_v0 = vpop.eup %2637 }
 0x37d   :  { %v744_v2 = vmul.f32 %v2638_v0, %v741_v61  ;;  %vm749_vm10 = vweird.f32 %v2638_v0  ;;  %v2640_v17 = vpop.eup %2639  ;;  %v697_v61 = vmul.f32 %v3307_v43, %v3249_v56 }
 0x37e   :  { %vm750_vm12 = vmor %vm748_vm11, %vm749_vm10  ;;  %v742_v9 = vadd.f32 1.0, %v2640_v17 }
 0x37f   :  { %v745_v12 = vsub.f32 1.0, %v744_v2 }
 0x380   :  { %2641 = vrcp.f32 %v742_v9  ;;  %v769_v39 = vand.u32 2147483648, %v742_v9  ;;  %vm763_vm15 = vweird.f32 %v742_v9  ;;  %v767_v41 = vand.u32 2147483647, %v742_v9 }
 0x381   :  { %v746_v13 = vmul.f32 %v2638_v0, %v745_v12 }
 0x382   :  { %v770_v25 = vor.u32 1.1754944e-38, %v769_v39  ;;  %vm768_vm2 = vcmp.eq.f32.partialorder %v767_v41, 8.507059e+37 }
 0x383   :  { %v747_v8 = vadd.f32 %v2638_v0, %v746_v13 }
 0x385   :  { %v751_v45 = vsel %vm750_vm12, %v2638_v0, %v747_v8 }
 0x386   :  { %v756_v21 = vsel %vm753_vm13, %v755_v19, %v751_v45  ;;  %v2642_v30 = vpop.eup %2641 }
 0x387   :  { %v759_v6 = vmul.f32 %v2642_v30, %v742_v9  ;;  %vm764_vm14 = vweird.f32 %v2642_v30  ;;  %v775_v47 = vmul.f32 %v756_v21, %v3255_v62 }
 0x388   :  { %vm765_vm1 = vmor %vm763_vm15, %vm764_vm14 }
 0x389   :  { %v760_v36 = vsub.f32 1.0, %v759_v6 }
 0x38b   :  { %v761_v37 = vmul.f32 %v2642_v30, %v760_v36 }
 0x38d   :  { %v762_v38 = vadd.f32 %v2642_v30, %v761_v37 }
 0x38f   :  { %v766_v42 = vsel %vm765_vm1, %v2642_v30, %v762_v38 }
 0x390   :  { %v771_v58 = vsel %vm768_vm2, %v770_v25, %v766_v42  ;;  %v287_v42 = vadd.f32 %v3221_v57, %v3229_v11 }
 0x391   :  { %v776_v32 = vmul.f32 %v771_v58, %v3264_v10 }
 0x3c5   :  { %v780_v63 = vpop.permute.xlu2 %779 }
 0x3c6   :  { %v785_v22 = vmul.f32 %v780_v63, %v756_v21 }
 0x3c8   :  { %789 = vrot.lane.b32.xlu0 %v785_v22, %s2993_s3 }
 0x3cd   :  { %v711_v28 = vpop.permute.xlu2 %710 }
 0x3ce   :  { %v3314_v29 = vadd.f32 %v711_v28, %v696_v20 }
 0x3d0   :  { %2643 = vtanh.f32 %v3314_v29 }
 0x3d6   :  { %v2644_v33 = vpop.eup %2643 }
 0x3d7   :  { %722 = vrot.lane.b32.xlu0 %v2644_v33, %s2992_s0 }
 0x3e5   :  { %v782_v44 = vpop.permute.xlu1 %781 }
 0x3e6   :  { %v786_v59 = vmul.f32 %v782_v44, %v771_v58 }
 0x3e8   :  { %791 = vrot.lane.b32.xlu2 %v786_v59, %s2993_s3 }
 0x3ed   :  { %v713_v0 = vpop.permute.xlu1 %712 }
 0x3ee   :  { %v3321_v2 = vadd.f32 %v713_v0, %v697_v61 }
 0x3f0   :  { %2645 = vtanh.f32 %v3321_v2 }
 0x3f6   :  { %v2646_v12 = vpop.eup %2645 }
 0x3f7   :  { %724 = vrot.lane.b32.xlu2 %v2646_v12, %s2992_s0 }
 0x43a   :  { %v790_v13 = vpop.permute.xlu0 %789 }
 0x43b   :  { %v3326_v8 = vadd.f32 %v790_v13, %v775_v47 }
 0x43d   :  { %2647 = vtanh.f32 %v3326_v8 }
 0x442   :  { %v792_v16 = vpop.permute.xlu2 %791 }
 0x443   :  { %v2648_v17 = vpop.eup %2647  ;;  %v3330_v56 = vadd.f32 %v792_v16, %v776_v32 }
 0x444   :  { %801 = vrot.lane.b32.xlu1 %v2648_v17, %s2992_s0 }
 0x445   :  { %2649 = vtanh.f32 %v3330_v56 }
 0x449   :  { %v723_v45 = vpop.permute.xlu0 %722 }
 0x44a   :  { %v3335_v19 = vmul.f32 %v723_v45, %v3302_v31 }
 0x44b   :  { %v2650_v62 = vpop.eup %2649 }
 0x44c   :  { %845 = vrot.lane.b32.xlu1 %v3335_v19, %s2993_s3  ;;  %803 = vrot.lane.b32.xlu0 %v2650_v62, %s2992_s0 }
 0x451   :  { %v725_v9 = vpop.permute.xlu2 %724 }
 0x452   :  { %v3341_v10 = vmul.f32 %v725_v9, %v3307_v43 }
 0x454   :  { %847 = vrot.lane.b32.xlu0 %v3341_v10, %s2993_s3 }
 0x4b6   :  { %v802_v63 = vpop.permute.xlu1 %801 }
 0x4b7   :  { %v3345_v22 = vmul.f32 %v802_v63, %v756_v21 }
 0x4b9   :  { %878 = vrot.lane.b32.xlu2 %v3345_v22, %s2993_s3 }
 0x4be   :  { %v846_v31 = vpop.permute.xlu1 %845  ;;  %v804_v20 = vpop.permute.xlu0 %803 }
 0x4bf   :  { %v3349_v28 = vmul.f32 %v804_v20, %v771_v58  ;;  %2508 = vmatmul.msk.f32.vlgmr.msra.gmra.mxu2 %vm125_vm0, %v846_v31  ;;  %v290_v20 = vadd.f32 %v3223_v60, %v3229_v11 }
 0x4c0   :  { %1381 = vmatpush.msra.mxu2 %v3062_v1 }
 0x4c1   :  { %880 = vrot.lane.b32.xlu1 %v3349_v28, %s2993_s3 }
 0x4c2   :  { %1382 = vmatpush.msra.mxu2 %v3065_v3  ;;  %v203_v3 = vpop.f32.mrf.mxu0 }
 0x4c4   :  { %1383 = vmatpush.msra.mxu2 %v3067_v5  ;;  %v204_v5 = vadd.f32 %v203_v3, %v3193_v35 }
 0x4c6   :  { %v848_v43 = vpop.permute.xlu0 %847  ;;  %1384 = vmatpush.msra.mxu2 %v3070_v7 }
 0x4c7   :  { %2509 = vmatmul.msk.f32.gmra.mxu2 %vm125_vm0, %v848_v43 }
 0x4ca   :  { %v206_v6 = vpop.f32.mrf.mxu0 }
 0x4cb   :  { %v207_v33 = vadd.f32 %v206_v6, %v3193_v35 }
 0x513   :  { %v879_v21 = vpop.permute.xlu2 %878 }
 0x514   :  { %2510 = vmatmul.msk.f32.vlgmr.msra.gmra.mxu3 %vm125_vm0, %v879_v21 }
 0x515   :  { %1414 = vmatpush.msra.mxu3 %v3136_v23 }
 0x517   :  { %1415 = vmatpush.msra.mxu3 %v3138_v24 }
 0x519   :  { %1416 = vmatpush.msra.mxu3 %v3147_v26 }
 0x51b   :  { %1417 = vmatpush.msra.mxu3 %v3149_v27 }
 0x533   :  { %v881_v1 = vpop.permute.xlu1 %880 }
 0x534   :  { %2511 = vmatmul.msk.f32.gmra.mxu3 %vm125_vm0, %v881_v1 }
 0x542   :  { %v870_v7 = vpop.f32.mrf.mxu2 }
 0x543   :  { %v912_v30 = vadd.f32 %v870_v7, %v204_v5 }
 0x545   :  { %2651 = vtanh.f32 %v912_v30  ;;  %v2512_v26 = vmul.f32 -1.442695, %v912_v30 }
 0x54a   :  { %v873_v36 = vpop.f32.mrf.mxu2 }
 0x54b   :  { %v2652_v23 = vpop.eup %2651  ;;  %v913_v37 = vadd.f32 %v873_v36, %v207_v33 }
 0x54c   :  { %958 = vrot.lane.b32.xlu2 %v2652_v23, %s2992_s0 }
 0x54d   :  { %2653 = vtanh.f32 %v913_v37  ;;  %v2513_v59 = vmul.f32 -1.442695, %v913_v37 }
 0x54e   :  { %2655 = vpow2.f32 %v2512_v26 }
 0x553   :  { %v2654_v24 = vpop.eup %2653 }
 0x554   :  { %960 = vrot.lane.b32.xlu1 %v2654_v24, %s2992_s0  ;;  %v2656_v27 = vpop.eup %2655 }
 0x555   :  { %v920_v38 = vadd.f32 1.0, %v2656_v27 }
 0x557   :  { %2657 = vrcp.f32 %v920_v38  ;;  %v933_v47 = vand.u32 2147483648, %v920_v38  ;;  %vm927_vm4 = vweird.f32 %v920_v38  ;;  %v931_v13 = vand.u32 2147483647, %v920_v38 }
 0x559   :  { %v934_v17 = vor.u32 1.1754944e-38, %v933_v47  ;;  %vm932_vm6 = vcmp.eq.f32.partialorder %v931_v13, 8.507059e+37 }
 0x55d   :  { %v2658_v39 = vpop.eup %2657 }
 0x55e   :  { %v923_v41 = vmul.f32 %v2658_v39, %v920_v38  ;;  %vm928_vm3 = vweird.f32 %v2658_v39 }
 0x55f   :  { %vm929_vm5 = vmor %vm927_vm4, %vm928_vm3 }
 0x560   :  { %v924_v44 = vsub.f32 1.0, %v923_v41 }
 0x562   :  { %v925_v61 = vmul.f32 %v2658_v39, %v924_v44 }
 0x564   :  { %v926_v0 = vadd.f32 %v2658_v39, %v925_v61 }
 0x566   :  { %v930_v16 = vsel %vm929_vm5, %v2658_v39, %v926_v0 }
 0x567   :  { %v3372_v45 = vsel %vm932_vm6, %v934_v17, %v930_v16 }
 0x597   :  { %v903_v25 = vpop.f32.mrf.mxu3 }
 0x598   :  { %v991_v58 = vadd.f32 %v903_v25, %v287_v42 }
 0x59a   :  { %2659 = vtanh.f32 %v991_v58  ;;  %v2514_v24 = vmul.f32 -1.442695, %v991_v58 }
 0x59b   :  { %2661 = vpow2.f32 %v2513_v59 }
 0x5a0   :  { %v2660_v12 = vpop.eup %2659 }
 0x5a1   :  { %1037 = vrot.lane.b32.xlu0 %v2660_v12, %s2992_s0  ;;  %v2662_v32 = vpop.eup %2661 }
 0x5a2   :  { %v921_v57 = vadd.f32 1.0, %v2662_v32 }
 0x5a4   :  { %2663 = vrcp.f32 %v921_v57  ;;  %v948_v30 = vand.u32 2147483648, %v921_v57  ;;  %vm942_vm8 = vweird.f32 %v921_v57  ;;  %v946_v6 = vand.u32 2147483647, %v921_v57 }
 0x5a6   :  { %v959_v62 = vpop.permute.xlu2 %958  ;;  %v949_v36 = vor.u32 1.1754944e-38, %v948_v30  ;;  %vm947_vm10 = vcmp.eq.f32.partialorder %v946_v6, 8.507059e+37 }
 0x5a7   :  { %v964_v9 = vmul.f32 %v959_v62, %v3372_v45 }
 0x5a9   :  { %968 = vrot.lane.b32.xlu0 %v964_v9, %s2993_s3 }
 0x5aa   :  { %v2664_v63 = vpop.eup %2663 }
 0x5ab   :  { %v938_v31 = vmul.f32 %v2664_v63, %v921_v57  ;;  %vm943_vm7 = vweird.f32 %v2664_v63 }
 0x5ac   :  { %vm944_vm9 = vmor %vm942_vm8, %vm943_vm7 }
 0x5ad   :  { %v939_v21 = vsub.f32 1.0, %v938_v31 }
 0x5af   :  { %v940_v3 = vmul.f32 %v2664_v63, %v939_v21 }
 0x5b1   :  { %v941_v5 = vadd.f32 %v2664_v63, %v940_v3 }
 0x5b3   :  { %v945_v33 = vsel %vm944_vm9, %v2664_v63, %v941_v5 }
 0x5b4   :  { %v3379_v37 = vsel %vm947_vm10, %v949_v36, %v945_v33 }
 0x5b5   :  { %v955_v33 = vmul.f32 %v3379_v37, %v3321_v2 }
 0x5b7   :  { %v906_v43 = vpop.f32.mrf.mxu3 }
 0x5b8   :  { %v992_v1 = vadd.f32 %v906_v43, %v290_v20 }
 0x5ba   :  { %2665 = vtanh.f32 %v992_v1  ;;  %v2515_v26 = vmul.f32 -1.442695, %v992_v1  ;;  %v954_v1 = vmul.f32 %v3372_v45, %v3314_v29 }
 0x5bb   :  { %2667 = vpow2.f32 %v2514_v24 }
 0x5bc   :  { %2669 = vpow2.f32 %v2515_v26 }
 0x5c0   :  { %v2666_v7 = vpop.eup %2665 }
 0x5c1   :  { %1039 = vrot.lane.b32.xlu2 %v2666_v7, %s2992_s0  ;;  %v2668_v27 = vpop.eup %2667 }
 0x5c2   :  { %v999_v38 = vadd.f32 1.0, %v2668_v27  ;;  %v2670_v39 = vpop.eup %2669 }
 0x5c3   :  { %v1000_v41 = vadd.f32 1.0, %v2670_v39 }
 0x5c4   :  { %2671 = vrcp.f32 %v999_v38  ;;  %v1012_v13 = vand.u32 2147483648, %v999_v38  ;;  %vm1006_vm12 = vweird.f32 %v999_v38  ;;  %v1010_v58 = vand.u32 2147483647, %v999_v38 }
 0x5c5   :  { %2673 = vrcp.f32 %v1000_v41  ;;  %v1027_v31 = vand.u32 2147483648, %v1000_v41  ;;  %vm1021_vm1 = vweird.f32 %v1000_v41  ;;  %v1025_v20 = vand.u32 2147483647, %v1000_v41 }
 0x5c6   :  { %v961_v23 = vpop.permute.xlu1 %960  ;;  %v1013_v17 = vor.u32 1.1754944e-38, %v1012_v13  ;;  %vm1011_vm14 = vcmp.eq.f32.partialorder %v1010_v58, 8.507059e+37 }
 0x5c7   :  { %v965_v60 = vmul.f32 %v961_v23, %v3379_v37  ;;  %v1028_v21 = vor.u32 1.1754944e-38, %v1027_v31  ;;  %vm1026_vm3 = vcmp.eq.f32.partialorder %v1025_v20, 8.507059e+37  ;;  %v209_v31 = vpop.f32.mrf.mxu0 }
 0x5c8   :  { %v210_v20 = vadd.f32 %v209_v31, %v3193_v35 }
 0x5c9   :  { %970 = vrot.lane.b32.xlu2 %v965_v60, %s2993_s3 }
 0x5ca   :  { %v2672_v42 = vpop.eup %2671 }
 0x5cb   :  { %v1002_v25 = vmul.f32 %v2672_v42, %v999_v38  ;;  %v2674_v59 = vpop.eup %2673  ;;  %vm1007_vm11 = vweird.f32 %v2672_v42 }
 0x5cc   :  { %v1017_v0 = vmul.f32 %v2674_v59, %v1000_v41  ;;  %vm1008_vm13 = vmor %vm1006_vm12, %vm1007_vm11  ;;  %vm1022_vm15 = vweird.f32 %v2674_v59 }
 0x5cd   :  { %v1003_v44 = vsub.f32 1.0, %v1002_v25  ;;  %vm1023_vm2 = vmor %vm1021_vm1, %vm1022_vm15 }
 0x5ce   :  { %v1018_v47 = vsub.f32 1.0, %v1017_v0  ;;  %v3422_v0 = vld [vmem:[#allocation7 + $0x18] sm:$0xff] }
 0x5cf   :  { %v1004_v61 = vmul.f32 %v2672_v42, %v1003_v44 }
 0x5d0   :  { %v1019_v16 = vmul.f32 %v2674_v59, %v1018_v47  ;;  %v3431_v47 = vld [vmem:[#allocation7] sm:$0xff] }
 0x5d1   :  { %v1005_v12 = vadd.f32 %v2672_v42, %v1004_v61 }
 0x5d2   :  { %v1020_v63 = vadd.f32 %v2674_v59, %v1019_v16 }
 0x5d3   :  { %v1009_v32 = vsel %vm1008_vm13, %v2672_v42, %v1005_v12  ;;  %v3425_v12 = vld [vmem:[#allocation7 + $0x10] sm:$0xff] }
 0x5d4   :  { %v1014_v62 = vsel %vm1011_vm14, %v1013_v17, %v1009_v32  ;;  %v1024_v43 = vsel %vm1023_vm2, %v2674_v59, %v1020_v63  ;;  %v3440_v17 = vld [vmem:[#allocation9 + $0x18] sm:$0xff]  ;;  %v3449_v63 = vld [vmem:[#allocation9] sm:$0xff] }
 0x5d5   :  { %v1029_v5 = vsel %vm1026_vm3, %v1028_v21, %v1024_v43  ;;  %v1033_v24 = vmul.f32 %v1014_v62, %v3326_v8 }
 0x5d6   :  { %v1034_v2 = vmul.f32 %v1029_v5, %v3330_v56 }
 0x613   :  { %v1038_v57 = vpop.permute.xlu0 %1037 }
 0x614   :  { %v1043_v9 = vmul.f32 %v1038_v57, %v1014_v62  ;;  %v3443_v57 = vld [vmem:[#allocation9 + $0x10] sm:$0xff] }
 0x616   :  { %1047 = vrot.lane.b32.xlu1 %v1043_v9, %s2993_s3 }
 0x61b   :  { %v969_v3 = vpop.permute.xlu0 %968  ;;  %v1040_v7 = vpop.permute.xlu2 %1039 }
 0x61c   :  { %v3386_v30 = vadd.f32 %v969_v3, %v954_v1  ;;  %v1044_v6 = vmul.f32 %v1040_v7, %v1029_v5  ;;  %v212_v3 = vpop.f32.mrf.mxu0 }
 0x61e   :  { %2675 = vtanh.f32 %v3386_v30  ;;  %1049 = vrot.lane.b32.xlu0 %v1044_v6, %s2993_s3 }
 0x623   :  { %v971_v36 = vpop.permute.xlu2 %970 }
 0x624   :  { %v2676_v23 = vpop.eup %2675  ;;  %v3392_v60 = vadd.f32 %v971_v36, %v955_v33 }
 0x625   :  { %980 = vrot.lane.b32.xlu1 %v2676_v23, %s2992_s0 }
 0x626   :  { %2677 = vtanh.f32 %v3392_v60 }
 0x62c   :  { %v2678_v29 = vpop.eup %2677 }
 0x62d   :  { %982 = vrot.lane.b32.xlu0 %v2678_v29, %s2992_s0 }
 0x688   :  { %v1048_v26 = vpop.permute.xlu1 %1047 }
 0x689   :  { %v3398_v27 = vadd.f32 %v1048_v26, %v1033_v24 }
 0x68b   :  { %2679 = vtanh.f32 %v3398_v27 }
 0x690   :  { %v1050_v38 = vpop.permute.xlu0 %1049 }
 0x691   :  { %v2680_v39 = vpop.eup %2679  ;;  %v3402_v41 = vadd.f32 %v1050_v38, %v1034_v2 }
 0x692   :  { %1059 = vrot.lane.b32.xlu2 %v2680_v39, %s2992_s0 }
 0x693   :  { %2681 = vtanh.f32 %v3402_v41 }
 0x697   :  { %v981_v42 = vpop.permute.xlu1 %980 }
 0x698   :  { %v3407_v25 = vmul.f32 %v981_v42, %v3372_v45  ;;  %v281_v42 = vadd.f32 %v3217_v54, %v3229_v11 }
 0x699   :  { %v2682_v8 = vpop.eup %2681 }
 0x69a   :  { %1103 = vrot.lane.b32.xlu2 %v3407_v25, %s2993_s3  ;;  %1061 = vrot.lane.b32.xlu1 %v2682_v8, %s2992_s0 }
 0x69f   :  { %v983_v44 = vpop.permute.xlu0 %982 }
 0x6a0   :  { %v3413_v56 = vmul.f32 %v983_v44, %v3379_v37  ;;  %v3428_v37 = vld [vmem:[#allocation7 + $0x8] sm:$0xff] }
 0x6a2   :  { %1105 = vrot.lane.b32.xlu1 %v3413_v56, %s2993_s3 }
 0x6ec   :  { %v1060_v59 = vpop.permute.xlu2 %1059 }
 0x6ed   :  { %v3417_v61 = vmul.f32 %v1060_v59, %v1014_v62  ;;  %v3446_v62 = vld [vmem:[#allocation9 + $0x8] sm:$0xff] }
 0x6ef   :  { %1136 = vrot.lane.b32.xlu0 %v3417_v61, %s2993_s3 }
 0x6f4   :  { %v1104_v45 = vpop.permute.xlu2 %1103 }
 0x6f5   :  { %2520 = vmatmul.msk.f32.vlgmr.msrb.gmra.mxu2 %vm125_vm0, %v1104_v45 }
 0x6f6   :  { %1613 = vmatpush.msrb.mxu2 %v3422_v0 }
 0x6f8   :  { %1614 = vmatpush.msrb.mxu2 %v3425_v12 }
 0x6fa   :  { %1615 = vmatpush.msrb.mxu2 %v3428_v37 }
 0x6fc   :  { %1616 = vmatpush.msrb.mxu2 %v3431_v47 }
 0x70c   :  { %v1062_v13 = vpop.permute.xlu1 %1061 }
 0x70d   :  { %v3434_v58 = vmul.f32 %v1062_v13, %v1029_v5  ;;  %v213_v5 = vadd.f32 %v212_v3, %v3193_v35 }
 0x70f   :  { %1138 = vrot.lane.b32.xlu2 %v3434_v58, %s2993_s3 }
 0x714   :  { %v1106_v32 = vpop.permute.xlu1 %1105 }
 0x715   :  { %2521 = vmatmul.msk.f32.gmra.mxu2 %vm125_vm0, %v1106_v32 }
 0x761   :  { %v1137_v16 = vpop.permute.xlu0 %1136 }
 0x762   :  { %2522 = vmatmul.msk.f32.vlgmr.msrb.gmra.mxu3 %vm125_vm0, %v1137_v16  ;;  %v284_v16 = vadd.f32 %v3219_v55, %v3229_v11 }
 0x763   :  { %1646 = vmatpush.msrb.mxu3 %v3440_v17 }
 0x765   :  { %1647 = vmatpush.msrb.mxu3 %v3443_v57 }
 0x767   :  { %1648 = vmatpush.msrb.mxu3 %v3446_v62 }
 0x769   :  { %v1139_v9 = vpop.permute.xlu2 %1138  ;;  %1649 = vmatpush.msrb.mxu3 %v3449_v63 }
 0x76a   :  { %2523 = vmatmul.msk.f32.gmra.mxu3 %vm125_vm0, %v1139_v9 }
 0x778   :  { %v1128_v43 = vpop.f32.mrf.mxu2 }
 0x779   :  { %v1170_v21 = vadd.f32 %v1128_v43, %v210_v20 }
 0x77b   :  { %2683 = vtanh.f32 %v1170_v21  ;;  %v2524_v36 = vmul.f32 -1.442695, %v1170_v21 }
 0x781   :  { %v2684_v1 = vpop.eup %2683 }
 0x782   :  { %1216 = vrot.lane.b32.xlu0 %v2684_v1, %s2992_s0 }
 0x798   :  { %v1131_v7 = vpop.f32.mrf.mxu2 }
 0x799   :  { %v1171_v6 = vadd.f32 %v1131_v7, %v213_v5 }
 0x79b   :  { %2685 = vtanh.f32 %v1171_v6  ;;  %v2525_v23 = vmul.f32 -1.442695, %v1171_v6 }
 0x79c   :  { %2687 = vpow2.f32 %v2524_v36 }
 0x79d   :  { %2689 = vpow2.f32 %v2525_v23 }
 0x7a1   :  { %v2686_v33 = vpop.eup %2685 }
 0x7a2   :  { %1218 = vrot.lane.b32.xlu2 %v2686_v33, %s2992_s0  ;;  %v2688_v29 = vpop.eup %2687 }
 0x7a3   :  { %v1178_v24 = vadd.f32 1.0, %v2688_v29  ;;  %v2690_v26 = vpop.eup %2689 }
 0x7a4   :  { %v1179_v2 = vadd.f32 1.0, %v2690_v26 }
 0x7a5   :  { %2691 = vrcp.f32 %v1178_v24  ;;  %v1191_v1 = vand.u32 2147483648, %v1178_v24  ;;  %vm1185_vm5 = vweird.f32 %v1178_v24  ;;  %v1189_v54 = vand.u32 2147483647, %v1178_v24 }
 0x7a6   :  { %2693 = vrcp.f32 %v1179_v2  ;;  %v1206_v29 = vand.u32 2147483648, %v1179_v2  ;;  %vm1200_vm9 = vweird.f32 %v1179_v2 }
 0x7a7   :  { %v1192_v7 = vor.u32 1.1754944e-38, %v1191_v1  ;;  %vm1190_vm7 = vcmp.eq.f32.partialorder %v1189_v54, 8.507059e+37 }
 0x7ab   :  { %v2692_v38 = vpop.eup %2691 }
 0x7ac   :  { %v1181_v39 = vmul.f32 %v2692_v38, %v1178_v24  ;;  %v2694_v59 = vpop.eup %2693  ;;  %vm1186_vm4 = vweird.f32 %v2692_v38  ;;  %v1204_v24 = vand.u32 2147483647, %v1179_v2 }
 0x7ad   :  { %v1196_v32 = vmul.f32 %v2694_v59, %v1179_v2  ;;  %vm1187_vm6 = vmor %vm1185_vm5, %vm1186_vm4  ;;  %vm1201_vm8 = vweird.f32 %v2694_v59 }
 0x7ae   :  { %v1182_v44 = vsub.f32 1.0, %v1181_v39  ;;  %vm1202_vm10 = vmor %vm1200_vm9, %vm1201_vm8  ;;  %vm1205_vm11 = vcmp.eq.f32.partialorder %v1204_v24, 8.507059e+37 }
 0x7af   :  { %v1197_v20 = vsub.f32 1.0, %v1196_v32 }
 0x7b0   :  { %v1183_v13 = vmul.f32 %v2692_v38, %v1182_v44 }
 0x7b1   :  { %v1198_v5 = vmul.f32 %v2694_v59, %v1197_v20 }
 0x7b2   :  { %v1184_v31 = vadd.f32 %v2692_v38, %v1183_v13 }
 0x7b3   :  { %v1199_v36 = vadd.f32 %v2694_v59, %v1198_v5 }
 0x7b4   :  { %v1188_v3 = vsel %vm1187_vm6, %v2692_v38, %v1184_v31  ;;  %v1207_v38 = vor.u32 1.1754944e-38, %v1206_v29 }
 0x7b5   :  { %v3462_v33 = vsel %vm1190_vm7, %v1192_v7, %v1188_v3  ;;  %v1203_v26 = vsel %vm1202_vm10, %v2694_v59, %v1199_v36 }
 0x7b6   :  { %v3467_v39 = vsel %vm1205_vm11, %v1207_v38, %v1203_v26 }
 0x7e5   :  { %v1161_v8 = vpop.f32.mrf.mxu3 }
 0x7e6   :  { %v1249_v45 = vadd.f32 %v1161_v8, %v281_v42 }
 0x7e8   :  { %2695 = vtanh.f32 %v1249_v45  ;;  %v2526_v44 = vmul.f32 -1.442695, %v1249_v45 }
 0x7ed   :  { %v1164_v9 = vpop.f32.mrf.mxu3 }
 0x7ee   :  { %v2696_v43 = vpop.eup %2695  ;;  %v1250_v21 = vadd.f32 %v1164_v9, %v284_v16 }
 0x7ef   :  { %1295 = vrot.lane.b32.xlu1 %v2696_v43, %s2992_s0 }
 0x7f0   :  { %2697 = vtanh.f32 %v1250_v21  ;;  %v2527_v13 = vmul.f32 -1.442695, %v1250_v21 }
 0x7f1   :  { %2699 = vpow2.f32 %v2526_v44  ;;  %v1212_v44 = vmul.f32 %v3462_v33, %v3386_v30 }
 0x7f2   :  { %2701 = vpow2.f32 %v2527_v13 }
 0x7f4   :  { %v1217_v6 = vpop.permute.xlu0 %1216 }
 0x7f5   :  { %v1222_v55 = vmul.f32 %v1217_v6, %v3462_v33 }
 0x7f6   :  { %v2698_v23 = vpop.eup %2697 }
 0x7f7   :  { %1226 = vrot.lane.b32.xlu1 %v1222_v55, %s2993_s3  ;;  %1297 = vrot.lane.b32.xlu0 %v2698_v23, %s2992_s0  ;;  %v2700_v32 = vpop.eup %2699 }
 0x7f8   :  { %v1257_v16 = vadd.f32 1.0, %v2700_v32  ;;  %v2702_v9 = vpop.eup %2701 }
 0x7f9   :  { %v1258_v2 = vadd.f32 1.0, %v2702_v9 }
 0x7fa   :  { %2703 = vrcp.f32 %v1257_v16  ;;  %v1270_v7 = vand.u32 2147483648, %v1257_v16  ;;  %vm1264_vm13 = vweird.f32 %v1257_v16  ;;  %v1268_v45 = vand.u32 2147483647, %v1257_v16 }
 0x7fb   :  { %2705 = vrcp.f32 %v1258_v2  ;;  %v1285_v26 = vand.u32 2147483648, %v1258_v2  ;;  %vm1279_vm2 = vweird.f32 %v1258_v2  ;;  %v1283_v38 = vand.u32 2147483647, %v1258_v2 }
 0x7fc   :  { %v1219_v42 = vpop.permute.xlu2 %1218  ;;  %v1271_v55 = vor.u32 1.1754944e-38, %v1270_v7  ;;  %vm1269_vm15 = vcmp.eq.f32.partialorder %v1268_v45, 8.507059e+37 }
 0x7fd   :  { %v1223_v8 = vmul.f32 %v1219_v42, %v3467_v39  ;;  %vm1284_vm4 = vcmp.eq.f32.partialorder %v1283_v38, 8.507059e+37 }
 0x7ff   :  { %1228 = vrot.lane.b32.xlu0 %v1223_v8, %s2993_s3  ;;  %v1286_v8 = vor.u32 1.1754944e-38, %v1285_v26 }
 0x800   :  { %v2704_v31 = vpop.eup %2703 }
 0x801   :  { %v1260_v59 = vmul.f32 %v2704_v31, %v1257_v16  ;;  %v2706_v43 = vpop.eup %2705  ;;  %vm1265_vm12 = vweird.f32 %v2704_v31 }
 0x802   :  { %v1275_v54 = vmul.f32 %v2706_v43, %v1258_v2  ;;  %vm1266_vm14 = vmor %vm1264_vm13, %vm1265_vm12  ;;  %vm1280_vm1 = vweird.f32 %v2706_v43  ;;  %v1213_v2 = vmul.f32 %v3467_v39, %v3392_v60 }
 0x803   :  { %v1261_v20 = vsub.f32 1.0, %v1260_v59  ;;  %vm1281_vm3 = vmor %vm1279_vm2, %vm1280_vm1 }
 0x804   :  { %v1276_v5 = vsub.f32 1.0, %v1275_v54 }
 0x805   :  { %v1262_v1 = vmul.f32 %v2704_v31, %v1261_v20 }
 0x806   :  { %v1277_v6 = vmul.f32 %v2706_v43, %v1276_v5 }
 0x807   :  { %v1263_v3 = vadd.f32 %v2704_v31, %v1262_v1 }
 0x808   :  { %v1278_v24 = vadd.f32 %v2706_v43, %v1277_v6 }
 0x809   :  { %v1267_v21 = vsel %vm1266_vm14, %v2704_v31, %v1263_v3 }
 0x80a   :  { %v1272_v23 = vsel %vm1269_vm15, %v1271_v55, %v1267_v21  ;;  %v1282_v42 = vsel %vm1281_vm3, %v2706_v43, %v1278_v24 }
 0x80b   :  { %v1287_v16 = vsel %vm1284_vm4, %v1286_v8, %v1282_v42  ;;  %v1291_v1 = vmul.f32 %v1272_v23, %v3398_v27  ;;  %v215_v42 = vpop.f32.mrf.mxu0 }
 0x80c   :  { %v1292_v45 = vmul.f32 %v1287_v16, %v3402_v41  ;;  %v216_v8 = vadd.f32 %v215_v42, %v3193_v35  ;;  %v278_v42 = vadd.f32 %v3215_v53, %v3229_v11 }
 0x861   :  { %v1296_v36 = vpop.permute.xlu1 %1295 }
 0x862   :  { %v1301_v29 = vmul.f32 %v1296_v36, %v1272_v23 }
 0x864   :  { %1305 = vrot.lane.b32.xlu2 %v1301_v29, %s2993_s3 }
 0x869   :  { %v1227_v13 = vpop.permute.xlu1 %1226  ;;  %v1298_v32 = vpop.permute.xlu0 %1297 }
 0x86a   :  { %v3474_v9 = vadd.f32 %v1227_v13, %v1212_v44  ;;  %v1302_v31 = vmul.f32 %v1298_v32, %v1287_v16  ;;  %v218_v32 = vpop.f32.mrf.mxu0 }
 0x86c   :  { %2707 = vtanh.f32 %v3474_v9  ;;  %1307 = vrot.lane.b32.xlu1 %v1302_v31, %s2993_s3 }
 0x871   :  { %v1229_v59 = vpop.permute.xlu0 %1228 }
 0x872   :  { %v2708_v20 = vpop.eup %2707  ;;  %v3480_v43 = vadd.f32 %v1229_v59, %v1213_v2 }
 0x873   :  { %1238 = vrot.lane.b32.xlu2 %v2708_v20, %s2992_s0 }
 0x874   :  { %2709 = vtanh.f32 %v3480_v43 }
 0x87a   :  { %v2710_v30 = vpop.eup %2709 }
 0x87b   :  { %1240 = vrot.lane.b32.xlu1 %v2710_v30, %s2992_s0 }
 0x8be   :  { %v1306_v54 = vpop.permute.xlu2 %1305 }
 0x8bf   :  { %v3486_v3 = vadd.f32 %v1306_v54, %v1291_v1 }
 0x8c1   :  { %2711 = vtanh.f32 %v3486_v3 }
 0x8c7   :  { %v2712_v5 = vpop.eup %2711 }
 0x8c8   :  { %1317 = vrot.lane.b32.xlu0 %v2712_v5, %s2992_s0 }
 0x8cd   :  { %v1239_v60 = vpop.permute.xlu2 %1238 }
 0x8ce   :  { %v3491_v7 = vmul.f32 %v1239_v60, %v3462_v33 }
 0x8d0   :  { %1361 = vrot.lane.b32.xlu0 %v3491_v7, %s2993_s3 }
 0x8de   :  { %v1308_v21 = vpop.permute.xlu1 %1307 }
 0x8df   :  { %v3496_v6 = vadd.f32 %v1308_v21, %v1292_v45 }
 0x8e1   :  { %2713 = vtanh.f32 %v3496_v6 }
 0x8e7   :  { %v2714_v27 = vpop.eup %2713 }
 0x8e8   :  { %1319 = vrot.lane.b32.xlu2 %v2714_v27, %s2992_s0 }
 0x8ed   :  { %v1241_v55 = vpop.permute.xlu1 %1240 }
 0x8ee   :  { %v3501_v36 = vmul.f32 %v1241_v55, %v3467_v39  ;;  %v275_v55 = vadd.f32 %v3213_v52, %v3229_v11 }
 0x8f0   :  { %1363 = vrot.lane.b32.xlu2 %v3501_v36, %s2993_s3 }
 0x93a   :  { %v1318_v33 = vpop.permute.xlu0 %1317 }
 0x93b   :  { %v3505_v29 = vmul.f32 %v1318_v33, %v1272_v23 }
 0x93d   :  { %1394 = vrot.lane.b32.xlu1 %v3505_v29, %s2993_s3 }
 0x942   :  { %v1362_v41 = vpop.permute.xlu0 %1361  ;;  %v1320_v24 = vpop.permute.xlu2 %1319 }
 0x943   :  { %v3509_v26 = vmul.f32 %v1320_v24, %v1287_v16  ;;  %2532 = vmatmul.msk.f32.vlgmr.msra.gmra.mxu2 %vm125_vm0, %v1362_v41  ;;  %v219_v16 = vadd.f32 %v218_v32, %v3193_v35 }
 0x944   :  { %1845 = vmatpush.msra.mxu2 %v3422_v0 }
 0x945   :  { %1396 = vrot.lane.b32.xlu0 %v3509_v26, %s2993_s3 }
 0x946   :  { %1846 = vmatpush.msra.mxu2 %v3425_v12 }
 0x948   :  { %1847 = vmatpush.msra.mxu2 %v3428_v37 }
 0x94a   :  { %v1364_v39 = vpop.permute.xlu2 %1363  ;;  %1848 = vmatpush.msra.mxu2 %v3431_v47 }
 0x94b   :  { %2533 = vmatmul.msk.f32.gmra.mxu2 %vm125_vm0, %v1364_v39 }
 0x9af   :  { %v1395_v23 = vpop.permute.xlu1 %1394 }
 0x9b0   :  { %2534 = vmatmul.msk.f32.vlgmr.msra.gmra.mxu3 %vm125_vm0, %v1395_v23 }
 0x9b1   :  { %1878 = vmatpush.msra.mxu3 %v3440_v17 }
 0x9b3   :  { %1879 = vmatpush.msra.mxu3 %v3443_v57 }
 0x9b5   :  { %1880 = vmatpush.msra.mxu3 %v3446_v62 }
 0x9b7   :  { %v1397_v38 = vpop.permute.xlu0 %1396  ;;  %1881 = vmatpush.msra.mxu3 %v3449_v63 }
 0x9b8   :  { %2535 = vmatmul.msk.f32.gmra.mxu3 %vm125_vm0, %v1397_v38 }
 0x9c6   :  { %v1386_v44 = vpop.f32.mrf.mxu2 }
 0x9c7   :  { %v1428_v13 = vadd.f32 %v1386_v44, %v216_v8 }
 0x9c9   :  { %2715 = vtanh.f32 %v1428_v13  ;;  %v2536_v30 = vmul.f32 -1.442695, %v1428_v13 }
 0x9ce   :  { %v1389_v31 = vpop.f32.mrf.mxu2 }
 0x9cf   :  { %v2716_v2 = vpop.eup %2715  ;;  %v1429_v59 = vadd.f32 %v1389_v31, %v219_v16 }
 0x9d0   :  { %1474 = vrot.lane.b32.xlu1 %v2716_v2, %s2992_s0 }
 0x9d1   :  { %2717 = vtanh.f32 %v1429_v59  ;;  %v2537_v1 = vmul.f32 -1.442695, %v1429_v59 }
 0x9d2   :  { %2719 = vpow2.f32 %v2536_v30 }
 0x9d3   :  { %2721 = vpow2.f32 %v2537_v1 }
 0x9d7   :  { %v2718_v20 = vpop.eup %2717 }
 0x9d8   :  { %1476 = vrot.lane.b32.xlu0 %v2718_v20, %s2992_s0  ;;  %v2720_v54 = vpop.eup %2719 }
 0x9d9   :  { %v1436_v5 = vadd.f32 1.0, %v2720_v54  ;;  %v2722_v60 = vpop.eup %2721 }
 0x9da   :  { %v1437_v45 = vadd.f32 1.0, %v2722_v60 }
 0x9db   :  { %2723 = vrcp.f32 %v1436_v5  ;;  %v1449_v31 = vand.u32 2147483648, %v1436_v5  ;;  %vm1443_vm6 = vweird.f32 %v1436_v5  ;;  %v1447_v52 = vand.u32 2147483647, %v1436_v5 }
 0x9dc   :  { %2725 = vrcp.f32 %v1437_v45  ;;  %vm1458_vm10 = vweird.f32 %v1437_v45 }
 0x9dd   :  { %v1450_v20 = vor.u32 1.1754944e-38, %v1449_v31  ;;  %vm1448_vm8 = vcmp.eq.f32.partialorder %v1447_v52, 8.507059e+37 }
 0x9e1   :  { %v2724_v21 = vpop.eup %2723 }
 0x9e2   :  { %v1439_v27 = vmul.f32 %v2724_v21, %v1436_v5  ;;  %v2726_v24 = vpop.eup %2725  ;;  %vm1444_vm5 = vweird.f32 %v2724_v21  ;;  %v1462_v5 = vand.u32 2147483647, %v1437_v45 }
 0x9e3   :  { %v1454_v38 = vmul.f32 %v2726_v24, %v1437_v45  ;;  %vm1445_vm7 = vmor %vm1443_vm6, %vm1444_vm5  ;;  %vm1459_vm9 = vweird.f32 %v2726_v24 }
 0x9e4   :  { %v1440_v41 = vsub.f32 1.0, %v1439_v27  ;;  %v1464_v27 = vand.u32 2147483648, %v1437_v45  ;;  %vm1460_vm11 = vmor %vm1458_vm10, %vm1459_vm9  ;;  %vm1463_vm12 = vcmp.eq.f32.partialorder %v1462_v5, 8.507059e+37 }
 0x9e5   :  { %v1455_v13 = vsub.f32 1.0, %v1454_v38 }
 0x9e6   :  { %v1441_v23 = vmul.f32 %v2724_v21, %v1440_v41 }
 0x9e7   :  { %v1456_v59 = vmul.f32 %v2726_v24, %v1455_v13 }
 0x9e8   :  { %v1442_v44 = vadd.f32 %v2724_v21, %v1441_v23 }
 0x9e9   :  { %v1457_v54 = vadd.f32 %v2726_v24, %v1456_v59 }
 0x9ea   :  { %v1446_v2 = vsel %vm1445_vm7, %v2724_v21, %v1442_v44 }
 0x9eb   :  { %v3534_v1 = vsel %vm1448_vm8, %v1450_v20, %v1446_v2  ;;  %v1461_v21 = vsel %vm1460_vm11, %v2726_v24, %v1457_v54 }
 0xa33   :  { %v1419_v33 = vpop.f32.mrf.mxu3 }
 0xa34   :  { %v1507_v39 = vadd.f32 %v1419_v33, %v275_v55  ;;  %v1465_v55 = vor.u32 1.1754944e-38, %v1464_v27 }
 0xa36   :  { %2727 = vtanh.f32 %v1507_v39  ;;  %v3539_v41 = vsel %vm1463_vm12, %v1465_v55, %v1461_v21  ;;  %v2538_v38 = vmul.f32 -1.442695, %v1507_v39 }
 0xa3b   :  { %v1422_v8 = vpop.f32.mrf.mxu3 }
 0xa3c   :  { %v2728_v32 = vpop.eup %2727  ;;  %v1508_v16 = vadd.f32 %v1422_v8, %v278_v42 }
 0xa3d   :  { %1553 = vrot.lane.b32.xlu2 %v2728_v32, %s2992_s0 }
 0xa3e   :  { %2729 = vtanh.f32 %v1508_v16  ;;  %v2539_v45 = vmul.f32 -1.442695, %v1508_v16  ;;  %v1470_v16 = vmul.f32 %v3534_v1, %v3474_v9 }
 0xa3f   :  { %2731 = vpow2.f32 %v2538_v38 }
 0xa42   :  { %v1475_v30 = vpop.permute.xlu1 %1474 }
 0xa43   :  { %v1480_v53 = vmul.f32 %v1475_v30, %v3534_v1 }
 0xa44   :  { %v2730_v60 = vpop.eup %2729 }
 0xa45   :  { %1484 = vrot.lane.b32.xlu2 %v1480_v53, %s2993_s3  ;;  %1555 = vrot.lane.b32.xlu1 %v2730_v60, %s2992_s0  ;;  %v2732_v42 = vpop.eup %2731 }
 0xa46   :  { %v1515_v8 = vadd.f32 1.0, %v2732_v42 }
 0xa48   :  { %2733 = vrcp.f32 %v1515_v8  ;;  %v1528_v52 = vand.u32 2147483648, %v1515_v8  ;;  %vm1522_vm14 = vweird.f32 %v1515_v8  ;;  %v1526_v2 = vand.u32 2147483647, %v1515_v8 }
 0xa49   :  { %2735 = vpow2.f32 %v2539_v45 }
 0xa4a   :  { %v1477_v33 = vpop.permute.xlu0 %1476  ;;  %v1529_v30 = vor.u32 1.1754944e-38, %v1528_v52  ;;  %vm1527_vm1 = vcmp.eq.f32.partialorder %v1526_v2, 8.507059e+37 }
 0xa4b   :  { %v1481_v23 = vmul.f32 %v1477_v33, %v3539_v41 }
 0xa4d   :  { %1486 = vrot.lane.b32.xlu1 %v1481_v23, %s2993_s3 }
 0xa4e   :  { %v2734_v44 = vpop.eup %2733 }
 0xa4f   :  { %v1518_v13 = vmul.f32 %v2734_v44, %v1515_v8  ;;  %vm1523_vm13 = vweird.f32 %v2734_v44  ;;  %v2736_v59 = vpop.eup %2735 }
 0xa50   :  { %vm1524_vm15 = vmor %vm1522_vm14, %vm1523_vm13  ;;  %v1516_v39 = vadd.f32 1.0, %v2736_v59 }
 0xa51   :  { %v1519_v32 = vsub.f32 1.0, %v1518_v13 }
 0xa52   :  { %2737 = vrcp.f32 %v1516_v39  ;;  %v1543_v8 = vand.u32 2147483648, %v1516_v39  ;;  %vm1537_vm3 = vweird.f32 %v1516_v39 }
 0xa53   :  { %v1520_v31 = vmul.f32 %v2734_v44, %v1519_v32 }
 0xa54   :  { %v1544_v9 = vor.u32 1.1754944e-38, %v1543_v8 }
 0xa55   :  { %v1521_v24 = vadd.f32 %v2734_v44, %v1520_v31 }
 0xa57   :  { %v1525_v20 = vsel %vm1524_vm15, %v2734_v44, %v1521_v24  ;;  %v1541_v44 = vand.u32 2147483647, %v1516_v39  ;;  %v1471_v24 = vmul.f32 %v3539_v41, %v3480_v43 }
 0xa58   :  { %v1530_v53 = vsel %vm1527_vm1, %v1529_v30, %v1525_v20  ;;  %v2738_v21 = vpop.eup %2737 }
 0xa59   :  { %v1533_v55 = vmul.f32 %v2738_v21, %v1516_v39  ;;  %vm1538_vm2 = vweird.f32 %v2738_v21  ;;  %vm1542_vm5 = vcmp.eq.f32.partialorder %v1541_v44, 8.507059e+37  ;;  %v1549_v20 = vmul.f32 %v1530_v53, %v3486_v3 }
 0xa5a   :  { %vm1539_vm4 = vmor %vm1537_vm3, %vm1538_vm2 }
 0xa5b   :  { %v1534_v23 = vsub.f32 1.0, %v1533_v55 }
 0xa5d   :  { %v1535_v38 = vmul.f32 %v2738_v21, %v1534_v23 }
 0xa5f   :  { %v1536_v42 = vadd.f32 %v2738_v21, %v1535_v38 }
 0xa61   :  { %v1540_v13 = vsel %vm1539_vm4, %v2738_v21, %v1536_v42 }
 0xa62   :  { %v1545_v45 = vsel %vm1542_vm5, %v1544_v9, %v1540_v13 }
 0xa97   :  { %v1554_v54 = vpop.permute.xlu2 %1553 }
 0xa98   :  { %v1559_v60 = vmul.f32 %v1554_v54, %v1530_v53  ;;  %v1550_v54 = vmul.f32 %v1545_v45, %v3496_v6 }
 0xa9a   :  { %1563 = vrot.lane.b32.xlu0 %v1559_v60, %s2993_s3 }
 0xa9f   :  { %v1485_v27 = vpop.permute.xlu2 %1484 }
 0xaa0   :  { %v3546_v5 = vadd.f32 %v1485_v27, %v1470_v16 }
 0xaa2   :  { %2739 = vtanh.f32 %v3546_v5 }
 0xaa8   :  { %v2740_v33 = vpop.eup %2739 }
 0xaa9   :  { %1496 = vrot.lane.b32.xlu0 %v2740_v33, %s2992_s0 }
 0xab7   :  { %v1556_v32 = vpop.permute.xlu1 %1555 }
 0xab8   :  { %v1560_v31 = vmul.f32 %v1556_v32, %v1545_v45 }
 0xaba   :  { %1565 = vrot.lane.b32.xlu2 %v1560_v31, %s2993_s3 }
 0xabf   :  { %v1487_v52 = vpop.permute.xlu1 %1486 }
 0xac0   :  { %v3553_v2 = vadd.f32 %v1487_v52, %v1471_v24  ;;  %v269_v52 = vadd.f32 %v3209_v50, %v3229_v11 }
 0xac2   :  { %2741 = vtanh.f32 %v3553_v2 }
 0xac8   :  { %v2742_v59 = vpop.eup %2741 }
 0xac9   :  { %1498 = vrot.lane.b32.xlu2 %v2742_v59, %s2992_s0 }
 0xb0c   :  { %v1564_v30 = vpop.permute.xlu0 %1563 }
 0xb0d   :  { %v3558_v39 = vadd.f32 %v1564_v30, %v1549_v20 }
 0xb0f   :  { %2743 = vtanh.f32 %v3558_v39 }
 0xb14   :  { %v1566_v60 = vpop.permute.xlu2 %1565 }
 0xb15   :  { %v2744_v16 = vpop.eup %2743  ;;  %v3562_v43 = vadd.f32 %v1566_v60, %v1550_v54 }
 0xb16   :  { %1575 = vrot.lane.b32.xlu1 %v2744_v16, %s2992_s0 }
 0xb17   :  { %2745 = vtanh.f32 %v3562_v43 }
 0xb1b   :  { %v1497_v27 = vpop.permute.xlu0 %1496 }
 0xb1c   :  { %v3567_v21 = vmul.f32 %v1497_v27, %v3534_v1 }
 0xb1d   :  { %v2746_v3 = vpop.eup %2745 }
 0xb1e   :  { %1593 = vrot.lane.b32.xlu1 %v3567_v21, %s2993_s3  ;;  %1577 = vrot.lane.b32.xlu0 %v2746_v3, %s2992_s0 }
 0xb23   :  { %v1499_v55 = vpop.permute.xlu2 %1498 }
 0xb24   :  { %v3573_v6 = vmul.f32 %v1499_v55, %v3539_v41 }
 0xb26   :  { %1595 = vrot.lane.b32.xlu0 %v3573_v6, %s2993_s3 }
 0xb88   :  { %v1576_v33 = vpop.permute.xlu1 %1575 }
 0xb89   :  { %v3577_v23 = vmul.f32 %v1576_v33, %v1530_v53 }
 0xb8b   :  { %1626 = vrot.lane.b32.xlu2 %v3577_v23, %s2993_s3 }
 0xb90   :  { %v1594_v1 = vpop.permute.xlu1 %1593  ;;  %v1578_v38 = vpop.permute.xlu0 %1577 }
 0xb91   :  { %v3581_v42 = vmul.f32 %v1578_v38, %v1545_v45  ;;  %2540 = vmatmul.msk.f32.vlgmr.msrb.gmra.mxu2 %vm125_vm0, %v1594_v1 }
 0xb92   :  { %2077 = vmatpush.msrb.mxu2 %v3422_v0 }
 0xb93   :  { %1628 = vrot.lane.b32.xlu1 %v3581_v42, %s2993_s3 }
 0xb94   :  { %2078 = vmatpush.msrb.mxu2 %v3425_v12  ;;  %v221_v12 = vpop.f32.mrf.mxu0 }
 0xb96   :  { %2079 = vmatpush.msrb.mxu2 %v3428_v37  ;;  %v222_v37 = vadd.f32 %v221_v12, %v3193_v35 }
 0xb98   :  { %v1596_v41 = vpop.permute.xlu0 %1595  ;;  %2080 = vmatpush.msrb.mxu2 %v3431_v47 }
 0xb99   :  { %2541 = vmatmul.msk.f32.gmra.mxu2 %vm125_vm0, %v1596_v41 }
 0xb9c   :  { %v224_v44 = vpop.f32.mrf.mxu0 }
 0xb9d   :  { %v225_v13 = vadd.f32 %v224_v44, %v3193_v35 }
 0xbe5   :  { %v1627_v53 = vpop.permute.xlu2 %1626 }
 0xbe6   :  { %2542 = vmatmul.msk.f32.vlgmr.msrb.gmra.mxu3 %vm125_vm0, %v1627_v53 }
 0xbe7   :  { %2110 = vmatpush.msrb.mxu3 %v3440_v17 }
 0xbe9   :  { %2111 = vmatpush.msrb.mxu3 %v3443_v57 }
 0xbeb   :  { %2112 = vmatpush.msrb.mxu3 %v3446_v62 }
 0xbed   :  { %2113 = vmatpush.msrb.mxu3 %v3449_v63 }
 0xc05   :  { %v1629_v0 = vpop.permute.xlu1 %1628 }
 0xc06   :  { %2543 = vmatmul.msk.f32.gmra.mxu3 %vm125_vm0, %v1629_v0 }
 0xc14   :  { %v1618_v47 = vpop.f32.mrf.mxu2 }
 0xc15   :  { %v1660_v8 = vadd.f32 %v1618_v47, %v222_v37  ;;  %v272_v47 = vadd.f32 %v3211_v51, %v3229_v11 }
 0xc17   :  { %2747 = vtanh.f32 %v1660_v8  ;;  %v2544_v62 = vmul.f32 -1.442695, %v1660_v8 }
 0xc1c   :  { %v1621_v9 = vpop.f32.mrf.mxu2 }
 0xc1d   :  { %v2748_v17 = vpop.eup %2747  ;;  %v1661_v32 = vadd.f32 %v1621_v9, %v225_v13 }
 0xc1e   :  { %1706 = vrot.lane.b32.xlu2 %v2748_v17, %s2992_s0 }
 0xc1f   :  { %2749 = vtanh.f32 %v1661_v32  ;;  %v2545_v54 = vmul.f32 -1.442695, %v1661_v32 }
 0xc20   :  { %2751 = vpow2.f32 %v2544_v62 }
 0xc25   :  { %v2750_v57 = vpop.eup %2749 }
 0xc26   :  { %1708 = vrot.lane.b32.xlu1 %v2750_v57, %s2992_s0  ;;  %v2752_v63 = vpop.eup %2751 }
 0xc27   :  { %v1668_v45 = vadd.f32 1.0, %v2752_v63 }
 0xc29   :  { %2753 = vrcp.f32 %v1668_v45  ;;  %v1681_v3 = vand.u32 2147483648, %v1668_v45  ;;  %vm1675_vm7 = vweird.f32 %v1668_v45  ;;  %v1679_v55 = vand.u32 2147483647, %v1668_v45 }
 0xc2b   :  { %v1682_v38 = vor.u32 1.1754944e-38, %v1681_v3  ;;  %vm1680_vm9 = vcmp.eq.f32.partialorder %v1679_v55, 8.507059e+37 }
 0xc2f   :  { %v2754_v31 = vpop.eup %2753 }
 0xc30   :  { %v1671_v24 = vmul.f32 %v2754_v31, %v1668_v45  ;;  %vm1676_vm6 = vweird.f32 %v2754_v31 }
 0xc31   :  { %vm1677_vm8 = vmor %vm1675_vm7, %vm1676_vm6 }
 0xc32   :  { %v1672_v20 = vsub.f32 1.0, %v1671_v24 }
 0xc34   :  { %v1673_v60 = vmul.f32 %v2754_v31, %v1672_v20 }
 0xc36   :  { %v1674_v16 = vadd.f32 %v2754_v31, %v1673_v60 }
 0xc38   :  { %v1678_v1 = vsel %vm1677_vm8, %v2754_v31, %v1674_v16 }
 0xc39   :  { %v3604_v41 = vsel %vm1680_vm9, %v1682_v38, %v1678_v1 }
 0xc69   :  { %v1651_v59 = vpop.f32.mrf.mxu3 }
 0xc6a   :  { %v1739_v30 = vadd.f32 %v1651_v59, %v269_v52 }
 0xc6c   :  { %2755 = vtanh.f32 %v1739_v30  ;;  %v2546_v52 = vmul.f32 -1.442695, %v1739_v30 }
 0xc6d   :  { %2757 = vpow2.f32 %v2545_v54 }
 0xc72   :  { %v2756_v27 = vpop.eup %2755 }
 0xc73   :  { %1785 = vrot.lane.b32.xlu0 %v2756_v27, %s2992_s0  ;;  %v2758_v33 = vpop.eup %2757 }
 0xc74   :  { %v1669_v50 = vadd.f32 1.0, %v2758_v33 }
 0xc76   :  { %2759 = vrcp.f32 %v1669_v50  ;;  %v1696_v57 = vand.u32 2147483648, %v1669_v50  ;;  %vm1690_vm11 = vweird.f32 %v1669_v50  ;;  %v1694_v62 = vand.u32 2147483647, %v1669_v50 }
 0xc78   :  { %v1707_v53 = vpop.permute.xlu2 %1706  ;;  %v1697_v45 = vor.u32 1.1754944e-38, %v1696_v57  ;;  %vm1695_vm13 = vcmp.eq.f32.partialorder %v1694_v62, 8.507059e+37 }
 0xc79   :  { %v1712_v0 = vmul.f32 %v1707_v53, %v3604_v41 }
 0xc7b   :  { %1716 = vrot.lane.b32.xlu0 %v1712_v0, %s2993_s3 }
 0xc7c   :  { %v2760_v12 = vpop.eup %2759 }
 0xc7d   :  { %v1686_v37 = vmul.f32 %v2760_v12, %v1669_v50  ;;  %vm1691_vm10 = vweird.f32 %v2760_v12 }
 0xc7e   :  { %vm1692_vm12 = vmor %vm1690_vm11, %vm1691_vm10 }
 0xc7f   :  { %v1687_v44 = vsub.f32 1.0, %v1686_v37 }
 0xc81   :  { %v1688_v9 = vmul.f32 %v2760_v12, %v1687_v44 }
 0xc83   :  { %v1689_v17 = vadd.f32 %v2760_v12, %v1688_v9 }
 0xc85   :  { %v1693_v63 = vsel %vm1692_vm12, %v2760_v12, %v1689_v17 }
 0xc86   :  { %v3611_v24 = vsel %vm1695_vm13, %v1697_v45, %v1693_v63  ;;  %v1702_v63 = vmul.f32 %v3604_v41, %v3546_v5 }
 0xc89   :  { %v1654_v8 = vpop.f32.mrf.mxu3 }
 0xc8a   :  { %v1740_v13 = vadd.f32 %v1654_v8, %v272_v47 }
 0xc8c   :  { %2761 = vtanh.f32 %v1740_v13  ;;  %v2547_v59 = vmul.f32 -1.442695, %v1740_v13 }
 0xc8d   :  { %2763 = vpow2.f32 %v2546_v52 }
 0xc8e   :  { %2765 = vpow2.f32 %v2547_v59 }
 0xc92   :  { %v2762_v32 = vpop.eup %2761 }
 0xc93   :  { %1787 = vrot.lane.b32.xlu2 %v2762_v32, %s2992_s0  ;;  %v2764_v20 = vpop.eup %2763 }
 0xc94   :  { %v1747_v54 = vadd.f32 1.0, %v2764_v20  ;;  %v2766_v60 = vpop.eup %2765  ;;  %v1703_v20 = vmul.f32 %v3611_v24, %v3553_v2 }
 0xc95   :  { %v1748_v16 = vadd.f32 1.0, %v2766_v60 }
 0xc96   :  { %2767 = vrcp.f32 %v1747_v54  ;;  %v1760_v0 = vand.u32 2147483648, %v1747_v54  ;;  %vm1754_vm15 = vweird.f32 %v1747_v54  ;;  %v1758_v30 = vand.u32 2147483647, %v1747_v54 }
 0xc97   :  { %2769 = vrcp.f32 %v1748_v16  ;;  %v1775_v17 = vand.u32 2147483648, %v1748_v16  ;;  %vm1769_vm4 = vweird.f32 %v1748_v16  ;;  %v1773_v32 = vand.u32 2147483647, %v1748_v16 }
 0xc98   :  { %v1709_v31 = vpop.permute.xlu1 %1708  ;;  %v1761_v47 = vor.u32 1.1754944e-38, %v1760_v0  ;;  %vm1759_vm2 = vcmp.eq.f32.partialorder %v1758_v30, 8.507059e+37 }
 0xc99   :  { %v1713_v51 = vmul.f32 %v1709_v31, %v3611_v24  ;;  %v1776_v62 = vor.u32 1.1754944e-38, %v1775_v17  ;;  %vm1774_vm6 = vcmp.eq.f32.partialorder %v1773_v32, 8.507059e+37 }
 0xc9b   :  { %1718 = vrot.lane.b32.xlu2 %v1713_v51, %s2993_s3 }
 0xc9c   :  { %v2768_v27 = vpop.eup %2767 }
 0xc9d   :  { %v1750_v3 = vmul.f32 %v2768_v27, %v1747_v54  ;;  %v2770_v33 = vpop.eup %2769  ;;  %vm1755_vm14 = vweird.f32 %v2768_v27 }
 0xc9e   :  { %v1765_v38 = vmul.f32 %v2770_v33, %v1748_v16  ;;  %vm1756_vm1 = vmor %vm1754_vm15, %vm1755_vm14  ;;  %vm1770_vm3 = vweird.f32 %v2770_v33 }
 0xc9f   :  { %v1751_v55 = vsub.f32 1.0, %v1750_v3  ;;  %vm1771_vm5 = vmor %vm1769_vm4, %vm1770_vm3 }
 0xca0   :  { %v1766_v53 = vsub.f32 1.0, %v1765_v38 }
 0xca1   :  { %v1752_v1 = vmul.f32 %v2768_v27, %v1751_v55 }
 0xca2   :  { %v1767_v37 = vmul.f32 %v2770_v33, %v1766_v53 }
 0xca3   :  { %v1753_v50 = vadd.f32 %v2768_v27, %v1752_v1 }
 0xca4   :  { %v1768_v9 = vadd.f32 %v2770_v33, %v1767_v37 }
 0xca5   :  { %v1757_v12 = vsel %vm1756_vm1, %v2768_v27, %v1753_v50 }
 0xca6   :  { %v1762_v44 = vsel %vm1759_vm2, %v1761_v47, %v1757_v12  ;;  %v1772_v57 = vsel %vm1771_vm5, %v2770_v33, %v1768_v9 }
 0xca7   :  { %v1777_v31 = vsel %vm1774_vm6, %v1776_v62, %v1772_v57  ;;  %v1781_v27 = vmul.f32 %v1762_v44, %v3558_v39 }
 0xca8   :  { %v1782_v2 = vmul.f32 %v1777_v31, %v3562_v43 }
 0xce5   :  { %v1786_v8 = vpop.permute.xlu0 %1785 }
 0xce6   :  { %v1791_v13 = vmul.f32 %v1786_v8, %v1762_v44 }
 0xce8   :  { %1795 = vrot.lane.b32.xlu1 %v1791_v13, %s2993_s3  ;;  %v227_v13 = vpop.f32.mrf.mxu0 }
 0xce9   :  { %v228_v9 = vadd.f32 %v227_v13, %v3193_v35 }
 0xced   :  { %v1717_v45 = vpop.permute.xlu0 %1716  ;;  %v1788_v51 = vpop.permute.xlu2 %1787 }
 0xcee   :  { %v3618_v52 = vadd.f32 %v1717_v45, %v1702_v63  ;;  %v1792_v59 = vmul.f32 %v1788_v51, %v1777_v31 }
 0xcf0   :  { %2771 = vtanh.f32 %v3618_v52  ;;  %1797 = vrot.lane.b32.xlu0 %v1792_v59, %s2993_s3  ;;  %v230_v62 = vpop.f32.mrf.mxu0 }
 0xcf1   :  { %v231_v63 = vadd.f32 %v230_v62, %v3193_v35 }
 0xcf5   :  { %v1719_v54 = vpop.permute.xlu2 %1718 }
 0xcf6   :  { %v2772_v60 = vpop.eup %2771  ;;  %v3624_v16 = vadd.f32 %v1719_v54, %v1703_v20 }
 0xcf7   :  { %1728 = vrot.lane.b32.xlu1 %v2772_v60, %s2992_s0 }
 0xcf8   :  { %2773 = vtanh.f32 %v3624_v16 }
 0xcfe   :  { %v2774_v5 = vpop.eup %2773 }
 0xcff   :  { %1730 = vrot.lane.b32.xlu0 %v2774_v5, %s2992_s0 }
 0xd5a   :  { %v1796_v3 = vpop.permute.xlu1 %1795 }
 0xd5b   :  { %v3630_v55 = vadd.f32 %v1796_v3, %v1781_v27 }
 0xd5d   :  { %2775 = vtanh.f32 %v3630_v55 }
 0xd62   :  { %v1798_v33 = vpop.permute.xlu0 %1797 }
 0xd63   :  { %v2776_v1 = vpop.eup %2775  ;;  %v3634_v38 = vadd.f32 %v1798_v33, %v1782_v2  ;;  %v263_v33 = vadd.f32 %v3204_v48, %v3229_v11 }
 0xd64   :  { %1807 = vrot.lane.b32.xlu2 %v2776_v1, %s2992_s0 }
 0xd65   :  { %2777 = vtanh.f32 %v3634_v38 }
 0xd69   :  { %v1729_v50 = vpop.permute.xlu1 %1728 }
 0xd6a   :  { %v3639_v53 = vmul.f32 %v1729_v50, %v3604_v41 }
 0xd6b   :  { %v2778_v39 = vpop.eup %2777 }
 0xd6c   :  { %1825 = vrot.lane.b32.xlu2 %v3639_v53, %s2993_s3  ;;  %1809 = vrot.lane.b32.xlu1 %v2778_v39, %s2992_s0 }
 0xd71   :  { %v1731_v0 = vpop.permute.xlu0 %1730 }
 0xd72   :  { %v3645_v43 = vmul.f32 %v1731_v0, %v3611_v24 }
 0xd74   :  { %1827 = vrot.lane.b32.xlu1 %v3645_v43, %s2993_s3 }
 0xdbe   :  { %v1808_v30 = vpop.permute.xlu2 %1807 }
 0xdbf   :  { %v3649_v12 = vmul.f32 %v1808_v30, %v1762_v44 }
 0xdc1   :  { %1858 = vrot.lane.b32.xlu0 %v3649_v12, %s2993_s3 }
 0xdc6   :  { %v1826_v41 = vpop.permute.xlu2 %1825 }
 0xdc7   :  { %2548 = vmatmul.msk.f32.vlgmr.msra.gmra.mxu2 %vm125_vm0, %v1826_v41 }
 0xdde   :  { %v1810_v37 = vpop.permute.xlu1 %1809 }
 0xddf   :  { %v3654_v47 = vmul.f32 %v1810_v37, %v1777_v31  ;;  %v266_v37 = vadd.f32 %v3207_v49, %v3229_v11 }
 0xde1   :  { %1860 = vrot.lane.b32.xlu2 %v3654_v47, %s2993_s3 }
 0xde6   :  { %v1828_v24 = vpop.permute.xlu1 %1827 }
 0xde7   :  { %2549 = vmatmul.msk.f32.gmra.mxu2 %vm125_vm0, %v1828_v24 }
 0xe33   :  { %v1859_v8 = vpop.permute.xlu0 %1858 }
 0xe34   :  { %2550 = vmatmul.msk.f32.vlgmr.msra.gmra.mxu3 %vm125_vm0, %v1859_v8 }
 0xe3b   :  { %v1861_v44 = vpop.permute.xlu2 %1860 }
 0xe3c   :  { %2551 = vmatmul.msk.f32.gmra.mxu3 %vm125_vm0, %v1861_v44 }
 0xe4a   :  { %v1850_v17 = vpop.f32.mrf.mxu2 }
 0xe4b   :  { %v1892_v32 = vadd.f32 %v1850_v17, %v228_v9 }
 0xe4d   :  { %2779 = vtanh.f32 %v1892_v32  ;;  %v2552_v59 = vmul.f32 -1.442695, %v1892_v32 }
 0xe53   :  { %v2780_v57 = vpop.eup %2779 }
 0xe54   :  { %1938 = vrot.lane.b32.xlu0 %v2780_v57, %s2992_s0 }
 0xe6a   :  { %v1853_v45 = vpop.f32.mrf.mxu2 }
 0xe6b   :  { %v1893_v31 = vadd.f32 %v1853_v45, %v231_v63 }
 0xe6d   :  { %2781 = vtanh.f32 %v1893_v31  ;;  %v2553_v20 = vmul.f32 -1.442695, %v1893_v31 }
 0xe6e   :  { %2783 = vpow2.f32 %v2552_v59 }
 0xe6f   :  { %2785 = vpow2.f32 %v2553_v20 }
 0xe73   :  { %v2782_v51 = vpop.eup %2781 }
 0xe74   :  { %1940 = vrot.lane.b32.xlu2 %v2782_v51, %s2992_s0  ;;  %v2784_v54 = vpop.eup %2783 }
 0xe75   :  { %v1900_v60 = vadd.f32 1.0, %v2784_v54  ;;  %v2786_v5 = vpop.eup %2785 }
 0xe76   :  { %v1901_v27 = vadd.f32 1.0, %v2786_v5 }
 0xe77   :  { %2787 = vrcp.f32 %v1900_v60  ;;  %v1913_v17 = vand.u32 2147483648, %v1900_v60  ;;  %vm1907_vm8 = vweird.f32 %v1900_v60  ;;  %v1911_v48 = vand.u32 2147483647, %v1900_v60 }
 0xe78   :  { %2789 = vrcp.f32 %v1901_v27  ;;  %v1928_v59 = vand.u32 2147483648, %v1901_v27  ;;  %vm1922_vm12 = vweird.f32 %v1901_v27  ;;  %v1926_v20 = vand.u32 2147483647, %v1901_v27 }
 0xe79   :  { %v1914_v62 = vor.u32 1.1754944e-38, %v1913_v17  ;;  %vm1912_vm10 = vcmp.eq.f32.partialorder %v1911_v48, 8.507059e+37 }
 0xe7a   :  { %vm1927_vm14 = vcmp.eq.f32.partialorder %v1926_v20, 8.507059e+37 }
 0xe7d   :  { %v2788_v3 = vpop.eup %2787 }
 0xe7e   :  { %v1903_v2 = vmul.f32 %v2788_v3, %v1900_v60  ;;  %v2790_v39 = vpop.eup %2789  ;;  %vm1908_vm7 = vweird.f32 %v2788_v3  ;;  %v1929_v60 = vor.u32 1.1754944e-38, %v1928_v59 }
 0xe7f   :  { %v1918_v41 = vmul.f32 %v2790_v39, %v1901_v27  ;;  %vm1909_vm9 = vmor %vm1907_vm8, %vm1908_vm7  ;;  %vm1923_vm11 = vweird.f32 %v2790_v39 }
 0xe80   :  { %v1904_v50 = vsub.f32 1.0, %v1903_v2  ;;  %vm1924_vm13 = vmor %vm1922_vm12, %vm1923_vm11 }
 0xe81   :  { %v1919_v44 = vsub.f32 1.0, %v1918_v41 }
 0xe82   :  { %v1905_v30 = vmul.f32 %v2788_v3, %v1904_v50 }
 0xe83   :  { %v1920_v57 = vmul.f32 %v2790_v39, %v1919_v44 }
 0xe84   :  { %v1906_v8 = vadd.f32 %v2788_v3, %v1905_v30 }
 0xe85   :  { %v1921_v31 = vadd.f32 %v2790_v39, %v1920_v57 }
 0xe86   :  { %v1910_v32 = vsel %vm1909_vm9, %v2788_v3, %v1906_v8 }
 0xe87   :  { %v3670_v45 = vsel %vm1912_vm10, %v1914_v62, %v1910_v32  ;;  %v1925_v54 = vsel %vm1924_vm13, %v2790_v39, %v1921_v31 }
 0xe88   :  { %v3675_v5 = vsel %vm1927_vm14, %v1929_v60, %v1925_v54 }
 0xeb7   :  { %v1883_v1 = vpop.f32.mrf.mxu3 }
 0xeb8   :  { %v1971_v0 = vadd.f32 %v1883_v1, %v263_v33 }
 0xeba   :  { %2791 = vtanh.f32 %v1971_v0  ;;  %v2554_v33 = vmul.f32 -1.442695, %v1971_v0 }
 0xebf   :  { %v1886_v24 = vpop.f32.mrf.mxu3 }
 0xec0   :  { %v2792_v13 = vpop.eup %2791  ;;  %v1972_v9 = vadd.f32 %v1886_v24, %v266_v37 }
 0xec1   :  { %2017 = vrot.lane.b32.xlu1 %v2792_v13, %s2992_s0 }
 0xec2   :  { %2793 = vtanh.f32 %v1972_v9  ;;  %v2555_v1 = vmul.f32 -1.442695, %v1972_v9 }
 0xec3   :  { %2795 = vpow2.f32 %v2554_v33 }
 0xec4   :  { %2797 = vpow2.f32 %v2555_v1 }
 0xec6   :  { %v1939_v63 = vpop.permute.xlu0 %1938 }
 0xec7   :  { %v1944_v49 = vmul.f32 %v1939_v63, %v3670_v45 }
 0xec8   :  { %v2794_v51 = vpop.eup %2793 }
 0xec9   :  { %1948 = vrot.lane.b32.xlu1 %v1944_v49, %s2993_s3  ;;  %2019 = vrot.lane.b32.xlu0 %v2794_v51, %s2992_s0  ;;  %v2796_v50 = vpop.eup %2795 }
 0xeca   :  { %v1979_v30 = vadd.f32 1.0, %v2796_v50  ;;  %v2798_v41 = vpop.eup %2797 }
 0xecb   :  { %v1980_v27 = vadd.f32 1.0, %v2798_v41  ;;  %v1935_v41 = vmul.f32 %v3675_v5, %v3624_v16 }
 0xecc   :  { %2799 = vrcp.f32 %v1979_v30  ;;  %v1992_v32 = vand.u32 2147483648, %v1979_v30  ;;  %vm1986_vm1 = vweird.f32 %v1979_v30  ;;  %v1990_v0 = vand.u32 2147483647, %v1979_v30 }
 0xecd   :  { %2801 = vrcp.f32 %v1980_v27  ;;  %v2007_v59 = vand.u32 2147483648, %v1980_v27  ;;  %vm2001_vm5 = vweird.f32 %v1980_v27  ;;  %v2005_v20 = vand.u32 2147483647, %v1980_v27 }
 0xece   :  { %v1941_v3 = vpop.permute.xlu2 %1940  ;;  %v1993_v62 = vor.u32 1.1754944e-38, %v1992_v32  ;;  %vm1991_vm3 = vcmp.eq.f32.partialorder %v1990_v0, 8.507059e+37 }
 0xecf   :  { %v1945_v2 = vmul.f32 %v1941_v3, %v3675_v5  ;;  %v2008_v60 = vor.u32 1.1754944e-38, %v2007_v59  ;;  %v1934_v3 = vmul.f32 %v3670_v45, %v3618_v52  ;;  %vm2006_vm7 = vcmp.eq.f32.partialorder %v2005_v20, 8.507059e+37  ;;  %v233_v59 = vpop.f32.mrf.mxu0 }
 0xed0   :  { %v234_v20 = vadd.f32 %v233_v59, %v3193_v35 }
 0xed1   :  { %1950 = vrot.lane.b32.xlu0 %v1945_v2, %s2993_s3 }
 0xed2   :  { %v2800_v37 = vpop.eup %2799 }
 0xed3   :  { %v1982_v39 = vmul.f32 %v2800_v37, %v1979_v30  ;;  %v2802_v8 = vpop.eup %2801  ;;  %vm1987_vm15 = vweird.f32 %v2800_v37 }
 0xed4   :  { %v1997_v13 = vmul.f32 %v2802_v8, %v1980_v27  ;;  %vm1988_vm2 = vmor %vm1986_vm1, %vm1987_vm15  ;;  %vm2002_vm4 = vweird.f32 %v2802_v8 }
 0xed5   :  { %v1983_v24 = vsub.f32 1.0, %v1982_v39  ;;  %vm2003_vm6 = vmor %vm2001_vm5, %vm2002_vm4 }
 0xed6   :  { %v1998_v48 = vsub.f32 1.0, %v1997_v13 }
 0xed7   :  { %v1984_v44 = vmul.f32 %v2800_v37, %v1983_v24 }
 0xed8   :  { %v1999_v57 = vmul.f32 %v2802_v8, %v1998_v48 }
 0xed9   :  { %v1985_v17 = vadd.f32 %v2800_v37, %v1984_v44 }
 0xeda   :  { %v2000_v51 = vadd.f32 %v2802_v8, %v1999_v57 }
 0xedb   :  { %v1989_v9 = vsel %vm1988_vm2, %v2800_v37, %v1985_v17 }
 0xedc   :  { %v1994_v49 = vsel %vm1991_vm3, %v1993_v62, %v1989_v9  ;;  %v2004_v54 = vsel %vm2003_vm6, %v2802_v8, %v2000_v51 }
 0xedd   :  { %v2009_v1 = vsel %vm2006_vm7, %v2008_v60, %v2004_v54  ;;  %v2013_v24 = vmul.f32 %v1994_v49, %v3630_v55 }
 0xede   :  { %v2014_v48 = vmul.f32 %v2009_v1, %v3634_v38 }
 0xf33   :  { %v2018_v63 = vpop.permute.xlu1 %2017 }
 0xf34   :  { %v2023_v31 = vmul.f32 %v2018_v63, %v1994_v49 }
 0xf36   :  { %2027 = vrot.lane.b32.xlu2 %v2023_v31, %s2993_s3 }
 0xf3b   :  { %v1949_v2 = vpop.permute.xlu1 %1948  ;;  %v2020_v33 = vpop.permute.xlu0 %2019 }
 0xf3c   :  { %v3682_v50 = vadd.f32 %v1949_v2, %v1934_v3  ;;  %v2024_v30 = vmul.f32 %v2020_v33, %v2009_v1  ;;  %v237_v3 = vadd.f32 %v3191_v34, %v3193_v35  ;;  %v2994_v34 = vmov 0  }
 0xf3d   :  { %2585 = vset.pattern.permute.xlu2 %v2994_v34  ;;  %2584 = vset.pattern.permute.xlu1 %v2994_v34 }
 0xf3e   :  { %2803 = vtanh.f32 %v3682_v50  ;;  %2029 = vrot.lane.b32.xlu1 %v2024_v30, %s2993_s3  ;;  %2583 = vset.pattern.permute.xlu0 %v2994_v34  ;;  %v2504_v34 = vld [vmem:[%s3910_s1 + $0x10] sm:$0xff] }
 0xf43   :  { %v1951_v27 = vpop.permute.xlu0 %1950 }
 0xf44   :  { %v2804_v37 = vpop.eup %2803  ;;  %v3688_v39 = vadd.f32 %v1951_v27, %v1935_v41 }
 0xf45   :  { %1960 = vrot.lane.b32.xlu2 %v2804_v37, %s2992_s0 }
 0xf46   :  { %2805 = vtanh.f32 %v3688_v39 }
 0xf4c   :  { %v2806_v52 = vpop.eup %2805 }
 0xf4d   :  { %1962 = vrot.lane.b32.xlu1 %v2806_v52, %s2992_s0 }
 0xf90   :  { %v2028_v8 = vpop.permute.xlu2 %2027 }
 0xf91   :  { %v3694_v44 = vadd.f32 %v2028_v8, %v2013_v24 }
 0xf93   :  { %2807 = vtanh.f32 %v3694_v44 }
 0xf99   :  { %v2808_v13 = vpop.eup %2807 }
 0xf9a   :  { %2039 = vrot.lane.b32.xlu0 %v2808_v13, %s2992_s0 }
 0xf9f   :  { %v1961_v16 = vpop.permute.xlu2 %1960 }
 0xfa0   :  { %v3699_v17 = vmul.f32 %v1961_v16, %v3670_v45  ;;  %v257_v16 = vadd.f32 %v3198_v40, %v3229_v11 }
 0xfa2   :  { %2057 = vrot.lane.b32.xlu0 %v3699_v17, %s2993_s3 }
 0xfb0   :  { %v2030_v32 = vpop.permute.xlu1 %2029 }
 0xfb1   :  { %v3704_v0 = vadd.f32 %v2030_v32, %v2014_v48 }
 0xfb3   :  { %2809 = vtanh.f32 %v3704_v0 }
 0xfb9   :  { %v2810_v55 = vpop.eup %2809 }
 0xfba   :  { %2041 = vrot.lane.b32.xlu2 %v2810_v55, %s2992_s0 }
 0xfbf   :  { %v1963_v9 = vpop.permute.xlu1 %1962 }
 0xfc0   :  { %v3709_v57 = vmul.f32 %v1963_v9, %v3675_v5 }
 0xfc2   :  { %2059 = vrot.lane.b32.xlu2 %v3709_v57, %s2993_s3 }
0x100c   :  { %v2040_v45 = vpop.permute.xlu0 %2039 }
0x100d   :  { %v3713_v62 = vmul.f32 %v2040_v45, %v1994_v49 }
0x100f   :  { %2090 = vrot.lane.b32.xlu1 %v3713_v62, %s2993_s3 }
0x1014   :  { %v2058_v38 = vpop.permute.xlu0 %2057  ;;  %v2042_v63 = vpop.permute.xlu2 %2041 }
0x1015   :  { %v3717_v31 = vmul.f32 %v2042_v63, %v2009_v1  ;;  %2556 = vmatmul.msk.f32.vlgmr.msrb.gmra.mxu2 %vm125_vm0, %v2058_v38  ;;  %v260_v63 = vadd.f32 %v3201_v46, %v3229_v11 }
0x1017   :  { %2092 = vrot.lane.b32.xlu0 %v3717_v31, %s2993_s3 }
0x101c   :  { %v2060_v5 = vpop.permute.xlu2 %2059 }
0x101d   :  { %2557 = vmatmul.msk.f32.gmra.mxu2 %vm125_vm0, %v2060_v5 }
0x1081   :  { %v2091_v51 = vpop.permute.xlu1 %2090 }
0x1082   :  { %2558 = vmatmul.msk.f32.vlgmr.msrb.gmra.mxu3 %vm125_vm0, %v2091_v51 }
0x1089   :  { %v2093_v49 = vpop.permute.xlu0 %2092 }
0x108a   :  { %2559 = vmatmul.msk.f32.gmra.mxu3 %vm125_vm0, %v2093_v49 }
0x1098   :  { %v2082_v54 = vpop.f32.mrf.mxu2 }
0x1099   :  { %v2124_v60 = vadd.f32 %v2082_v54, %v234_v20 }
0x109b   :  { %2811 = vtanh.f32 %v2124_v60  ;;  %v2560_v41 = vmul.f32 -1.442695, %v2124_v60 }
0x10a0   :  { %v2085_v2 = vpop.f32.mrf.mxu2 }
0x10a1   :  { %v2812_v33 = vpop.eup %2811  ;;  %v2125_v1 = vadd.f32 %v2085_v2, %v237_v3 }
0x10a2   :  { %2170 = vrot.lane.b32.xlu1 %v2812_v33, %s2992_s0 }
0x10a3   :  { %2813 = vtanh.f32 %v2125_v1  ;;  %v2561_v27 = vmul.f32 -1.442695, %v2125_v1 }
0x10a4   :  { %2815 = vpow2.f32 %v2560_v41 }
0x10a5   :  { %2817 = vpow2.f32 %v2561_v27 }
0x10a9   :  { %v2814_v30 = vpop.eup %2813 }
0x10aa   :  { %2172 = vrot.lane.b32.xlu0 %v2814_v30, %s2992_s0  ;;  %v2816_v37 = vpop.eup %2815 }
0x10ab   :  { %v2132_v52 = vadd.f32 1.0, %v2816_v37  ;;  %v2818_v24 = vpop.eup %2817 }
0x10ac   :  { %v2133_v8 = vadd.f32 1.0, %v2818_v24 }
0x10ad   :  { %2819 = vrcp.f32 %v2132_v52  ;;  %v2145_v54 = vand.u32 2147483648, %v2132_v52  ;;  %vm2139_vm9 = vweird.f32 %v2132_v52  ;;  %v2143_v40 = vand.u32 2147483647, %v2132_v52 }
0x10ae   :  { %2821 = vrcp.f32 %v2133_v8  ;;  %v2160_v41 = vand.u32 2147483648, %v2133_v8  ;;  %vm2154_vm13 = vweird.f32 %v2133_v8  ;;  %v2158_v27 = vand.u32 2147483647, %v2133_v8 }
0x10af   :  { %v2146_v2 = vor.u32 1.1754944e-38, %v2145_v54  ;;  %vm2144_vm11 = vcmp.eq.f32.partialorder %v2143_v40, 8.507059e+37 }
0x10b0   :  { %vm2159_vm15 = vcmp.eq.f32.partialorder %v2158_v27, 8.507059e+37 }
0x10b3   :  { %v2820_v13 = vpop.eup %2819 }
0x10b4   :  { %v2135_v35 = vmul.f32 %v2820_v13, %v2132_v52  ;;  %v2822_v55 = vpop.eup %2821  ;;  %vm2140_vm8 = vweird.f32 %v2820_v13  ;;  %v2161_v52 = vor.u32 1.1754944e-38, %v2160_v41 }
0x10b5   :  { %v2150_v38 = vmul.f32 %v2822_v55, %v2133_v8  ;;  %vm2141_vm10 = vmor %vm2139_vm9, %vm2140_vm8  ;;  %vm2155_vm12 = vweird.f32 %v2822_v55  ;;  %v3750_v8 = vld [vmem:[%s3910_s1 + $0x70] sm:$0xff]  ;;  %vm2302_vm8 = vcmask 7168  }
0x10b6   :  { %v2136_v32 = vsub.f32 1.0, %v2135_v35  ;;  %vm2156_vm14 = vmor %vm2154_vm13, %vm2155_vm12 }
0x10b7   :  { %v2151_v49 = vsub.f32 1.0, %v2150_v38 }
0x10b8   :  { %v2137_v45 = vmul.f32 %v2820_v13, %v2136_v32 }
0x10b9   :  { %v2152_v3 = vmul.f32 %v2822_v55, %v2151_v49 }
0x10ba   :  { %v2138_v51 = vadd.f32 %v2820_v13, %v2137_v45  ;;  %v3774_v45 = vld [vmem:[%s3910_s1 + $0x28] sm:$0xff] }
0x10bb   :  { %v2153_v11 = vadd.f32 %v2822_v55, %v2152_v3 }
0x10bc   :  { %v2142_v60 = vsel %vm2141_vm10, %v2820_v13, %v2138_v51 }
0x10bd   :  { %v3735_v1 = vsel %vm2144_vm11, %v2146_v2, %v2142_v60  ;;  %v2157_v37 = vsel %vm2156_vm14, %v2822_v55, %v2153_v11  ;;  %v3768_v55 = vld [vmem:[%s3910_s1 + $0x78] sm:$0xff]  ;;  %vm2405_vm14 = vcmask 523264  }
0x10be   :  { %v3740_v13 = vsel %vm2159_vm15, %v2161_v52, %v2157_v37  ;;  %v2518_v52 = vld [vmem:[%s3910_s1 + $0x50] sm:$0xff] }
0x1105   :  { %v2115_v48 = vpop.f32.mrf.mxu3 }
0x1106   :  { %v2202_v9 = vadd.f32 %v2115_v48, %v257_v16  ;;  %v3756_v16 = vld [vmem:[%s3910_s1 + $0x60] sm:$0xff]  ;;  %v3762_v48 = vld [vmem:[%s3910_s1 + $0x30] sm:$0xff] }
0x1108   :  { %2823 = vtanh.f32 %v2202_v9  ;;  %v2562_v32 = vmul.f32 -1.442695, %v2202_v9 }
0x110d   :  { %v2118_v5 = vpop.f32.mrf.mxu3 }
0x110e   :  { %v2824_v59 = vpop.eup %2823  ;;  %v2203_v20 = vadd.f32 %v2118_v5, %v260_v63 }
0x110f   :  { %2248 = vrot.lane.b32.xlu2 %v2824_v59, %s2992_s0 }
0x1110   :  { %2825 = vtanh.f32 %v2203_v20  ;;  %v2563_v49 = vmul.f32 -1.442695, %v2203_v20  ;;  %v552_v20 = vld [vmem:[%s3910_s1] sm:$0xff] }
0x1111   :  { %2827 = vpow2.f32 %v2562_v32  ;;  %v553_v32 = vld [vmem:[%s3910_s1 + $0x8] sm:$0xff] }
0x1114   :  { %v2171_v33 = vpop.permute.xlu1 %2170 }
0x1115   :  { %v2176_v46 = vmul.f32 %v2171_v33, %v3735_v1 }
0x1116   :  { %v2826_v30 = vpop.eup %2825 }
0x1117   :  { %2180 = vrot.lane.b32.xlu2 %v2176_v46, %s2993_s3  ;;  %2250 = vrot.lane.b32.xlu1 %v2826_v30, %s2992_s0  ;;  %v2828_v38 = vpop.eup %2827 }
0x1118   :  { %v2210_v63 = vadd.f32 1.0, %v2828_v38 }
0x111a   :  { %2829 = vrcp.f32 %v2210_v63  ;;  %v2223_v40 = vand.u32 2147483648, %v2210_v63  ;;  %vm2217_vm2 = vweird.f32 %v2210_v63  ;;  %v2221_v60 = vand.u32 2147483647, %v2210_v63 }
0x111b   :  { %2831 = vpow2.f32 %v2563_v49  ;;  %v2303_v49 = vsel %vm2302_vm8, %v552_v20, 0.0 }
0x111c   :  { %v2173_v24 = vpop.permute.xlu0 %2172  ;;  %v2224_v33 = vor.u32 1.1754944e-38, %v2223_v40  ;;  %vm2222_vm4 = vcmp.eq.f32.partialorder %v2221_v60, 8.507059e+37  ;;  %v2516_v60 = vld [vmem:[%s3910_s1 + $0x20] sm:$0xff] }
0x111d   :  { %v2177_v35 = vmul.f32 %v2173_v24, %v3740_v13 }
0x111f   :  { %814 = vperm.xlu2 %2585, %v2504_v34   ;;  %2182 = vrot.lane.b32.xlu1 %v2177_v35, %s2993_s3 }
0x1120   :  { %v2830_v5 = vpop.eup %2829 }
0x1121   :  { %v2213_v9 = vmul.f32 %v2830_v5, %v2210_v63  ;;  %vm2218_vm1 = vweird.f32 %v2830_v5  ;;  %v2832_v3 = vpop.eup %2831 }
0x1122   :  { %vm2219_vm3 = vmor %vm2217_vm2, %vm2218_vm1  ;;  %v2211_v46 = vadd.f32 1.0, %v2832_v3 }
0x1123   :  { %v2214_v51 = vsub.f32 1.0, %v2213_v9 }
0x1124   :  { %2833 = vrcp.f32 %v2211_v46  ;;  %v2238_v63 = vand.u32 2147483648, %v2211_v46  ;;  %vm2232_vm6 = vweird.f32 %v2211_v46 }
0x1125   :  { %v2215_v59 = vmul.f32 %v2830_v5, %v2214_v51 }
0x1126   :  { %v2239_v40 = vor.u32 1.1754944e-38, %v2238_v63 }
0x1127   :  { %573 = vperm.xlu1 %2584, %v3750_v8   ;;  %v2216_v54 = vadd.f32 %v2830_v5, %v2215_v59  ;;  %v2304_v59 = vsel %vm2302_vm8, %v2504_v34, 0.0  ;;  %v2507_v34 = vld [vmem:[%s3910_s1 + $0x68] sm:$0xff] }
0x1128   :  { %v2305_v3 = vadd.f32 %v2304_v59, %v2303_v49  ;;  %v2316_v49 = vsel %vm2302_vm8, %v3750_v8, 0.0  ;;  %v2318_v8 = vsel %vm2302_vm8, %v553_v32, 0.0 }
0x1129   :  { %v2220_v2 = vsel %vm2219_vm3, %v2830_v5, %v2216_v54  ;;  %v2236_v5 = vand.u32 2147483647, %v2211_v46  ;;  %v2166_v54 = vmul.f32 %v3735_v1, %v3682_v50 }
0x112a   :  { %v3777_v11 = vsel %vm2222_vm4, %v2224_v33, %v2220_v2  ;;  %v2834_v27 = vpop.eup %2833  ;;  %v2306_v2 = vsel %vm2302_vm8, %v2516_v60, 0.0 }
0x112b   :  { %v2228_v37 = vmul.f32 %v2834_v27, %v2211_v46  ;;  %vm2233_vm5 = vweird.f32 %v2834_v27  ;;  %vm2237_vm9 = vcmp.eq.f32.partialorder %v2236_v5, 8.507059e+37 }
0x112c   :  { %vm2234_vm7 = vmor %vm2232_vm6, %vm2233_vm5 }
0x112d   :  { %v2229_v24 = vsub.f32 1.0, %v2228_v37 }
0x112f   :  { %831 = vperm.xlu1 %2584, %v3756_v16   ;;  %v2230_v35 = vmul.f32 %v2834_v27, %v2229_v24 }
0x1131   :  { %v2231_v38 = vadd.f32 %v2834_v27, %v2230_v35 }
0x1133   :  { %v2235_v51 = vsel %vm2234_vm7, %v2834_v27, %v2231_v38  ;;  %v2530_v27 = vld [vmem:[%s3910_s1 + $0x40] sm:$0xff]  ;;  %v2312_v38 = vsel %vm2302_vm8, %v2518_v52, 0.0 }
0x1134   :  { %v2310_v24 = vsel %vm2302_vm8, %v2530_v27, 0.0 }
0x1137   :  { %1330 = vperm.xlu1 %2584, %v3762_v48  }
0x113f   :  { %578 = vperm.xlu1 %2584, %v3768_v55  }
0x1147   :  { %1077 = vperm.xlu1 %2584, %v3774_v45  }
0x1169   :  { %v2249_v30 = vpop.permute.xlu2 %2248 }
0x116a   :  { %v2254_v41 = vmul.f32 %v2249_v30, %v3777_v11  ;;  %v3798_v30 = vsel %vm2237_vm9, %v2239_v40, %v2235_v51  ;;  %v2531_v51 = vld [vmem:[%s3910_s1 + $0x48] sm:$0xff]  ;;  %v2529_v40 = vld [vmem:[%s3910_s1 + $0x38] sm:$0xff] }
0x116c   :  { %2258 = vrot.lane.b32.xlu0 %v2254_v41, %s2993_s3  ;;  %v2307_v41 = vadd.f32 %v2306_v2, %v2305_v3  ;;  %v2321_v2 = vsel %vm2302_vm8, %v3774_v45, 0.0  ;;  %v2167_v45 = vmul.f32 %v3740_v13, %v3688_v39 }
0x1171   :  { %v2181_v9 = vpop.permute.xlu2 %2180 }
0x1172   :  { %v2186_v33 = vadd.f32 %v2181_v9, %v2166_v54  ;;  %v2505_v54 = vld [vmem:[%s3910_s1 + $0x18] sm:$0xff] }
0x1174   :  { %556 = vperm.xlu0 %2583, %v552_v20   ;;  %v2308_v20 = vsel %vm2302_vm8, %v3762_v48, 0.0  ;;  %2835 = vtanh.f32 %v2186_v33  ;;  %v2314_v48 = vsel %vm2302_vm8, %v3756_v16, 0.0  ;;  %v2519_v16 = vld [vmem:[%s3910_s1 + $0x58] sm:$0xff] }
0x1175   :  { %v2309_v37 = vadd.f32 %v2308_v20, %v2307_v41 }
0x1177   :  { %v2311_v35 = vadd.f32 %v2310_v24, %v2309_v37 }
0x1179   :  { %v2313_v5 = vadd.f32 %v2312_v38, %v2311_v35  ;;  %v3836_v35 = vpop.permute.xlu2 %814 }
0x117a   :  { %v2836_v63 = vpop.eup %2835 }
0x117b   :  { %v2315_v9 = vadd.f32 %v2314_v48, %v2313_v5 }
0x117c   :  { %1089 = vperm.xlu0 %2583, %v2518_v52  }
0x117d   :  { %v2317_v59 = vadd.f32 %v2316_v49, %v2315_v9  ;;  %v2245_v9 = vmul.f32 %v3798_v30, %v3704_v0  ;;  %v2331_v0 = vsel %vm2302_vm8, %v3768_v55, 0.0 }
0x117f   :  { %v2333_v52 = vmax.f32 %v2317_v59, 1e-09 }
0x1184   :  { %561 = vperm.xlu0 %2583, %v553_v32   ;;  %v2244_v32 = vmul.f32 %v3777_v11, %v3694_v44  ;;  %v2329_v44 = vsel %vm2302_vm8, %v2507_v34, 0.0 }
0x1189   :  { %v2251_v46 = vpop.permute.xlu1 %2250 }
0x118a   :  { %v2255_v50 = vmul.f32 %v2251_v46, %v3798_v30  ;;  %v2323_v46 = vsel %vm2302_vm8, %v2529_v40, 0.0 }
0x118c   :  { %2260 = vrot.lane.b32.xlu2 %v2255_v50, %s2993_s3  ;;  %836 = vperm.xlu0 %2583, %v2507_v34   ;;  %v2325_v50 = vsel %vm2302_vm8, %v2531_v51, 0.0 }
0x1191   :  { %v2183_v24 = vpop.permute.xlu1 %2182 }
0x1192   :  { %v2187_v48 = vadd.f32 %v2183_v24, %v2167_v45 }
0x1194   :  { %1072 = vperm.xlu2 %2585, %v2516_v60   ;;  %2192 = vrot.lane.b32.xlu0 %v2836_v63, %s2992_s0  ;;  %v2319_v60 = vsel %vm2302_vm8, %v2505_v54, 0.0 }
0x1195   :  { %v2320_v3 = vadd.f32 %v2319_v60, %v2318_v8 }
0x1197   :  { %v2322_v33 = vadd.f32 %v2321_v2, %v2320_v3 }
0x1199   :  { %v2324_v41 = vadd.f32 %v2323_v46, %v2322_v33  ;;  %v574_v38 = vpop.permute.xlu1 %573 }
0x119a   :  { %v581_v39 = vmul.f32 %v574_v38, %v3273_v15 }
0x119b   :  { %v2326_v20 = vadd.f32 %v2325_v50, %v2324_v41 }
0x119c   :  { %1347 = vperm.xlu2 %2585, %v2530_v27   ;;  %1352 = vperm.xlu0 %2583, %v2531_v51   ;;  %v2327_v27 = vsel %vm2302_vm8, %v2519_v16, 0.0 }
0x119d   :  { %v2328_v37 = vadd.f32 %v2327_v27, %v2326_v20  ;;  %v822_v27 = vmul.f32 %v3836_v35, %v3335_v19 }
0x11a4   :  { %819 = vperm.xlu2 %2585, %v2505_v54   ;;  %2355 = vperm.xlu0 %2583, %v2333_v52   ;;  %v832_v54 = vpop.permute.xlu1 %831 }
0x11ac   :  { %1094 = vperm.xlu2 %2585, %v2519_v16   ;;  %v839_v16 = vmul.f32 %v832_v54, %v3345_v22  ;;  %v1331_v50 = vpop.permute.xlu1 %1330 }
0x11ad   :  { %v1587_v24 = vmul.f32 %v3577_v23, %v1331_v50  ;;  %v2047_v23 = vmul.f32 %v3699_v17, %v832_v54 }
0x11ae   :  { %v841_v33 = vadd.f32 %v839_v16, %v581_v39 }
0x11b4   :  { %1335 = vperm.xlu2 %2585, %v2529_v40   ;;  %v2330_v40 = vadd.f32 %v2329_v44, %v2328_v37 }
0x11b6   :  { %v2332_v34 = vadd.f32 %v2331_v0, %v2330_v40  ;;  %v579_v0 = vpop.permute.xlu1 %578 }
0x11b8   :  { %v2334_v22 = vmax.f32 %v2332_v34, 1e-09 }
0x11be   :  { %v1078_v34 = vpop.permute.xlu1 %1077 }
0x11de   :  { %v2259_v63 = vpop.permute.xlu0 %2258 }
0x11df   :  { %v2264_v5 = vadd.f32 %v2259_v63, %v2244_v32 }
0x11e1   :  { %2837 = vtanh.f32 %v2264_v5 }
0x11e2   :  { %2839 = vtanh.f32 %v2187_v48 }
0x11e6   :  { %v3844_v51 = vpop.permute.xlu0 %556  ;;  %v2261_v49 = vpop.permute.xlu2 %2260 }
0x11e7   :  { %v2838_v59 = vpop.eup %2837  ;;  %v2265_v52 = vadd.f32 %v2261_v49, %v2245_v9  ;;  %v564_v15 = vmul.f32 %v3844_v51, %v3260_v4  ;;  %v1338_v4 = vmul.f32 %v1331_v50, %v3491_v7 }
0x11e8   :  { %2270 = vrot.lane.b32.xlu1 %v2838_v59, %s2992_s0  ;;  %v2840_v8 = vpop.eup %2839 }
0x11e9   :  { %2841 = vtanh.f32 %v2265_v52  ;;  %v824_v32 = vadd.f32 %v822_v27, %v564_v15 }
0x11ee   :  { %v1090_v60 = vpop.permute.xlu0 %1089  ;;  %v1073_v3 = vpop.permute.xlu2 %1072 }
0x11ef   :  { %v2842_v2 = vpop.eup %2841  ;;  %v1097_v46 = vmul.f32 %v1090_v60, %v3417_v61  ;;  %v1080_v37 = vmul.f32 %v1073_v3, %v3407_v25  ;;  %v1819_v45 = vmul.f32 %v3649_v12, %v1073_v3 }
0x11f0   :  { %2194 = vrot.lane.b32.xlu1 %v2840_v8, %s2992_s0  ;;  %2272 = vrot.lane.b32.xlu2 %v2842_v2, %s2992_s0 }
0x11f1   :  { %v1099_v41 = vadd.f32 %v1097_v46, %v841_v33  ;;  %v1082_v5 = vadd.f32 %v1080_v37, %v824_v32  ;;  %v2398_v32 = vld [vmem:[#allocation10 + $0x28] sm:$0xff] }
0x11f3   :  { %v1340_v19 = vadd.f32 %v1338_v4, %v1082_v5 }
0x11f6   :  { %v562_v20 = vpop.permute.xlu0 %561  ;;  %v1348_v55 = vpop.permute.xlu2 %1347 }
0x11f7   :  { %v1355_v61 = vmul.f32 %v1348_v55, %v3505_v29  ;;  %v1583_v9 = vmul.f32 %v3567_v21, %v1348_v55  ;;  %v1815_v29 = vmul.f32 %v3639_v53, %v1090_v60  ;;  %v582_v53 = vmul.f32 %v579_v0, %v3277_v18 }
0x11f8   :  { %2360 = vperm.xlu1 %2584, %v2334_v22   ;;  %v1820_v22 = vmul.f32 %v3654_v47, %v1078_v34  ;;  %v565_v37 = vmul.f32 %v562_v20, %v3269_v14 }
0x11f9   :  { %v1357_v63 = vadd.f32 %v1355_v61, %v1099_v41  ;;  %v1585_v25 = vadd.f32 %v1583_v9, %v1340_v19  ;;  %v1081_v61 = vmul.f32 %v1078_v34, %v3413_v56  ;;  %v2395_v56 = vld [vmem:[#allocation10 + $0x10] sm:$0xff] }
0x11fb   :  { %v1589_v48 = vadd.f32 %v1587_v24, %v1357_v63  ;;  %v1817_v52 = vadd.f32 %v1815_v29, %v1585_v25  ;;  %v2399_v24 = vld [vmem:[#allocation10 + $0x30] sm:$0xff] }
0x11fd   :  { %v1821_v49 = vadd.f32 %v1819_v45, %v1589_v48  ;;  %v2049_v12 = vadd.f32 %v2047_v23, %v1817_v52  ;;  %v2396_v45 = vld [vmem:[#allocation10 + $0x18] sm:$0xff] }
0x11fe   :  { %v3865_v59 = vpop.permute.xlu0 %836  ;;  %v820_v7 = vpop.permute.xlu2 %819 }
0x11ff   :  { %v840_v8 = vmul.f32 %v3865_v59, %v3349_v28  ;;  %v2052_v18 = vmul.f32 %v3717_v31, %v820_v7  ;;  %v2397_v31 = vld [vmem:[#allocation10 + $0x20] sm:$0xff] }
0x1201   :  { %v842_v2 = vadd.f32 %v840_v8, %v582_v53 }
0x1206   :  { %v2193_v44 = vpop.permute.xlu0 %2192  ;;  %v1095_v21 = vpop.permute.xlu2 %1094 }
0x1207   :  { %v2198_v16 = vmul.f32 %v2193_v44, %v3735_v1  ;;  %v1098_v60 = vmul.f32 %v1095_v21, %v3434_v58  ;;  %v2400_v1 = vld [vmem:[#allocation10 + $0x38] sm:$0xff]  ;;  %v1816_v9 = vmul.f32 %v3645_v43, %v1095_v21 }
0x1208   :  { %2420 = vmatpush.msrb.mxu0 %v2400_v1 }
0x1209   :  { %v2278_v40 = vmul.f32 %v2198_v16, %v574_v38  ;;  %v1100_v38 = vadd.f32 %v1098_v60, %v842_v2 }
0x120a   :  { %2421 = vmatpush.msrb.mxu0 %v2399_v24 }
0x120b   :  { %v2280_v39 = vadd.f32 %v2278_v40, %v2049_v12 }
0x120c   :  { %2422 = vmatpush.msrb.mxu0 %v2398_v32 }
0x120d   :  { %2337 = vrot.lane.b32.xlu2 %v2280_v39, %s2993_s3 }
0x120e   :  { %v1353_v3 = vpop.permute.xlu0 %1352  ;;  %v1336_v54 = vpop.permute.xlu2 %1335  ;;  %2423 = vmatpush.msrb.mxu0 %v2397_v31 }
0x120f   :  { %v1356_v17 = vmul.f32 %v1353_v3, %v3509_v26  ;;  %v1588_v46 = vmul.f32 %v3581_v42, %v1336_v54  ;;  %v823_v26 = vmul.f32 %v820_v7, %v3341_v10  ;;  %v1339_v47 = vmul.f32 %v1336_v54, %v3501_v36 }
0x1210   :  { %v2051_v10 = vmul.f32 %v3713_v62, %v3836_v35  ;;  %v1584_v14 = vmul.f32 %v3573_v6, %v1353_v3  ;;  %2424 = vmatpush.msrb.mxu0 %v2396_v45  ;;  %v2048_v6 = vmul.f32 %v3709_v57, %v3865_v59 }
0x1211   :  { %v1358_v33 = vadd.f32 %v1356_v17, %v1100_v38  ;;  %v825_v42 = vadd.f32 %v823_v26, %v565_v37 }
0x1212   :  { %v2053_v4 = vadd.f32 %v2051_v10, %v1821_v49  ;;  %2425 = vmatpush.msrb.mxu0 %v2395_v56  ;;  %v2393_v49 = vld [vmem:[#allocation10] sm:$0xff] }
0x1213   :  { %v1590_v41 = vadd.f32 %v1588_v46, %v1358_v33  ;;  %v1083_v63 = vadd.f32 %v1081_v61, %v825_v42 }
0x1215   :  { %v1822_v28 = vadd.f32 %v1820_v22, %v1590_v41 }
0x1216   :  { %v2356_v43 = vpop.permute.xlu0 %2355 }
0x1217   :  { %v2054_v55 = vadd.f32 %v2052_v18, %v1822_v28  ;;  %2843 = vrcp.f32 %v2356_v43  ;;  %vm2368_vm10 = vweird.f32 %v2356_v43  ;;  %v2372_v21 = vand.u32 2147483647, %v2356_v43 }
0x1219   :  { %vm2373_vm13 = vcmp.eq.f32.partialorder %v2372_v21, 8.507059e+37 }
0x121d   :  { %v2844_v23 = vpop.eup %2843 }
0x121e   :  { %v2364_v16 = vmul.f32 %v2844_v23, %v2356_v43  ;;  %vm2369_vm11 = vweird.f32 %v2844_v23 }
0x121f   :  { %vm2370_vm12 = vmor %vm2368_vm10, %vm2369_vm11 }
0x1220   :  { %v2365_v40 = vsub.f32 1.0, %v2364_v16 }
0x1222   :  { %v2366_v57 = vmul.f32 %v2844_v23, %v2365_v40 }
0x1224   :  { %v2367_v7 = vadd.f32 %v2844_v23, %v2366_v57 }
0x1226   :  { %v2371_v3 = vsel %vm2370_vm12, %v2844_v23, %v2367_v7 }
0x124a   :  { %v2273_v50 = vpop.permute.xlu2 %2272 }
0x124b   :  { %v2277_v58 = vmul.f32 %v2273_v50, %v3798_v30  ;;  %v1341_v30 = vadd.f32 %v1339_v47, %v1083_v63 }
0x124d   :  { %v2283_v15 = vmul.f32 %v2277_v58, %v562_v20  ;;  %v1586_v48 = vadd.f32 %v1584_v14, %v1341_v30  ;;  %v2586_v58 = vld [vmem:[%s3916_s7] ss:$0 sm:$0xff] }
0x124f   :  { %v2285_v27 = vadd.f32 %v2283_v15, %v2054_v55  ;;  %v1818_v25 = vadd.f32 %v1816_v9, %v1586_v48 }
0x1251   :  { %2347 = vrot.lane.b32.xlu2 %v2285_v27, %s2992_s0  ;;  %v2050_v35 = vadd.f32 %v2048_v6, %v1818_v25 }
0x125a   :  { %v2271_v5 = vpop.permute.xlu1 %2270 }
0x125b   :  { %v2276_v20 = vmul.f32 %v2271_v5, %v3777_v11 }
0x125d   :  { %v2282_v36 = vmul.f32 %v2276_v20, %v3844_v51  ;;  %v2394_v51 = vld [vmem:[#allocation10 + $0x8] sm:$0xff] }
0x125e   :  { %2426 = vmatpush.msrb.mxu0 %v2394_v51 }
0x125f   :  { %v2284_v19 = vadd.f32 %v2282_v36, %v2053_v4 }
0x1260   :  { %2427 = vmatpush.msrb.mxu0 %v2393_v49 }
0x1261   :  { %2345 = vrot.lane.b32.xlu0 %v2284_v19, %s2992_s0 }
0x1262   :  { %v2195_v29 = vpop.permute.xlu1 %2194 }
0x1263   :  { %v2199_v62 = vmul.f32 %v2195_v29, %v3740_v13  ;;  %v2374_v13 = vand.u32 2147483648, %v2356_v43 }
0x1265   :  { %v2279_v11 = vmul.f32 %v2199_v62, %v579_v0  ;;  %v2375_v0 = vor.u32 1.1754944e-38, %v2374_v13 }
0x1267   :  { %v2281_v52 = vadd.f32 %v2279_v11, %v2050_v35  ;;  %v2338_v53 = vpop.permute.xlu2 %2337  ;;  %v2376_v2 = vsel %vm2373_vm13, %v2375_v0, %v2371_v3 }
0x1269   :  { %2339 = vrot.lane.b32.xlu1 %v2281_v52, %s2993_s3  ;;  %s2995_s3 = smov [#allocation12]  }
0x126a   :  { %v2361_v44 = vpop.permute.xlu1 %2360  ;;  %s2441_s2 = sshll.u32 %s2995_s3, 4  ;;  %s2442_s2 = int_to_ptr.vmem [resolvable:$true] %s2441_s2 }
0x126b   :  { %2845 = vrcp.f32 %v2361_v44  ;;  %v2389_v54 = vand.u32 2147483648, %v2361_v44  ;;  %vm2383_vm1 = vweird.f32 %v2361_v44  ;;  %v2387_v33 = vand.u32 2147483647, %v2361_v44 }
0x126d   :  { %v2390_v34 = vor.u32 1.1754944e-38, %v2389_v54  ;;  %vm2388_vm3 = vcmp.eq.f32.partialorder %v2387_v33, 8.507059e+37 }
0x1271   :  { %v2846_v12 = vpop.eup %2845 }
0x1272   :  { %v2379_v59 = vmul.f32 %v2846_v12, %v2361_v44  ;;  %vm2384_vm15 = vweird.f32 %v2846_v12 }
0x1273   :  { %vm2385_vm2 = vmor %vm2383_vm1, %vm2384_vm15 }
0x1274   :  { %v2380_v39 = vsub.f32 1.0, %v2379_v59 }
0x1276   :  { %v2381_v8 = vmul.f32 %v2846_v12, %v2380_v39 }
0x1278   :  { %v2382_v38 = vadd.f32 %v2846_v12, %v2381_v8 }
0x127a   :  { %v2386_v46 = vsel %vm2385_vm2, %v2846_v12, %v2382_v38 }
0x127b   :  { %v2391_v28 = vsel %vm2388_vm3, %v2390_v34, %v2386_v46 }
0x12ab   :  { %v2348_v41 = vpop.permute.xlu2 %2347 }
0x12d3   :  { %v2346_v60 = vpop.permute.xlu0 %2345 }
0x12d4   :  { %v2351_v17 = vsel %vm125_vm0, %v2338_v53, %v2346_v60 }
0x12d5   :  { %v2377_v1 = vmul.f32 %v2376_v2, %v2351_v17 }
0x12d7   :  { %2564 = vmatmul.msk.f32.vlgmr.msrb.gmra.mxu0 %vm2405_vm14, %v2377_v1 }
0x12db   :  { %v2340_v22 = vpop.permute.xlu1 %2339 }
0x12dc   :  { %v2352_v50 = vsel %vm125_vm0, %v2340_v22, %v2348_v41 }
0x12dd   :  { %v2392_v18 = vmul.f32 %v2391_v28, %v2352_v50 }
0x12df   :  { %2565 = vmatmul.msk.f32.gmra.mxu0 %vm2405_vm14, %v2392_v18 }
0x1354   :  { %v2429_v15 = vpop.f32.mrf.mxu0 }
0x1355   :  { %v2430_v55 = vadd.f32 %v2586_v58, %v2429_v15 }
0x1357   :  { %2435 = vst [vmem:[#allocation12] sm:$0xff] %v2430_v55 }
0x135c   :  { %v2432_v26 = vpop.f32.mrf.mxu0 }
0x135d   :  { %v2433_v27 = vadd.f32 %v2586_v58, %v2432_v26 }
0x135f   :  { %2436 = vst [vmem:[#allocation12 + $0x8] sm:$0xff] %v2433_v27 }
0x1360   :  { %2449 = dma.vmem_to_hbm [thread:$0]  %s2442_s2, 256, %s2444_s24, [#allocation6], %s2984_s13, %s2984_s13, %s2985_s14  }
0x1361   :  { %2981 = dma.done.wait [#allocation6], 256  }
0x1362   :  { %2982 = vsyncadd [#allocation6], 4294967040 }
0x1363   :  { %2454 = vsyncpa [#allocation5], 1 }
0x1364   :  { %2455 = vsyncpa [#allocation8], 1 }
0x1365   :  { %2456 = vsyncpa [#allocation11], 1 }
0x1366   :  { %2457 = vsyncpa [#allocation6], 1 }

// kernel: tpu_custom_call.1
= control target key start
LH: loop header
LB: loop body
LE: loop exit
PB: predicated region body
PF: predicated region fallthrough
CT: control target
= control target key end

     0   :  { %13 = vsyncpa [#allocation5], 0  ;;  %s3909_s0 = inlined_call_operand.vmem [shape: f32[8,16,32], index: 0, kind: input, shape index: {}]   ;;  %s3910_s1 = inlined_call_operand.vmem [shape: f32[8,16,1], index: 1, kind: input, shape index: {}]   ;;  %s3911_s2 = inlined_call_operand.hbm [shape: f32[32,256], index: 2, kind: input, shape index: {}]   ;;  %s3912_s3 = inlined_call_operand.vmem [shape: f32[1,256], index: 3, kind: input, shape index: {}]   ;;  %s3913_s4 = inlined_call_operand.hbm [shape: f32[32,128], index: 4, kind: input, shape index: {}]   ;;  %s3914_s5 = inlined_call_operand.hbm [shape: f32[32,128], index: 5, kind: input, shape index: {}]   ;;  %s3915_s6 = inlined_call_operand.hbm [shape: f32[64,128], index: 6, kind: input, shape index: {}]   ;;  %s3916_s7 = inlined_call_operand.vmem [shape: f32[1,128], index: 7, kind: input, shape index: {}]   ;;  %s3917_s8 = inlined_call_operand.hbm [shape: f32[16,128], index: 8, kind: output, shape index: {}]  }
   0x1   :  { %14 = vsyncpa [#allocation8], 0 }
   0x2   :  { %15 = vsyncpa [#allocation11], 0  ;;  %s40_s29 = sshll.u32 %s3913_s4, 4  ;;  %s41_s29 = int_to_ptr.hbm [resolvable:$true] %s40_s29 }
   0x3   :  { %16 = vsyncpa [#allocation6], 0  ;;  %s2983_s30 = smov [#allocation7]   ;;  %s25_s12 = sshll.u32 %s3911_s2, 4  ;;  %s26_s12 = int_to_ptr.hbm [resolvable:$true] %s25_s12 }
   0x4   :  { %s42_s9 = sshll.u32 %s2983_s30, 4  ;;  %s2984_s13 = smov 128   ;;  %s43_s9 = int_to_ptr.vmem [resolvable:$true] %s42_s9 }
   0x5   :  { %s2985_s14 = smov 8   ;;  %s2986_s15 = smov [#allocation4]  }
   0x6   :  { %48 = dma.hbm_to_vmem [thread:$0]  %s41_s29, 512, %s43_s9, [#allocation8], %s2984_s13, %s2984_s13, %s2985_s14  }
   0x7   :  { %s27_s16 = sshll.u32 %s2986_s15, 4  ;;  %s2987_s4 = smov 256   ;;  %s28_s16 = int_to_ptr.vmem [resolvable:$true] %s27_s16 }
   0x8   :  { %s2988_s17 = smov 16   ;;  %s53_s20 = sshll.u32 %s3914_s5, 4  ;;  %s54_s20 = int_to_ptr.hbm [resolvable:$true] %s53_s20 }
   0x9   :  { %33 = dma.hbm_to_vmem [thread:$0]  %s26_s12, 1024, %s28_s16, [#allocation5], %s2987_s4, %s2987_s4, %s2988_s17  }
   0xa   :  { %s2989_s21 = smov [#allocation9]   ;;  %s66_s24 = sshll.u32 %s3915_s6, 4  ;;  %s67_s24 = int_to_ptr.hbm [resolvable:$true] %s66_s24 }
   0xb   :  { %s55_s2 = sshll.u32 %s2989_s21, 4  ;;  %s2990_s25 = smov [#allocation10]   ;;  %s56_s2 = int_to_ptr.vmem [resolvable:$true] %s55_s2 }
   0xc   :  { %61 = dma.hbm_to_vmem [thread:$0]  %s54_s20, 512, %s56_s2, [#allocation8], %s2984_s13, %s2984_s13, %s2985_s14  }
   0xd   :  { %s68_s26 = sshll.u32 %s2990_s25, 4  ;;  %s69_s26 = int_to_ptr.vmem [resolvable:$true] %s68_s26 }
   0xe   :  { %74 = dma.hbm_to_vmem [thread:$0]  %s67_s24, 1024, %s69_s26, [#allocation11], %s2984_s13, %s2984_s13, %s2985_s14  }
   0xf   :  { %2975 = dma.done.wait [#allocation5], 1024  }
  0x10   :  { %2976 = vsyncadd [#allocation5], 4294966272 }
  0x11   :  { %2977 = dma.done.wait [#allocation8], 1024  }
  0x12   :  { %2978 = vsyncadd [#allocation8], 4294966272 }
  0x13   :  { %2979 = dma.done.wait [#allocation11], 1024  }
  0x14   :  { %2980 = vsyncadd [#allocation11], 4294966272  ;;  %v117_v0 = vld [vmem:[#allocation4 + $0x30] sm:$0xff]  ;;  %v3062_v1 = vld [vmem:[#allocation7 + $0x18] sm:$0xff]  ;;  %vm125_vm0 = vcmask 261120   ;;  %v2991_v11 = vmov 0.0  }
  0x15   :  { %v115_v2 = vld [vmem:[#allocation4 + $0x20] sm:$0xff]  ;;  %2566 = vmatpush.msra.mxu1 %v117_v0  ;;  %361 = vmatpush.msra.mxu2 %v3062_v1  ;;  %v3065_v3 = vld [vmem:[#allocation7 + $0x10] sm:$0xff]  ;;  %v3067_v5 = vld [vmem:[#allocation7 + $0x8] sm:$0xff]  ;;  %s2443_s24 = sshll.u32 %s3917_s8, 4  ;;  %s2444_s24 = int_to_ptr.hbm [resolvable:$true] %s2443_s24 }
  0x16   :  { %186 = vmatpush.msra.mxu0 %v117_v0  ;;  %v113_v4 = vld [vmem:[#allocation4 + $0x10] sm:$0xff]  ;;  %v111_v6 = vld [vmem:[#allocation4] sm:$0xff]  ;;  %v3076_v8 = vld [vmem:[%s3909_s0 + $0x78] sm:$0xff] }
  0x17   :  { %2567 = vmatpush.msra.mxu1 %v115_v2  ;;  %362 = vmatpush.msra.mxu2 %v3065_v3  ;;  %v3070_v7 = vld [vmem:[#allocation7] sm:$0xff]  ;;  %v118_v9 = vld [vmem:[#allocation4 + $0x38] sm:$0xff]  ;;  %v116_v12 = vld [vmem:[#allocation4 + $0x28] sm:$0xff] }
  0x18   :  { %187 = vmatpush.msra.mxu0 %v115_v2  ;;  %v95_v10 = vld [vmem:[%s3909_s0] sm:$0xff]  ;;  %v114_v13 = vld [vmem:[#allocation4 + $0x18] sm:$0xff]  ;;  %v112_v14 = vld [vmem:[#allocation4 + $0x8] sm:$0xff] }
  0x19   :  { %2568 = vmatpush.msra.mxu1 %v113_v4  ;;  %363 = vmatpush.msra.mxu2 %v3067_v5  ;;  %v96_v15 = vld [vmem:[%s3909_s0 + $0x8] sm:$0xff]  ;;  %v97_v16 = vld [vmem:[%s3909_s0 + $0x10] sm:$0xff]  ;;  %v98_v17 = vld [vmem:[%s3909_s0 + $0x18] sm:$0xff] }
  0x1a   :  { %188 = vmatpush.msra.mxu0 %v113_v4  ;;  %v99_v18 = vld [vmem:[%s3909_s0 + $0x20] sm:$0xff]  ;;  %v100_v19 = vld [vmem:[%s3909_s0 + $0x28] sm:$0xff]  ;;  %v101_v20 = vld [vmem:[%s3909_s0 + $0x30] sm:$0xff] }
  0x1b   :  { %2569 = vmatpush.msra.mxu1 %v111_v6  ;;  %364 = vmatpush.msra.mxu2 %v3070_v7  ;;  %v102_v21 = vld [vmem:[%s3909_s0 + $0x38] sm:$0xff]  ;;  %v103_v22 = vld [vmem:[%s3909_s0 + $0x40] sm:$0xff]  ;;  %v3138_v24 = vld [vmem:[#allocation9 + $0x10] sm:$0xff] }
  0x1c   :  { %2473 = vmatmul.msk.f32.vlgmr.msra.gmra.mxu1 %vm125_vm0, %v3076_v8  ;;  %365 = vmatmul.f32.vlgmr.msra.gmra.mxu2 %v2991_v11  ;;  %v3136_v23 = vld [vmem:[#allocation9 + $0x18] sm:$0xff]  ;;  %v104_v25 = vld [vmem:[%s3909_s0 + $0x48] sm:$0xff]  ;;  %v3149_v27 = vld [vmem:[#allocation9] sm:$0xff] }
  0x1d   :  { %251 = vmatpush.msrb.mxu1 %v118_v9  ;;  %189 = vmatpush.msra.mxu0 %v111_v6  ;;  %v3147_v26 = vld [vmem:[#allocation9 + $0x8] sm:$0xff]  ;;  %v105_v28 = vld [vmem:[%s3909_s0 + $0x50] sm:$0xff]  ;;  %v106_v29 = vld [vmem:[%s3909_s0 + $0x58] sm:$0xff] }
  0x1e   :  { %2458 = vmatmul.msk.f32.vlgmr.msra.gmra.mxu0 %vm125_vm0, %v95_v10  ;;  %607 = vmatpush.msrb.mxu2 %v3062_v1  ;;  %v107_v30 = vld [vmem:[%s3909_s0 + $0x60] sm:$0xff]  ;;  %v108_v31 = vld [vmem:[%s3909_s0 + $0x68] sm:$0xff]  ;;  %v109_v32 = vld [vmem:[%s3909_s0 + $0x70] sm:$0xff]  ;;  %s2992_s0 = smov 64  }
  0x1f   :  { %252 = vmatpush.msrb.mxu1 %v116_v12  ;;  %384 = vmatpush.msra.mxu3 %v3136_v23  ;;  %v119_v33 = vld [vmem:[%s3912_s3] sm:$0x3]  ;;  %s2993_s3 = smov 32  }
  0x20   :  { %608 = vmatpush.msrb.mxu2 %v3065_v3  ;;  %v3193_v35 = vperm.slane %v119_v33, 0 }
  0x21   :  { %253 = vmatpush.msrb.mxu1 %v114_v13  ;;  %385 = vmatpush.msra.mxu3 %v3138_v24 }
  0x22   :  { %609 = vmatpush.msrb.mxu2 %v3067_v5 }
  0x23   :  { %254 = vmatpush.msrb.mxu1 %v112_v14  ;;  %386 = vmatpush.msra.mxu3 %v3147_v26 }
  0x24   :  { %2474 = vmatmul.msk.f32.vlgmr.msrb.gmra.mxu1 %vm125_vm0, %v95_v10  ;;  %368 = vmatmul.f32.gmra.mxu2 %v2991_v11 }
  0x25   :  { %610 = vmatpush.msrb.mxu2 %v3070_v7  ;;  %387 = vmatpush.msra.mxu3 %v3149_v27 }
  0x26   :  { %2459 = vmatmul.msk.f32.gmra.mxu0 %vm125_vm0, %v96_v15  ;;  %388 = vmatmul.f32.vlgmr.msra.gmra.mxu3 %v2991_v11 }
  0x27   :  { %865 = vmatpush.msra.mxu2 %v3062_v1  ;;  %640 = vmatpush.msrb.mxu3 %v3136_v23 }
  0x29   :  { %866 = vmatpush.msra.mxu2 %v3065_v3  ;;  %641 = vmatpush.msrb.mxu3 %v3138_v24 }
  0x2b   :  { %867 = vmatpush.msra.mxu2 %v3067_v5  ;;  %642 = vmatpush.msrb.mxu3 %v3147_v26 }
  0x2c   :  { %2475 = vmatmul.msk.f32.gmra.mxu1 %vm125_vm0, %v96_v15 }
  0x2d   :  { %868 = vmatpush.msra.mxu2 %v3070_v7  ;;  %643 = vmatpush.msrb.mxu3 %v3149_v27 }
  0x2e   :  { %2460 = vmatmul.msk.f32.gmra.mxu0 %vm125_vm0, %v97_v16  ;;  %391 = vmatmul.f32.gmra.mxu3 %v2991_v11  ;;  %v3229_v11 = vperm.slane %v119_v33, 1 }
  0x2f   :  { %898 = vmatpush.msra.mxu3 %v3136_v23 }
  0x31   :  { %899 = vmatpush.msra.mxu3 %v3138_v24 }
  0x33   :  { %900 = vmatpush.msra.mxu3 %v3147_v26 }
  0x34   :  { %2476 = vmatmul.msk.f32.gmra.mxu1 %vm125_vm0, %v97_v16 }
  0x35   :  { %901 = vmatpush.msra.mxu3 %v3149_v27 }
  0x36   :  { %2461 = vmatmul.msk.f32.gmra.mxu0 %vm125_vm0, %v98_v17 }
  0x3c   :  { %2477 = vmatmul.msk.f32.gmra.mxu1 %vm125_vm0, %v98_v17 }
  0x3e   :  { %2462 = vmatmul.msk.f32.gmra.mxu0 %vm125_vm0, %v99_v18 }
  0x44   :  { %2478 = vmatmul.msk.f32.gmra.mxu1 %vm125_vm0, %v99_v18 }
  0x46   :  { %2463 = vmatmul.msk.f32.gmra.mxu0 %vm125_vm0, %v100_v19 }
  0x4c   :  { %2479 = vmatmul.msk.f32.gmra.mxu1 %vm125_vm0, %v100_v19 }
  0x4e   :  { %2464 = vmatmul.msk.f32.gmra.mxu0 %vm125_vm0, %v101_v20 }
  0x54   :  { %2480 = vmatmul.msk.f32.gmra.mxu1 %vm125_vm0, %v101_v20 }
  0x56   :  { %2465 = vmatmul.msk.f32.gmra.mxu0 %vm125_vm0, %v102_v21 }
  0x5c   :  { %2481 = vmatmul.msk.f32.gmra.mxu1 %vm125_vm0, %v102_v21 }
  0x5e   :  { %2466 = vmatmul.msk.f32.gmra.mxu0 %vm125_vm0, %v103_v22 }
  0x64   :  { %2482 = vmatmul.msk.f32.gmra.mxu1 %vm125_vm0, %v103_v22 }
  0x66   :  { %2467 = vmatmul.msk.f32.gmra.mxu0 %vm125_vm0, %v104_v25 }
  0x6c   :  { %2483 = vmatmul.msk.f32.gmra.mxu1 %vm125_vm0, %v104_v25 }
  0x6e   :  { %2468 = vmatmul.msk.f32.gmra.mxu0 %vm125_vm0, %v105_v28 }
  0x74   :  { %2484 = vmatmul.msk.f32.gmra.mxu1 %vm125_vm0, %v105_v28 }
  0x76   :  { %2469 = vmatmul.msk.f32.gmra.mxu0 %vm125_vm0, %v106_v29 }
  0x7c   :  { %2485 = vmatmul.msk.f32.gmra.mxu1 %vm125_vm0, %v106_v29 }
  0x7e   :  { %2470 = vmatmul.msk.f32.gmra.mxu0 %vm125_vm0, %v107_v30 }
  0x84   :  { %2486 = vmatmul.msk.f32.gmra.mxu1 %vm125_vm0, %v107_v30 }
  0x86   :  { %2471 = vmatmul.msk.f32.gmra.mxu0 %vm125_vm0, %v108_v31 }
  0x8c   :  { %2487 = vmatmul.msk.f32.gmra.mxu1 %vm125_vm0, %v108_v31 }
  0x8e   :  { %2472 = vmatmul.msk.f32.gmra.mxu0 %vm125_vm0, %v109_v32 }
  0x94   :  { %2488 = vmatmul.msk.f32.gmra.mxu1 %vm125_vm0, %v109_v32 }
  0x99   :  { %v3191_v34 = vpop.f32.mrf.mxu1 }
  0x9b   :  { %v191_v36 = vpop.f32.mrf.mxu0 }
  0x9c   :  { %2489 = vmatmul.msk.f32.gmra.mxu1 %vm125_vm0, %v3076_v8  ;;  %v192_v37 = vadd.f32 %v191_v36, %v3193_v35 }
  0x9f   :  { %v366_v38 = vpop.f32.mrf.mxu2 }
  0xa0   :  { %v397_v39 = vadd.f32 %v366_v38, %v192_v37 }
  0xa1   :  { %v3198_v40 = vpop.f32.mrf.mxu1 }
  0xa2   :  { %2587 = vtanh.f32 %v397_v39  ;;  %v2490_v56 = vmul.f32 -1.442695, %v397_v39 }
  0xa3   :  { %v194_v41 = vpop.f32.mrf.mxu0 }
  0xa4   :  { %v195_v42 = vadd.f32 %v194_v41, %v3193_v35 }
  0xa7   :  { %v369_v43 = vpop.f32.mrf.mxu2 }
  0xa8   :  { %v2588_v44 = vpop.eup %2587  ;;  %v398_v45 = vadd.f32 %v369_v43, %v195_v42 }
  0xa9   :  { %v3201_v46 = vpop.f32.mrf.mxu1  ;;  %443 = vrot.lane.b32.xlu0 %v2588_v44, %s2992_s0  ;;  %v389_v10 = vpop.f32.mrf.mxu3 }
  0xaa   :  { %2589 = vtanh.f32 %v398_v45  ;;  %v2491_v58 = vmul.f32 -1.442695, %v398_v45 }
  0xab   :  { %2591 = vpow2.f32 %v2490_v56 }
  0xac   :  { %2593 = vpow2.f32 %v2491_v58 }
  0xb0   :  { %v2590_v47 = vpop.eup %2589 }
  0xb1   :  { %v3204_v48 = vpop.f32.mrf.mxu1  ;;  %445 = vrot.lane.b32.xlu1 %v2590_v47, %s2992_s0  ;;  %v2592_v59 = vpop.eup %2591 }
  0xb2   :  { %v405_v61 = vadd.f32 1.0, %v2592_v59  ;;  %v2594_v62 = vpop.eup %2593  ;;  %v392_v29 = vpop.f32.mrf.mxu3 }
  0xb3   :  { %v406_v0 = vadd.f32 1.0, %v2594_v62 }
  0xb4   :  { %2595 = vrcp.f32 %v405_v61  ;;  %vm412_vm1 = vweird.f32 %v405_v61  ;;  %v418_v16 = vand.u32 2147483648, %v405_v61  ;;  %v416_v19 = vand.u32 2147483647, %v405_v61 }
  0xb5   :  { %2597 = vrcp.f32 %v406_v0  ;;  %vm427_vm5 = vweird.f32 %v406_v0  ;;  %v433_v33 = vand.u32 2147483648, %v406_v0  ;;  %v431_v41 = vand.u32 2147483647, %v406_v0 }
  0xb6   :  { %v419_v21 = vor.u32 1.1754944e-38, %v418_v16  ;;  %vm417_vm4 = vcmp.eq.f32.partialorder %v416_v19, 8.507059e+37 }
  0xb7   :  { %v434_v42 = vor.u32 1.1754944e-38, %v433_v33  ;;  %vm432_vm8 = vcmp.eq.f32.partialorder %v431_v41, 8.507059e+37 }
  0xb9   :  { %v3207_v49 = vpop.f32.mrf.mxu1 }
  0xba   :  { %v2596_v2 = vpop.eup %2595 }
  0xbb   :  { %v408_v4 = vmul.f32 %v2596_v2, %v405_v61  ;;  %v2598_v9 = vpop.eup %2597  ;;  %vm413_vm2 = vweird.f32 %v2596_v2 }
  0xbc   :  { %v423_v13 = vmul.f32 %v2598_v9, %v406_v0  ;;  %vm414_vm3 = vmor %vm412_vm1, %vm413_vm2  ;;  %vm428_vm6 = vweird.f32 %v2598_v9 }
  0xbd   :  { %v409_v8 = vsub.f32 1.0, %v408_v4  ;;  %vm429_vm7 = vmor %vm427_vm5, %vm428_vm6 }
  0xbe   :  { %v424_v20 = vsub.f32 1.0, %v423_v13 }
  0xbf   :  { %v410_v12 = vmul.f32 %v2596_v2, %v409_v8 }
  0xc0   :  { %v425_v25 = vmul.f32 %v2598_v9, %v424_v20 }
  0xc1   :  { %v3209_v50 = vpop.f32.mrf.mxu1  ;;  %v411_v18 = vadd.f32 %v2596_v2, %v410_v12 }
  0xc2   :  { %v426_v39 = vadd.f32 %v2598_v9, %v425_v25 }
  0xc3   :  { %v415_v22 = vsel %vm414_vm3, %v2596_v2, %v411_v18 }
  0xc4   :  { %v3233_v32 = vsel %vm417_vm4, %v419_v21, %v415_v22  ;;  %v430_v43 = vsel %vm429_vm7, %v2598_v9, %v426_v39 }
  0xc5   :  { %v3238_v45 = vsel %vm432_vm8, %v434_v42, %v430_v43  ;;  %v439_v21 = vmul.f32 0.0, %v3233_v32 }
  0xc6   :  { %v440_v42 = vmul.f32 0.0, %v3238_v45 }
  0xc9   :  { %v3211_v51 = vpop.f32.mrf.mxu1 }
  0xd1   :  { %v3213_v52 = vpop.f32.mrf.mxu1 }
  0xd9   :  { %v3215_v53 = vpop.f32.mrf.mxu1 }
  0xe1   :  { %v3217_v54 = vpop.f32.mrf.mxu1 }
  0xe9   :  { %v3219_v55 = vpop.f32.mrf.mxu1 }
  0xf1   :  { %v3221_v57 = vpop.f32.mrf.mxu1 }
  0xf9   :  { %v3223_v60 = vpop.f32.mrf.mxu1 }
 0x101   :  { %v3225_v63 = vpop.f32.mrf.mxu1 }
 0x109   :  { %v3227_v6 = vpop.f32.mrf.mxu1 }
 0x111   :  { %v298_v14 = vpop.f32.mrf.mxu1 }
 0x112   :  { %v299_v15 = vadd.f32 %v298_v14, %v3229_v11 }
 0x114   :  { %v476_v17 = vadd.f32 %v389_v10, %v299_v15 }
 0x116   :  { %2599 = vtanh.f32 %v476_v17  ;;  %v2492_v58 = vmul.f32 -1.442695, %v476_v17 }
 0x119   :  { %v301_v28 = vpop.f32.mrf.mxu1 }
 0x11a   :  { %v302_v30 = vadd.f32 %v301_v28, %v3229_v11 }
 0x11b   :  { %v444_v31 = vpop.permute.xlu0 %443 }
 0x11c   :  { %v2600_v36 = vpop.eup %2599  ;;  %v477_v37 = vadd.f32 %v392_v29, %v302_v30  ;;  %v449_v38 = vmul.f32 %v444_v31, %v3233_v32 }
 0x11d   :  { %522 = vrot.lane.b32.xlu0 %v2600_v36, %s2992_s0 }
 0x11e   :  { %2601 = vtanh.f32 %v477_v37  ;;  %453 = vrot.lane.b32.xlu2 %v449_v38, %s2993_s3  ;;  %v2493_v59 = vmul.f32 -1.442695, %v477_v37 }
 0x11f   :  { %2603 = vpow2.f32 %v2492_v58 }
 0x120   :  { %2605 = vpow2.f32 %v2493_v59 }
 0x123   :  { %v446_v44 = vpop.permute.xlu1 %445 }
 0x124   :  { %v2602_v47 = vpop.eup %2601  ;;  %v450_v56 = vmul.f32 %v446_v44, %v3238_v45 }
 0x125   :  { %524 = vrot.lane.b32.xlu1 %v2602_v47, %s2992_s0  ;;  %v2604_v61 = vpop.eup %2603 }
 0x126   :  { %455 = vrot.lane.b32.xlu0 %v450_v56, %s2993_s3  ;;  %v484_v62 = vadd.f32 1.0, %v2604_v61  ;;  %v2606_v0 = vpop.eup %2605 }
 0x127   :  { %v485_v2 = vadd.f32 1.0, %v2606_v0 }
 0x128   :  { %2607 = vrcp.f32 %v484_v62  ;;  %v497_v16 = vand.u32 2147483648, %v484_v62  ;;  %vm491_vm10 = vweird.f32 %v484_v62  ;;  %v495_v17 = vand.u32 2147483647, %v484_v62 }
 0x129   :  { %2609 = vrcp.f32 %v485_v2  ;;  %vm506_vm13 = vweird.f32 %v485_v2  ;;  %v512_v30 = vand.u32 2147483648, %v485_v2  ;;  %v510_v36 = vand.u32 2147483647, %v485_v2 }
 0x12a   :  { %v498_v22 = vor.u32 1.1754944e-38, %v497_v16  ;;  %vm496_vm12 = vcmp.eq.f32.partialorder %v495_v17, 8.507059e+37 }
 0x12b   :  { %v513_v37 = vor.u32 1.1754944e-38, %v512_v30  ;;  %vm511_vm1 = vcmp.eq.f32.partialorder %v510_v36, 8.507059e+37 }
 0x12e   :  { %v2608_v4 = vpop.eup %2607 }
 0x12f   :  { %v487_v8 = vmul.f32 %v2608_v4, %v484_v62  ;;  %v2610_v10 = vpop.eup %2609  ;;  %vm492_vm9 = vweird.f32 %v2608_v4 }
 0x130   :  { %v502_v13 = vmul.f32 %v2610_v10, %v485_v2  ;;  %vm493_vm11 = vmor %vm491_vm10, %vm492_vm9  ;;  %vm507_vm14 = vweird.f32 %v2610_v10 }
 0x131   :  { %v488_v9 = vsub.f32 1.0, %v487_v8  ;;  %vm508_vm15 = vmor %vm506_vm13, %vm507_vm14 }
 0x132   :  { %v503_v15 = vsub.f32 1.0, %v502_v13 }
 0x133   :  { %v489_v12 = vmul.f32 %v2608_v4, %v488_v9 }
 0x134   :  { %v504_v20 = vmul.f32 %v2610_v10, %v503_v15 }
 0x135   :  { %v490_v14 = vadd.f32 %v2608_v4, %v489_v12 }
 0x136   :  { %v505_v33 = vadd.f32 %v2610_v10, %v504_v20 }
 0x137   :  { %v494_v19 = vsel %vm493_vm11, %v2608_v4, %v490_v14 }
 0x138   :  { %v499_v28 = vsel %vm496_vm12, %v498_v22, %v494_v19  ;;  %v509_v38 = vsel %vm508_vm15, %v2610_v10, %v505_v33 }
 0x139   :  { %v514_v39 = vsel %vm511_vm1, %v513_v37, %v509_v38  ;;  %v518_v59 = vmul.f32 0.0, %v499_v28 }
 0x13a   :  { %v519_v8 = vmul.f32 0.0, %v514_v39 }
 0x178   :  { %v454_v18 = vpop.permute.xlu2 %453 }
 0x179   :  { %v3244_v25 = vadd.f32 %v454_v18, %v439_v21  ;;  %v197_v21 = vpop.f32.mrf.mxu0 }
 0x17a   :  { %v198_v22 = vadd.f32 %v197_v21, %v3193_v35 }
 0x17b   :  { %2611 = vtanh.f32 %v3244_v25 }
 0x181   :  { %v2612_v47 = vpop.eup %2611  ;;  %v200_v30 = vpop.f32.mrf.mxu0 }
 0x18f   :  { %v523_v29 = vpop.permute.xlu0 %522 }
 0x190   :  { %v528_v31 = vmul.f32 %v523_v29, %v499_v28 }
 0x192   :  { %532 = vrot.lane.b32.xlu2 %v528_v31, %s2993_s3  ;;  %v201_v31 = vadd.f32 %v200_v30, %v3193_v35 }
 0x197   :  { %v525_v41 = vpop.permute.xlu1 %524 }
 0x198   :  { %v529_v43 = vmul.f32 %v525_v41, %v514_v39  ;;  %v456_v44 = vpop.permute.xlu0 %455 }
 0x199   :  { %v3249_v56 = vadd.f32 %v456_v44, %v440_v42 }
 0x19a   :  { %534 = vrot.lane.b32.xlu1 %v529_v43, %s2993_s3  ;;  %465 = vrot.lane.b32.xlu2 %v2612_v47, %s2992_s0 }
 0x19b   :  { %2613 = vtanh.f32 %v3249_v56 }
 0x1a1   :  { %v2614_v58 = vpop.eup %2613 }
 0x1a2   :  { %467 = vrot.lane.b32.xlu1 %v2614_v58, %s2992_s0 }
 0x1ec   :  { %v533_v61 = vpop.permute.xlu2 %532 }
 0x1ed   :  { %v3255_v62 = vadd.f32 %v533_v61, %v518_v59  ;;  %v293_v61 = vadd.f32 %v3225_v63, %v3229_v11 }
 0x1ef   :  { %2615 = vtanh.f32 %v3255_v62 }
 0x1f4   :  { %v466_v2 = vpop.permute.xlu2 %465 }
 0x1f5   :  { %v2616_v0 = vpop.eup %2615  ;;  %v3260_v4 = vmul.f32 %v466_v2, %v3233_v32 }
 0x1f6   :  { %544 = vrot.lane.b32.xlu0 %v2616_v0, %s2992_s0 }
 0x1fe   :  { %587 = vrot.lane.b32.xlu0 %v3260_v4, %s2993_s3 }
 0x20c   :  { %v535_v9 = vpop.permute.xlu1 %534 }
 0x20d   :  { %v3264_v10 = vadd.f32 %v535_v9, %v519_v8 }
 0x20f   :  { %2617 = vtanh.f32 %v3264_v10 }
 0x214   :  { %v468_v13 = vpop.permute.xlu1 %467 }
 0x215   :  { %v2618_v12 = vpop.eup %2617  ;;  %v3269_v14 = vmul.f32 %v468_v13, %v3238_v45 }
 0x216   :  { %546 = vrot.lane.b32.xlu2 %v2618_v12, %s2992_s0 }
 0x21e   :  { %589 = vrot.lane.b32.xlu2 %v3269_v14, %s2993_s3 }
 0x268   :  { %v545_v32 = vpop.permute.xlu0 %544 }
 0x269   :  { %v3273_v15 = vmul.f32 %v545_v32, %v499_v28  ;;  %v296_v32 = vadd.f32 %v3227_v6, %v3229_v11 }
 0x26b   :  { %620 = vrot.lane.b32.xlu1 %v3273_v15, %s2993_s3 }
 0x270   :  { %v588_v16 = vpop.permute.xlu0 %587  ;;  %v547_v17 = vpop.permute.xlu2 %546 }
 0x271   :  { %v3277_v18 = vmul.f32 %v547_v17, %v514_v39  ;;  %2496 = vmatmul.msk.f32.vlgmr.msrb.gmra.mxu2 %vm125_vm0, %v588_v16 }
 0x272   :  { %1123 = vmatpush.msrb.mxu2 %v3062_v1 }
 0x273   :  { %622 = vrot.lane.b32.xlu0 %v3277_v18, %s2993_s3 }
 0x274   :  { %1124 = vmatpush.msrb.mxu2 %v3065_v3 }
 0x276   :  { %1125 = vmatpush.msrb.mxu2 %v3067_v5 }
 0x278   :  { %v590_v45 = vpop.permute.xlu2 %589  ;;  %1126 = vmatpush.msrb.mxu2 %v3070_v7 }
 0x279   :  { %2497 = vmatmul.msk.f32.gmra.mxu2 %vm125_vm0, %v590_v45 }
 0x2dd   :  { %v621_v19 = vpop.permute.xlu1 %620 }
 0x2de   :  { %2498 = vmatmul.msk.f32.vlgmr.msrb.gmra.mxu3 %vm125_vm0, %v621_v19 }
 0x2df   :  { %1156 = vmatpush.msrb.mxu3 %v3136_v23 }
 0x2e1   :  { %1157 = vmatpush.msrb.mxu3 %v3138_v24 }
 0x2e3   :  { %1158 = vmatpush.msrb.mxu3 %v3147_v26 }
 0x2e5   :  { %v623_v20 = vpop.permute.xlu0 %622  ;;  %1159 = vmatpush.msrb.mxu3 %v3149_v27 }
 0x2e6   :  { %2499 = vmatmul.msk.f32.gmra.mxu3 %vm125_vm0, %v623_v20 }
 0x2f4   :  { %v612_v28 = vpop.f32.mrf.mxu2 }
 0x2f5   :  { %v654_v29 = vadd.f32 %v612_v28, %v198_v22 }
 0x2f7   :  { %2619 = vtanh.f32 %v654_v29  ;;  %v2500_v39 = vmul.f32 -1.442695, %v654_v29 }
 0x2fc   :  { %v615_v33 = vpop.f32.mrf.mxu2 }
 0x2fd   :  { %v2620_v36 = vpop.eup %2619  ;;  %v655_v37 = vadd.f32 %v615_v33, %v201_v31 }
 0x2fe   :  { %700 = vrot.lane.b32.xlu1 %v2620_v36, %s2992_s0 }
 0x2ff   :  { %2621 = vtanh.f32 %v655_v37  ;;  %v2501_v41 = vmul.f32 -1.442695, %v655_v37 }
 0x300   :  { %2623 = vpow2.f32 %v2500_v39 }
 0x301   :  { %2625 = vpow2.f32 %v2501_v41 }
 0x305   :  { %v2622_v38 = vpop.eup %2621 }
 0x306   :  { %702 = vrot.lane.b32.xlu0 %v2622_v38, %s2992_s0  ;;  %v2624_v42 = vpop.eup %2623 }
 0x307   :  { %v662_v43 = vadd.f32 1.0, %v2624_v42  ;;  %v2626_v44 = vpop.eup %2625 }
 0x308   :  { %v663_v47 = vadd.f32 1.0, %v2626_v44 }
 0x309   :  { %2627 = vrcp.f32 %v662_v43  ;;  %v675_v21 = vand.u32 2147483648, %v662_v43  ;;  %vm669_vm3 = vweird.f32 %v662_v43  ;;  %v673_v63 = vand.u32 2147483647, %v662_v43 }
 0x30a   :  { %2629 = vrcp.f32 %v663_v47  ;;  %v690_v37 = vand.u32 2147483648, %v663_v47  ;;  %vm684_vm7 = vweird.f32 %v663_v47  ;;  %v688_v38 = vand.u32 2147483647, %v663_v47 }
 0x30b   :  { %v676_v29 = vor.u32 1.1754944e-38, %v675_v21  ;;  %vm674_vm5 = vcmp.eq.f32.partialorder %v673_v63, 8.507059e+37 }
 0x30c   :  { %v691_v41 = vor.u32 1.1754944e-38, %v690_v37  ;;  %vm689_vm9 = vcmp.eq.f32.partialorder %v688_v38, 8.507059e+37 }
 0x30f   :  { %v2628_v58 = vpop.eup %2627 }
 0x310   :  { %v665_v59 = vmul.f32 %v2628_v58, %v662_v43  ;;  %v2630_v8 = vpop.eup %2629  ;;  %vm670_vm2 = vweird.f32 %v2628_v58 }
 0x311   :  { %v680_v13 = vmul.f32 %v2630_v8, %v663_v47  ;;  %vm671_vm4 = vmor %vm669_vm3, %vm670_vm2  ;;  %vm685_vm6 = vweird.f32 %v2630_v8 }
 0x312   :  { %v666_v2 = vsub.f32 1.0, %v665_v59  ;;  %vm686_vm8 = vmor %vm684_vm7, %vm685_vm6 }
 0x313   :  { %v681_v45 = vsub.f32 1.0, %v680_v13 }
 0x314   :  { %v667_v12 = vmul.f32 %v2628_v58, %v666_v2 }
 0x315   :  { %v682_v28 = vmul.f32 %v2630_v8, %v681_v45 }
 0x316   :  { %v668_v17 = vadd.f32 %v2628_v58, %v667_v12 }
 0x317   :  { %v683_v33 = vadd.f32 %v2630_v8, %v682_v28 }
 0x318   :  { %v672_v22 = vsel %vm671_vm4, %v2628_v58, %v668_v17 }
 0x319   :  { %v3302_v31 = vsel %vm674_vm5, %v676_v29, %v672_v22  ;;  %v687_v39 = vsel %vm686_vm8, %v2630_v8, %v683_v33 }
 0x31a   :  { %v3307_v43 = vsel %vm689_vm9, %v691_v41, %v687_v39 }
 0x361   :  { %v645_v0 = vpop.f32.mrf.mxu3 }
 0x362   :  { %v733_v9 = vadd.f32 %v645_v0, %v293_v61 }
 0x364   :  { %2631 = vtanh.f32 %v733_v9  ;;  %v2502_v58 = vmul.f32 -1.442695, %v733_v9 }
 0x369   :  { %v648_v16 = vpop.f32.mrf.mxu3 }
 0x36a   :  { %v2632_v19 = vpop.eup %2631  ;;  %v734_v20 = vadd.f32 %v648_v16, %v296_v32 }
 0x36b   :  { %779 = vrot.lane.b32.xlu2 %v2632_v19, %s2992_s0 }
 0x36c   :  { %2633 = vtanh.f32 %v734_v20  ;;  %v2503_v47 = vmul.f32 -1.442695, %v734_v20  ;;  %v696_v20 = vmul.f32 %v3302_v31, %v3244_v25 }
 0x36d   :  { %2635 = vpow2.f32 %v2502_v58 }
 0x370   :  { %v701_v30 = vpop.permute.xlu1 %700 }
 0x371   :  { %v706_v6 = vmul.f32 %v701_v30, %v3302_v31 }
 0x372   :  { %v2634_v36 = vpop.eup %2633 }
 0x373   :  { %710 = vrot.lane.b32.xlu2 %v706_v6, %s2993_s3  ;;  %781 = vrot.lane.b32.xlu1 %v2634_v36, %s2992_s0  ;;  %v2636_v59 = vpop.eup %2635 }
 0x374   :  { %v741_v61 = vadd.f32 1.0, %v2636_v59 }
 0x376   :  { %2637 = vrcp.f32 %v741_v61  ;;  %v754_v32 = vand.u32 2147483648, %v741_v61  ;;  %vm748_vm11 = vweird.f32 %v741_v61  ;;  %v752_v16 = vand.u32 2147483647, %v741_v61 }
 0x377   :  { %2639 = vpow2.f32 %v2503_v47 }
 0x378   :  { %v703_v42 = vpop.permute.xlu0 %702  ;;  %v755_v19 = vor.u32 1.1754944e-38, %v754_v32  ;;  %vm753_vm13 = vcmp.eq.f32.partialorder %v752_v16, 8.507059e+37 }
 0x379   :  { %v707_v44 = vmul.f32 %v703_v42, %v3307_v43 }
 0x37b   :  { %712 = vrot.lane.b32.xlu1 %v707_v44, %s2993_s3 }
 0x37c   :  { %v2638_v0 = vpop.eup %2637 }
 0x37d   :  { %v744_v2 = vmul.f32 %v2638_v0, %v741_v61  ;;  %vm749_vm10 = vweird.f32 %v2638_v0  ;;  %v2640_v17 = vpop.eup %2639  ;;  %v697_v61 = vmul.f32 %v3307_v43, %v3249_v56 }
 0x37e   :  { %vm750_vm12 = vmor %vm748_vm11, %vm749_vm10  ;;  %v742_v9 = vadd.f32 1.0, %v2640_v17 }
 0x37f   :  { %v745_v12 = vsub.f32 1.0, %v744_v2 }
 0x380   :  { %2641 = vrcp.f32 %v742_v9  ;;  %v769_v39 = vand.u32 2147483648, %v742_v9  ;;  %vm763_vm15 = vweird.f32 %v742_v9  ;;  %v767_v41 = vand.u32 2147483647, %v742_v9 }
 0x381   :  { %v746_v13 = vmul.f32 %v2638_v0, %v745_v12 }
 0x382   :  { %v770_v25 = vor.u32 1.1754944e-38, %v769_v39  ;;  %vm768_vm2 = vcmp.eq.f32.partialorder %v767_v41, 8.507059e+37 }
 0x383   :  { %v747_v8 = vadd.f32 %v2638_v0, %v746_v13 }
 0x385   :  { %v751_v45 = vsel %vm750_vm12, %v2638_v0, %v747_v8 }
 0x386   :  { %v756_v21 = vsel %vm753_vm13, %v755_v19, %v751_v45  ;;  %v2642_v30 = vpop.eup %2641 }
 0x387   :  { %v759_v6 = vmul.f32 %v2642_v30, %v742_v9  ;;  %vm764_vm14 = vweird.f32 %v2642_v30  ;;  %v775_v47 = vmul.f32 %v756_v21, %v3255_v62 }
 0x388   :  { %vm765_vm1 = vmor %vm763_vm15, %vm764_vm14 }
 0x389   :  { %v760_v36 = vsub.f32 1.0, %v759_v6 }
 0x38b   :  { %v761_v37 = vmul.f32 %v2642_v30, %v760_v36 }
 0x38d   :  { %v762_v38 = vadd.f32 %v2642_v30, %v761_v37 }
 0x38f   :  { %v766_v42 = vsel %vm765_vm1, %v2642_v30, %v762_v38 }
 0x390   :  { %v771_v58 = vsel %vm768_vm2, %v770_v25, %v766_v42  ;;  %v287_v42 = vadd.f32 %v3221_v57, %v3229_v11 }
 0x391   :  { %v776_v32 = vmul.f32 %v771_v58, %v3264_v10 }
 0x3c5   :  { %v780_v63 = vpop.permute.xlu2 %779 }
 0x3c6   :  { %v785_v22 = vmul.f32 %v780_v63, %v756_v21 }
 0x3c8   :  { %789 = vrot.lane.b32.xlu0 %v785_v22, %s2993_s3 }
 0x3cd   :  { %v711_v28 = vpop.permute.xlu2 %710 }
 0x3ce   :  { %v3314_v29 = vadd.f32 %v711_v28, %v696_v20 }
 0x3d0   :  { %2643 = vtanh.f32 %v3314_v29 }
 0x3d6   :  { %v2644_v33 = vpop.eup %2643 }
 0x3d7   :  { %722 = vrot.lane.b32.xlu0 %v2644_v33, %s2992_s0 }
 0x3e5   :  { %v782_v44 = vpop.permute.xlu1 %781 }
 0x3e6   :  { %v786_v59 = vmul.f32 %v782_v44, %v771_v58 }
 0x3e8   :  { %791 = vrot.lane.b32.xlu2 %v786_v59, %s2993_s3 }
 0x3ed   :  { %v713_v0 = vpop.permute.xlu1 %712 }
 0x3ee   :  { %v3321_v2 = vadd.f32 %v713_v0, %v697_v61 }
 0x3f0   :  { %2645 = vtanh.f32 %v3321_v2 }
 0x3f6   :  { %v2646_v12 = vpop.eup %2645 }
 0x3f7   :  { %724 = vrot.lane.b32.xlu2 %v2646_v12, %s2992_s0 }
 0x43a   :  { %v790_v13 = vpop.permute.xlu0 %789 }
 0x43b   :  { %v3326_v8 = vadd.f32 %v790_v13, %v775_v47 }
 0x43d   :  { %2647 = vtanh.f32 %v3326_v8 }
 0x442   :  { %v792_v16 = vpop.permute.xlu2 %791 }
 0x443   :  { %v2648_v17 = vpop.eup %2647  ;;  %v3330_v56 = vadd.f32 %v792_v16, %v776_v32 }
 0x444   :  { %801 = vrot.lane.b32.xlu1 %v2648_v17, %s2992_s0 }
 0x445   :  { %2649 = vtanh.f32 %v3330_v56 }
 0x449   :  { %v723_v45 = vpop.permute.xlu0 %722 }
 0x44a   :  { %v3335_v19 = vmul.f32 %v723_v45, %v3302_v31 }
 0x44b   :  { %v2650_v62 = vpop.eup %2649 }
 0x44c   :  { %845 = vrot.lane.b32.xlu1 %v3335_v19, %s2993_s3  ;;  %803 = vrot.lane.b32.xlu0 %v2650_v62, %s2992_s0 }
 0x451   :  { %v725_v9 = vpop.permute.xlu2 %724 }
 0x452   :  { %v3341_v10 = vmul.f32 %v725_v9, %v3307_v43 }
 0x454   :  { %847 = vrot.lane.b32.xlu0 %v3341_v10, %s2993_s3 }
 0x4b6   :  { %v802_v63 = vpop.permute.xlu1 %801 }
 0x4b7   :  { %v3345_v22 = vmul.f32 %v802_v63, %v756_v21 }
 0x4b9   :  { %878 = vrot.lane.b32.xlu2 %v3345_v22, %s2993_s3 }
 0x4be   :  { %v846_v31 = vpop.permute.xlu1 %845  ;;  %v804_v20 = vpop.permute.xlu0 %803 }
 0x4bf   :  { %v3349_v28 = vmul.f32 %v804_v20, %v771_v58  ;;  %2508 = vmatmul.msk.f32.vlgmr.msra.gmra.mxu2 %vm125_vm0, %v846_v31  ;;  %v290_v20 = vadd.f32 %v3223_v60, %v3229_v11 }
 0x4c0   :  { %1381 = vmatpush.msra.mxu2 %v3062_v1 }
 0x4c1   :  { %880 = vrot.lane.b32.xlu1 %v3349_v28, %s2993_s3 }
 0x4c2   :  { %1382 = vmatpush.msra.mxu2 %v3065_v3  ;;  %v203_v3 = vpop.f32.mrf.mxu0 }
 0x4c4   :  { %1383 = vmatpush.msra.mxu2 %v3067_v5  ;;  %v204_v5 = vadd.f32 %v203_v3, %v3193_v35 }
 0x4c6   :  { %v848_v43 = vpop.permute.xlu0 %847  ;;  %1384 = vmatpush.msra.mxu2 %v3070_v7 }
 0x4c7   :  { %2509 = vmatmul.msk.f32.gmra.mxu2 %vm125_vm0, %v848_v43 }
 0x4ca   :  { %v206_v6 = vpop.f32.mrf.mxu0 }
 0x4cb   :  { %v207_v33 = vadd.f32 %v206_v6, %v3193_v35 }
 0x513   :  { %v879_v21 = vpop.permute.xlu2 %878 }
 0x514   :  { %2510 = vmatmul.msk.f32.vlgmr.msra.gmra.mxu3 %vm125_vm0, %v879_v21 }
 0x515   :  { %1414 = vmatpush.msra.mxu3 %v3136_v23 }
 0x517   :  { %1415 = vmatpush.msra.mxu3 %v3138_v24 }
 0x519   :  { %1416 = vmatpush.msra.mxu3 %v3147_v26 }
 0x51b   :  { %1417 = vmatpush.msra.mxu3 %v3149_v27 }
 0x533   :  { %v881_v1 = vpop.permute.xlu1 %880 }
 0x534   :  { %2511 = vmatmul.msk.f32.gmra.mxu3 %vm125_vm0, %v881_v1 }
 0x542   :  { %v870_v7 = vpop.f32.mrf.mxu2 }
 0x543   :  { %v912_v30 = vadd.f32 %v870_v7, %v204_v5 }
 0x545   :  { %2651 = vtanh.f32 %v912_v30  ;;  %v2512_v26 = vmul.f32 -1.442695, %v912_v30 }
 0x54a   :  { %v873_v36 = vpop.f32.mrf.mxu2 }
 0x54b   :  { %v2652_v23 = vpop.eup %2651  ;;  %v913_v37 = vadd.f32 %v873_v36, %v207_v33 }
 0x54c   :  { %958 = vrot.lane.b32.xlu2 %v2652_v23, %s2992_s0 }
 0x54d   :  { %2653 = vtanh.f32 %v913_v37  ;;  %v2513_v59 = vmul.f32 -1.442695, %v913_v37 }
 0x54e   :  { %2655 = vpow2.f32 %v2512_v26 }
 0x553   :  { %v2654_v24 = vpop.eup %2653 }
 0x554   :  { %960 = vrot.lane.b32.xlu1 %v2654_v24, %s2992_s0  ;;  %v2656_v27 = vpop.eup %2655 }
 0x555   :  { %v920_v38 = vadd.f32 1.0, %v2656_v27 }
 0x557   :  { %2657 = vrcp.f32 %v920_v38  ;;  %v933_v47 = vand.u32 2147483648, %v920_v38  ;;  %vm927_vm4 = vweird.f32 %v920_v38  ;;  %v931_v13 = vand.u32 2147483647, %v920_v38 }
 0x559   :  { %v934_v17 = vor.u32 1.1754944e-38, %v933_v47  ;;  %vm932_vm6 = vcmp.eq.f32.partialorder %v931_v13, 8.507059e+37 }
 0x55d   :  { %v2658_v39 = vpop.eup %2657 }
 0x55e   :  { %v923_v41 = vmul.f32 %v2658_v39, %v920_v38  ;;  %vm928_vm3 = vweird.f32 %v2658_v39 }
 0x55f   :  { %vm929_vm5 = vmor %vm927_vm4, %vm928_vm3 }
 0x560   :  { %v924_v44 = vsub.f32 1.0, %v923_v41 }
 0x562   :  { %v925_v61 = vmul.f32 %v2658_v39, %v924_v44 }
 0x564   :  { %v926_v0 = vadd.f32 %v2658_v39, %v925_v61 }
 0x566   :  { %v930_v16 = vsel %vm929_vm5, %v2658_v39, %v926_v0 }
 0x567   :  { %v3372_v45 = vsel %vm932_vm6, %v934_v17, %v930_v16 }
 0x597   :  { %v903_v25 = vpop.f32.mrf.mxu3 }
 0x598   :  { %v991_v58 = vadd.f32 %v903_v25, %v287_v42 }
 0x59a   :  { %2659 = vtanh.f32 %v991_v58  ;;  %v2514_v24 = vmul.f32 -1.442695, %v991_v58 }
 0x59b   :  { %2661 = vpow2.f32 %v2513_v59 }
 0x5a0   :  { %v2660_v12 = vpop.eup %2659 }
 0x5a1   :  { %1037 = vrot.lane.b32.xlu0 %v2660_v12, %s2992_s0  ;;  %v2662_v32 = vpop.eup %2661 }
 0x5a2   :  { %v921_v57 = vadd.f32 1.0, %v2662_v32 }
 0x5a4   :  { %2663 = vrcp.f32 %v921_v57  ;;  %v948_v30 = vand.u32 2147483648, %v921_v57  ;;  %vm942_vm8 = vweird.f32 %v921_v57  ;;  %v946_v6 = vand.u32 2147483647, %v921_v57 }
 0x5a6   :  { %v959_v62 = vpop.permute.xlu2 %958  ;;  %v949_v36 = vor.u32 1.1754944e-38, %v948_v30  ;;  %vm947_vm10 = vcmp.eq.f32.partialorder %v946_v6, 8.507059e+37 }
 0x5a7   :  { %v964_v9 = vmul.f32 %v959_v62, %v3372_v45 }
 0x5a9   :  { %968 = vrot.lane.b32.xlu0 %v964_v9, %s2993_s3 }
 0x5aa   :  { %v2664_v63 = vpop.eup %2663 }
 0x5ab   :  { %v938_v31 = vmul.f32 %v2664_v63, %v921_v57  ;;  %vm943_vm7 = vweird.f32 %v2664_v63 }
 0x5ac   :  { %vm944_vm9 = vmor %vm942_vm8, %vm943_vm7 }
 0x5ad   :  { %v939_v21 = vsub.f32 1.0, %v938_v31 }
 0x5af   :  { %v940_v3 = vmul.f32 %v2664_v63, %v939_v21 }
 0x5b1   :  { %v941_v5 = vadd.f32 %v2664_v63, %v940_v3 }
 0x5b3   :  { %v945_v33 = vsel %vm944_vm9, %v2664_v63, %v941_v5 }
 0x5b4   :  { %v3379_v37 = vsel %vm947_vm10, %v949_v36, %v945_v33 }
 0x5b5   :  { %v955_v33 = vmul.f32 %v3379_v37, %v3321_v2 }
 0x5b7   :  { %v906_v43 = vpop.f32.mrf.mxu3 }
 0x5b8   :  { %v992_v1 = vadd.f32 %v906_v43, %v290_v20 }
 0x5ba   :  { %2665 = vtanh.f32 %v992_v1  ;;  %v2515_v26 = vmul.f32 -1.442695, %v992_v1  ;;  %v954_v1 = vmul.f32 %v3372_v45, %v3314_v29 }
 0x5bb   :  { %2667 = vpow2.f32 %v2514_v24 }
 0x5bc   :  { %2669 = vpow2.f32 %v2515_v26 }
 0x5c0   :  { %v2666_v7 = vpop.eup %2665 }
 0x5c1   :  { %1039 = vrot.lane.b32.xlu2 %v2666_v7, %s2992_s0  ;;  %v2668_v27 = vpop.eup %2667 }
 0x5c2   :  { %v999_v38 = vadd.f32 1.0, %v2668_v27  ;;  %v2670_v39 = vpop.eup %2669 }
 0x5c3   :  { %v1000_v41 = vadd.f32 1.0, %v2670_v39 }
 0x5c4   :  { %2671 = vrcp.f32 %v999_v38  ;;  %v1012_v13 = vand.u32 2147483648, %v999_v38  ;;  %vm1006_vm12 = vweird.f32 %v999_v38  ;;  %v1010_v58 = vand.u32 2147483647, %v999_v38 }
 0x5c5   :  { %2673 = vrcp.f32 %v1000_v41  ;;  %v1027_v31 = vand.u32 2147483648, %v1000_v41  ;;  %vm1021_vm1 = vweird.f32 %v1000_v41  ;;  %v1025_v20 = vand.u32 2147483647, %v1000_v41 }
 0x5c6   :  { %v961_v23 = vpop.permute.xlu1 %960  ;;  %v1013_v17 = vor.u32 1.1754944e-38, %v1012_v13  ;;  %vm1011_vm14 = vcmp.eq.f32.partialorder %v1010_v58, 8.507059e+37 }
 0x5c7   :  { %v965_v60 = vmul.f32 %v961_v23, %v3379_v37  ;;  %v1028_v21 = vor.u32 1.1754944e-38, %v1027_v31  ;;  %vm1026_vm3 = vcmp.eq.f32.partialorder %v1025_v20, 8.507059e+37  ;;  %v209_v31 = vpop.f32.mrf.mxu0 }
 0x5c8   :  { %v210_v20 = vadd.f32 %v209_v31, %v3193_v35 }
 0x5c9   :  { %970 = vrot.lane.b32.xlu2 %v965_v60, %s2993_s3 }
 0x5ca   :  { %v2672_v42 = vpop.eup %2671 }
 0x5cb   :  { %v1002_v25 = vmul.f32 %v2672_v42, %v999_v38  ;;  %v2674_v59 = vpop.eup %2673  ;;  %vm1007_vm11 = vweird.f32 %v2672_v42 }
 0x5cc   :  { %v1017_v0 = vmul.f32 %v2674_v59, %v1000_v41  ;;  %vm1008_vm13 = vmor %vm1006_vm12, %vm1007_vm11  ;;  %vm1022_vm15 = vweird.f32 %v2674_v59 }
 0x5cd   :  { %v1003_v44 = vsub.f32 1.0, %v1002_v25  ;;  %vm1023_vm2 = vmor %vm1021_vm1, %vm1022_vm15 }
 0x5ce   :  { %v1018_v47 = vsub.f32 1.0, %v1017_v0  ;;  %v3422_v0 = vld [vmem:[#allocation7 + $0x18] sm:$0xff] }
 0x5cf   :  { %v1004_v61 = vmul.f32 %v2672_v42, %v1003_v44 }
 0x5d0   :  { %v1019_v16 = vmul.f32 %v2674_v59, %v1018_v47  ;;  %v3431_v47 = vld [vmem:[#allocation7] sm:$0xff] }
 0x5d1   :  { %v1005_v12 = vadd.f32 %v2672_v42, %v1004_v61 }
 0x5d2   :  { %v1020_v63 = vadd.f32 %v2674_v59, %v1019_v16 }
 0x5d3   :  { %v1009_v32 = vsel %vm1008_vm13, %v2672_v42, %v1005_v12  ;;  %v3425_v12 = vld [vmem:[#allocation7 + $0x10] sm:$0xff] }
 0x5d4   :  { %v1014_v62 = vsel %vm1011_vm14, %v1013_v17, %v1009_v32  ;;  %v1024_v43 = vsel %vm1023_vm2, %v2674_v59, %v1020_v63  ;;  %v3440_v17 = vld [vmem:[#allocation9 + $0x18] sm:$0xff]  ;;  %v3449_v63 = vld [vmem:[#allocation9] sm:$0xff] }
 0x5d5   :  { %v1029_v5 = vsel %vm1026_vm3, %v1028_v21, %v1024_v43  ;;  %v1033_v24 = vmul.f32 %v1014_v62, %v3326_v8 }
 0x5d6   :  { %v1034_v2 = vmul.f32 %v1029_v5, %v3330_v56 }
 0x613   :  { %v1038_v57 = vpop.permute.xlu0 %1037 }
 0x614   :  { %v1043_v9 = vmul.f32 %v1038_v57, %v1014_v62  ;;  %v3443_v57 = vld [vmem:[#allocation9 + $0x10] sm:$0xff] }
 0x616   :  { %1047 = vrot.lane.b32.xlu1 %v1043_v9, %s2993_s3 }
 0x61b   :  { %v969_v3 = vpop.permute.xlu0 %968  ;;  %v1040_v7 = vpop.permute.xlu2 %1039 }
 0x61c   :  { %v3386_v30 = vadd.f32 %v969_v3, %v954_v1  ;;  %v1044_v6 = vmul.f32 %v1040_v7, %v1029_v5  ;;  %v212_v3 = vpop.f32.mrf.mxu0 }
 0x61e   :  { %2675 = vtanh.f32 %v3386_v30  ;;  %1049 = vrot.lane.b32.xlu0 %v1044_v6, %s2993_s3 }
 0x623   :  { %v971_v36 = vpop.permute.xlu2 %970 }
 0x624   :  { %v2676_v23 = vpop.eup %2675  ;;  %v3392_v60 = vadd.f32 %v971_v36, %v955_v33 }
 0x625   :  { %980 = vrot.lane.b32.xlu1 %v2676_v23, %s2992_s0 }
 0x626   :  { %2677 = vtanh.f32 %v3392_v60 }
 0x62c   :  { %v2678_v29 = vpop.eup %2677 }
 0x62d   :  { %982 = vrot.lane.b32.xlu0 %v2678_v29, %s2992_s0 }
 0x688   :  { %v1048_v26 = vpop.permute.xlu1 %1047 }
 0x689   :  { %v3398_v27 = vadd.f32 %v1048_v26, %v1033_v24 }
 0x68b   :  { %2679 = vtanh.f32 %v3398_v27 }
 0x690   :  { %v1050_v38 = vpop.permute.xlu0 %1049 }
 0x691   :  { %v2680_v39 = vpop.eup %2679  ;;  %v3402_v41 = vadd.f32 %v1050_v38, %v1034_v2 }
 0x692   :  { %1059 = vrot.lane.b32.xlu2 %v2680_v39, %s2992_s0 }
 0x693   :  { %2681 = vtanh.f32 %v3402_v41 }
 0x697   :  { %v981_v42 = vpop.permute.xlu1 %980 }
 0x698   :  { %v3407_v25 = vmul.f32 %v981_v42, %v3372_v45  ;;  %v281_v42 = vadd.f32 %v3217_v54, %v3229_v11 }
 0x699   :  { %v2682_v8 = vpop.eup %2681 }
 0x69a   :  { %1103 = vrot.lane.b32.xlu2 %v3407_v25, %s2993_s3  ;;  %1061 = vrot.lane.b32.xlu1 %v2682_v8, %s2992_s0 }
 0x69f   :  { %v983_v44 = vpop.permute.xlu0 %982 }
 0x6a0   :  { %v3413_v56 = vmul.f32 %v983_v44, %v3379_v37  ;;  %v3428_v37 = vld [vmem:[#allocation7 + $0x8] sm:$0xff] }
 0x6a2   :  { %1105 = vrot.lane.b32.xlu1 %v3413_v56, %s2993_s3 }
 0x6ec   :  { %v1060_v59 = vpop.permute.xlu2 %1059 }
 0x6ed   :  { %v3417_v61 = vmul.f32 %v1060_v59, %v1014_v62  ;;  %v3446_v62 = vld [vmem:[#allocation9 + $0x8] sm:$0xff] }
 0x6ef   :  { %1136 = vrot.lane.b32.xlu0 %v3417_v61, %s2993_s3 }
 0x6f4   :  { %v1104_v45 = vpop.permute.xlu2 %1103 }
 0x6f5   :  { %2520 = vmatmul.msk.f32.vlgmr.msrb.gmra.mxu2 %vm125_vm0, %v1104_v45 }
 0x6f6   :  { %1613 = vmatpush.msrb.mxu2 %v3422_v0 }
 0x6f8   :  { %1614 = vmatpush.msrb.mxu2 %v3425_v12 }
 0x6fa   :  { %1615 = vmatpush.msrb.mxu2 %v3428_v37 }
 0x6fc   :  { %1616 = vmatpush.msrb.mxu2 %v3431_v47 }
 0x70c   :  { %v1062_v13 = vpop.permute.xlu1 %1061 }
 0x70d   :  { %v3434_v58 = vmul.f32 %v1062_v13, %v1029_v5  ;;  %v213_v5 = vadd.f32 %v212_v3, %v3193_v35 }
 0x70f   :  { %1138 = vrot.lane.b32.xlu2 %v3434_v58, %s2993_s3 }
 0x714   :  { %v1106_v32 = vpop.permute.xlu1 %1105 }
 0x715   :  { %2521 = vmatmul.msk.f32.gmra.mxu2 %vm125_vm0, %v1106_v32 }
 0x761   :  { %v1137_v16 = vpop.permute.xlu0 %1136 }
 0x762   :  { %2522 = vmatmul.msk.f32.vlgmr.msrb.gmra.mxu3 %vm125_vm0, %v1137_v16  ;;  %v284_v16 = vadd.f32 %v3219_v55, %v3229_v11 }
 0x763   :  { %1646 = vmatpush.msrb.mxu3 %v3440_v17 }
 0x765   :  { %1647 = vmatpush.msrb.mxu3 %v3443_v57 }
 0x767   :  { %1648 = vmatpush.msrb.mxu3 %v3446_v62 }
 0x769   :  { %v1139_v9 = vpop.permute.xlu2 %1138  ;;  %1649 = vmatpush.msrb.mxu3 %v3449_v63 }
 0x76a   :  { %2523 = vmatmul.msk.f32.gmra.mxu3 %vm125_vm0, %v1139_v9 }
 0x778   :  { %v1128_v43 = vpop.f32.mrf.mxu2 }
 0x779   :  { %v1170_v21 = vadd.f32 %v1128_v43, %v210_v20 }
 0x77b   :  { %2683 = vtanh.f32 %v1170_v21  ;;  %v2524_v36 = vmul.f32 -1.442695, %v1170_v21 }
 0x781   :  { %v2684_v1 = vpop.eup %2683 }
 0x782   :  { %1216 = vrot.lane.b32.xlu0 %v2684_v1, %s2992_s0 }
 0x798   :  { %v1131_v7 = vpop.f32.mrf.mxu2 }
 0x799   :  { %v1171_v6 = vadd.f32 %v1131_v7, %v213_v5 }
 0x79b   :  { %2685 = vtanh.f32 %v1171_v6  ;;  %v2525_v23 = vmul.f32 -1.442695, %v1171_v6 }
 0x79c   :  { %2687 = vpow2.f32 %v2524_v36 }
 0x79d   :  { %2689 = vpow2.f32 %v2525_v23 }
 0x7a1   :  { %v2686_v33 = vpop.eup %2685 }
 0x7a2   :  { %1218 = vrot.lane.b32.xlu2 %v2686_v33, %s2992_s0  ;;  %v2688_v29 = vpop.eup %2687 }
 0x7a3   :  { %v1178_v24 = vadd.f32 1.0, %v2688_v29  ;;  %v2690_v26 = vpop.eup %2689 }
 0x7a4   :  { %v1179_v2 = vadd.f32 1.0, %v2690_v26 }
 0x7a5   :  { %2691 = vrcp.f32 %v1178_v24  ;;  %v1191_v1 = vand.u32 2147483648, %v1178_v24  ;;  %vm1185_vm5 = vweird.f32 %v1178_v24  ;;  %v1189_v54 = vand.u32 2147483647, %v1178_v24 }
 0x7a6   :  { %2693 = vrcp.f32 %v1179_v2  ;;  %v1206_v29 = vand.u32 2147483648, %v1179_v2  ;;  %vm1200_vm9 = vweird.f32 %v1179_v2 }
 0x7a7   :  { %v1192_v7 = vor.u32 1.1754944e-38, %v1191_v1  ;;  %vm1190_vm7 = vcmp.eq.f32.partialorder %v1189_v54, 8.507059e+37 }
 0x7ab   :  { %v2692_v38 = vpop.eup %2691 }
 0x7ac   :  { %v1181_v39 = vmul.f32 %v2692_v38, %v1178_v24  ;;  %v2694_v59 = vpop.eup %2693  ;;  %vm1186_vm4 = vweird.f32 %v2692_v38  ;;  %v1204_v24 = vand.u32 2147483647, %v1179_v2 }
 0x7ad   :  { %v1196_v32 = vmul.f32 %v2694_v59, %v1179_v2  ;;  %vm1187_vm6 = vmor %vm1185_vm5, %vm1186_vm4  ;;  %vm1201_vm8 = vweird.f32 %v2694_v59 }
 0x7ae   :  { %v1182_v44 = vsub.f32 1.0, %v1181_v39  ;;  %vm1202_vm10 = vmor %vm1200_vm9, %vm1201_vm8  ;;  %vm1205_vm11 = vcmp.eq.f32.partialorder %v1204_v24, 8.507059e+37 }
 0x7af   :  { %v1197_v20 = vsub.f32 1.0, %v1196_v32 }
 0x7b0   :  { %v1183_v13 = vmul.f32 %v2692_v38, %v1182_v44 }
 0x7b1   :  { %v1198_v5 = vmul.f32 %v2694_v59, %v1197_v20 }
 0x7b2   :  { %v1184_v31 = vadd.f32 %v2692_v38, %v1183_v13 }
 0x7b3   :  { %v1199_v36 = vadd.f32 %v2694_v59, %v1198_v5 }
 0x7b4   :  { %v1188_v3 = vsel %vm1187_vm6, %v2692_v38, %v1184_v31  ;;  %v1207_v38 = vor.u32 1.1754944e-38, %v1206_v29 }
 0x7b5   :  { %v3462_v33 = vsel %vm1190_vm7, %v1192_v7, %v1188_v3  ;;  %v1203_v26 = vsel %vm1202_vm10, %v2694_v59, %v1199_v36 }
 0x7b6   :  { %v3467_v39 = vsel %vm1205_vm11, %v1207_v38, %v1203_v26 }
 0x7e5   :  { %v1161_v8 = vpop.f32.mrf.mxu3 }
 0x7e6   :  { %v1249_v45 = vadd.f32 %v1161_v8, %v281_v42 }
 0x7e8   :  { %2695 = vtanh.f32 %v1249_v45  ;;  %v2526_v44 = vmul.f32 -1.442695, %v1249_v45 }
 0x7ed   :  { %v1164_v9 = vpop.f32.mrf.mxu3 }
 0x7ee   :  { %v2696_v43 = vpop.eup %2695  ;;  %v1250_v21 = vadd.f32 %v1164_v9, %v284_v16 }
 0x7ef   :  { %1295 = vrot.lane.b32.xlu1 %v2696_v43, %s2992_s0 }
 0x7f0   :  { %2697 = vtanh.f32 %v1250_v21  ;;  %v2527_v13 = vmul.f32 -1.442695, %v1250_v21 }
 0x7f1   :  { %2699 = vpow2.f32 %v2526_v44  ;;  %v1212_v44 = vmul.f32 %v3462_v33, %v3386_v30 }
 0x7f2   :  { %2701 = vpow2.f32 %v2527_v13 }
 0x7f4   :  { %v1217_v6 = vpop.permute.xlu0 %1216 }
 0x7f5   :  { %v1222_v55 = vmul.f32 %v1217_v6, %v3462_v33 }
 0x7f6   :  { %v2698_v23 = vpop.eup %2697 }
 0x7f7   :  { %1226 = vrot.lane.b32.xlu1 %v1222_v55, %s2993_s3  ;;  %1297 = vrot.lane.b32.xlu0 %v2698_v23, %s2992_s0  ;;  %v2700_v32 = vpop.eup %2699 }
 0x7f8   :  { %v1257_v16 = vadd.f32 1.0, %v2700_v32  ;;  %v2702_v9 = vpop.eup %2701 }
 0x7f9   :  { %v1258_v2 = vadd.f32 1.0, %v2702_v9 }
 0x7fa   :  { %2703 = vrcp.f32 %v1257_v16  ;;  %v1270_v7 = vand.u32 2147483648, %v1257_v16  ;;  %vm1264_vm13 = vweird.f32 %v1257_v16  ;;  %v1268_v45 = vand.u32 2147483647, %v1257_v16 }
 0x7fb   :  { %2705 = vrcp.f32 %v1258_v2  ;;  %v1285_v26 = vand.u32 2147483648, %v1258_v2  ;;  %vm1279_vm2 = vweird.f32 %v1258_v2  ;;  %v1283_v38 = vand.u32 2147483647, %v1258_v2 }
 0x7fc   :  { %v1219_v42 = vpop.permute.xlu2 %1218  ;;  %v1271_v55 = vor.u32 1.1754944e-38, %v1270_v7  ;;  %vm1269_vm15 = vcmp.eq.f32.partialorder %v1268_v45, 8.507059e+37 }
 0x7fd   :  { %v1223_v8 = vmul.f32 %v1219_v42, %v3467_v39  ;;  %vm1284_vm4 = vcmp.eq.f32.partialorder %v1283_v38, 8.507059e+37 }
 0x7ff   :  { %1228 = vrot.lane.b32.xlu0 %v1223_v8, %s2993_s3  ;;  %v1286_v8 = vor.u32 1.1754944e-38, %v1285_v26 }
 0x800   :  { %v2704_v31 = vpop.eup %2703 }
 0x801   :  { %v1260_v59 = vmul.f32 %v2704_v31, %v1257_v16  ;;  %v2706_v43 = vpop.eup %2705  ;;  %vm1265_vm12 = vweird.f32 %v2704_v31 }
 0x802   :  { %v1275_v54 = vmul.f32 %v2706_v43, %v1258_v2  ;;  %vm1266_vm14 = vmor %vm1264_vm13, %vm1265_vm12  ;;  %vm1280_vm1 = vweird.f32 %v2706_v43  ;;  %v1213_v2 = vmul.f32 %v3467_v39, %v3392_v60 }
 0x803   :  { %v1261_v20 = vsub.f32 1.0, %v1260_v59  ;;  %vm1281_vm3 = vmor %vm1279_vm2, %vm1280_vm1 }
 0x804   :  { %v1276_v5 = vsub.f32 1.0, %v1275_v54 }
 0x805   :  { %v1262_v1 = vmul.f32 %v2704_v31, %v1261_v20 }
 0x806   :  { %v1277_v6 = vmul.f32 %v2706_v43, %v1276_v5 }
 0x807   :  { %v1263_v3 = vadd.f32 %v2704_v31, %v1262_v1 }
 0x808   :  { %v1278_v24 = vadd.f32 %v2706_v43, %v1277_v6 }
 0x809   :  { %v1267_v21 = vsel %vm1266_vm14, %v2704_v31, %v1263_v3 }
 0x80a   :  { %v1272_v23 = vsel %vm1269_vm15, %v1271_v55, %v1267_v21  ;;  %v1282_v42 = vsel %vm1281_vm3, %v2706_v43, %v1278_v24 }
 0x80b   :  { %v1287_v16 = vsel %vm1284_vm4, %v1286_v8, %v1282_v42  ;;  %v1291_v1 = vmul.f32 %v1272_v23, %v3398_v27  ;;  %v215_v42 = vpop.f32.mrf.mxu0 }
 0x80c   :  { %v1292_v45 = vmul.f32 %v1287_v16, %v3402_v41  ;;  %v216_v8 = vadd.f32 %v215_v42, %v3193_v35  ;;  %v278_v42 = vadd.f32 %v3215_v53, %v3229_v11 }
 0x861   :  { %v1296_v36 = vpop.permute.xlu1 %1295 }
 0x862   :  { %v1301_v29 = vmul.f32 %v1296_v36, %v1272_v23 }
 0x864   :  { %1305 = vrot.lane.b32.xlu2 %v1301_v29, %s2993_s3 }
 0x869   :  { %v1227_v13 = vpop.permute.xlu1 %1226  ;;  %v1298_v32 = vpop.permute.xlu0 %1297 }
 0x86a   :  { %v3474_v9 = vadd.f32 %v1227_v13, %v1212_v44  ;;  %v1302_v31 = vmul.f32 %v1298_v32, %v1287_v16  ;;  %v218_v32 = vpop.f32.mrf.mxu0 }
 0x86c   :  { %2707 = vtanh.f32 %v3474_v9  ;;  %1307 = vrot.lane.b32.xlu1 %v1302_v31, %s2993_s3 }
 0x871   :  { %v1229_v59 = vpop.permute.xlu0 %1228 }
 0x872   :  { %v2708_v20 = vpop.eup %2707  ;;  %v3480_v43 = vadd.f32 %v1229_v59, %v1213_v2 }
 0x873   :  { %1238 = vrot.lane.b32.xlu2 %v2708_v20, %s2992_s0 }
 0x874   :  { %2709 = vtanh.f32 %v3480_v43 }
 0x87a   :  { %v2710_v30 = vpop.eup %2709 }
 0x87b   :  { %1240 = vrot.lane.b32.xlu1 %v2710_v30, %s2992_s0 }
 0x8be   :  { %v1306_v54 = vpop.permute.xlu2 %1305 }
 0x8bf   :  { %v3486_v3 = vadd.f32 %v1306_v54, %v1291_v1 }
 0x8c1   :  { %2711 = vtanh.f32 %v3486_v3 }
 0x8c7   :  { %v2712_v5 = vpop.eup %2711 }
 0x8c8   :  { %1317 = vrot.lane.b32.xlu0 %v2712_v5, %s2992_s0 }
 0x8cd   :  { %v1239_v60 = vpop.permute.xlu2 %1238 }
 0x8ce   :  { %v3491_v7 = vmul.f32 %v1239_v60, %v3462_v33 }
 0x8d0   :  { %1361 = vrot.lane.b32.xlu0 %v3491_v7, %s2993_s3 }
 0x8de   :  { %v1308_v21 = vpop.permute.xlu1 %1307 }
 0x8df   :  { %v3496_v6 = vadd.f32 %v1308_v21, %v1292_v45 }
 0x8e1   :  { %2713 = vtanh.f32 %v3496_v6 }
 0x8e7   :  { %v2714_v27 = vpop.eup %2713 }
 0x8e8   :  { %1319 = vrot.lane.b32.xlu2 %v2714_v27, %s2992_s0 }
 0x8ed   :  { %v1241_v55 = vpop.permute.xlu1 %1240 }
 0x8ee   :  { %v3501_v36 = vmul.f32 %v1241_v55, %v3467_v39  ;;  %v275_v55 = vadd.f32 %v3213_v52, %v3229_v11 }
 0x8f0   :  { %1363 = vrot.lane.b32.xlu2 %v3501_v36, %s2993_s3 }
 0x93a   :  { %v1318_v33 = vpop.permute.xlu0 %1317 }
 0x93b   :  { %v3505_v29 = vmul.f32 %v1318_v33, %v1272_v23 }
 0x93d   :  { %1394 = vrot.lane.b32.xlu1 %v3505_v29, %s2993_s3 }
 0x942   :  { %v1362_v41 = vpop.permute.xlu0 %1361  ;;  %v1320_v24 = vpop.permute.xlu2 %1319 }
 0x943   :  { %v3509_v26 = vmul.f32 %v1320_v24, %v1287_v16  ;;  %2532 = vmatmul.msk.f32.vlgmr.msra.gmra.mxu2 %vm125_vm0, %v1362_v41  ;;  %v219_v16 = vadd.f32 %v218_v32, %v3193_v35 }
 0x944   :  { %1845 = vmatpush.msra.mxu2 %v3422_v0 }
 0x945   :  { %1396 = vrot.lane.b32.xlu0 %v3509_v26, %s2993_s3 }
 0x946   :  { %1846 = vmatpush.msra.mxu2 %v3425_v12 }
 0x948   :  { %1847 = vmatpush.msra.mxu2 %v3428_v37 }
 0x94a   :  { %v1364_v39 = vpop.permute.xlu2 %1363  ;;  %1848 = vmatpush.msra.mxu2 %v3431_v47 }
 0x94b   :  { %2533 = vmatmul.msk.f32.gmra.mxu2 %vm125_vm0, %v1364_v39 }
 0x9af   :  { %v1395_v23 = vpop.permute.xlu1 %1394 }
 0x9b0   :  { %2534 = vmatmul.msk.f32.vlgmr.msra.gmra.mxu3 %vm125_vm0, %v1395_v23 }
 0x9b1   :  { %1878 = vmatpush.msra.mxu3 %v3440_v17 }
 0x9b3   :  { %1879 = vmatpush.msra.mxu3 %v3443_v57 }
 0x9b5   :  { %1880 = vmatpush.msra.mxu3 %v3446_v62 }
 0x9b7   :  { %v1397_v38 = vpop.permute.xlu0 %1396  ;;  %1881 = vmatpush.msra.mxu3 %v3449_v63 }
 0x9b8   :  { %2535 = vmatmul.msk.f32.gmra.mxu3 %vm125_vm0, %v1397_v38 }
 0x9c6   :  { %v1386_v44 = vpop.f32.mrf.mxu2 }
 0x9c7   :  { %v1428_v13 = vadd.f32 %v1386_v44, %v216_v8 }
 0x9c9   :  { %2715 = vtanh.f32 %v1428_v13  ;;  %v2536_v30 = vmul.f32 -1.442695, %v1428_v13 }
 0x9ce   :  { %v1389_v31 = vpop.f32.mrf.mxu2 }
 0x9cf   :  { %v2716_v2 = vpop.eup %2715  ;;  %v1429_v59 = vadd.f32 %v1389_v31, %v219_v16 }
 0x9d0   :  { %1474 = vrot.lane.b32.xlu1 %v2716_v2, %s2992_s0 }
 0x9d1   :  { %2717 = vtanh.f32 %v1429_v59  ;;  %v2537_v1 = vmul.f32 -1.442695, %v1429_v59 }
 0x9d2   :  { %2719 = vpow2.f32 %v2536_v30 }
 0x9d3   :  { %2721 = vpow2.f32 %v2537_v1 }
 0x9d7   :  { %v2718_v20 = vpop.eup %2717 }
 0x9d8   :  { %1476 = vrot.lane.b32.xlu0 %v2718_v20, %s2992_s0  ;;  %v2720_v54 = vpop.eup %2719 }
 0x9d9   :  { %v1436_v5 = vadd.f32 1.0, %v2720_v54  ;;  %v2722_v60 = vpop.eup %2721 }
 0x9da   :  { %v1437_v45 = vadd.f32 1.0, %v2722_v60 }
 0x9db   :  { %2723 = vrcp.f32 %v1436_v5  ;;  %v1449_v31 = vand.u32 2147483648, %v1436_v5  ;;  %vm1443_vm6 = vweird.f32 %v1436_v5  ;;  %v1447_v52 = vand.u32 2147483647, %v1436_v5 }
 0x9dc   :  { %2725 = vrcp.f32 %v1437_v45  ;;  %vm1458_vm10 = vweird.f32 %v1437_v45 }
 0x9dd   :  { %v1450_v20 = vor.u32 1.1754944e-38, %v1449_v31  ;;  %vm1448_vm8 = vcmp.eq.f32.partialorder %v1447_v52, 8.507059e+37 }
 0x9e1   :  { %v2724_v21 = vpop.eup %2723 }
 0x9e2   :  { %v1439_v27 = vmul.f32 %v2724_v21, %v1436_v5  ;;  %v2726_v24 = vpop.eup %2725  ;;  %vm1444_vm5 = vweird.f32 %v2724_v21  ;;  %v1462_v5 = vand.u32 2147483647, %v1437_v45 }
 0x9e3   :  { %v1454_v38 = vmul.f32 %v2726_v24, %v1437_v45  ;;  %vm1445_vm7 = vmor %vm1443_vm6, %vm1444_vm5  ;;  %vm1459_vm9 = vweird.f32 %v2726_v24 }
 0x9e4   :  { %v1440_v41 = vsub.f32 1.0, %v1439_v27  ;;  %v1464_v27 = vand.u32 2147483648, %v1437_v45  ;;  %vm1460_vm11 = vmor %vm1458_vm10, %vm1459_vm9  ;;  %vm1463_vm12 = vcmp.eq.f32.partialorder %v1462_v5, 8.507059e+37 }
 0x9e5   :  { %v1455_v13 = vsub.f32 1.0, %v1454_v38 }
 0x9e6   :  { %v1441_v23 = vmul.f32 %v2724_v21, %v1440_v41 }
 0x9e7   :  { %v1456_v59 = vmul.f32 %v2726_v24, %v1455_v13 }
 0x9e8   :  { %v1442_v44 = vadd.f32 %v2724_v21, %v1441_v23 }
 0x9e9   :  { %v1457_v54 = vadd.f32 %v2726_v24, %v1456_v59 }
 0x9ea   :  { %v1446_v2 = vsel %vm1445_vm7, %v2724_v21, %v1442_v44 }
 0x9eb   :  { %v3534_v1 = vsel %vm1448_vm8, %v1450_v20, %v1446_v2  ;;  %v1461_v21 = vsel %vm1460_vm11, %v2726_v24, %v1457_v54 }
 0xa33   :  { %v1419_v33 = vpop.f32.mrf.mxu3 }
 0xa34   :  { %v1507_v39 = vadd.f32 %v1419_v33, %v275_v55  ;;  %v1465_v55 = vor.u32 1.1754944e-38, %v1464_v27 }
 0xa36   :  { %2727 = vtanh.f32 %v1507_v39  ;;  %v3539_v41 = vsel %vm1463_vm12, %v1465_v55, %v1461_v21  ;;  %v2538_v38 = vmul.f32 -1.442695, %v1507_v39 }
 0xa3b   :  { %v1422_v8 = vpop.f32.mrf.mxu3 }
 0xa3c   :  { %v2728_v32 = vpop.eup %2727  ;;  %v1508_v16 = vadd.f32 %v1422_v8, %v278_v42 }
 0xa3d   :  { %1553 = vrot.lane.b32.xlu2 %v2728_v32, %s2992_s0 }
 0xa3e   :  { %2729 = vtanh.f32 %v1508_v16  ;;  %v2539_v45 = vmul.f32 -1.442695, %v1508_v16  ;;  %v1470_v16 = vmul.f32 %v3534_v1, %v3474_v9 }
 0xa3f   :  { %2731 = vpow2.f32 %v2538_v38 }
 0xa42   :  { %v1475_v30 = vpop.permute.xlu1 %1474 }
 0xa43   :  { %v1480_v53 = vmul.f32 %v1475_v30, %v3534_v1 }
 0xa44   :  { %v2730_v60 = vpop.eup %2729 }
 0xa45   :  { %1484 = vrot.lane.b32.xlu2 %v1480_v53, %s2993_s3  ;;  %1555 = vrot.lane.b32.xlu1 %v2730_v60, %s2992_s0  ;;  %v2732_v42 = vpop.eup %2731 }
 0xa46   :  { %v1515_v8 = vadd.f32 1.0, %v2732_v42 }
 0xa48   :  { %2733 = vrcp.f32 %v1515_v8  ;;  %v1528_v52 = vand.u32 2147483648, %v1515_v8  ;;  %vm1522_vm14 = vweird.f32 %v1515_v8  ;;  %v1526_v2 = vand.u32 2147483647, %v1515_v8 }
 0xa49   :  { %2735 = vpow2.f32 %v2539_v45 }
 0xa4a   :  { %v1477_v33 = vpop.permute.xlu0 %1476  ;;  %v1529_v30 = vor.u32 1.1754944e-38, %v1528_v52  ;;  %vm1527_vm1 = vcmp.eq.f32.partialorder %v1526_v2, 8.507059e+37 }
 0xa4b   :  { %v1481_v23 = vmul.f32 %v1477_v33, %v3539_v41 }
 0xa4d   :  { %1486 = vrot.lane.b32.xlu1 %v1481_v23, %s2993_s3 }
 0xa4e   :  { %v2734_v44 = vpop.eup %2733 }
 0xa4f   :  { %v1518_v13 = vmul.f32 %v2734_v44, %v1515_v8  ;;  %vm1523_vm13 = vweird.f32 %v2734_v44  ;;  %v2736_v59 = vpop.eup %2735 }
 0xa50   :  { %vm1524_vm15 = vmor %vm1522_vm14, %vm1523_vm13  ;;  %v1516_v39 = vadd.f32 1.0, %v2736_v59 }
 0xa51   :  { %v1519_v32 = vsub.f32 1.0, %v1518_v13 }
 0xa52   :  { %2737 = vrcp.f32 %v1516_v39  ;;  %v1543_v8 = vand.u32 2147483648, %v1516_v39  ;;  %vm1537_vm3 = vweird.f32 %v1516_v39 }
 0xa53   :  { %v1520_v31 = vmul.f32 %v2734_v44, %v1519_v32 }
 0xa54   :  { %v1544_v9 = vor.u32 1.1754944e-38, %v1543_v8 }
 0xa55   :  { %v1521_v24 = vadd.f32 %v2734_v44, %v1520_v31 }
 0xa57   :  { %v1525_v20 = vsel %vm1524_vm15, %v2734_v44, %v1521_v24  ;;  %v1541_v44 = vand.u32 2147483647, %v1516_v39  ;;  %v1471_v24 = vmul.f32 %v3539_v41, %v3480_v43 }
 0xa58   :  { %v1530_v53 = vsel %vm1527_vm1, %v1529_v30, %v1525_v20  ;;  %v2738_v21 = vpop.eup %2737 }
 0xa59   :  { %v1533_v55 = vmul.f32 %v2738_v21, %v1516_v39  ;;  %vm1538_vm2 = vweird.f32 %v2738_v21  ;;  %vm1542_vm5 = vcmp.eq.f32.partialorder %v1541_v44, 8.507059e+37  ;;  %v1549_v20 = vmul.f32 %v1530_v53, %v3486_v3 }
 0xa5a   :  { %vm1539_vm4 = vmor %vm1537_vm3, %vm1538_vm2 }
 0xa5b   :  { %v1534_v23 = vsub.f32 1.0, %v1533_v55 }
 0xa5d   :  { %v1535_v38 = vmul.f32 %v2738_v21, %v1534_v23 }
 0xa5f   :  { %v1536_v42 = vadd.f32 %v2738_v21, %v1535_v38 }
 0xa61   :  { %v1540_v13 = vsel %vm1539_vm4, %v2738_v21, %v1536_v42 }
 0xa62   :  { %v1545_v45 = vsel %vm1542_vm5, %v1544_v9, %v1540_v13 }
 0xa97   :  { %v1554_v54 = vpop.permute.xlu2 %1553 }
 0xa98   :  { %v1559_v60 = vmul.f32 %v1554_v54, %v1530_v53  ;;  %v1550_v54 = vmul.f32 %v1545_v45, %v3496_v6 }
 0xa9a   :  { %1563 = vrot.lane.b32.xlu0 %v1559_v60, %s2993_s3 }
 0xa9f   :  { %v1485_v27 = vpop.permute.xlu2 %1484 }
 0xaa0   :  { %v3546_v5 = vadd.f32 %v1485_v27, %v1470_v16 }
 0xaa2   :  { %2739 = vtanh.f32 %v3546_v5 }
 0xaa8   :  { %v2740_v33 = vpop.eup %2739 }
 0xaa9   :  { %1496 = vrot.lane.b32.xlu0 %v2740_v33, %s2992_s0 }
 0xab7   :  { %v1556_v32 = vpop.permute.xlu1 %1555 }
 0xab8   :  { %v1560_v31 = vmul.f32 %v1556_v32, %v1545_v45 }
 0xaba   :  { %1565 = vrot.lane.b32.xlu2 %v1560_v31, %s2993_s3 }
 0xabf   :  { %v1487_v52 = vpop.permute.xlu1 %1486 }
 0xac0   :  { %v3553_v2 = vadd.f32 %v1487_v52, %v1471_v24  ;;  %v269_v52 = vadd.f32 %v3209_v50, %v3229_v11 }
 0xac2   :  { %2741 = vtanh.f32 %v3553_v2 }
 0xac8   :  { %v2742_v59 = vpop.eup %2741 }
 0xac9   :  { %1498 = vrot.lane.b32.xlu2 %v2742_v59, %s2992_s0 }
 0xb0c   :  { %v1564_v30 = vpop.permute.xlu0 %1563 }
 0xb0d   :  { %v3558_v39 = vadd.f32 %v1564_v30, %v1549_v20 }
 0xb0f   :  { %2743 = vtanh.f32 %v3558_v39 }
 0xb14   :  { %v1566_v60 = vpop.permute.xlu2 %1565 }
 0xb15   :  { %v2744_v16 = vpop.eup %2743  ;;  %v3562_v43 = vadd.f32 %v1566_v60, %v1550_v54 }
 0xb16   :  { %1575 = vrot.lane.b32.xlu1 %v2744_v16, %s2992_s0 }
 0xb17   :  { %2745 = vtanh.f32 %v3562_v43 }
 0xb1b   :  { %v1497_v27 = vpop.permute.xlu0 %1496 }
 0xb1c   :  { %v3567_v21 = vmul.f32 %v1497_v27, %v3534_v1 }
 0xb1d   :  { %v2746_v3 = vpop.eup %2745 }
 0xb1e   :  { %1593 = vrot.lane.b32.xlu1 %v3567_v21, %s2993_s3  ;;  %1577 = vrot.lane.b32.xlu0 %v2746_v3, %s2992_s0 }
 0xb23   :  { %v1499_v55 = vpop.permute.xlu2 %1498 }
 0xb24   :  { %v3573_v6 = vmul.f32 %v1499_v55, %v3539_v41 }
 0xb26   :  { %1595 = vrot.lane.b32.xlu0 %v3573_v6, %s2993_s3 }
 0xb88   :  { %v1576_v33 = vpop.permute.xlu1 %1575 }
 0xb89   :  { %v3577_v23 = vmul.f32 %v1576_v33, %v1530_v53 }
 0xb8b   :  { %1626 = vrot.lane.b32.xlu2 %v3577_v23, %s2993_s3 }
 0xb90   :  { %v1594_v1 = vpop.permute.xlu1 %1593  ;;  %v1578_v38 = vpop.permute.xlu0 %1577 }
 0xb91   :  { %v3581_v42 = vmul.f32 %v1578_v38, %v1545_v45  ;;  %2540 = vmatmul.msk.f32.vlgmr.msrb.gmra.mxu2 %vm125_vm0, %v1594_v1 }
 0xb92   :  { %2077 = vmatpush.msrb.mxu2 %v3422_v0 }
 0xb93   :  { %1628 = vrot.lane.b32.xlu1 %v3581_v42, %s2993_s3 }
 0xb94   :  { %2078 = vmatpush.msrb.mxu2 %v3425_v12  ;;  %v221_v12 = vpop.f32.mrf.mxu0 }
 0xb96   :  { %2079 = vmatpush.msrb.mxu2 %v3428_v37  ;;  %v222_v37 = vadd.f32 %v221_v12, %v3193_v35 }
 0xb98   :  { %v1596_v41 = vpop.permute.xlu0 %1595  ;;  %2080 = vmatpush.msrb.mxu2 %v3431_v47 }
 0xb99   :  { %2541 = vmatmul.msk.f32.gmra.mxu2 %vm125_vm0, %v1596_v41 }
 0xb9c   :  { %v224_v44 = vpop.f32.mrf.mxu0 }
 0xb9d   :  { %v225_v13 = vadd.f32 %v224_v44, %v3193_v35 }
 0xbe5   :  { %v1627_v53 = vpop.permute.xlu2 %1626 }
 0xbe6   :  { %2542 = vmatmul.msk.f32.vlgmr.msrb.gmra.mxu3 %vm125_vm0, %v1627_v53 }
 0xbe7   :  { %2110 = vmatpush.msrb.mxu3 %v3440_v17 }
 0xbe9   :  { %2111 = vmatpush.msrb.mxu3 %v3443_v57 }
 0xbeb   :  { %2112 = vmatpush.msrb.mxu3 %v3446_v62 }
 0xbed   :  { %2113 = vmatpush.msrb.mxu3 %v3449_v63 }
 0xc05   :  { %v1629_v0 = vpop.permute.xlu1 %1628 }
 0xc06   :  { %2543 = vmatmul.msk.f32.gmra.mxu3 %vm125_vm0, %v1629_v0 }
 0xc14   :  { %v1618_v47 = vpop.f32.mrf.mxu2 }
 0xc15   :  { %v1660_v8 = vadd.f32 %v1618_v47, %v222_v37  ;;  %v272_v47 = vadd.f32 %v3211_v51, %v3229_v11 }
 0xc17   :  { %2747 = vtanh.f32 %v1660_v8  ;;  %v2544_v62 = vmul.f32 -1.442695, %v1660_v8 }
 0xc1c   :  { %v1621_v9 = vpop.f32.mrf.mxu2 }
 0xc1d   :  { %v2748_v17 = vpop.eup %2747  ;;  %v1661_v32 = vadd.f32 %v1621_v9, %v225_v13 }
 0xc1e   :  { %1706 = vrot.lane.b32.xlu2 %v2748_v17, %s2992_s0 }
 0xc1f   :  { %2749 = vtanh.f32 %v1661_v32  ;;  %v2545_v54 = vmul.f32 -1.442695, %v1661_v32 }
 0xc20   :  { %2751 = vpow2.f32 %v2544_v62 }
 0xc25   :  { %v2750_v57 = vpop.eup %2749 }
 0xc26   :  { %1708 = vrot.lane.b32.xlu1 %v2750_v57, %s2992_s0  ;;  %v2752_v63 = vpop.eup %2751 }
 0xc27   :  { %v1668_v45 = vadd.f32 1.0, %v2752_v63 }
 0xc29   :  { %2753 = vrcp.f32 %v1668_v45  ;;  %v1681_v3 = vand.u32 2147483648, %v1668_v45  ;;  %vm1675_vm7 = vweird.f32 %v1668_v45  ;;  %v1679_v55 = vand.u32 2147483647, %v1668_v45 }
 0xc2b   :  { %v1682_v38 = vor.u32 1.1754944e-38, %v1681_v3  ;;  %vm1680_vm9 = vcmp.eq.f32.partialorder %v1679_v55, 8.507059e+37 }
 0xc2f   :  { %v2754_v31 = vpop.eup %2753 }
 0xc30   :  { %v1671_v24 = vmul.f32 %v2754_v31, %v1668_v45  ;;  %vm1676_vm6 = vweird.f32 %v2754_v31 }
 0xc31   :  { %vm1677_vm8 = vmor %vm1675_vm7, %vm1676_vm6 }
 0xc32   :  { %v1672_v20 = vsub.f32 1.0, %v1671_v24 }
 0xc34   :  { %v1673_v60 = vmul.f32 %v2754_v31, %v1672_v20 }
 0xc36   :  { %v1674_v16 = vadd.f32 %v2754_v31, %v1673_v60 }
 0xc38   :  { %v1678_v1 = vsel %vm1677_vm8, %v2754_v31, %v1674_v16 }
 0xc39   :  { %v3604_v41 = vsel %vm1680_vm9, %v1682_v38, %v1678_v1 }
 0xc69   :  { %v1651_v59 = vpop.f32.mrf.mxu3 }
 0xc6a   :  { %v1739_v30 = vadd.f32 %v1651_v59, %v269_v52 }
 0xc6c   :  { %2755 = vtanh.f32 %v1739_v30  ;;  %v2546_v52 = vmul.f32 -1.442695, %v1739_v30 }
 0xc6d   :  { %2757 = vpow2.f32 %v2545_v54 }
 0xc72   :  { %v2756_v27 = vpop.eup %2755 }
 0xc73   :  { %1785 = vrot.lane.b32.xlu0 %v2756_v27, %s2992_s0  ;;  %v2758_v33 = vpop.eup %2757 }
 0xc74   :  { %v1669_v50 = vadd.f32 1.0, %v2758_v33 }
 0xc76   :  { %2759 = vrcp.f32 %v1669_v50  ;;  %v1696_v57 = vand.u32 2147483648, %v1669_v50  ;;  %vm1690_vm11 = vweird.f32 %v1669_v50  ;;  %v1694_v62 = vand.u32 2147483647, %v1669_v50 }
 0xc78   :  { %v1707_v53 = vpop.permute.xlu2 %1706  ;;  %v1697_v45 = vor.u32 1.1754944e-38, %v1696_v57  ;;  %vm1695_vm13 = vcmp.eq.f32.partialorder %v1694_v62, 8.507059e+37 }
 0xc79   :  { %v1712_v0 = vmul.f32 %v1707_v53, %v3604_v41 }
 0xc7b   :  { %1716 = vrot.lane.b32.xlu0 %v1712_v0, %s2993_s3 }
 0xc7c   :  { %v2760_v12 = vpop.eup %2759 }
 0xc7d   :  { %v1686_v37 = vmul.f32 %v2760_v12, %v1669_v50  ;;  %vm1691_vm10 = vweird.f32 %v2760_v12 }
 0xc7e   :  { %vm1692_vm12 = vmor %vm1690_vm11, %vm1691_vm10 }
 0xc7f   :  { %v1687_v44 = vsub.f32 1.0, %v1686_v37 }
 0xc81   :  { %v1688_v9 = vmul.f32 %v2760_v12, %v1687_v44 }
 0xc83   :  { %v1689_v17 = vadd.f32 %v2760_v12, %v1688_v9 }
 0xc85   :  { %v1693_v63 = vsel %vm1692_vm12, %v2760_v12, %v1689_v17 }
 0xc86   :  { %v3611_v24 = vsel %vm1695_vm13, %v1697_v45, %v1693_v63  ;;  %v1702_v63 = vmul.f32 %v3604_v41, %v3546_v5 }
 0xc89   :  { %v1654_v8 = vpop.f32.mrf.mxu3 }
 0xc8a   :  { %v1740_v13 = vadd.f32 %v1654_v8, %v272_v47 }
 0xc8c   :  { %2761 = vtanh.f32 %v1740_v13  ;;  %v2547_v59 = vmul.f32 -1.442695, %v1740_v13 }
 0xc8d   :  { %2763 = vpow2.f32 %v2546_v52 }
 0xc8e   :  { %2765 = vpow2.f32 %v2547_v59 }
 0xc92   :  { %v2762_v32 = vpop.eup %2761 }
 0xc93   :  { %1787 = vrot.lane.b32.xlu2 %v2762_v32, %s2992_s0  ;;  %v2764_v20 = vpop.eup %2763 }
 0xc94   :  { %v1747_v54 = vadd.f32 1.0, %v2764_v20  ;;  %v2766_v60 = vpop.eup %2765  ;;  %v1703_v20 = vmul.f32 %v3611_v24, %v3553_v2 }
 0xc95   :  { %v1748_v16 = vadd.f32 1.0, %v2766_v60 }
 0xc96   :  { %2767 = vrcp.f32 %v1747_v54  ;;  %v1760_v0 = vand.u32 2147483648, %v1747_v54  ;;  %vm1754_vm15 = vweird.f32 %v1747_v54  ;;  %v1758_v30 = vand.u32 2147483647, %v1747_v54 }
 0xc97   :  { %2769 = vrcp.f32 %v1748_v16  ;;  %v1775_v17 = vand.u32 2147483648, %v1748_v16  ;;  %vm1769_vm4 = vweird.f32 %v1748_v16  ;;  %v1773_v32 = vand.u32 2147483647, %v1748_v16 }
 0xc98   :  { %v1709_v31 = vpop.permute.xlu1 %1708  ;;  %v1761_v47 = vor.u32 1.1754944e-38, %v1760_v0  ;;  %vm1759_vm2 = vcmp.eq.f32.partialorder %v1758_v30, 8.507059e+37 }
 0xc99   :  { %v1713_v51 = vmul.f32 %v1709_v31, %v3611_v24  ;;  %v1776_v62 = vor.u32 1.1754944e-38, %v1775_v17  ;;  %vm1774_vm6 = vcmp.eq.f32.partialorder %v1773_v32, 8.507059e+37 }
 0xc9b   :  { %1718 = vrot.lane.b32.xlu2 %v1713_v51, %s2993_s3 }
 0xc9c   :  { %v2768_v27 = vpop.eup %2767 }
 0xc9d   :  { %v1750_v3 = vmul.f32 %v2768_v27, %v1747_v54  ;;  %v2770_v33 = vpop.eup %2769  ;;  %vm1755_vm14 = vweird.f32 %v2768_v27 }
 0xc9e   :  { %v1765_v38 = vmul.f32 %v2770_v33, %v1748_v16  ;;  %vm1756_vm1 = vmor %vm1754_vm15, %vm1755_vm14  ;;  %vm1770_vm3 = vweird.f32 %v2770_v33 }
 0xc9f   :  { %v1751_v55 = vsub.f32 1.0, %v1750_v3  ;;  %vm1771_vm5 = vmor %vm1769_vm4, %vm1770_vm3 }
 0xca0   :  { %v1766_v53 = vsub.f32 1.0, %v1765_v38 }
 0xca1   :  { %v1752_v1 = vmul.f32 %v2768_v27, %v1751_v55 }
 0xca2   :  { %v1767_v37 = vmul.f32 %v2770_v33, %v1766_v53 }
 0xca3   :  { %v1753_v50 = vadd.f32 %v2768_v27, %v1752_v1 }
 0xca4   :  { %v1768_v9 = vadd.f32 %v2770_v33, %v1767_v37 }
 0xca5   :  { %v1757_v12 = vsel %vm1756_vm1, %v2768_v27, %v1753_v50 }
 0xca6   :  { %v1762_v44 = vsel %vm1759_vm2, %v1761_v47, %v1757_v12  ;;  %v1772_v57 = vsel %vm1771_vm5, %v2770_v33, %v1768_v9 }
 0xca7   :  { %v1777_v31 = vsel %vm1774_vm6, %v1776_v62, %v1772_v57  ;;  %v1781_v27 = vmul.f32 %v1762_v44, %v3558_v39 }
 0xca8   :  { %v1782_v2 = vmul.f32 %v1777_v31, %v3562_v43 }
 0xce5   :  { %v1786_v8 = vpop.permute.xlu0 %1785 }
 0xce6   :  { %v1791_v13 = vmul.f32 %v1786_v8, %v1762_v44 }
 0xce8   :  { %1795 = vrot.lane.b32.xlu1 %v1791_v13, %s2993_s3  ;;  %v227_v13 = vpop.f32.mrf.mxu0 }
 0xce9   :  { %v228_v9 = vadd.f32 %v227_v13, %v3193_v35 }
 0xced   :  { %v1717_v45 = vpop.permute.xlu0 %1716  ;;  %v1788_v51 = vpop.permute.xlu2 %1787 }
 0xcee   :  { %v3618_v52 = vadd.f32 %v1717_v45, %v1702_v63  ;;  %v1792_v59 = vmul.f32 %v1788_v51, %v1777_v31 }
 0xcf0   :  { %2771 = vtanh.f32 %v3618_v52  ;;  %1797 = vrot.lane.b32.xlu0 %v1792_v59, %s2993_s3  ;;  %v230_v62 = vpop.f32.mrf.mxu0 }
 0xcf1   :  { %v231_v63 = vadd.f32 %v230_v62, %v3193_v35 }
 0xcf5   :  { %v1719_v54 = vpop.permute.xlu2 %1718 }
 0xcf6   :  { %v2772_v60 = vpop.eup %2771  ;;  %v3624_v16 = vadd.f32 %v1719_v54, %v1703_v20 }
 0xcf7   :  { %1728 = vrot.lane.b32.xlu1 %v2772_v60, %s2992_s0 }
 0xcf8   :  { %2773 = vtanh.f32 %v3624_v16 }
 0xcfe   :  { %v2774_v5 = vpop.eup %2773 }
 0xcff   :  { %1730 = vrot.lane.b32.xlu0 %v2774_v5, %s2992_s0 }
 0xd5a   :  { %v1796_v3 = vpop.permute.xlu1 %1795 }
 0xd5b   :  { %v3630_v55 = vadd.f32 %v1796_v3, %v1781_v27 }
 0xd5d   :  { %2775 = vtanh.f32 %v3630_v55 }
 0xd62   :  { %v1798_v33 = vpop.permute.xlu0 %1797 }
 0xd63   :  { %v2776_v1 = vpop.eup %2775  ;;  %v3634_v38 = vadd.f32 %v1798_v33, %v1782_v2  ;;  %v263_v33 = vadd.f32 %v3204_v48, %v3229_v11 }
 0xd64   :  { %1807 = vrot.lane.b32.xlu2 %v2776_v1, %s2992_s0 }
 0xd65   :  { %2777 = vtanh.f32 %v3634_v38 }
 0xd69   :  { %v1729_v50 = vpop.permute.xlu1 %1728 }
 0xd6a   :  { %v3639_v53 = vmul.f32 %v1729_v50, %v3604_v41 }
 0xd6b   :  { %v2778_v39 = vpop.eup %2777 }
 0xd6c   :  { %1825 = vrot.lane.b32.xlu2 %v3639_v53, %s2993_s3  ;;  %1809 = vrot.lane.b32.xlu1 %v2778_v39, %s2992_s0 }
 0xd71   :  { %v1731_v0 = vpop.permute.xlu0 %1730 }
 0xd72   :  { %v3645_v43 = vmul.f32 %v1731_v0, %v3611_v24 }
 0xd74   :  { %1827 = vrot.lane.b32.xlu1 %v3645_v43, %s2993_s3 }
 0xdbe   :  { %v1808_v30 = vpop.permute.xlu2 %1807 }
 0xdbf   :  { %v3649_v12 = vmul.f32 %v1808_v30, %v1762_v44 }
 0xdc1   :  { %1858 = vrot.lane.b32.xlu0 %v3649_v12, %s2993_s3 }
 0xdc6   :  { %v1826_v41 = vpop.permute.xlu2 %1825 }
 0xdc7   :  { %2548 = vmatmul.msk.f32.vlgmr.msra.gmra.mxu2 %vm125_vm0, %v1826_v41 }
 0xdde   :  { %v1810_v37 = vpop.permute.xlu1 %1809 }
 0xddf   :  { %v3654_v47 = vmul.f32 %v1810_v37, %v1777_v31  ;;  %v266_v37 = vadd.f32 %v3207_v49, %v3229_v11 }
 0xde1   :  { %1860 = vrot.lane.b32.xlu2 %v3654_v47, %s2993_s3 }
 0xde6   :  { %v1828_v24 = vpop.permute.xlu1 %1827 }
 0xde7   :  { %2549 = vmatmul.msk.f32.gmra.mxu2 %vm125_vm0, %v1828_v24 }
 0xe33   :  { %v1859_v8 = vpop.permute.xlu0 %1858 }
 0xe34   :  { %2550 = vmatmul.msk.f32.vlgmr.msra.gmra.mxu3 %vm125_vm0, %v1859_v8 }
 0xe3b   :  { %v1861_v44 = vpop.permute.xlu2 %1860 }
 0xe3c   :  { %2551 = vmatmul.msk.f32.gmra.mxu3 %vm125_vm0, %v1861_v44 }
 0xe4a   :  { %v1850_v17 = vpop.f32.mrf.mxu2 }
 0xe4b   :  { %v1892_v32 = vadd.f32 %v1850_v17, %v228_v9 }
 0xe4d   :  { %2779 = vtanh.f32 %v1892_v32  ;;  %v2552_v59 = vmul.f32 -1.442695, %v1892_v32 }
 0xe53   :  { %v2780_v57 = vpop.eup %2779 }
 0xe54   :  { %1938 = vrot.lane.b32.xlu0 %v2780_v57, %s2992_s0 }
 0xe6a   :  { %v1853_v45 = vpop.f32.mrf.mxu2 }
 0xe6b   :  { %v1893_v31 = vadd.f32 %v1853_v45, %v231_v63 }
 0xe6d   :  { %2781 = vtanh.f32 %v1893_v31  ;;  %v2553_v20 = vmul.f32 -1.442695, %v1893_v31 }
 0xe6e   :  { %2783 = vpow2.f32 %v2552_v59 }
 0xe6f   :  { %2785 = vpow2.f32 %v2553_v20 }
 0xe73   :  { %v2782_v51 = vpop.eup %2781 }
 0xe74   :  { %1940 = vrot.lane.b32.xlu2 %v2782_v51, %s2992_s0  ;;  %v2784_v54 = vpop.eup %2783 }
 0xe75   :  { %v1900_v60 = vadd.f32 1.0, %v2784_v54  ;;  %v2786_v5 = vpop.eup %2785 }
 0xe76   :  { %v1901_v27 = vadd.f32 1.0, %v2786_v5 }
 0xe77   :  { %2787 = vrcp.f32 %v1900_v60  ;;  %v1913_v17 = vand.u32 2147483648, %v1900_v60  ;;  %vm1907_vm8 = vweird.f32 %v1900_v60  ;;  %v1911_v48 = vand.u32 2147483647, %v1900_v60 }
 0xe78   :  { %2789 = vrcp.f32 %v1901_v27  ;;  %v1928_v59 = vand.u32 2147483648, %v1901_v27  ;;  %vm1922_vm12 = vweird.f32 %v1901_v27  ;;  %v1926_v20 = vand.u32 2147483647, %v1901_v27 }
 0xe79   :  { %v1914_v62 = vor.u32 1.1754944e-38, %v1913_v17  ;;  %vm1912_vm10 = vcmp.eq.f32.partialorder %v1911_v48, 8.507059e+37 }
 0xe7a   :  { %vm1927_vm14 = vcmp.eq.f32.partialorder %v1926_v20, 8.507059e+37 }
 0xe7d   :  { %v2788_v3 = vpop.eup %2787 }
 0xe7e   :  { %v1903_v2 = vmul.f32 %v2788_v3, %v1900_v60  ;;  %v2790_v39 = vpop.eup %2789  ;;  %vm1908_vm7 = vweird.f32 %v2788_v3  ;;  %v1929_v60 = vor.u32 1.1754944e-38, %v1928_v59 }
 0xe7f   :  { %v1918_v41 = vmul.f32 %v2790_v39, %v1901_v27  ;;  %vm1909_vm9 = vmor %vm1907_vm8, %vm1908_vm7  ;;  %vm1923_vm11 = vweird.f32 %v2790_v39 }
 0xe80   :  { %v1904_v50 = vsub.f32 1.0, %v1903_v2  ;;  %vm1924_vm13 = vmor %vm1922_vm12, %vm1923_vm11 }
 0xe81   :  { %v1919_v44 = vsub.f32 1.0, %v1918_v41 }
 0xe82   :  { %v1905_v30 = vmul.f32 %v2788_v3, %v1904_v50 }
 0xe83   :  { %v1920_v57 = vmul.f32 %v2790_v39, %v1919_v44 }
 0xe84   :  { %v1906_v8 = vadd.f32 %v2788_v3, %v1905_v30 }
 0xe85   :  { %v1921_v31 = vadd.f32 %v2790_v39, %v1920_v57 }
 0xe86   :  { %v1910_v32 = vsel %vm1909_vm9, %v2788_v3, %v1906_v8 }
 0xe87   :  { %v3670_v45 = vsel %vm1912_vm10, %v1914_v62, %v1910_v32  ;;  %v1925_v54 = vsel %vm1924_vm13, %v2790_v39, %v1921_v31 }
 0xe88   :  { %v3675_v5 = vsel %vm1927_vm14, %v1929_v60, %v1925_v54 }
 0xeb7   :  { %v1883_v1 = vpop.f32.mrf.mxu3 }
 0xeb8   :  { %v1971_v0 = vadd.f32 %v1883_v1, %v263_v33 }
 0xeba   :  { %2791 = vtanh.f32 %v1971_v0  ;;  %v2554_v33 = vmul.f32 -1.442695, %v1971_v0 }
 0xebf   :  { %v1886_v24 = vpop.f32.mrf.mxu3 }
 0xec0   :  { %v2792_v13 = vpop.eup %2791  ;;  %v1972_v9 = vadd.f32 %v1886_v24, %v266_v37 }
 0xec1   :  { %2017 = vrot.lane.b32.xlu1 %v2792_v13, %s2992_s0 }
 0xec2   :  { %2793 = vtanh.f32 %v1972_v9  ;;  %v2555_v1 = vmul.f32 -1.442695, %v1972_v9 }
 0xec3   :  { %2795 = vpow2.f32 %v2554_v33 }
 0xec4   :  { %2797 = vpow2.f32 %v2555_v1 }
 0xec6   :  { %v1939_v63 = vpop.permute.xlu0 %1938 }
 0xec7   :  { %v1944_v49 = vmul.f32 %v1939_v63, %v3670_v45 }
 0xec8   :  { %v2794_v51 = vpop.eup %2793 }
 0xec9   :  { %1948 = vrot.lane.b32.xlu1 %v1944_v49, %s2993_s3  ;;  %2019 = vrot.lane.b32.xlu0 %v2794_v51, %s2992_s0  ;;  %v2796_v50 = vpop.eup %2795 }
 0xeca   :  { %v1979_v30 = vadd.f32 1.0, %v2796_v50  ;;  %v2798_v41 = vpop.eup %2797 }
 0xecb   :  { %v1980_v27 = vadd.f32 1.0, %v2798_v41  ;;  %v1935_v41 = vmul.f32 %v3675_v5, %v3624_v16 }
 0xecc   :  { %2799 = vrcp.f32 %v1979_v30  ;;  %v1992_v32 = vand.u32 2147483648, %v1979_v30  ;;  %vm1986_vm1 = vweird.f32 %v1979_v30  ;;  %v1990_v0 = vand.u32 2147483647, %v1979_v30 }
 0xecd   :  { %2801 = vrcp.f32 %v1980_v27  ;;  %v2007_v59 = vand.u32 2147483648, %v1980_v27  ;;  %vm2001_vm5 = vweird.f32 %v1980_v27  ;;  %v2005_v20 = vand.u32 2147483647, %v1980_v27 }
 0xece   :  { %v1941_v3 = vpop.permute.xlu2 %1940  ;;  %v1993_v62 = vor.u32 1.1754944e-38, %v1992_v32  ;;  %vm1991_vm3 = vcmp.eq.f32.partialorder %v1990_v0, 8.507059e+37 }
 0xecf   :  { %v1945_v2 = vmul.f32 %v1941_v3, %v3675_v5  ;;  %v2008_v60 = vor.u32 1.1754944e-38, %v2007_v59  ;;  %v1934_v3 = vmul.f32 %v3670_v45, %v3618_v52  ;;  %vm2006_vm7 = vcmp.eq.f32.partialorder %v2005_v20, 8.507059e+37  ;;  %v233_v59 = vpop.f32.mrf.mxu0 }
 0xed0   :  { %v234_v20 = vadd.f32 %v233_v59, %v3193_v35 }
 0xed1   :  { %1950 = vrot.lane.b32.xlu0 %v1945_v2, %s2993_s3 }
 0xed2   :  { %v2800_v37 = vpop.eup %2799 }
 0xed3   :  { %v1982_v39 = vmul.f32 %v2800_v37, %v1979_v30  ;;  %v2802_v8 = vpop.eup %2801  ;;  %vm1987_vm15 = vweird.f32 %v2800_v37 }
 0xed4   :  { %v1997_v13 = vmul.f32 %v2802_v8, %v1980_v27  ;;  %vm1988_vm2 = vmor %vm1986_vm1, %vm1987_vm15  ;;  %vm2002_vm4 = vweird.f32 %v2802_v8 }
 0xed5   :  { %v1983_v24 = vsub.f32 1.0, %v1982_v39  ;;  %vm2003_vm6 = vmor %vm2001_vm5, %vm2002_vm4 }
 0xed6   :  { %v1998_v48 = vsub.f32 1.0, %v1997_v13 }
 0xed7   :  { %v1984_v44 = vmul.f32 %v2800_v37, %v1983_v24 }
 0xed8   :  { %v1999_v57 = vmul.f32 %v2802_v8, %v1998_v48 }
 0xed9   :  { %v1985_v17 = vadd.f32 %v2800_v37, %v1984_v44 }
 0xeda   :  { %v2000_v51 = vadd.f32 %v2802_v8, %v1999_v57 }
 0xedb   :  { %v1989_v9 = vsel %vm1988_vm2, %v2800_v37, %v1985_v17 }
 0xedc   :  { %v1994_v49 = vsel %vm1991_vm3, %v1993_v62, %v1989_v9  ;;  %v2004_v54 = vsel %vm2003_vm6, %v2802_v8, %v2000_v51 }
 0xedd   :  { %v2009_v1 = vsel %vm2006_vm7, %v2008_v60, %v2004_v54  ;;  %v2013_v24 = vmul.f32 %v1994_v49, %v3630_v55 }
 0xede   :  { %v2014_v48 = vmul.f32 %v2009_v1, %v3634_v38 }
 0xf33   :  { %v2018_v63 = vpop.permute.xlu1 %2017 }
 0xf34   :  { %v2023_v31 = vmul.f32 %v2018_v63, %v1994_v49 }
 0xf36   :  { %2027 = vrot.lane.b32.xlu2 %v2023_v31, %s2993_s3 }
 0xf3b   :  { %v1949_v2 = vpop.permute.xlu1 %1948  ;;  %v2020_v33 = vpop.permute.xlu0 %2019 }
 0xf3c   :  { %v3682_v50 = vadd.f32 %v1949_v2, %v1934_v3  ;;  %v2024_v30 = vmul.f32 %v2020_v33, %v2009_v1  ;;  %v237_v3 = vadd.f32 %v3191_v34, %v3193_v35  ;;  %v2994_v34 = vmov 0  }
 0xf3d   :  { %2585 = vset.pattern.permute.xlu2 %v2994_v34  ;;  %2584 = vset.pattern.permute.xlu1 %v2994_v34 }
 0xf3e   :  { %2803 = vtanh.f32 %v3682_v50  ;;  %2029 = vrot.lane.b32.xlu1 %v2024_v30, %s2993_s3  ;;  %2583 = vset.pattern.permute.xlu0 %v2994_v34  ;;  %v2504_v34 = vld [vmem:[%s3910_s1 + $0x10] sm:$0xff] }
 0xf43   :  { %v1951_v27 = vpop.permute.xlu0 %1950 }
 0xf44   :  { %v2804_v37 = vpop.eup %2803  ;;  %v3688_v39 = vadd.f32 %v1951_v27, %v1935_v41 }
 0xf45   :  { %1960 = vrot.lane.b32.xlu2 %v2804_v37, %s2992_s0 }
 0xf46   :  { %2805 = vtanh.f32 %v3688_v39 }
 0xf4c   :  { %v2806_v52 = vpop.eup %2805 }
 0xf4d   :  { %1962 = vrot.lane.b32.xlu1 %v2806_v52, %s2992_s0 }
 0xf90   :  { %v2028_v8 = vpop.permute.xlu2 %2027 }
 0xf91   :  { %v3694_v44 = vadd.f32 %v2028_v8, %v2013_v24 }
 0xf93   :  { %2807 = vtanh.f32 %v3694_v44 }
 0xf99   :  { %v2808_v13 = vpop.eup %2807 }
 0xf9a   :  { %2039 = vrot.lane.b32.xlu0 %v2808_v13, %s2992_s0 }
 0xf9f   :  { %v1961_v16 = vpop.permute.xlu2 %1960 }
 0xfa0   :  { %v3699_v17 = vmul.f32 %v1961_v16, %v3670_v45  ;;  %v257_v16 = vadd.f32 %v3198_v40, %v3229_v11 }
 0xfa2   :  { %2057 = vrot.lane.b32.xlu0 %v3699_v17, %s2993_s3 }
 0xfb0   :  { %v2030_v32 = vpop.permute.xlu1 %2029 }
 0xfb1   :  { %v3704_v0 = vadd.f32 %v2030_v32, %v2014_v48 }
 0xfb3   :  { %2809 = vtanh.f32 %v3704_v0 }
 0xfb9   :  { %v2810_v55 = vpop.eup %2809 }
 0xfba   :  { %2041 = vrot.lane.b32.xlu2 %v2810_v55, %s2992_s0 }
 0xfbf   :  { %v1963_v9 = vpop.permute.xlu1 %1962 }
 0xfc0   :  { %v3709_v57 = vmul.f32 %v1963_v9, %v3675_v5 }
 0xfc2   :  { %2059 = vrot.lane.b32.xlu2 %v3709_v57, %s2993_s3 }
0x100c   :  { %v2040_v45 = vpop.permute.xlu0 %2039 }
0x100d   :  { %v3713_v62 = vmul.f32 %v2040_v45, %v1994_v49 }
0x100f   :  { %2090 = vrot.lane.b32.xlu1 %v3713_v62, %s2993_s3 }
0x1014   :  { %v2058_v38 = vpop.permute.xlu0 %2057  ;;  %v2042_v63 = vpop.permute.xlu2 %2041 }
0x1015   :  { %v3717_v31 = vmul.f32 %v2042_v63, %v2009_v1  ;;  %2556 = vmatmul.msk.f32.vlgmr.msrb.gmra.mxu2 %vm125_vm0, %v2058_v38  ;;  %v260_v63 = vadd.f32 %v3201_v46, %v3229_v11 }
0x1017   :  { %2092 = vrot.lane.b32.xlu0 %v3717_v31, %s2993_s3 }
0x101c   :  { %v2060_v5 = vpop.permute.xlu2 %2059 }
0x101d   :  { %2557 = vmatmul.msk.f32.gmra.mxu2 %vm125_vm0, %v2060_v5 }
0x1081   :  { %v2091_v51 = vpop.permute.xlu1 %2090 }
0x1082   :  { %2558 = vmatmul.msk.f32.vlgmr.msrb.gmra.mxu3 %vm125_vm0, %v2091_v51 }
0x1089   :  { %v2093_v49 = vpop.permute.xlu0 %2092 }
0x108a   :  { %2559 = vmatmul.msk.f32.gmra.mxu3 %vm125_vm0, %v2093_v49 }
0x1098   :  { %v2082_v54 = vpop.f32.mrf.mxu2 }
0x1099   :  { %v2124_v60 = vadd.f32 %v2082_v54, %v234_v20 }
0x109b   :  { %2811 = vtanh.f32 %v2124_v60  ;;  %v2560_v41 = vmul.f32 -1.442695, %v2124_v60 }
0x10a0   :  { %v2085_v2 = vpop.f32.mrf.mxu2 }
0x10a1   :  { %v2812_v33 = vpop.eup %2811  ;;  %v2125_v1 = vadd.f32 %v2085_v2, %v237_v3 }
0x10a2   :  { %2170 = vrot.lane.b32.xlu1 %v2812_v33, %s2992_s0 }
0x10a3   :  { %2813 = vtanh.f32 %v2125_v1  ;;  %v2561_v27 = vmul.f32 -1.442695, %v2125_v1 }
0x10a4   :  { %2815 = vpow2.f32 %v2560_v41 }
0x10a5   :  { %2817 = vpow2.f32 %v2561_v27 }
0x10a9   :  { %v2814_v30 = vpop.eup %2813 }
0x10aa   :  { %2172 = vrot.lane.b32.xlu0 %v2814_v30, %s2992_s0  ;;  %v2816_v37 = vpop.eup %2815 }
0x10ab   :  { %v2132_v52 = vadd.f32 1.0, %v2816_v37  ;;  %v2818_v24 = vpop.eup %2817 }
0x10ac   :  { %v2133_v8 = vadd.f32 1.0, %v2818_v24 }
0x10ad   :  { %2819 = vrcp.f32 %v2132_v52  ;;  %v2145_v54 = vand.u32 2147483648, %v2132_v52  ;;  %vm2139_vm9 = vweird.f32 %v2132_v52  ;;  %v2143_v40 = vand.u32 2147483647, %v2132_v52 }
0x10ae   :  { %2821 = vrcp.f32 %v2133_v8  ;;  %v2160_v41 = vand.u32 2147483648, %v2133_v8  ;;  %vm2154_vm13 = vweird.f32 %v2133_v8  ;;  %v2158_v27 = vand.u32 2147483647, %v2133_v8 }
0x10af   :  { %v2146_v2 = vor.u32 1.1754944e-38, %v2145_v54  ;;  %vm2144_vm11 = vcmp.eq.f32.partialorder %v2143_v40, 8.507059e+37 }
0x10b0   :  { %vm2159_vm15 = vcmp.eq.f32.partialorder %v2158_v27, 8.507059e+37 }
0x10b3   :  { %v2820_v13 = vpop.eup %2819 }
0x10b4   :  { %v2135_v35 = vmul.f32 %v2820_v13, %v2132_v52  ;;  %v2822_v55 = vpop.eup %2821  ;;  %vm2140_vm8 = vweird.f32 %v2820_v13  ;;  %v2161_v52 = vor.u32 1.1754944e-38, %v2160_v41 }
0x10b5   :  { %v2150_v38 = vmul.f32 %v2822_v55, %v2133_v8  ;;  %vm2141_vm10 = vmor %vm2139_vm9, %vm2140_vm8  ;;  %vm2155_vm12 = vweird.f32 %v2822_v55  ;;  %v3750_v8 = vld [vmem:[%s3910_s1 + $0x70] sm:$0xff]  ;;  %vm2302_vm8 = vcmask 7168  }
0x10b6   :  { %v2136_v32 = vsub.f32 1.0, %v2135_v35  ;;  %vm2156_vm14 = vmor %vm2154_vm13, %vm2155_vm12 }
0x10b7   :  { %v2151_v49 = vsub.f32 1.0, %v2150_v38 }
0x10b8   :  { %v2137_v45 = vmul.f32 %v2820_v13, %v2136_v32 }
0x10b9   :  { %v2152_v3 = vmul.f32 %v2822_v55, %v2151_v49 }
0x10ba   :  { %v2138_v51 = vadd.f32 %v2820_v13, %v2137_v45  ;;  %v3774_v45 = vld [vmem:[%s3910_s1 + $0x28] sm:$0xff] }
0x10bb   :  { %v2153_v11 = vadd.f32 %v2822_v55, %v2152_v3 }
0x10bc   :  { %v2142_v60 = vsel %vm2141_vm10, %v2820_v13, %v2138_v51 }
0x10bd   :  { %v3735_v1 = vsel %vm2144_vm11, %v2146_v2, %v2142_v60  ;;  %v2157_v37 = vsel %vm2156_vm14, %v2822_v55, %v2153_v11  ;;  %v3768_v55 = vld [vmem:[%s3910_s1 + $0x78] sm:$0xff]  ;;  %vm2405_vm14 = vcmask 523264  }
0x10be   :  { %v3740_v13 = vsel %vm2159_vm15, %v2161_v52, %v2157_v37  ;;  %v2518_v52 = vld [vmem:[%s3910_s1 + $0x50] sm:$0xff] }
0x1105   :  { %v2115_v48 = vpop.f32.mrf.mxu3 }
0x1106   :  { %v2202_v9 = vadd.f32 %v2115_v48, %v257_v16  ;;  %v3756_v16 = vld [vmem:[%s3910_s1 + $0x60] sm:$0xff]  ;;  %v3762_v48 = vld [vmem:[%s3910_s1 + $0x30] sm:$0xff] }
0x1108   :  { %2823 = vtanh.f32 %v2202_v9  ;;  %v2562_v32 = vmul.f32 -1.442695, %v2202_v9 }
0x110d   :  { %v2118_v5 = vpop.f32.mrf.mxu3 }
0x110e   :  { %v2824_v59 = vpop.eup %2823  ;;  %v2203_v20 = vadd.f32 %v2118_v5, %v260_v63 }
0x110f   :  { %2248 = vrot.lane.b32.xlu2 %v2824_v59, %s2992_s0 }
0x1110   :  { %2825 = vtanh.f32 %v2203_v20  ;;  %v2563_v49 = vmul.f32 -1.442695, %v2203_v20  ;;  %v552_v20 = vld [vmem:[%s3910_s1] sm:$0xff] }
0x1111   :  { %2827 = vpow2.f32 %v2562_v32  ;;  %v553_v32 = vld [vmem:[%s3910_s1 + $0x8] sm:$0xff] }
0x1114   :  { %v2171_v33 = vpop.permute.xlu1 %2170 }
0x1115   :  { %v2176_v46 = vmul.f32 %v2171_v33, %v3735_v1 }
0x1116   :  { %v2826_v30 = vpop.eup %2825 }
0x1117   :  { %2180 = vrot.lane.b32.xlu2 %v2176_v46, %s2993_s3  ;;  %2250 = vrot.lane.b32.xlu1 %v2826_v30, %s2992_s0  ;;  %v2828_v38 = vpop.eup %2827 }
0x1118   :  { %v2210_v63 = vadd.f32 1.0, %v2828_v38 }
0x111a   :  { %2829 = vrcp.f32 %v2210_v63  ;;  %v2223_v40 = vand.u32 2147483648, %v2210_v63  ;;  %vm2217_vm2 = vweird.f32 %v2210_v63  ;;  %v2221_v60 = vand.u32 2147483647, %v2210_v63 }
0x111b   :  { %2831 = vpow2.f32 %v2563_v49  ;;  %v2303_v49 = vsel %vm2302_vm8, %v552_v20, 0.0 }
0x111c   :  { %v2173_v24 = vpop.permute.xlu0 %2172  ;;  %v2224_v33 = vor.u32 1.1754944e-38, %v2223_v40  ;;  %vm2222_vm4 = vcmp.eq.f32.partialorder %v2221_v60, 8.507059e+37  ;;  %v2516_v60 = vld [vmem:[%s3910_s1 + $0x20] sm:$0xff] }
0x111d   :  { %v2177_v35 = vmul.f32 %v2173_v24, %v3740_v13 }
0x111f   :  { %814 = vperm.xlu2 %2585, %v2504_v34   ;;  %2182 = vrot.lane.b32.xlu1 %v2177_v35, %s2993_s3 }
0x1120   :  { %v2830_v5 = vpop.eup %2829 }
0x1121   :  { %v2213_v9 = vmul.f32 %v2830_v5, %v2210_v63  ;;  %vm2218_vm1 = vweird.f32 %v2830_v5  ;;  %v2832_v3 = vpop.eup %2831 }
0x1122   :  { %vm2219_vm3 = vmor %vm2217_vm2, %vm2218_vm1  ;;  %v2211_v46 = vadd.f32 1.0, %v2832_v3 }
0x1123   :  { %v2214_v51 = vsub.f32 1.0, %v2213_v9 }
0x1124   :  { %2833 = vrcp.f32 %v2211_v46  ;;  %v2238_v63 = vand.u32 2147483648, %v2211_v46  ;;  %vm2232_vm6 = vweird.f32 %v2211_v46 }
0x1125   :  { %v2215_v59 = vmul.f32 %v2830_v5, %v2214_v51 }
0x1126   :  { %v2239_v40 = vor.u32 1.1754944e-38, %v2238_v63 }
0x1127   :  { %573 = vperm.xlu1 %2584, %v3750_v8   ;;  %v2216_v54 = vadd.f32 %v2830_v5, %v2215_v59  ;;  %v2304_v59 = vsel %vm2302_vm8, %v2504_v34, 0.0  ;;  %v2507_v34 = vld [vmem:[%s3910_s1 + $0x68] sm:$0xff] }
0x1128   :  { %v2305_v3 = vadd.f32 %v2304_v59, %v2303_v49  ;;  %v2316_v49 = vsel %vm2302_vm8, %v3750_v8, 0.0  ;;  %v2318_v8 = vsel %vm2302_vm8, %v553_v32, 0.0 }
0x1129   :  { %v2220_v2 = vsel %vm2219_vm3, %v2830_v5, %v2216_v54  ;;  %v2236_v5 = vand.u32 2147483647, %v2211_v46  ;;  %v2166_v54 = vmul.f32 %v3735_v1, %v3682_v50 }
0x112a   :  { %v3777_v11 = vsel %vm2222_vm4, %v2224_v33, %v2220_v2  ;;  %v2834_v27 = vpop.eup %2833  ;;  %v2306_v2 = vsel %vm2302_vm8, %v2516_v60, 0.0 }
0x112b   :  { %v2228_v37 = vmul.f32 %v2834_v27, %v2211_v46  ;;  %vm2233_vm5 = vweird.f32 %v2834_v27  ;;  %vm2237_vm9 = vcmp.eq.f32.partialorder %v2236_v5, 8.507059e+37 }
0x112c   :  { %vm2234_vm7 = vmor %vm2232_vm6, %vm2233_vm5 }
0x112d   :  { %v2229_v24 = vsub.f32 1.0, %v2228_v37 }
0x112f   :  { %831 = vperm.xlu1 %2584, %v3756_v16   ;;  %v2230_v35 = vmul.f32 %v2834_v27, %v2229_v24 }
0x1131   :  { %v2231_v38 = vadd.f32 %v2834_v27, %v2230_v35 }
0x1133   :  { %v2235_v51 = vsel %vm2234_vm7, %v2834_v27, %v2231_v38  ;;  %v2530_v27 = vld [vmem:[%s3910_s1 + $0x40] sm:$0xff]  ;;  %v2312_v38 = vsel %vm2302_vm8, %v2518_v52, 0.0 }
0x1134   :  { %v2310_v24 = vsel %vm2302_vm8, %v2530_v27, 0.0 }
0x1137   :  { %1330 = vperm.xlu1 %2584, %v3762_v48  }
0x113f   :  { %578 = vperm.xlu1 %2584, %v3768_v55  }
0x1147   :  { %1077 = vperm.xlu1 %2584, %v3774_v45  }
0x1169   :  { %v2249_v30 = vpop.permute.xlu2 %2248 }
0x116a   :  { %v2254_v41 = vmul.f32 %v2249_v30, %v3777_v11  ;;  %v3798_v30 = vsel %vm2237_vm9, %v2239_v40, %v2235_v51  ;;  %v2531_v51 = vld [vmem:[%s3910_s1 + $0x48] sm:$0xff]  ;;  %v2529_v40 = vld [vmem:[%s3910_s1 + $0x38] sm:$0xff] }
0x116c   :  { %2258 = vrot.lane.b32.xlu0 %v2254_v41, %s2993_s3  ;;  %v2307_v41 = vadd.f32 %v2306_v2, %v2305_v3  ;;  %v2321_v2 = vsel %vm2302_vm8, %v3774_v45, 0.0  ;;  %v2167_v45 = vmul.f32 %v3740_v13, %v3688_v39 }
0x1171   :  { %v2181_v9 = vpop.permute.xlu2 %2180 }
0x1172   :  { %v2186_v33 = vadd.f32 %v2181_v9, %v2166_v54  ;;  %v2505_v54 = vld [vmem:[%s3910_s1 + $0x18] sm:$0xff] }
0x1174   :  { %556 = vperm.xlu0 %2583, %v552_v20   ;;  %v2308_v20 = vsel %vm2302_vm8, %v3762_v48, 0.0  ;;  %2835 = vtanh.f32 %v2186_v33  ;;  %v2314_v48 = vsel %vm2302_vm8, %v3756_v16, 0.0  ;;  %v2519_v16 = vld [vmem:[%s3910_s1 + $0x58] sm:$0xff] }
0x1175   :  { %v2309_v37 = vadd.f32 %v2308_v20, %v2307_v41 }
0x1177   :  { %v2311_v35 = vadd.f32 %v2310_v24, %v2309_v37 }
0x1179   :  { %v2313_v5 = vadd.f32 %v2312_v38, %v2311_v35  ;;  %v3836_v35 = vpop.permute.xlu2 %814 }
0x117a   :  { %v2836_v63 = vpop.eup %2835 }
0x117b   :  { %v2315_v9 = vadd.f32 %v2314_v48, %v2313_v5 }
0x117c   :  { %1089 = vperm.xlu0 %2583, %v2518_v52  }
0x117d   :  { %v2317_v59 = vadd.f32 %v2316_v49, %v2315_v9  ;;  %v2245_v9 = vmul.f32 %v3798_v30, %v3704_v0  ;;  %v2331_v0 = vsel %vm2302_vm8, %v3768_v55, 0.0 }
0x117f   :  { %v2333_v52 = vmax.f32 %v2317_v59, 1e-09 }
0x1184   :  { %561 = vperm.xlu0 %2583, %v553_v32   ;;  %v2244_v32 = vmul.f32 %v3777_v11, %v3694_v44  ;;  %v2329_v44 = vsel %vm2302_vm8, %v2507_v34, 0.0 }
0x1189   :  { %v2251_v46 = vpop.permute.xlu1 %2250 }
0x118a   :  { %v2255_v50 = vmul.f32 %v2251_v46, %v3798_v30  ;;  %v2323_v46 = vsel %vm2302_vm8, %v2529_v40, 0.0 }
0x118c   :  { %2260 = vrot.lane.b32.xlu2 %v2255_v50, %s2993_s3  ;;  %836 = vperm.xlu0 %2583, %v2507_v34   ;;  %v2325_v50 = vsel %vm2302_vm8, %v2531_v51, 0.0 }
0x1191   :  { %v2183_v24 = vpop.permute.xlu1 %2182 }
0x1192   :  { %v2187_v48 = vadd.f32 %v2183_v24, %v2167_v45 }
0x1194   :  { %1072 = vperm.xlu2 %2585, %v2516_v60   ;;  %2192 = vrot.lane.b32.xlu0 %v2836_v63, %s2992_s0  ;;  %v2319_v60 = vsel %vm2302_vm8, %v2505_v54, 0.0 }
0x1195   :  { %v2320_v3 = vadd.f32 %v2319_v60, %v2318_v8 }
0x1197   :  { %v2322_v33 = vadd.f32 %v2321_v2, %v2320_v3 }
0x1199   :  { %v2324_v41 = vadd.f32 %v2323_v46, %v2322_v33  ;;  %v574_v38 = vpop.permute.xlu1 %573 }
0x119a   :  { %v581_v39 = vmul.f32 %v574_v38, %v3273_v15 }
0x119b   :  { %v2326_v20 = vadd.f32 %v2325_v50, %v2324_v41 }
0x119c   :  { %1347 = vperm.xlu2 %2585, %v2530_v27   ;;  %1352 = vperm.xlu0 %2583, %v2531_v51   ;;  %v2327_v27 = vsel %vm2302_vm8, %v2519_v16, 0.0 }
0x119d   :  { %v2328_v37 = vadd.f32 %v2327_v27, %v2326_v20  ;;  %v822_v27 = vmul.f32 %v3836_v35, %v3335_v19 }
0x11a4   :  { %819 = vperm.xlu2 %2585, %v2505_v54   ;;  %2355 = vperm.xlu0 %2583, %v2333_v52   ;;  %v832_v54 = vpop.permute.xlu1 %831 }
0x11ac   :  { %1094 = vperm.xlu2 %2585, %v2519_v16   ;;  %v839_v16 = vmul.f32 %v832_v54, %v3345_v22  ;;  %v1331_v50 = vpop.permute.xlu1 %1330 }
0x11ad   :  { %v1587_v24 = vmul.f32 %v3577_v23, %v1331_v50  ;;  %v2047_v23 = vmul.f32 %v3699_v17, %v832_v54 }
0x11ae   :  { %v841_v33 = vadd.f32 %v839_v16, %v581_v39 }
0x11b4   :  { %1335 = vperm.xlu2 %2585, %v2529_v40   ;;  %v2330_v40 = vadd.f32 %v2329_v44, %v2328_v37 }
0x11b6   :  { %v2332_v34 = vadd.f32 %v2331_v0, %v2330_v40  ;;  %v579_v0 = vpop.permute.xlu1 %578 }
0x11b8   :  { %v2334_v22 = vmax.f32 %v2332_v34, 1e-09 }
0x11be   :  { %v1078_v34 = vpop.permute.xlu1 %1077 }
0x11de   :  { %v2259_v63 = vpop.permute.xlu0 %2258 }
0x11df   :  { %v2264_v5 = vadd.f32 %v2259_v63, %v2244_v32 }
0x11e1   :  { %2837 = vtanh.f32 %v2264_v5 }
0x11e2   :  { %2839 = vtanh.f32 %v2187_v48 }
0x11e6   :  { %v3844_v51 = vpop.permute.xlu0 %556  ;;  %v2261_v49 = vpop.permute.xlu2 %2260 }
0x11e7   :  { %v2838_v59 = vpop.eup %2837  ;;  %v2265_v52 = vadd.f32 %v2261_v49, %v2245_v9  ;;  %v564_v15 = vmul.f32 %v3844_v51, %v3260_v4  ;;  %v1338_v4 = vmul.f32 %v1331_v50, %v3491_v7 }
0x11e8   :  { %2270 = vrot.lane.b32.xlu1 %v2838_v59, %s2992_s0  ;;  %v2840_v8 = vpop.eup %2839 }
0x11e9   :  { %2841 = vtanh.f32 %v2265_v52  ;;  %v824_v32 = vadd.f32 %v822_v27, %v564_v15 }
0x11ee   :  { %v1090_v60 = vpop.permute.xlu0 %1089  ;;  %v1073_v3 = vpop.permute.xlu2 %1072 }
0x11ef   :  { %v2842_v2 = vpop.eup %2841  ;;  %v1097_v46 = vmul.f32 %v1090_v60, %v3417_v61  ;;  %v1080_v37 = vmul.f32 %v1073_v3, %v3407_v25  ;;  %v1819_v45 = vmul.f32 %v3649_v12, %v1073_v3 }
0x11f0   :  { %2194 = vrot.lane.b32.xlu1 %v2840_v8, %s2992_s0  ;;  %2272 = vrot.lane.b32.xlu2 %v2842_v2, %s2992_s0 }
0x11f1   :  { %v1099_v41 = vadd.f32 %v1097_v46, %v841_v33  ;;  %v1082_v5 = vadd.f32 %v1080_v37, %v824_v32  ;;  %v2398_v32 = vld [vmem:[#allocation10 + $0x28] sm:$0xff] }
0x11f3   :  { %v1340_v19 = vadd.f32 %v1338_v4, %v1082_v5 }
0x11f6   :  { %v562_v20 = vpop.permute.xlu0 %561  ;;  %v1348_v55 = vpop.permute.xlu2 %1347 }
0x11f7   :  { %v1355_v61 = vmul.f32 %v1348_v55, %v3505_v29  ;;  %v1583_v9 = vmul.f32 %v3567_v21, %v1348_v55  ;;  %v1815_v29 = vmul.f32 %v3639_v53, %v1090_v60  ;;  %v582_v53 = vmul.f32 %v579_v0, %v3277_v18 }
0x11f8   :  { %2360 = vperm.xlu1 %2584, %v2334_v22   ;;  %v1820_v22 = vmul.f32 %v3654_v47, %v1078_v34  ;;  %v565_v37 = vmul.f32 %v562_v20, %v3269_v14 }
0x11f9   :  { %v1357_v63 = vadd.f32 %v1355_v61, %v1099_v41  ;;  %v1585_v25 = vadd.f32 %v1583_v9, %v1340_v19  ;;  %v1081_v61 = vmul.f32 %v1078_v34, %v3413_v56  ;;  %v2395_v56 = vld [vmem:[#allocation10 + $0x10] sm:$0xff] }
0x11fb   :  { %v1589_v48 = vadd.f32 %v1587_v24, %v1357_v63  ;;  %v1817_v52 = vadd.f32 %v1815_v29, %v1585_v25  ;;  %v2399_v24 = vld [vmem:[#allocation10 + $0x30] sm:$0xff] }
0x11fd   :  { %v1821_v49 = vadd.f32 %v1819_v45, %v1589_v48  ;;  %v2049_v12 = vadd.f32 %v2047_v23, %v1817_v52  ;;  %v2396_v45 = vld [vmem:[#allocation10 + $0x18] sm:$0xff] }
0x11fe   :  { %v3865_v59 = vpop.permute.xlu0 %836  ;;  %v820_v7 = vpop.permute.xlu2 %819 }
0x11ff   :  { %v840_v8 = vmul.f32 %v3865_v59, %v3349_v28  ;;  %v2052_v18 = vmul.f32 %v3717_v31, %v820_v7  ;;  %v2397_v31 = vld [vmem:[#allocation10 + $0x20] sm:$0xff] }
0x1201   :  { %v842_v2 = vadd.f32 %v840_v8, %v582_v53 }
0x1206   :  { %v2193_v44 = vpop.permute.xlu0 %2192  ;;  %v1095_v21 = vpop.permute.xlu2 %1094 }
0x1207   :  { %v2198_v16 = vmul.f32 %v2193_v44, %v3735_v1  ;;  %v1098_v60 = vmul.f32 %v1095_v21, %v3434_v58  ;;  %v2400_v1 = vld [vmem:[#allocation10 + $0x38] sm:$0xff]  ;;  %v1816_v9 = vmul.f32 %v3645_v43, %v1095_v21 }
0x1208   :  { %2420 = vmatpush.msrb.mxu0 %v2400_v1 }
0x1209   :  { %v2278_v40 = vmul.f32 %v2198_v16, %v574_v38  ;;  %v1100_v38 = vadd.f32 %v1098_v60, %v842_v2 }
0x120a   :  { %2421 = vmatpush.msrb.mxu0 %v2399_v24 }
0x120b   :  { %v2280_v39 = vadd.f32 %v2278_v40, %v2049_v12 }
0x120c   :  { %2422 = vmatpush.msrb.mxu0 %v2398_v32 }
0x120d   :  { %2337 = vrot.lane.b32.xlu2 %v2280_v39, %s2993_s3 }
0x120e   :  { %v1353_v3 = vpop.permute.xlu0 %1352  ;;  %v1336_v54 = vpop.permute.xlu2 %1335  ;;  %2423 = vmatpush.msrb.mxu0 %v2397_v31 }
0x120f   :  { %v1356_v17 = vmul.f32 %v1353_v3, %v3509_v26  ;;  %v1588_v46 = vmul.f32 %v3581_v42, %v1336_v54  ;;  %v823_v26 = vmul.f32 %v820_v7, %v3341_v10  ;;  %v1339_v47 = vmul.f32 %v1336_v54, %v3501_v36 }
0x1210   :  { %v2051_v10 = vmul.f32 %v3713_v62, %v3836_v35  ;;  %v1584_v14 = vmul.f32 %v3573_v6, %v1353_v3  ;;  %2424 = vmatpush.msrb.mxu0 %v2396_v45  ;;  %v2048_v6 = vmul.f32 %v3709_v57, %v3865_v59 }
0x1211   :  { %v1358_v33 = vadd.f32 %v1356_v17, %v1100_v38  ;;  %v825_v42 = vadd.f32 %v823_v26, %v565_v37 }
0x1212   :  { %v2053_v4 = vadd.f32 %v2051_v10, %v1821_v49  ;;  %2425 = vmatpush.msrb.mxu0 %v2395_v56  ;;  %v2393_v49 = vld [vmem:[#allocation10] sm:$0xff] }
0x1213   :  { %v1590_v41 = vadd.f32 %v1588_v46, %v1358_v33  ;;  %v1083_v63 = vadd.f32 %v1081_v61, %v825_v42 }
0x1215   :  { %v1822_v28 = vadd.f32 %v1820_v22, %v1590_v41 }
0x1216   :  { %v2356_v43 = vpop.permute.xlu0 %2355 }
0x1217   :  { %v2054_v55 = vadd.f32 %v2052_v18, %v1822_v28  ;;  %2843 = vrcp.f32 %v2356_v43  ;;  %vm2368_vm10 = vweird.f32 %v2356_v43  ;;  %v2372_v21 = vand.u32 2147483647, %v2356_v43 }
0x1219   :  { %vm2373_vm13 = vcmp.eq.f32.partialorder %v2372_v21, 8.507059e+37 }
0x121d   :  { %v2844_v23 = vpop.eup %2843 }
0x121e   :  { %v2364_v16 = vmul.f32 %v2844_v23, %v2356_v43  ;;  %vm2369_vm11 = vweird.f32 %v2844_v23 }
0x121f   :  { %vm2370_vm12 = vmor %vm2368_vm10, %vm2369_vm11 }
0x1220   :  { %v2365_v40 = vsub.f32 1.0, %v2364_v16 }
0x1222   :  { %v2366_v57 = vmul.f32 %v2844_v23, %v2365_v40 }
0x1224   :  { %v2367_v7 = vadd.f32 %v2844_v23, %v2366_v57 }
0x1226   :  { %v2371_v3 = vsel %vm2370_vm12, %v2844_v23, %v2367_v7 }
0x124a   :  { %v2273_v50 = vpop.permute.xlu2 %2272 }
0x124b   :  { %v2277_v58 = vmul.f32 %v2273_v50, %v3798_v30  ;;  %v1341_v30 = vadd.f32 %v1339_v47, %v1083_v63 }
0x124d   :  { %v2283_v15 = vmul.f32 %v2277_v58, %v562_v20  ;;  %v1586_v48 = vadd.f32 %v1584_v14, %v1341_v30  ;;  %v2586_v58 = vld [vmem:[%s3916_s7] ss:$0 sm:$0xff] }
0x124f   :  { %v2285_v27 = vadd.f32 %v2283_v15, %v2054_v55  ;;  %v1818_v25 = vadd.f32 %v1816_v9, %v1586_v48 }
0x1251   :  { %2347 = vrot.lane.b32.xlu2 %v2285_v27, %s2992_s0  ;;  %v2050_v35 = vadd.f32 %v2048_v6, %v1818_v25 }
0x125a   :  { %v2271_v5 = vpop.permute.xlu1 %2270 }
0x125b   :  { %v2276_v20 = vmul.f32 %v2271_v5, %v3777_v11 }
0x125d   :  { %v2282_v36 = vmul.f32 %v2276_v20, %v3844_v51  ;;  %v2394_v51 = vld [vmem:[#allocation10 + $0x8] sm:$0xff] }
0x125e   :  { %2426 = vmatpush.msrb.mxu0 %v2394_v51 }
0x125f   :  { %v2284_v19 = vadd.f32 %v2282_v36, %v2053_v4 }
0x1260   :  { %2427 = vmatpush.msrb.mxu0 %v2393_v49 }
0x1261   :  { %2345 = vrot.lane.b32.xlu0 %v2284_v19, %s2992_s0 }
0x1262   :  { %v2195_v29 = vpop.permute.xlu1 %2194 }
0x1263   :  { %v2199_v62 = vmul.f32 %v2195_v29, %v3740_v13  ;;  %v2374_v13 = vand.u32 2147483648, %v2356_v43 }
0x1265   :  { %v2279_v11 = vmul.f32 %v2199_v62, %v579_v0  ;;  %v2375_v0 = vor.u32 1.1754944e-38, %v2374_v13 }
0x1267   :  { %v2281_v52 = vadd.f32 %v2279_v11, %v2050_v35  ;;  %v2338_v53 = vpop.permute.xlu2 %2337  ;;  %v2376_v2 = vsel %vm2373_vm13, %v2375_v0, %v2371_v3 }
0x1269   :  { %2339 = vrot.lane.b32.xlu1 %v2281_v52, %s2993_s3  ;;  %s2995_s3 = smov [#allocation12]  }
0x126a   :  { %v2361_v44 = vpop.permute.xlu1 %2360  ;;  %s2441_s2 = sshll.u32 %s2995_s3, 4  ;;  %s2442_s2 = int_to_ptr.vmem [resolvable:$true] %s2441_s2 }
0x126b   :  { %2845 = vrcp.f32 %v2361_v44  ;;  %v2389_v54 = vand.u32 2147483648, %v2361_v44  ;;  %vm2383_vm1 = vweird.f32 %v2361_v44  ;;  %v2387_v33 = vand.u32 2147483647, %v2361_v44 }
0x126d   :  { %v2390_v34 = vor.u32 1.1754944e-38, %v2389_v54  ;;  %vm2388_vm3 = vcmp.eq.f32.partialorder %v2387_v33, 8.507059e+37 }
0x1271   :  { %v2846_v12 = vpop.eup %2845 }
0x1272   :  { %v2379_v59 = vmul.f32 %v2846_v12, %v2361_v44  ;;  %vm2384_vm15 = vweird.f32 %v2846_v12 }
0x1273   :  { %vm2385_vm2 = vmor %vm2383_vm1, %vm2384_vm15 }
0x1274   :  { %v2380_v39 = vsub.f32 1.0, %v2379_v59 }
0x1276   :  { %v2381_v8 = vmul.f32 %v2846_v12, %v2380_v39 }
0x1278   :  { %v2382_v38 = vadd.f32 %v2846_v12, %v2381_v8 }
0x127a   :  { %v2386_v46 = vsel %vm2385_vm2, %v2846_v12, %v2382_v38 }
0x127b   :  { %v2391_v28 = vsel %vm2388_vm3, %v2390_v34, %v2386_v46 }
0x12ab   :  { %v2348_v41 = vpop.permute.xlu2 %2347 }
0x12d3   :  { %v2346_v60 = vpop.permute.xlu0 %2345 }
0x12d4   :  { %v2351_v17 = vsel %vm125_vm0, %v2338_v53, %v2346_v60 }
0x12d5   :  { %v2377_v1 = vmul.f32 %v2376_v2, %v2351_v17 }
0x12d7   :  { %2564 = vmatmul.msk.f32.vlgmr.msrb.gmra.mxu0 %vm2405_vm14, %v2377_v1 }
0x12db   :  { %v2340_v22 = vpop.permute.xlu1 %2339 }
0x12dc   :  { %v2352_v50 = vsel %vm125_vm0, %v2340_v22, %v2348_v41 }
0x12dd   :  { %v2392_v18 = vmul.f32 %v2391_v28, %v2352_v50 }
0x12df   :  { %2565 = vmatmul.msk.f32.gmra.mxu0 %vm2405_vm14, %v2392_v18 }
0x1354   :  { %v2429_v15 = vpop.f32.mrf.mxu0 }
0x1355   :  { %v2430_v55 = vadd.f32 %v2586_v58, %v2429_v15 }
0x1357   :  { %2435 = vst [vmem:[#allocation12] sm:$0xff] %v2430_v55 }
0x135c   :  { %v2432_v26 = vpop.f32.mrf.mxu0 }
0x135d   :  { %v2433_v27 = vadd.f32 %v2586_v58, %v2432_v26 }
0x135f   :  { %2436 = vst [vmem:[#allocation12 + $0x8] sm:$0xff] %v2433_v27 }
0x1360   :  { %2449 = dma.vmem_to_hbm [thread:$0]  %s2442_s2, 256, %s2444_s24, [#allocation6], %s2984_s13, %s2984_s13, %s2985_s14  }
0x1361   :  { %2981 = dma.done.wait [#allocation6], 256  }
0x1362   :  { %2982 = vsyncadd [#allocation6], 4294967040 }
0x1363   :  { %2454 = vsyncpa [#allocation5], 1 }
0x1364   :  { %2455 = vsyncpa [#allocation8], 1 }
0x1365   :  { %2456 = vsyncpa [#allocation11], 1 }
0x1366   :  { %2457 = vsyncpa [#allocation6], 1 }

</bundles_post_ra>
